<compile_context>
chip_gen: v7x
topology: tpu7x:2x2x1
jax: 0.10.0
libtpu: 0.0.40
codegen_flags: <defaults>
</compile_context>

<pallas_src>
import functools

import jax
import jax.numpy as jnp
from jax import lax
from jax.experimental import pallas as pl
from jax.experimental.pallas import tpu as pltpu


def _basic_block_kernel(x_ref, w1_ref, s1_ref, b1_ref, w2_ref, s2_ref, b2_ref,
                        o_ref, xpad3_ref, mid3_ref, *, H, W, Wp, C, TH):
    # x_ref     : (1, H, W, C)      bf16, whole image, resident across the row-tile axis
    # w1/w2_ref : (9*C, C)          bf16, conv weights in im2col (kh, kw, cin)-major order
    # s*/b*     : (1, C)            f32, folded BatchNorm scale / bias
    # o_ref     : (1, TH, W, C)     bf16, output row tile
    # xpad3_ref : (3, H+4, Wp, C)   bf16 scratch: xpad3[kw, a, b, :] == x[a-2, b+kw-1, :]
    #                               (zero-extended outside the image)
    # mid3_ref  : (3, TH+2, Wp, C)  bf16 scratch: mid3[kw, a, b, :] == relu(bn1(conv1(x))) at
    #                               image row r0-1+a, column b+kw-1 (zero-extended)
    TH2 = TH + 2
    r = pl.program_id(1)
    num_r = pl.num_programs(1)
    r0 = pl.multiple_of(r * TH, TH)
    bf16 = jnp.bfloat16

    # ---- once per image: build the kw-shifted, zero-padded input planes in VMEM ----
    @pl.when(r == 0)
    def _():
        img = x_ref[0]                                               # (H, W, C) bf16
        for kw in range(3):
            # zero only the halo: 2 top rows, 2 bottom rows, column 0, columns W-1..Wp-1
            xpad3_ref[kw, 0:2, :, :] = jnp.zeros((2, Wp, C), bf16)
            xpad3_ref[kw, H + 2:H + 4, :, :] = jnp.zeros((2, Wp, C), bf16)
            xpad3_ref[kw, :, 0:1, :] = jnp.zeros((H + 4, 1, C), bf16)
            xpad3_ref[kw, :, W - 1:Wp, :] = jnp.zeros((H + 4, Wp - W + 1, C), bf16)
            mid3_ref[kw, :, 0:1, :] = jnp.zeros((TH + 2, 1, C), bf16)
            mid3_ref[kw, :, W - 1:Wp, :] = jnp.zeros((TH + 2, Wp - W + 1, C), bf16)
        # plane kw holds the image shifted by (kw - 1) columns; these one-time shifted stores
        # replace the per-tile unaligned im2col slices with aligned row slabs.
        xpad3_ref[1, 2:H + 2, 0:W, :] = img
        xpad3_ref[0, 2:H + 2, 1:W + 1, :] = img
        xpad3_ref[2, 2:H + 2, 0:W - 1, :] = img[:, 1:W, :]

    # ---- conv1 over TH+2 rows (1-row halo each side for conv2): single K=9C matmul ----
    planes1 = [xpad3_ref[kw, pl.ds(r0, TH + 4), :, :] for kw in range(3)]   # aligned slabs
    taps1 = [planes1[kw][kh:kh + TH2].reshape(TH2 * Wp, C)
             for kh in range(3) for kw in range(3)]
    patches1 = jnp.concatenate(taps1, axis=-1)                              # (TH2*Wp, 9C)
    acc1 = jnp.dot(patches1, w1_ref[...], preferred_element_type=jnp.float32)

    # bn1 (folded) + relu, staged as three kw-shifted planes (conv2's padded input)
    mid = jnp.maximum(acc1 * s1_ref[0] + b1_ref[0], 0.0).astype(bf16).reshape(TH2, Wp, C)
    mid3_ref[1, 0:TH2, 0:W, :] = mid[:, 0:W, :]
    mid3_ref[0, 0:TH2, 1:W + 1, :] = mid[:, 0:W, :]
    mid3_ref[2, 0:TH2, 0:W - 1, :] = mid[:, 1:W, :]

    # halo rows that fall outside the image are conv2's zero padding (first / last tile only)
    @pl.when(r == 0)
    def _():
        for kw in range(3):
            mid3_ref[kw, 0:1, :, :] = jnp.zeros((1, Wp, C), bf16)

    @pl.when(r == num_r - 1)
    def _():
        for kw in range(3):
            mid3_ref[kw, TH + 1:TH + 2, :, :] = jnp.zeros((1, Wp, C), bf16)

    # ---- conv2 over the TH output rows: single K=9C matmul from aligned slabs ----
    planes2 = [mid3_ref[kw] for kw in range(3)]
    taps2 = [planes2[kw][kh:kh + TH].reshape(TH * Wp, C)
             for kh in range(3) for kw in range(3)]
    patches2 = jnp.concatenate(taps2, axis=-1)                              # (TH*Wp, 9C)
    acc2 = jnp.dot(patches2, w2_ref[...], preferred_element_type=jnp.float32)

    # ---- bn2 (folded) + residual + relu, drop the Wp-W pad columns, single write-back ----
    out = (acc2 * s2_ref[0] + b2_ref[0]).reshape(TH, Wp, C)[:, 0:W, :]
    res = x_ref[0, pl.ds(r0, TH), :, :].astype(jnp.float32)
    o_ref[0] = jnp.maximum(out + res, 0.0).astype(o_ref.dtype)


def basic_block_pallas_nhwc(x_nhwc, w1_k, s1, b1, w2_k, s2, b2, *, row_tile_cap=64):
    """NHWC / bf16 entry point (preferred inside a fused network: no layout transposes)."""
    N, H, W, C = x_nhwc.shape
    assert W >= 2, "kernel assumes W >= 2"
    Wp = ((W + 1 + 7) // 8) * 8            # padded width: >= W+1, sublane aligned

    try:                                   # chip-aware budget (v5e/v6e: 128 MiB, v7x: 64 MiB)
        phys_vmem = int(pltpu.get_tpu_info().vmem_capacity_bytes)
    except Exception:
        phys_vmem = 64 * 1024 * 1024       # conservative fallback (v7x per-core size)
    budget = (phys_vmem * 3) // 4          # leave headroom for compiler-internal scratch

    pad8 = lambda v: ((v + 7) // 8) * 8
    pad128 = lambda v: ((v + 127) // 128) * 128
    Cv, Wv, Kv = pad128(C), pad8(W), pad128(9 * C)

    def vmem_bytes(th):
        est = 2 * H * Wv * Cv * 2                            # x block (double buffered), bf16
        est += 2 * th * Wv * Cv * 2                          # out block, bf16
        est += 2 * 2 * pad8(9 * C) * Cv * 2                  # w1 + w2 blocks, bf16
        est += 2 * 4 * 8 * Cv * 4                            # scales / biases, f32
        est += 3 * (H + 4) * Wp * Cv * 2                     # xpad3 scratch
        est += 3 * (th + 2) * Wp * Cv * 2                    # mid3 scratch
        est += (th + 2) * Wp * (Kv * 2 + Cv * 4 + Cv * 2)    # conv1 patches / acc / mid temps
        est += th * Wp * (Kv * 2 + Cv * 4)                   # conv2 patches / acc temps
        return est

    cap = min(row_tile_cap, H)
    divisors = sorted((d for d in range(1, H + 1) if H % d == 0 and d <= cap), reverse=True)
    TH = divisors[-1]                                        # fallback: smallest divisor
    for cand in divisors:                                    # largest row tile that fits
        if vmem_bytes(cand) <= budget:
            TH = cand
            break
    vmem_limit = int(min(budget, max(vmem_bytes(TH) + vmem_bytes(TH) // 4, 16 * 1024 * 1024)))

    kernel = functools.partial(_basic_block_kernel, H=H, W=W, Wp=Wp, C=C, TH=TH)

    return pl.pallas_call(
        kernel,
        out_shape=jax.ShapeDtypeStruct((N, H, W, C), jnp.bfloat16),
        grid_spec=pltpu.PrefetchScalarGridSpec(
            num_scalar_prefetch=0,
            grid=(N, H // TH),
            in_specs=[
                pl.BlockSpec((1, H, W, C), lambda n, r: (n, 0, 0, 0)),  # x: resident per image
                pl.BlockSpec((9 * C, C), lambda n, r: (0, 0)),          # conv1 weights
                pl.BlockSpec((1, C), lambda n, r: (0, 0)),              # bn1 scale
                pl.BlockSpec((1, C), lambda n, r: (0, 0)),              # bn1 bias
                pl.BlockSpec((9 * C, C), lambda n, r: (0, 0)),          # conv2 weights
                pl.BlockSpec((1, C), lambda n, r: (0, 0)),              # bn2 scale
                pl.BlockSpec((1, C), lambda n, r: (0, 0)),              # bn2 bias
            ],
            out_specs=pl.BlockSpec((1, TH, W, C), lambda n, r: (n, r, 0, 0)),
            scratch_shapes=[
                pltpu.VMEM((3, H + 4, Wp, C), jnp.bfloat16),   # kw-shifted padded input planes
                pltpu.VMEM((3, TH + 2, Wp, C), jnp.bfloat16),  # kw-shifted conv1->conv2 staging
            ]),
        compiler_params=pltpu.CompilerParams(
            # Batch axis parallel (feeds both v7x TensorCores when N >= 2); the row-tile axis
            # reuses the per-image padded-input scratch, so it must stay sequential.
            dimension_semantics=("parallel", "arbitrary"),
            vmem_limit_bytes=vmem_limit),
    )(x_nhwc, w1_k, s1, b1, w2_k, s2, b2)


def basic_block_pallas(x_nchw, w1, g1, be1, m1, v1, w2, g2, be2, m2, v2,
                       eps=1e-5, row_tile_cap=64):
    """Drop-in BasicBlock forward (stride=1, downsample=None, eval-mode BN), NCHW f32 in/out.

    Inside a full network prefer basic_block_pallas_nhwc (NHWC/bf16) so the NCHW<->NHWC
    transposes and f32<->bf16 casts do not add extra HBM passes around every block.
    """
    N, C, H, W = x_nchw.shape
    assert w1.shape == (C, C, 3, 3) and w2.shape == (C, C, 3, 3), \
        "default BasicBlock config requires inplanes == planes"

    x_nhwc = jnp.transpose(x_nchw, (0, 2, 3, 1)).astype(jnp.bfloat16)

    def _im2col_w(w):   # OIHW -> (kh, kw, cin, cout) -> (9*Cin, Cout): matches in-kernel order
        return jnp.transpose(w, (2, 3, 1, 0)).reshape(9 * C, C).astype(jnp.bfloat16)

    def _fold_bn(g, b, m, v):   # eval-mode BN -> per-channel scale / bias (f32)
        s = (g / jnp.sqrt(v + eps)).astype(jnp.float32)
        bias = b.astype(jnp.float32) - m.astype(jnp.float32) * s
        return s.reshape(1, C), bias.reshape(1, C)

    s1, b1 = _fold_bn(g1, be1, m1, v1)
    s2, b2 = _fold_bn(g2, be2, m2, v2)

    out_nhwc = basic_block_pallas_nhwc(x_nhwc, _im2col_w(w1), s1, b1, _im2col_w(w2), s2, b2,
                                       row_tile_cap=row_tile_cap)
    # bf16 kernel output -> f32 NCHW to match the PyTorch module interface.
    return jnp.transpose(out_nhwc.astype(jnp.float32), (0, 3, 1, 2))


def _reference(x, w1, g1, be1, m1, v1, w2, g2, be2, m2, v2, eps=1e-5):
    """Pure-JAX reference (NCHW) mirroring the PyTorch forward (eval-mode BN)."""
    def conv(x, w):
        return lax.conv_general_dilated(
            x, w, window_strides=(1, 1), padding=((1, 1), (1, 1)),
            dimension_numbers=("NCHW", "OIHW", "NCHW"))

    def bn(x, g, b, m, v):
        g = g.reshape(1, -1, 1, 1); b = b.reshape(1, -1, 1, 1)
        m = m.reshape(1, -1, 1, 1); v = v.reshape(1, -1, 1, 1)
        return (x - m) / jnp.sqrt(v + eps) * g + b

    out = jnp.maximum(bn(conv(x, w1), g1, be1, m1, v1), 0.0)
    out = bn(conv(out, w2), g2, be2, m2, v2) + x
    return jnp.maximum(out, 0.0)


if __name__ == "__main__":
    key = jax.random.PRNGKey(0)
    N, C, H, W = 2, 32, 16, 16  # inplanes == planes, stride=1, downsample=None

    keys = jax.random.split(key, 11)
    x = jax.random.normal(keys[0], (N, C, H, W), jnp.float32)

    w1 = jax.random.normal(keys[1], (C, C, 3, 3), jnp.float32) * 0.1
    w2 = jax.random.normal(keys[2], (C, C, 3, 3), jnp.float32) * 0.1

    g1 = 1.0 + 0.1 * jax.random.normal(keys[3], (C,), jnp.float32)
    be1 = 0.1 * jax.random.normal(keys[4], (C,), jnp.float32)
    m1 = 0.1 * jax.random.normal(keys[5], (C,), jnp.float32)
    v1 = 1.0 + 0.1 * jax.random.uniform(keys[6], (C,), jnp.float32)

    g2 = 1.0 + 0.1 * jax.random.normal(keys[7], (C,), jnp.float32)
    be2 = 0.1 * jax.random.normal(keys[8], (C,), jnp.float32)
    m2 = 0.1 * jax.random.normal(keys[9], (C,), jnp.float32)
    v2 = 1.0 + 0.1 * jax.random.uniform(keys[10], (C,), jnp.float32)

    out = basic_block_pallas(x, w1, g1, be1, m1, v1, w2, g2, be2, m2, v2)
    out = jax.block_until_ready(out)

    # Reference on the same bf16-rounded inputs (kernel computes in bf16 with f32 accumulation
    # and emits bf16 that is cast back to f32 in the wrapper).
    xq = x.astype(jnp.bfloat16).astype(jnp.float32)
    w1q = w1.astype(jnp.bfloat16).astype(jnp.float32)
    w2q = w2.astype(jnp.bfloat16).astype(jnp.float32)
    ref = _reference(xq, w1q, g1, be1, m1, v1, w2q, g2, be2, m2, v2)

    assert out.shape == (N, C, H, W)
    max_err = jnp.max(jnp.abs(out - ref))
    assert jnp.allclose(out, ref, atol=5e-2, rtol=5e-2), f"mismatch vs reference (max err {max_err})"

    print("KERNEL_OK")
</pallas_src>

<mosaic_0001>
module attributes {stable_mosaic.version = 11 : i64} {
  func.func @_basic_block_kernel(%arg0: i32, %arg1: i32, %arg2: memref<1x16x16x32xbf16, #tpu.memory_space<vmem>>, %arg3: memref<288x32xbf16, #tpu.memory_space<vmem>>, %arg4: memref<1x32xf32, #tpu.memory_space<vmem>>, %arg5: memref<1x32xf32, #tpu.memory_space<vmem>>, %arg6: memref<288x32xbf16, #tpu.memory_space<vmem>>, %arg7: memref<1x32xf32, #tpu.memory_space<vmem>>, %arg8: memref<1x32xf32, #tpu.memory_space<vmem>>, %arg9: memref<1x16x16x32xbf16, #tpu.memory_space<vmem>>, %arg10: memref<3x20x24x32xbf16, #tpu.memory_space<vmem>>, %arg11: memref<3x18x24x32xbf16, #tpu.memory_space<vmem>>) attributes {dimension_semantics = [#tpu.dimension_semantics<parallel>, #tpu.dimension_semantics<arbitrary>], iteration_bounds = array<i64: 2, 1>, scalar_prefetch = 0 : i64, scratch_operands = 2 : i64, tpu.core_type = #tpu.core_type<tc>, window_params = [{transform_indices = @transform_0, window_bounds = array<i64: 1, 16, 16, 32>}, {pipeline_mode = #tpu.pipeline_mode<synchronous>, transform_indices = @transform_1, window_bounds = array<i64: 288, 32>}, {pipeline_mode = #tpu.pipeline_mode<synchronous>, transform_indices = @transform_2, window_bounds = array<i64: 1, 32>}, {pipeline_mode = #tpu.pipeline_mode<synchronous>, transform_indices = @transform_3, window_bounds = array<i64: 1, 32>}, {pipeline_mode = #tpu.pipeline_mode<synchronous>, transform_indices = @transform_4, window_bounds = array<i64: 288, 32>}, {pipeline_mode = #tpu.pipeline_mode<synchronous>, transform_indices = @transform_5, window_bounds = array<i64: 1, 32>}, {pipeline_mode = #tpu.pipeline_mode<synchronous>, transform_indices = @transform_6, window_bounds = array<i64: 1, 32>}, {transform_indices = @transform_7, window_bounds = array<i64: 1, 16, 16, 32>}]} {
    %c16_i32 = arith.constant 16 : i32
    %0 = arith.muli %arg1, %c16_i32 : i32
    %1 = tpu.assume_multiple %0, 16 : i32
    %c0_i32 = arith.constant 0 : i32
    %2 = arith.cmpi eq, %arg1, %c0_i32 : i32
    %3 = arith.extui %2 : i1 to i32
    %c0_i32_0 = arith.constant 0 : i32
    %4 = arith.cmpi ne, %3, %c0_i32_0 : i32
    scf.if %4 {
      %c0_57 = arith.constant 0 : index
      %c0_58 = arith.constant 0 : index
      %c0_59 = arith.constant 0 : index
      %c0_60 = arith.constant 0 : index
      %117 = vector.load %arg2[%c0_57, %c0_58, %c0_59, %c0_60] : memref<1x16x16x32xbf16, #tpu.memory_space<vmem>>, vector<1x16x16x32xbf16>
      %118 = vector.shape_cast %117 : vector<1x16x16x32xbf16> to vector<16x16x32xbf16>
      %cst_61 = arith.constant 0.000000e+00 : bf16
      %119 = vector.broadcast %cst_61 : bf16 to vector<2x24x32xbf16>
      %c0_62 = arith.constant 0 : index
      %c0_63 = arith.constant 0 : index
      %c0_64 = arith.constant 0 : index
      %c0_65 = arith.constant 0 : index
      %120 = vector.load %arg10[%c0_62, %c0_63, %c0_64, %c0_65] : memref<3x20x24x32xbf16, #tpu.memory_space<vmem>>, vector<1x2x24x32xbf16>
      %121 = vector.shape_cast %120 : vector<1x2x24x32xbf16> to vector<2x24x32xbf16>
      %122 = vector.shape_cast %119 : vector<2x24x32xbf16> to vector<1x2x24x32xbf16>
      tpu.vector_store %arg10[%c0_62, %c0_63, %c0_64, %c0_65], %122 {strides = array<i32>} : memref<3x20x24x32xbf16, #tpu.memory_space<vmem>>, vector<1x2x24x32xbf16>,
      %cst_66 = arith.constant 0.000000e+00 : bf16
      %123 = vector.broadcast %cst_66 : bf16 to vector<2x24x32xbf16>
      %c0_67 = arith.constant 0 : index
      %c18 = arith.constant 18 : index
      %c0_68 = arith.constant 0 : index
      %c0_69 = arith.constant 0 : index
      %124 = vector.load %arg10[%c0_67, %c18, %c0_68, %c0_69] : memref<3x20x24x32xbf16, #tpu.memory_space<vmem>>, vector<1x2x24x32xbf16>
      %125 = vector.shape_cast %124 : vector<1x2x24x32xbf16> to vector<2x24x32xbf16>
      %126 = vector.shape_cast %123 : vector<2x24x32xbf16> to vector<1x2x24x32xbf16>
      tpu.vector_store %arg10[%c0_67, %c18, %c0_68, %c0_69], %126 {strides = array<i32>} : memref<3x20x24x32xbf16, #tpu.memory_space<vmem>>, vector<1x2x24x32xbf16>,
      %cst_70 = arith.constant 0.000000e+00 : bf16
      %127 = vector.broadcast %cst_70 : bf16 to vector<20x1x32xbf16>
      %c0_71 = arith.constant 0 : index
      %c0_72 = arith.constant 0 : index
      %c0_73 = arith.constant 0 : index
      %c0_74 = arith.constant 0 : index
      %128 = vector.load %arg10[%c0_71, %c0_72, %c0_73, %c0_74] : memref<3x20x24x32xbf16, #tpu.memory_space<vmem>>, vector<1x20x1x32xbf16>
      %129 = vector.shape_cast %128 : vector<1x20x1x32xbf16> to vector<20x1x32xbf16>
      %130 = vector.shape_cast %127 : vector<20x1x32xbf16> to vector<1x20x1x32xbf16>
      tpu.vector_store %arg10[%c0_71, %c0_72, %c0_73, %c0_74], %130 {strides = array<i32>} : memref<3x20x24x32xbf16, #tpu.memory_space<vmem>>, vector<1x20x1x32xbf16>,
      %cst_75 = arith.constant 0.000000e+00 : bf16
      %131 = vector.broadcast %cst_75 : bf16 to vector<20x9x32xbf16>
      %c0_76 = arith.constant 0 : index
      %c0_77 = arith.constant 0 : index
      %c15 = arith.constant 15 : index
      %c0_78 = arith.constant 0 : index
      %132 = vector.load %arg10[%c0_76, %c0_77, %c15, %c0_78] : memref<3x20x24x32xbf16, #tpu.memory_space<vmem>>, vector<1x20x9x32xbf16>
      %133 = vector.shape_cast %132 : vector<1x20x9x32xbf16> to vector<20x9x32xbf16>
      %134 = vector.shape_cast %131 : vector<20x9x32xbf16> to vector<1x20x9x32xbf16>
      tpu.vector_store %arg10[%c0_76, %c0_77, %c15, %c0_78], %134 {strides = array<i32>} : memref<3x20x24x32xbf16, #tpu.memory_space<vmem>>, vector<1x20x9x32xbf16>,
      %cst_79 = arith.constant 0.000000e+00 : bf16
      %135 = vector.broadcast %cst_79 : bf16 to vector<18x1x32xbf16>
      %c0_80 = arith.constant 0 : index
      %c0_81 = arith.constant 0 : index
      %c0_82 = arith.constant 0 : index
      %c0_83 = arith.constant 0 : index
      %136 = vector.load %arg11[%c0_80, %c0_81, %c0_82, %c0_83] : memref<3x18x24x32xbf16, #tpu.memory_space<vmem>>, vector<1x18x1x32xbf16>
      %137 = vector.shape_cast %136 : vector<1x18x1x32xbf16> to vector<18x1x32xbf16>
      %138 = vector.shape_cast %135 : vector<18x1x32xbf16> to vector<1x18x1x32xbf16>
      tpu.vector_store %arg11[%c0_80, %c0_81, %c0_82, %c0_83], %138 {strides = array<i32>} : memref<3x18x24x32xbf16, #tpu.memory_space<vmem>>, vector<1x18x1x32xbf16>,
      %cst_84 = arith.constant 0.000000e+00 : bf16
      %139 = vector.broadcast %cst_84 : bf16 to vector<18x9x32xbf16>
      %c0_85 = arith.constant 0 : index
      %c0_86 = arith.constant 0 : index
      %c15_87 = arith.constant 15 : index
      %c0_88 = arith.constant 0 : index
      %140 = vector.load %arg11[%c0_85, %c0_86, %c15_87, %c0_88] : memref<3x18x24x32xbf16, #tpu.memory_space<vmem>>, vector<1x18x9x32xbf16>
      %141 = vector.shape_cast %140 : vector<1x18x9x32xbf16> to vector<18x9x32xbf16>
      %142 = vector.shape_cast %139 : vector<18x9x32xbf16> to vector<1x18x9x32xbf16>
      tpu.vector_store %arg11[%c0_85, %c0_86, %c15_87, %c0_88], %142 {strides = array<i32>} : memref<3x18x24x32xbf16, #tpu.memory_space<vmem>>, vector<1x18x9x32xbf16>,
      %cst_89 = arith.constant 0.000000e+00 : bf16
      %143 = vector.broadcast %cst_89 : bf16 to vector<2x24x32xbf16>
      %c1_90 = arith.constant 1 : index
      %c0_91 = arith.constant 0 : index
      %c0_92 = arith.constant 0 : index
      %c0_93 = arith.constant 0 : index
      %144 = vector.load %arg10[%c1_90, %c0_91, %c0_92, %c0_93] : memref<3x20x24x32xbf16, #tpu.memory_space<vmem>>, vector<1x2x24x32xbf16>
      %145 = vector.shape_cast %144 : vector<1x2x24x32xbf16> to vector<2x24x32xbf16>
      %146 = vector.shape_cast %143 : vector<2x24x32xbf16> to vector<1x2x24x32xbf16>
      tpu.vector_store %arg10[%c1_90, %c0_91, %c0_92, %c0_93], %146 {strides = array<i32>} : memref<3x20x24x32xbf16, #tpu.memory_space<vmem>>, vector<1x2x24x32xbf16>,
      %cst_94 = arith.constant 0.000000e+00 : bf16
      %147 = vector.broadcast %cst_94 : bf16 to vector<2x24x32xbf16>
      %c1_95 = arith.constant 1 : index
      %c18_96 = arith.constant 18 : index
      %c0_97 = arith.constant 0 : index
      %c0_98 = arith.constant 0 : index
      %148 = vector.load %arg10[%c1_95, %c18_96, %c0_97, %c0_98] : memref<3x20x24x32xbf16, #tpu.memory_space<vmem>>, vector<1x2x24x32xbf16>
      %149 = vector.shape_cast %148 : vector<1x2x24x32xbf16> to vector<2x24x32xbf16>
      %150 = vector.shape_cast %147 : vector<2x24x32xbf16> to vector<1x2x24x32xbf16>
      tpu.vector_store %arg10[%c1_95, %c18_96, %c0_97, %c0_98], %150 {strides = array<i32>} : memref<3x20x24x32xbf16, #tpu.memory_space<vmem>>, vector<1x2x24x32xbf16>,
      %cst_99 = arith.constant 0.000000e+00 : bf16
      %151 = vector.broadcast %cst_99 : bf16 to vector<20x1x32xbf16>
      %c1_100 = arith.constant 1 : index
      %c0_101 = arith.constant 0 : index
      %c0_102 = arith.constant 0 : index
      %c0_103 = arith.constant 0 : index
      %152 = vector.load %arg10[%c1_100, %c0_101, %c0_102, %c0_103] : memref<3x20x24x32xbf16, #tpu.memory_space<vmem>>, vector<1x20x1x32xbf16>
      %153 = vector.shape_cast %152 : vector<1x20x1x32xbf16> to vector<20x1x32xbf16>
      %154 = vector.shape_cast %151 : vector<20x1x32xbf16> to vector<1x20x1x32xbf16>
      tpu.vector_store %arg10[%c1_100, %c0_101, %c0_102, %c0_103], %154 {strides = array<i32>} : memref<3x20x24x32xbf16, #tpu.memory_space<vmem>>, vector<1x20x1x32xbf16>,
      %cst_104 = arith.constant 0.000000e+00 : bf16
      %155 = vector.broadcast %cst_104 : bf16 to vector<20x9x32xbf16>
      %c1_105 = arith.constant 1 : index
      %c0_106 = arith.constant 0 : index
      %c15_107 = arith.constant 15 : index
      %c0_108 = arith.constant 0 : index
      %156 = vector.load %arg10[%c1_105, %c0_106, %c15_107, %c0_108] : memref<3x20x24x32xbf16, #tpu.memory_space<vmem>>, vector<1x20x9x32xbf16>
      %157 = vector.shape_cast %156 : vector<1x20x9x32xbf16> to vector<20x9x32xbf16>
      %158 = vector.shape_cast %155 : vector<20x9x32xbf16> to vector<1x20x9x32xbf16>
      tpu.vector_store %arg10[%c1_105, %c0_106, %c15_107, %c0_108], %158 {strides = array<i32>} : memref<3x20x24x32xbf16, #tpu.memory_space<vmem>>, vector<1x20x9x32xbf16>,
      %cst_109 = arith.constant 0.000000e+00 : bf16
      %159 = vector.broadcast %cst_109 : bf16 to vector<18x1x32xbf16>
      %c1_110 = arith.constant 1 : index
      %c0_111 = arith.constant 0 : index
      %c0_112 = arith.constant 0 : index
      %c0_113 = arith.constant 0 : index
      %160 = vector.load %arg11[%c1_110, %c0_111, %c0_112, %c0_113] : memref<3x18x24x32xbf16, #tpu.memory_space<vmem>>, vector<1x18x1x32xbf16>
      %161 = vector.shape_cast %160 : vector<1x18x1x32xbf16> to vector<18x1x32xbf16>
      %162 = vector.shape_cast %159 : vector<18x1x32xbf16> to vector<1x18x1x32xbf16>
      tpu.vector_store %arg11[%c1_110, %c0_111, %c0_112, %c0_113], %162 {strides = array<i32>} : memref<3x18x24x32xbf16, #tpu.memory_space<vmem>>, vector<1x18x1x32xbf16>,
      %cst_114 = arith.constant 0.000000e+00 : bf16
      %163 = vector.broadcast %cst_114 : bf16 to vector<18x9x32xbf16>
      %c1_115 = arith.constant 1 : index
      %c0_116 = arith.constant 0 : index
      %c15_117 = arith.constant 15 : index
      %c0_118 = arith.constant 0 : index
      %164 = vector.load %arg11[%c1_115, %c0_116, %c15_117, %c0_118] : memref<3x18x24x32xbf16, #tpu.memory_space<vmem>>, vector<1x18x9x32xbf16>
      %165 = vector.shape_cast %164 : vector<1x18x9x32xbf16> to vector<18x9x32xbf16>
      %166 = vector.shape_cast %163 : vector<18x9x32xbf16> to vector<1x18x9x32xbf16>
      tpu.vector_store %arg11[%c1_115, %c0_116, %c15_117, %c0_118], %166 {strides = array<i32>} : memref<3x18x24x32xbf16, #tpu.memory_space<vmem>>, vector<1x18x9x32xbf16>,
      %cst_119 = arith.constant 0.000000e+00 : bf16
      %167 = vector.broadcast %cst_119 : bf16 to vector<2x24x32xbf16>
      %c2_120 = arith.constant 2 : index
      %c0_121 = arith.constant 0 : index
      %c0_122 = arith.constant 0 : index
      %c0_123 = arith.constant 0 : index
      %168 = vector.load %arg10[%c2_120, %c0_121, %c0_122, %c0_123] : memref<3x20x24x32xbf16, #tpu.memory_space<vmem>>, vector<1x2x24x32xbf16>
      %169 = vector.shape_cast %168 : vector<1x2x24x32xbf16> to vector<2x24x32xbf16>
      %170 = vector.shape_cast %167 : vector<2x24x32xbf16> to vector<1x2x24x32xbf16>
      tpu.vector_store %arg10[%c2_120, %c0_121, %c0_122, %c0_123], %170 {strides = array<i32>} : memref<3x20x24x32xbf16, #tpu.memory_space<vmem>>, vector<1x2x24x32xbf16>,
      %cst_124 = arith.constant 0.000000e+00 : bf16
      %171 = vector.broadcast %cst_124 : bf16 to vector<2x24x32xbf16>
      %c2_125 = arith.constant 2 : index
      %c18_126 = arith.constant 18 : index
      %c0_127 = arith.constant 0 : index
      %c0_128 = arith.constant 0 : index
      %172 = vector.load %arg10[%c2_125, %c18_126, %c0_127, %c0_128] : memref<3x20x24x32xbf16, #tpu.memory_space<vmem>>, vector<1x2x24x32xbf16>
      %173 = vector.shape_cast %172 : vector<1x2x24x32xbf16> to vector<2x24x32xbf16>
      %174 = vector.shape_cast %171 : vector<2x24x32xbf16> to vector<1x2x24x32xbf16>
      tpu.vector_store %arg10[%c2_125, %c18_126, %c0_127, %c0_128], %174 {strides = array<i32>} : memref<3x20x24x32xbf16, #tpu.memory_space<vmem>>, vector<1x2x24x32xbf16>,
      %cst_129 = arith.constant 0.000000e+00 : bf16
      %175 = vector.broadcast %cst_129 : bf16 to vector<20x1x32xbf16>
      %c2_130 = arith.constant 2 : index
      %c0_131 = arith.constant 0 : index
      %c0_132 = arith.constant 0 : index
      %c0_133 = arith.constant 0 : index
      %176 = vector.load %arg10[%c2_130, %c0_131, %c0_132, %c0_133] : memref<3x20x24x32xbf16, #tpu.memory_space<vmem>>, vector<1x20x1x32xbf16>
      %177 = vector.shape_cast %176 : vector<1x20x1x32xbf16> to vector<20x1x32xbf16>
      %178 = vector.shape_cast %175 : vector<20x1x32xbf16> to vector<1x20x1x32xbf16>
      tpu.vector_store %arg10[%c2_130, %c0_131, %c0_132, %c0_133], %178 {strides = array<i32>} : memref<3x20x24x32xbf16, #tpu.memory_space<vmem>>, vector<1x20x1x32xbf16>,
      %cst_134 = arith.constant 0.000000e+00 : bf16
      %179 = vector.broadcast %cst_134 : bf16 to vector<20x9x32xbf16>
      %c2_135 = arith.constant 2 : index
      %c0_136 = arith.constant 0 : index
      %c15_137 = arith.constant 15 : index
      %c0_138 = arith.constant 0 : index
      %180 = vector.load %arg10[%c2_135, %c0_136, %c15_137, %c0_138] : memref<3x20x24x32xbf16, #tpu.memory_space<vmem>>, vector<1x20x9x32xbf16>
      %181 = vector.shape_cast %180 : vector<1x20x9x32xbf16> to vector<20x9x32xbf16>
      %182 = vector.shape_cast %179 : vector<20x9x32xbf16> to vector<1x20x9x32xbf16>
      tpu.vector_store %arg10[%c2_135, %c0_136, %c15_137, %c0_138], %182 {strides = array<i32>} : memref<3x20x24x32xbf16, #tpu.memory_space<vmem>>, vector<1x20x9x32xbf16>,
      %cst_139 = arith.constant 0.000000e+00 : bf16
      %183 = vector.broadcast %cst_139 : bf16 to vector<18x1x32xbf16>
      %c2_140 = arith.constant 2 : index
      %c0_141 = arith.constant 0 : index
      %c0_142 = arith.constant 0 : index
      %c0_143 = arith.constant 0 : index
      %184 = vector.load %arg11[%c2_140, %c0_141, %c0_142, %c0_143] : memref<3x18x24x32xbf16, #tpu.memory_space<vmem>>, vector<1x18x1x32xbf16>
      %185 = vector.shape_cast %184 : vector<1x18x1x32xbf16> to vector<18x1x32xbf16>
      %186 = vector.shape_cast %183 : vector<18x1x32xbf16> to vector<1x18x1x32xbf16>
      tpu.vector_store %arg11[%c2_140, %c0_141, %c0_142, %c0_143], %186 {strides = array<i32>} : memref<3x18x24x32xbf16, #tpu.memory_space<vmem>>, vector<1x18x1x32xbf16>,
      %cst_144 = arith.constant 0.000000e+00 : bf16
      %187 = vector.broadcast %cst_144 : bf16 to vector<18x9x32xbf16>
      %c2_145 = arith.constant 2 : index
      %c0_146 = arith.constant 0 : index
      %c15_147 = arith.constant 15 : index
      %c0_148 = arith.constant 0 : index
      %188 = vector.load %arg11[%c2_145, %c0_146, %c15_147, %c0_148] : memref<3x18x24x32xbf16, #tpu.memory_space<vmem>>, vector<1x18x9x32xbf16>
      %189 = vector.shape_cast %188 : vector<1x18x9x32xbf16> to vector<18x9x32xbf16>
      %190 = vector.shape_cast %187 : vector<18x9x32xbf16> to vector<1x18x9x32xbf16>
      tpu.vector_store %arg11[%c2_145, %c0_146, %c15_147, %c0_148], %190 {strides = array<i32>} : memref<3x18x24x32xbf16, #tpu.memory_space<vmem>>, vector<1x18x9x32xbf16>,
      %c1_149 = arith.constant 1 : index
      %c2_150 = arith.constant 2 : index
      %c0_151 = arith.constant 0 : index
      %c0_152 = arith.constant 0 : index
      %191 = vector.load %arg10[%c1_149, %c2_150, %c0_151, %c0_152] : memref<3x20x24x32xbf16, #tpu.memory_space<vmem>>, vector<1x16x16x32xbf16>
      %192 = vector.shape_cast %191 : vector<1x16x16x32xbf16> to vector<16x16x32xbf16>
      %193 = vector.shape_cast %118 : vector<16x16x32xbf16> to vector<1x16x16x32xbf16>
      tpu.vector_store %arg10[%c1_149, %c2_150, %c0_151, %c0_152], %193 {strides = array<i32>} : memref<3x20x24x32xbf16, #tpu.memory_space<vmem>>, vector<1x16x16x32xbf16>,
      %c0_153 = arith.constant 0 : index
      %c2_154 = arith.constant 2 : index
      %c1_155 = arith.constant 1 : index
      %c0_156 = arith.constant 0 : index
      %194 = vector.load %arg10[%c0_153, %c2_154, %c1_155, %c0_156] : memref<3x20x24x32xbf16, #tpu.memory_space<vmem>>, vector<1x16x16x32xbf16>
      %195 = vector.shape_cast %194 : vector<1x16x16x32xbf16> to vector<16x16x32xbf16>
      %196 = vector.shape_cast %118 : vector<16x16x32xbf16> to vector<1x16x16x32xbf16>
      tpu.vector_store %arg10[%c0_153, %c2_154, %c1_155, %c0_156], %196 {strides = array<i32>} : memref<3x20x24x32xbf16, #tpu.memory_space<vmem>>, vector<1x16x16x32xbf16>,
      %197 = vector.extract_strided_slice %118 {offsets = [0, 1, 0], sizes = [16, 15, 32], strides = [1, 1, 1]} : vector<16x16x32xbf16> to vector<16x15x32xbf16>
      %c2_157 = arith.constant 2 : index
      %c2_158 = arith.constant 2 : index
      %c0_159 = arith.constant 0 : index
      %c0_160 = arith.constant 0 : index
      %198 = vector.load %arg10[%c2_157, %c2_158, %c0_159, %c0_160] : memref<3x20x24x32xbf16, #tpu.memory_space<vmem>>, vector<1x16x15x32xbf16>
      %199 = vector.shape_cast %198 : vector<1x16x15x32xbf16> to vector<16x15x32xbf16>
      %200 = vector.shape_cast %197 : vector<16x15x32xbf16> to vector<1x16x15x32xbf16>
      tpu.vector_store %arg10[%c2_157, %c2_158, %c0_159, %c0_160], %200 {strides = array<i32>} : memref<3x20x24x32xbf16, #tpu.memory_space<vmem>>, vector<1x16x15x32xbf16>,
    } else {
    }
    %c0 = arith.constant 0 : index
    %5 = arith.index_cast %1 : i32 to index
    %c0_1 = arith.constant 0 : index
    %c0_2 = arith.constant 0 : index
    %6 = vector.load %arg10[%c0, %5, %c0_1, %c0_2] : memref<3x20x24x32xbf16, #tpu.memory_space<vmem>>, vector<1x20x24x32xbf16>
    %7 = vector.shape_cast %6 : vector<1x20x24x32xbf16> to vector<20x24x32xbf16>
    %c1 = arith.constant 1 : index
    %8 = arith.index_cast %1 : i32 to index
    %c0_3 = arith.constant 0 : index
    %c0_4 = arith.constant 0 : index
    %9 = vector.load %arg10[%c1, %8, %c0_3, %c0_4] : memref<3x20x24x32xbf16, #tpu.memory_space<vmem>>, vector<1x20x24x32xbf16>
    %10 = vector.shape_cast %9 : vector<1x20x24x32xbf16> to vector<20x24x32xbf16>
    %c2 = arith.constant 2 : index
    %11 = arith.index_cast %1 : i32 to index
    %c0_5 = arith.constant 0 : index
    %c0_6 = arith.constant 0 : index
    %12 = vector.load %arg10[%c2, %11, %c0_5, %c0_6] : memref<3x20x24x32xbf16, #tpu.memory_space<vmem>>, vector<1x20x24x32xbf16>
    %13 = vector.shape_cast %12 : vector<1x20x24x32xbf16> to vector<20x24x32xbf16>
    %14 = vector.extract_strided_slice %7 {offsets = [0, 0, 0], sizes = [18, 24, 32], strides = [1, 1, 1]} : vector<20x24x32xbf16> to vector<18x24x32xbf16>
    %15 = vector.shape_cast %14 : vector<18x24x32xbf16> to vector<432x32xbf16>
    %16 = vector.extract_strided_slice %10 {offsets = [0, 0, 0], sizes = [18, 24, 32], strides = [1, 1, 1]} : vector<20x24x32xbf16> to vector<18x24x32xbf16>
    %17 = vector.shape_cast %16 : vector<18x24x32xbf16> to vector<432x32xbf16>
    %18 = vector.extract_strided_slice %13 {offsets = [0, 0, 0], sizes = [18, 24, 32], strides = [1, 1, 1]} : vector<20x24x32xbf16> to vector<18x24x32xbf16>
    %19 = vector.shape_cast %18 : vector<18x24x32xbf16> to vector<432x32xbf16>
    %20 = vector.extract_strided_slice %7 {offsets = [1, 0, 0], sizes = [18, 24, 32], strides = [1, 1, 1]} : vector<20x24x32xbf16> to vector<18x24x32xbf16>
    %21 = vector.shape_cast %20 : vector<18x24x32xbf16> to vector<432x32xbf16>
    %22 = vector.extract_strided_slice %10 {offsets = [1, 0, 0], sizes = [18, 24, 32], strides = [1, 1, 1]} : vector<20x24x32xbf16> to vector<18x24x32xbf16>
    %23 = vector.shape_cast %22 : vector<18x24x32xbf16> to vector<432x32xbf16>
    %24 = vector.extract_strided_slice %13 {offsets = [1, 0, 0], sizes = [18, 24, 32], strides = [1, 1, 1]} : vector<20x24x32xbf16> to vector<18x24x32xbf16>
    %25 = vector.shape_cast %24 : vector<18x24x32xbf16> to vector<432x32xbf16>
    %26 = vector.extract_strided_slice %7 {offsets = [2, 0, 0], sizes = [18, 24, 32], strides = [1, 1, 1]} : vector<20x24x32xbf16> to vector<18x24x32xbf16>
    %27 = vector.shape_cast %26 : vector<18x24x32xbf16> to vector<432x32xbf16>
    %28 = vector.extract_strided_slice %10 {offsets = [2, 0, 0], sizes = [18, 24, 32], strides = [1, 1, 1]} : vector<20x24x32xbf16> to vector<18x24x32xbf16>
    %29 = vector.shape_cast %28 : vector<18x24x32xbf16> to vector<432x32xbf16>
    %30 = vector.extract_strided_slice %13 {offsets = [2, 0, 0], sizes = [18, 24, 32], strides = [1, 1, 1]} : vector<20x24x32xbf16> to vector<18x24x32xbf16>
    %31 = vector.shape_cast %30 : vector<18x24x32xbf16> to vector<432x32xbf16>
    %32 = tpu.concatenate %15, %17, %19, %21, %23, %25, %27, %29, %31 in 1 : vector<432x32xbf16>, vector<432x32xbf16>, vector<432x32xbf16>, vector<432x32xbf16>, vector<432x32xbf16>, vector<432x32xbf16>, vector<432x32xbf16>, vector<432x32xbf16>, vector<432x32xbf16> -> vector<432x288xbf16>
    %c0_7 = arith.constant 0 : index
    %c0_8 = arith.constant 0 : index
    %33 = vector.load %arg3[%c0_7, %c0_8] : memref<288x32xbf16, #tpu.memory_space<vmem>>, vector<288x32xbf16>
    %cst = arith.constant dense<0.000000e+00> : vector<432x32xf32>
    %34 = tpu.matmul %32, %33, %cst {dimension_numbers = #tpu.dot_dimension_numbers<[1], [0], [0], [1], [0, 0, 1, 1], [], []>} : vector<432x288xbf16>, vector<288x32xbf16>, vector<432x32xf32> -> vector<432x32xf32>
    %c0_9 = arith.constant 0 : index
    %c0_10 = arith.constant 0 : index
    %35 = vector.load %arg4[%c0_9, %c0_10] : memref<1x32xf32, #tpu.memory_space<vmem>>, vector<1x32xf32>
    %36 = vector.shape_cast %35 : vector<1x32xf32> to vector<32xf32>
    %37 = vector.shape_cast %36 : vector<32xf32> to vector<1x32xf32>
    %38 = vector.broadcast %37 : vector<1x32xf32> to vector<432x32xf32>
    %39 = arith.mulf %34, %38 : vector<432x32xf32>
    %c0_11 = arith.constant 0 : index
    %c0_12 = arith.constant 0 : index
    %40 = vector.load %arg5[%c0_11, %c0_12] : memref<1x32xf32, #tpu.memory_space<vmem>>, vector<1x32xf32>
    %41 = vector.shape_cast %40 : vector<1x32xf32> to vector<32xf32>
    %42 = vector.shape_cast %41 : vector<32xf32> to vector<1x32xf32>
    %43 = vector.broadcast %42 : vector<1x32xf32> to vector<432x32xf32>
    %44 = arith.addf %39, %43 : vector<432x32xf32>
    %cst_13 = arith.constant 0.000000e+00 : f32
    %45 = vector.broadcast %cst_13 : f32 to vector<432x32xf32>
    %46 = arith.maximumf %44, %45 : vector<432x32xf32>
    %47 = arith.truncf %46 : vector<432x32xf32> to vector<432x32xbf16>
    %48 = vector.shape_cast %47 : vector<432x32xbf16> to vector<18x24x32xbf16>
    %49 = vector.extract_strided_slice %48 {offsets = [0, 0, 0], sizes = [18, 16, 32], strides = [1, 1, 1]} : vector<18x24x32xbf16> to vector<18x16x32xbf16>
    %c1_14 = arith.constant 1 : index
    %c0_15 = arith.constant 0 : index
    %c0_16 = arith.constant 0 : index
    %c0_17 = arith.constant 0 : index
    %50 = vector.load %arg11[%c1_14, %c0_15, %c0_16, %c0_17] : memref<3x18x24x32xbf16, #tpu.memory_space<vmem>>, vector<1x18x16x32xbf16>
    %51 = vector.shape_cast %50 : vector<1x18x16x32xbf16> to vector<18x16x32xbf16>
    %52 = vector.shape_cast %49 : vector<18x16x32xbf16> to vector<1x18x16x32xbf16>
    tpu.vector_store %arg11[%c1_14, %c0_15, %c0_16, %c0_17], %52 {strides = array<i32>} : memref<3x18x24x32xbf16, #tpu.memory_space<vmem>>, vector<1x18x16x32xbf16>,
    %53 = vector.extract_strided_slice %48 {offsets = [0, 0, 0], sizes = [18, 16, 32], strides = [1, 1, 1]} : vector<18x24x32xbf16> to vector<18x16x32xbf16>
    %c0_18 = arith.constant 0 : index
    %c0_19 = arith.constant 0 : index
    %c1_20 = arith.constant 1 : index
    %c0_21 = arith.constant 0 : index
    %54 = vector.load %arg11[%c0_18, %c0_19, %c1_20, %c0_21] : memref<3x18x24x32xbf16, #tpu.memory_space<vmem>>, vector<1x18x16x32xbf16>
    %55 = vector.shape_cast %54 : vector<1x18x16x32xbf16> to vector<18x16x32xbf16>
    %56 = vector.shape_cast %53 : vector<18x16x32xbf16> to vector<1x18x16x32xbf16>
    tpu.vector_store %arg11[%c0_18, %c0_19, %c1_20, %c0_21], %56 {strides = array<i32>} : memref<3x18x24x32xbf16, #tpu.memory_space<vmem>>, vector<1x18x16x32xbf16>,
    %57 = vector.extract_strided_slice %48 {offsets = [0, 1, 0], sizes = [18, 15, 32], strides = [1, 1, 1]} : vector<18x24x32xbf16> to vector<18x15x32xbf16>
    %c2_22 = arith.constant 2 : index
    %c0_23 = arith.constant 0 : index
    %c0_24 = arith.constant 0 : index
    %c0_25 = arith.constant 0 : index
    %58 = vector.load %arg11[%c2_22, %c0_23, %c0_24, %c0_25] : memref<3x18x24x32xbf16, #tpu.memory_space<vmem>>, vector<1x18x15x32xbf16>
    %59 = vector.shape_cast %58 : vector<1x18x15x32xbf16> to vector<18x15x32xbf16>
    %60 = vector.shape_cast %57 : vector<18x15x32xbf16> to vector<1x18x15x32xbf16>
    tpu.vector_store %arg11[%c2_22, %c0_23, %c0_24, %c0_25], %60 {strides = array<i32>} : memref<3x18x24x32xbf16, #tpu.memory_space<vmem>>, vector<1x18x15x32xbf16>,
    %c0_i32_26 = arith.constant 0 : i32
    %61 = arith.cmpi eq, %arg1, %c0_i32_26 : i32
    %62 = arith.extui %61 : i1 to i32
    %c0_i32_27 = arith.constant 0 : i32
    %63 = arith.cmpi ne, %62, %c0_i32_27 : i32
    scf.if %63 {
      %cst_57 = arith.constant 0.000000e+00 : bf16
      %117 = vector.broadcast %cst_57 : bf16 to vector<1x24x32xbf16>
      %c0_58 = arith.constant 0 : index
      %c0_59 = arith.constant 0 : index
      %c0_60 = arith.constant 0 : index
      %c0_61 = arith.constant 0 : index
      %118 = vector.load %arg11[%c0_58, %c0_59, %c0_60, %c0_61] : memref<3x18x24x32xbf16, #tpu.memory_space<vmem>>, vector<1x1x24x32xbf16>
      %119 = vector.shape_cast %118 : vector<1x1x24x32xbf16> to vector<1x24x32xbf16>
      %120 = vector.shape_cast %117 : vector<1x24x32xbf16> to vector<1x1x24x32xbf16>
      tpu.vector_store %arg11[%c0_58, %c0_59, %c0_60, %c0_61], %120 {strides = array<i32>} : memref<3x18x24x32xbf16, #tpu.memory_space<vmem>>, vector<1x1x24x32xbf16>,
      %cst_62 = arith.constant 0.000000e+00 : bf16
      %121 = vector.broadcast %cst_62 : bf16 to vector<1x24x32xbf16>
      %c1_63 = arith.constant 1 : index
      %c0_64 = arith.constant 0 : index
      %c0_65 = arith.constant 0 : index
      %c0_66 = arith.constant 0 : index
      %122 = vector.load %arg11[%c1_63, %c0_64, %c0_65, %c0_66] : memref<3x18x24x32xbf16, #tpu.memory_space<vmem>>, vector<1x1x24x32xbf16>
      %123 = vector.shape_cast %122 : vector<1x1x24x32xbf16> to vector<1x24x32xbf16>
      %124 = vector.shape_cast %121 : vector<1x24x32xbf16> to vector<1x1x24x32xbf16>
      tpu.vector_store %arg11[%c1_63, %c0_64, %c0_65, %c0_66], %124 {strides = array<i32>} : memref<3x18x24x32xbf16, #tpu.memory_space<vmem>>, vector<1x1x24x32xbf16>,
      %cst_67 = arith.constant 0.000000e+00 : bf16
      %125 = vector.broadcast %cst_67 : bf16 to vector<1x24x32xbf16>
      %c2_68 = arith.constant 2 : index
      %c0_69 = arith.constant 0 : index
      %c0_70 = arith.constant 0 : index
      %c0_71 = arith.constant 0 : index
      %126 = vector.load %arg11[%c2_68, %c0_69, %c0_70, %c0_71] : memref<3x18x24x32xbf16, #tpu.memory_space<vmem>>, vector<1x1x24x32xbf16>
      %127 = vector.shape_cast %126 : vector<1x1x24x32xbf16> to vector<1x24x32xbf16>
      %128 = vector.shape_cast %125 : vector<1x24x32xbf16> to vector<1x1x24x32xbf16>
      tpu.vector_store %arg11[%c2_68, %c0_69, %c0_70, %c0_71], %128 {strides = array<i32>} : memref<3x18x24x32xbf16, #tpu.memory_space<vmem>>, vector<1x1x24x32xbf16>,
    } else {
    }
    %c0_i32_28 = arith.constant 0 : i32
    %64 = arith.cmpi eq, %arg1, %c0_i32_28 : i32
    %65 = arith.extui %64 : i1 to i32
    %c0_i32_29 = arith.constant 0 : i32
    %66 = arith.cmpi ne, %65, %c0_i32_29 : i32
    scf.if %66 {
      %cst_57 = arith.constant 0.000000e+00 : bf16
      %117 = vector.broadcast %cst_57 : bf16 to vector<1x24x32xbf16>
      %c0_58 = arith.constant 0 : index
      %c17 = arith.constant 17 : index
      %c0_59 = arith.constant 0 : index
      %c0_60 = arith.constant 0 : index
      %118 = vector.load %arg11[%c0_58, %c17, %c0_59, %c0_60] : memref<3x18x24x32xbf16, #tpu.memory_space<vmem>>, vector<1x1x24x32xbf16>
      %119 = vector.shape_cast %118 : vector<1x1x24x32xbf16> to vector<1x24x32xbf16>
      %120 = vector.shape_cast %117 : vector<1x24x32xbf16> to vector<1x1x24x32xbf16>
      tpu.vector_store %arg11[%c0_58, %c17, %c0_59, %c0_60], %120 {strides = array<i32>} : memref<3x18x24x32xbf16, #tpu.memory_space<vmem>>, vector<1x1x24x32xbf16>,
      %cst_61 = arith.constant 0.000000e+00 : bf16
      %121 = vector.broadcast %cst_61 : bf16 to vector<1x24x32xbf16>
      %c1_62 = arith.constant 1 : index
      %c17_63 = arith.constant 17 : index
      %c0_64 = arith.constant 0 : index
      %c0_65 = arith.constant 0 : index
      %122 = vector.load %arg11[%c1_62, %c17_63, %c0_64, %c0_65] : memref<3x18x24x32xbf16, #tpu.memory_space<vmem>>, vector<1x1x24x32xbf16>
      %123 = vector.shape_cast %122 : vector<1x1x24x32xbf16> to vector<1x24x32xbf16>
      %124 = vector.shape_cast %121 : vector<1x24x32xbf16> to vector<1x1x24x32xbf16>
      tpu.vector_store %arg11[%c1_62, %c17_63, %c0_64, %c0_65], %124 {strides = array<i32>} : memref<3x18x24x32xbf16, #tpu.memory_space<vmem>>, vector<1x1x24x32xbf16>,
      %cst_66 = arith.constant 0.000000e+00 : bf16
      %125 = vector.broadcast %cst_66 : bf16 to vector<1x24x32xbf16>
      %c2_67 = arith.constant 2 : index
      %c17_68 = arith.constant 17 : index
      %c0_69 = arith.constant 0 : index
      %c0_70 = arith.constant 0 : index
      %126 = vector.load %arg11[%c2_67, %c17_68, %c0_69, %c0_70] : memref<3x18x24x32xbf16, #tpu.memory_space<vmem>>, vector<1x1x24x32xbf16>
      %127 = vector.shape_cast %126 : vector<1x1x24x32xbf16> to vector<1x24x32xbf16>
      %128 = vector.shape_cast %125 : vector<1x24x32xbf16> to vector<1x1x24x32xbf16>
      tpu.vector_store %arg11[%c2_67, %c17_68, %c0_69, %c0_70], %128 {strides = array<i32>} : memref<3x18x24x32xbf16, #tpu.memory_space<vmem>>, vector<1x1x24x32xbf16>,
    } else {
    }
    %c0_30 = arith.constant 0 : index
    %c0_31 = arith.constant 0 : index
    %c0_32 = arith.constant 0 : index
    %c0_33 = arith.constant 0 : index
    %67 = vector.load %arg11[%c0_30, %c0_31, %c0_32, %c0_33] : memref<3x18x24x32xbf16, #tpu.memory_space<vmem>>, vector<1x18x24x32xbf16>
    %68 = vector.shape_cast %67 : vector<1x18x24x32xbf16> to vector<18x24x32xbf16>
    %c1_34 = arith.constant 1 : index
    %c0_35 = arith.constant 0 : index
    %c0_36 = arith.constant 0 : index
    %c0_37 = arith.constant 0 : index
    %69 = vector.load %arg11[%c1_34, %c0_35, %c0_36, %c0_37] : memref<3x18x24x32xbf16, #tpu.memory_space<vmem>>, vector<1x18x24x32xbf16>
    %70 = vector.shape_cast %69 : vector<1x18x24x32xbf16> to vector<18x24x32xbf16>
    %c2_38 = arith.constant 2 : index
    %c0_39 = arith.constant 0 : index
    %c0_40 = arith.constant 0 : index
    %c0_41 = arith.constant 0 : index
    %71 = vector.load %arg11[%c2_38, %c0_39, %c0_40, %c0_41] : memref<3x18x24x32xbf16, #tpu.memory_space<vmem>>, vector<1x18x24x32xbf16>
    %72 = vector.shape_cast %71 : vector<1x18x24x32xbf16> to vector<18x24x32xbf16>
    %73 = vector.extract_strided_slice %68 {offsets = [0, 0, 0], sizes = [16, 24, 32], strides = [1, 1, 1]} : vector<18x24x32xbf16> to vector<16x24x32xbf16>
    %74 = vector.shape_cast %73 : vector<16x24x32xbf16> to vector<384x32xbf16>
    %75 = vector.extract_strided_slice %70 {offsets = [0, 0, 0], sizes = [16, 24, 32], strides = [1, 1, 1]} : vector<18x24x32xbf16> to vector<16x24x32xbf16>
    %76 = vector.shape_cast %75 : vector<16x24x32xbf16> to vector<384x32xbf16>
    %77 = vector.extract_strided_slice %72 {offsets = [0, 0, 0], sizes = [16, 24, 32], strides = [1, 1, 1]} : vector<18x24x32xbf16> to vector<16x24x32xbf16>
    %78 = vector.shape_cast %77 : vector<16x24x32xbf16> to vector<384x32xbf16>
    %79 = vector.extract_strided_slice %68 {offsets = [1, 0, 0], sizes = [16, 24, 32], strides = [1, 1, 1]} : vector<18x24x32xbf16> to vector<16x24x32xbf16>
    %80 = vector.shape_cast %79 : vector<16x24x32xbf16> to vector<384x32xbf16>
    %81 = vector.extract_strided_slice %70 {offsets = [1, 0, 0], sizes = [16, 24, 32], strides = [1, 1, 1]} : vector<18x24x32xbf16> to vector<16x24x32xbf16>
    %82 = vector.shape_cast %81 : vector<16x24x32xbf16> to vector<384x32xbf16>
    %83 = vector.extract_strided_slice %72 {offsets = [1, 0, 0], sizes = [16, 24, 32], strides = [1, 1, 1]} : vector<18x24x32xbf16> to vector<16x24x32xbf16>
    %84 = vector.shape_cast %83 : vector<16x24x32xbf16> to vector<384x32xbf16>
    %85 = vector.extract_strided_slice %68 {offsets = [2, 0, 0], sizes = [16, 24, 32], strides = [1, 1, 1]} : vector<18x24x32xbf16> to vector<16x24x32xbf16>
    %86 = vector.shape_cast %85 : vector<16x24x32xbf16> to vector<384x32xbf16>
    %87 = vector.extract_strided_slice %70 {offsets = [2, 0, 0], sizes = [16, 24, 32], strides = [1, 1, 1]} : vector<18x24x32xbf16> to vector<16x24x32xbf16>
    %88 = vector.shape_cast %87 : vector<16x24x32xbf16> to vector<384x32xbf16>
    %89 = vector.extract_strided_slice %72 {offsets = [2, 0, 0], sizes = [16, 24, 32], strides = [1, 1, 1]} : vector<18x24x32xbf16> to vector<16x24x32xbf16>
    %90 = vector.shape_cast %89 : vector<16x24x32xbf16> to vector<384x32xbf16>
    %91 = tpu.concatenate %74, %76, %78, %80, %82, %84, %86, %88, %90 in 1 : vector<384x32xbf16>, vector<384x32xbf16>, vector<384x32xbf16>, vector<384x32xbf16>, vector<384x32xbf16>, vector<384x32xbf16>, vector<384x32xbf16>, vector<384x32xbf16>, vector<384x32xbf16> -> vector<384x288xbf16>
    %c0_42 = arith.constant 0 : index
    %c0_43 = arith.constant 0 : index
    %92 = vector.load %arg6[%c0_42, %c0_43] : memref<288x32xbf16, #tpu.memory_space<vmem>>, vector<288x32xbf16>
    %cst_44 = arith.constant dense<0.000000e+00> : vector<384x32xf32>
    %93 = tpu.matmul %91, %92, %cst_44 {dimension_numbers = #tpu.dot_dimension_numbers<[1], [0], [0], [1], [0, 0, 1, 1], [], []>} : vector<384x288xbf16>, vector<288x32xbf16>, vector<384x32xf32> -> vector<384x32xf32>
    %c0_45 = arith.constant 0 : index
    %c0_46 = arith.constant 0 : index
    %94 = vector.load %arg7[%c0_45, %c0_46] : memref<1x32xf32, #tpu.memory_space<vmem>>, vector<1x32xf32>
    %95 = vector.shape_cast %94 : vector<1x32xf32> to vector<32xf32>
    %96 = vector.shape_cast %95 : vector<32xf32> to vector<1x32xf32>
    %97 = vector.broadcast %96 : vector<1x32xf32> to vector<384x32xf32>
    %98 = arith.mulf %93, %97 : vector<384x32xf32>
    %c0_47 = arith.constant 0 : index
    %c0_48 = arith.constant 0 : index
    %99 = vector.load %arg8[%c0_47, %c0_48] : memref<1x32xf32, #tpu.memory_space<vmem>>, vector<1x32xf32>
    %100 = vector.shape_cast %99 : vector<1x32xf32> to vector<32xf32>
    %101 = vector.shape_cast %100 : vector<32xf32> to vector<1x32xf32>
    %102 = vector.broadcast %101 : vector<1x32xf32> to vector<384x32xf32>
    %103 = arith.addf %98, %102 : vector<384x32xf32>
    %104 = vector.shape_cast %103 : vector<384x32xf32> to vector<16x24x32xf32>
    %105 = vector.extract_strided_slice %104 {offsets = [0, 0, 0], sizes = [16, 16, 32], strides = [1, 1, 1]} : vector<16x24x32xf32> to vector<16x16x32xf32>
    %c0_49 = arith.constant 0 : index
    %106 = arith.index_cast %1 : i32 to index
    %c0_50 = arith.constant 0 : index
    %c0_51 = arith.constant 0 : index
    %107 = vector.load %arg2[%c0_49, %106, %c0_50, %c0_51] : memref<1x16x16x32xbf16, #tpu.memory_space<vmem>>, vector<1x16x16x32xbf16>
    %108 = vector.shape_cast %107 : vector<1x16x16x32xbf16> to vector<16x16x32xbf16>
    %109 = arith.extf %108 : vector<16x16x32xbf16> to vector<16x16x32xf32>
    %110 = arith.addf %105, %109 : vector<16x16x32xf32>
    %cst_52 = arith.constant 0.000000e+00 : f32
    %111 = vector.broadcast %cst_52 : f32 to vector<16x16x32xf32>
    %112 = arith.maximumf %110, %111 : vector<16x16x32xf32>
    %113 = arith.truncf %112 : vector<16x16x32xf32> to vector<16x16x32xbf16>
    %c0_53 = arith.constant 0 : index
    %c0_54 = arith.constant 0 : index
    %c0_55 = arith.constant 0 : index
    %c0_56 = arith.constant 0 : index
    %114 = vector.load %arg9[%c0_53, %c0_54, %c0_55, %c0_56] : memref<1x16x16x32xbf16, #tpu.memory_space<vmem>>, vector<1x16x16x32xbf16>
    %115 = vector.shape_cast %114 : vector<1x16x16x32xbf16> to vector<16x16x32xbf16>
    %116 = vector.shape_cast %113 : vector<16x16x32xbf16> to vector<1x16x16x32xbf16>
    tpu.vector_store %arg9[%c0_53, %c0_54, %c0_55, %c0_56], %116 {strides = array<i32>} : memref<1x16x16x32xbf16, #tpu.memory_space<vmem>>, vector<1x16x16x32xbf16>,
    return
  }
  func.func @transform_0(%arg0: i32, %arg1: i32) -> (i32, i32, i32, i32) {
    %c0_i32 = arith.constant 0 : i32
    %c0_i32_0 = arith.constant 0 : i32
    %c0_i32_1 = arith.constant 0 : i32
    %c0_i32_2 = arith.constant 0 : i32
    return %arg0, %c0_i32, %c0_i32_0, %c0_i32_1 : i32, i32, i32, i32
  }
  func.func @transform_1(%arg0: i32, %arg1: i32) -> (i32, i32) {
    %c0_i32 = arith.constant 0 : i32
    %c0_i32_0 = arith.constant 0 : i32
    %c0_i32_1 = arith.constant 0 : i32
    return %c0_i32, %c0_i32_0 : i32, i32
  }
  func.func @transform_2(%arg0: i32, %arg1: i32) -> (i32, i32) {
    %c0_i32 = arith.constant 0 : i32
    %c0_i32_0 = arith.constant 0 : i32
    %c0_i32_1 = arith.constant 0 : i32
    return %c0_i32, %c0_i32_0 : i32, i32
  }
  func.func @transform_3(%arg0: i32, %arg1: i32) -> (i32, i32) {
    %c0_i32 = arith.constant 0 : i32
    %c0_i32_0 = arith.constant 0 : i32
    %c0_i32_1 = arith.constant 0 : i32
    return %c0_i32, %c0_i32_0 : i32, i32
  }
  func.func @transform_4(%arg0: i32, %arg1: i32) -> (i32, i32) {
    %c0_i32 = arith.constant 0 : i32
    %c0_i32_0 = arith.constant 0 : i32
    %c0_i32_1 = arith.constant 0 : i32
    return %c0_i32, %c0_i32_0 : i32, i32
  }
  func.func @transform_5(%arg0: i32, %arg1: i32) -> (i32, i32) {
    %c0_i32 = arith.constant 0 : i32
    %c0_i32_0 = arith.constant 0 : i32
    %c0_i32_1 = arith.constant 0 : i32
    return %c0_i32, %c0_i32_0 : i32, i32
  }
  func.func @transform_6(%arg0: i32, %arg1: i32) -> (i32, i32) {
    %c0_i32 = arith.constant 0 : i32
    %c0_i32_0 = arith.constant 0 : i32
    %c0_i32_1 = arith.constant 0 : i32
    return %c0_i32, %c0_i32_0 : i32, i32
  }
  func.func @transform_7(%arg0: i32, %arg1: i32) -> (i32, i32, i32, i32) {
    %c0_i32 = arith.constant 0 : i32
    %c0_i32_0 = arith.constant 0 : i32
    %c0_i32_1 = arith.constant 0 : i32
    return %arg0, %arg1, %c0_i32, %c0_i32_0 : i32, i32, i32, i32
  }
}

</mosaic_0001>

<bundles_post_ra>
// kernel: tpu_custom_call.1
= control target key start
LH: loop header
LB: loop body
LE: loop exit
PB: predicated region body
PF: predicated region fallthrough
CT: control target
= control target key end

     0   :  { %12 = vsyncpa [#allocation5], 0  ;;  %s13948_s0 = inlined_call_operand.vmem [shape: bf16[2,16,16,32], index: 0, kind: input, shape index: {}]   ;;  %s13949_s1 = inlined_call_operand.vmem [shape: bf16[288,32], index: 1, kind: input, shape index: {}]   ;;  %s13950_s2 = inlined_call_operand.vmem [shape: f32[1,32], index: 2, kind: input, shape index: {}]   ;;  %s13951_s3 = inlined_call_operand.vmem [shape: f32[1,32], index: 3, kind: input, shape index: {}]   ;;  %s13952_s4 = inlined_call_operand.vmem [shape: bf16[288,32], index: 4, kind: input, shape index: {}]   ;;  %s13953_s5 = inlined_call_operand.vmem [shape: f32[1,32], index: 5, kind: input, shape index: {}]   ;;  %s13954_s6 = inlined_call_operand.vmem [shape: f32[1,32], index: 6, kind: input, shape index: {}]   ;;  %s13955_s7 = inlined_call_operand.hbm [shape: bf16[2,16,16,32], index: 7, kind: output, shape index: {}]  }
   0x1   :  { %14 = vsyncpa [#allocation5 + $0x1], 0  ;;  %s9203_s24 = smov 0   ;;  %s9205_s25 = smov 0  }
   0x2   :  { %s9207_s26 = smov 0   ;;  %s9209_s27 = smov 0  }
   0x3   :  { %s9211_s28 = smov 0   ;;  %s9213_s29 = smov 0  }
   0x4 LB: > { %s7681_s30 = sadd.s32 4294967295, %s9153_s29   ;;  %s7682_s8 = sadd.s32 4294967294, %s9153_s29   ;;  %s9153_s29 = sphi %s9213_s29, %s20_s29   ;;  %s9149_s28 = sphi %s9211_s28, %s14408_s28   ;;  %s9145_s27 = sphi %s9209_s27, %s14407_s27   ;;  %s9141_s26 = sphi %s9207_s26, %s14406_s26   ;;  %s9137_s25 = sphi %s9205_s25, %s14405_s25   ;;  %s9133_s24 = sphi %s9203_s24, %s14404_s24  }
   0x5   : > { %s32_s9 = sadd.s32 1, %s9149_s28  ;;  %s193_s10 = sadd.s32 1, %s9141_s26 }
   0x6   : > { %p34_p0 = scmp.ge.s32.totalorder %s32_s9, 2  ;;  %p203_p1 = scmp.ne.s32.totalorder %s9141_s26, %s9137_s25 }
   0x7   : > { %p204_p2 = scmp.eq.s32.totalorder %s7681_s30, 1  ;;  %p209_p3 = scmp.ne.s32.totalorder %s9137_s25, %s9133_s24 }
   0x8   : > { %s14410_s9 = smov (%p34_p0, %s32_s9), 0  ;;  %p210_p5 = scmp.eq.s32.totalorder %s7682_s8, 1 }
   0x9   : > { %p9243_p4 = por %p204_p2, %p203_p1  ;;  %s188_s12 = ssub.s32 %s9149_s28, %s14410_s9 }
   0xa   : > { %p7685_p6 = scmp.ge.s32.totalorder %s9153_s29, 1  ;;  %p191_p7 = scmp.eq.s32.totalorder %s188_s12, 0 }
   0xb   : > { %p9250_p8 = por %p210_p5, %p209_p3  ;;  %p254_p9 = scmp.lt.s32.totalorder %s9153_s29, 3 }
   0xc   : > { %s9256_s14 = scalar_select %p191_p7, %s9141_s26, %s193_s10  }
   0xd   : > { %p255_p10 = pnand %p7685_p6, %p254_p9 }
   0xf   : > { %258 = sbr.rel (%p255_p10) target bundleno = 1567 (0x61f), region = 48 }
  0x16   : > { %p286_p11 = scmp.lt.s32.totalorder %s9145_s27, 1  ;;  %vm330_vm0 = vcmask 257024   ;;  %vm344_vm1 = vcmask 253952   ;;  %vm345_vm2 = vsmask.f32 256  ;;  %vm407_vm4 = vcmask 257027  }
  0x17   : > { %vm9260_vm3 = vmand %vm344_vm1, %vm345_vm2  ;;  %vm408_vm5 = vsmask.f32 7950  ;;  %v13956_v1 = vmov 0   ;;  %v9266_v2 = vld [vmem:[#allocation2 + $0x108] sm:$0x1]  ;;  %v8835_v13 = vld [vmem:[%s13949_s1] sm:$0xff]  }
  0x18   : > { %622 = vst.msk [vmem:[#allocation2 + $0x104] sm:$0xf] %vm330_vm0, %v13956_v1  ;;  %701 = vst.msk [vmem:[#allocation2 + $0x110] sm:$0xf] %vm330_vm0, %v13956_v1  ;;  %3598 = vmatprep.subr.bf16.mxu0 %v13956_v1  ;;  %s9546_s15 = scalar_select %p286_p11, %s9145_s27, 1  ;;  %v637_v4 = vsel %vm9260_vm3, 0, %v9266_v2 }
  0x19   : > { %331 = vst.msk [vmem:[#allocation2] sm:$0xf] %vm330_vm0, %v13956_v1  ;;  %332 = vst.msk [vmem:[#allocation2 + $0x4] sm:$0xf] %vm330_vm0, %v13956_v1  ;;  %v698_v5 = vld [vmem:[#allocation2 + $0x10c] sm:$0x8]  ;;  %3599 = vmatpush1.bf16.msra.mxu0 %v8835_v13 }
  0x1a   : > { %333 = vst.msk [vmem:[#allocation2 + $0x8] sm:$0xf] %vm330_vm0, %v13956_v1  ;;  %334 = vst.msk [vmem:[#allocation2 + $0xc] sm:$0xf] %vm330_vm0, %v13956_v1  ;;  %v639_v6 = vld [vmem:[#allocation2 + $0x114] sm:$0x1]  ;;  %3600 = vmatprep.subr.bf16.mxu0 %v13956_v1 }
  0x1b   : > { %335 = vst.msk [vmem:[#allocation2 + $0x10] sm:$0xf] %vm330_vm0, %v13956_v1  ;;  %336 = vst.msk [vmem:[#allocation2 + $0x14] sm:$0xf] %vm330_vm0, %v13956_v1  ;;  %v640_v8 = vsel %vm9260_vm3, 0, %v639_v6  ;;  %s8297_s16 = sshll.u32 %s9546_s15, 7 }
  0x1c   : > { %338 = vst.msk [vmem:[#allocation2 + $0xd8] sm:$0xf] %vm330_vm0, %v13956_v1  ;;  %339 = vst.msk [vmem:[#allocation2 + $0xdc] sm:$0xf] %vm330_vm0, %v13956_v1  ;;  %v356_v9 = vld [vmem:[#allocation2 + $0x24] sm:$0x1]  ;;  %s9599_s19 = scalar_lea.vmem %s13948_s0, %s8297_s16 }
  0x1d   : > { %340 = vst.msk [vmem:[#allocation2 + $0xe0] sm:$0xf] %vm330_vm0, %v13956_v1  ;;  %341 = vst.msk [vmem:[#allocation2 + $0xe4] sm:$0xf] %vm330_vm0, %v13956_v1  ;;  %v357_v10 = vsel %vm9260_vm3, 0, %v356_v9  ;;  %v8837_v33 = vld [vmem:[%s13949_s1 + $0x8] sm:$0xff]  }
  0x1e   : > { %342 = vst.msk [vmem:[#allocation2 + $0xe8] sm:$0xf] %vm330_vm0, %v13956_v1  ;;  %343 = vst.msk [vmem:[#allocation2 + $0xec] sm:$0xf] %vm330_vm0, %v13956_v1  ;;  %v917_v11 = vld [vmem:[#allocation2 + $0x1f8] sm:$0x1]  ;;  %3601 = vmatpush1.bf16.msra.mxu0 %v8837_v33 }
  0x1f   : > { %421 = vst.msk [vmem:[#allocation2 + $0x20] sm:$0xf] %vm330_vm0, %v13956_v1  ;;  %425 = vst.msk [vmem:[#allocation2 + $0x2c] sm:$0xf] %vm330_vm0, %v13956_v1  ;;  %v918_v12 = vsel %vm9260_vm3, 0, %v917_v11  ;;  %v8839_v45 = vld [vmem:[%s13949_s1 + $0x10] sm:$0xff]   ;;  %3602 = vmatprep.subr.bf16.mxu0 %v13956_v1 }
  0x20   : > { %429 = vst.msk [vmem:[#allocation2 + $0x38] sm:$0xf] %vm330_vm0, %v13956_v1  ;;  %433 = vst.msk [vmem:[#allocation2 + $0x44] sm:$0xf] %vm330_vm0, %v13956_v1  ;;  %v9607_v14 = vld [vmem:[%s9599_s19] sm:$0xf] }
  0x21   : > { %437 = vst.msk [vmem:[#allocation2 + $0x50] sm:$0xf] %vm330_vm0, %v13956_v1  ;;  %441 = vst.msk [vmem:[#allocation2 + $0x5c] sm:$0xf] %vm330_vm0, %v13956_v1  ;;  %v9610_v15 = vld [vmem:[%s9599_s19 + $0x4] sm:$0xf] }
  0x22   : > { %445 = vst.msk [vmem:[#allocation2 + $0x68] sm:$0xf] %vm330_vm0, %v13956_v1  ;;  %449 = vst.msk [vmem:[#allocation2 + $0x74] sm:$0xf] %vm330_vm0, %v13956_v1  ;;  %v300_v16 = vld [vmem:[%s9599_s19 + $0x8] sm:$0xf]  ;;  %3603 = vmatpush1.bf16.msra.mxu0 %v8839_v45 }
  0x23   : > { %453 = vst.msk [vmem:[#allocation2 + $0x80] sm:$0xf] %vm330_vm0, %v13956_v1  ;;  %457 = vst.msk [vmem:[#allocation2 + $0x8c] sm:$0xf] %vm330_vm0, %v13956_v1  ;;  %v1214_v17 = vshrl.u32 %v9607_v14, 16  ;;  %v1217_v18 = vshll.u32 %v9607_v14, 16  ;;  %3604 = vmatprep.subr.bf16.mxu0 %v13956_v1 }
  0x24   : > { %461 = vst.msk [vmem:[#allocation2 + $0x98] sm:$0xf] %vm330_vm0, %v13956_v1  ;;  %465 = vst.msk [vmem:[#allocation2 + $0xa4] sm:$0xf] %vm330_vm0, %v13956_v1  ;;  %v1222_v19 = vshrl.u32 %v9610_v15, 16  ;;  %v1225_v20 = vshll.u32 %v9610_v15, 16 }
  0x25   : > { %469 = vst.msk [vmem:[#allocation2 + $0xb0] sm:$0xf] %vm330_vm0, %v13956_v1  ;;  %473 = vst.msk [vmem:[#allocation2 + $0xbc] sm:$0xf] %vm330_vm0, %v13956_v1  ;;  %vm1535_vm7 = vsmask.f32 7938 }
  0x26   : > { %477 = vst.msk [vmem:[#allocation2 + $0xc8] sm:$0xf] %vm330_vm0, %v13956_v1  ;;  %481 = vst.msk [vmem:[#allocation2 + $0xd4] sm:$0xf] %vm330_vm0, %v13956_v1  ;;  %v1652_v23 = vrot.slane %v1214_v17, 4  ;;  %v1653_v24 = vrot.slane %v1217_v18, 5 }
  0x27   : > { %547 = vst.msk [vmem:[#allocation3 + $0x8] sm:$0xf] %vm330_vm0, %v13956_v1  ;;  %551 = vst.msk [vmem:[#allocation3 + $0x14] sm:$0xf] %vm330_vm0, %v13956_v1  ;;  %vm1649_vm8 = vsmask.f32 3328 }
  0x28   : > { %555 = vst.msk [vmem:[#allocation3 + $0x20] sm:$0xf] %vm330_vm0, %v13956_v1  ;;  %559 = vst.msk [vmem:[#allocation3 + $0x2c] sm:$0xf] %vm330_vm0, %v13956_v1  ;;  %vm1650_vm9 = vsmask.f32 7440  ;;  %v1654_v30 = vor.u32 %v1653_v24, %v1652_v23 }
  0x29   : > { %563 = vst.msk [vmem:[#allocation3 + $0x38] sm:$0xf] %vm330_vm0, %v13956_v1  ;;  %567 = vst.msk [vmem:[#allocation3 + $0x44] sm:$0xf] %vm330_vm0, %v13956_v1  ;;  %v9625_v25 = vrot.slane %v1214_v17, 7  ;;  %v9631_v29 = vrot.slane %v1222_v19, 7 }
  0x2a   : > { %571 = vst.msk [vmem:[#allocation3 + $0x50] sm:$0xf] %vm330_vm0, %v13956_v1  ;;  %575 = vst.msk [vmem:[#allocation3 + $0x5c] sm:$0xf] %vm330_vm0, %v13956_v1  ;;  %v350_v28 = vld [vmem:[#allocation2 + $0xc] sm:$0x1] }
  0x2b   : > { %579 = vst.msk [vmem:[#allocation3 + $0x68] sm:$0xf] %vm330_vm0, %v13956_v1  ;;  %583 = vst.msk [vmem:[#allocation3 + $0x74] sm:$0xf] %vm330_vm0, %v13956_v1  ;;  %v9635_v31 = vrot.slane %v1225_v20, 5  ;;  %v9640_v34 = vrot.slane %v1222_v19, 4  ;;  %v1227_v11 = vor.u32 %v1225_v20, %v9631_v29 }
  0x2c   : > { %587 = vst.msk [vmem:[#allocation3 + $0x80] sm:$0xf] %vm330_vm0, %v13956_v1  ;;  %591 = vst.msk [vmem:[#allocation3 + $0x8c] sm:$0xf] %vm330_vm0, %v13956_v1  ;;  %v414_v32 = vld [vmem:[#allocation2 + $0x10] sm:$0x8] }
  0x2d   : > { %595 = vst.msk [vmem:[#allocation3 + $0x98] sm:$0xf] %vm330_vm0, %v13956_v1  ;;  %599 = vst.msk [vmem:[#allocation3 + $0xa4] sm:$0xf] %vm330_vm0, %v13956_v1  ;;  %v9644_v36 = vld [vmem:[#allocation2 + $0x110] sm:$0xf] }
  0x2e   : > { %603 = vst.msk [vmem:[#allocation3 + $0xb0] sm:$0xf] %vm330_vm0, %v13956_v1  ;;  %607 = vst.msk [vmem:[#allocation3 + $0xbc] sm:$0xf] %vm330_vm0, %v13956_v1  ;;  %v1231_v37 = vshrl.u32 %v300_v16, 16  ;;  %v1234_v38 = vshll.u32 %v300_v16, 16 }
  0x2f   : > { %611 = vst.msk [vmem:[#allocation3 + $0xc8] sm:$0xf] %vm330_vm0, %v13956_v1  ;;  %615 = vst.msk [vmem:[#allocation3 + $0xd4] sm:$0xf] %vm330_vm0, %v13956_v1  ;;  %v351_v39 = vsel %vm9260_vm3, 0, %v350_v28  ;;  %v1655_v41 = vrot.slane %v1654_v30, 4 }
  0x30   : > { %617 = vst.msk [vmem:[#allocation2 + $0xf0] sm:$0xf] %vm330_vm0, %v13956_v1  ;;  %618 = vst.msk [vmem:[#allocation2 + $0xf4] sm:$0xf] %vm330_vm0, %v13956_v1  ;;  %v1220_v46 = vrot.slane %v9625_v25, 4  ;;  %v9660_v49 = vrot.slane %v1231_v37, 7 }
  0x31   : > { %619 = vst.msk [vmem:[#allocation2 + $0xf8] sm:$0xf] %vm330_vm0, %v13956_v1  ;;  %620 = vst.msk [vmem:[#allocation2 + $0xfc] sm:$0xf] %vm330_vm0, %v13956_v1  ;;  %v14092_v50 = vmov 0  ;;  %v1229_v56 = vrot.slane %v9631_v29, 4 }
  0x32   : > { %621 = vst.msk [vmem:[#allocation2 + $0x100] sm:$0xf] %vm330_vm0, %v13956_v1  ;;  %624 = vst.msk [vmem:[#allocation2 + $0x1c8] sm:$0xf] %vm330_vm0, %v13956_v1  ;;  %v353_v57 = vld [vmem:[#allocation2 + $0x18] sm:$0x1]  ;;  %v1236_v58 = vor.u32 %v1234_v38, %v9660_v49 }
  0x33   : > { %625 = vst.msk [vmem:[#allocation2 + $0x1cc] sm:$0xf] %vm330_vm0, %v13956_v1  ;;  %626 = vst.msk [vmem:[#allocation2 + $0x1d0] sm:$0xf] %vm330_vm0, %v13956_v1  ;;  %v9681_v59 = vrot.slane %v1231_v37, 4  ;;  %v9683_v60 = vrot.slane %v1234_v38, 5 }
  0x34   : > { %627 = vst.msk [vmem:[#allocation2 + $0x1d4] sm:$0xf] %vm330_vm0, %v13956_v1  ;;  %628 = vst.msk [vmem:[#allocation2 + $0x1d8] sm:$0xf] %vm330_vm0, %v13956_v1  ;;  %s9156_s10 = smov 96   ;;  %v14095_v6 = vmov 0 }
  0x35   : > { %629 = vst.msk [vmem:[#allocation2 + $0x1dc] sm:$0xf] %vm330_vm0, %v13956_v1  ;;  %705 = vst.msk [vmem:[#allocation2 + $0x11c] sm:$0xf] %vm330_vm0, %v13956_v1  ;;  %s9157_s16 = smov 64   ;;  %v8843_v30 = vld [vmem:[%s13949_s1 + $0x20] sm:$0xff]   ;;  %v1663_v37 = vor.u32 %v9683_v60, %v9681_v59 }
  0x36   : > { %709 = vst.msk [vmem:[#allocation2 + $0x128] sm:$0xf] %vm330_vm0, %v13956_v1  ;;  %713 = vst.msk [vmem:[#allocation2 + $0x134] sm:$0xf] %vm330_vm0, %v13956_v1  ;;  %v418_v24 = vld [vmem:[#allocation2 + $0x1c] sm:$0x8] }
  0x37   : > { %717 = vst.msk [vmem:[#allocation2 + $0x140] sm:$0xf] %vm330_vm0, %v13956_v1  ;;  %721 = vst.msk [vmem:[#allocation2 + $0x14c] sm:$0xf] %vm330_vm0, %v13956_v1  ;;  %v630_v62 = vld [vmem:[#allocation2 + $0xf0] sm:$0x1] }
  0x38   : > { %725 = vst.msk [vmem:[#allocation2 + $0x158] sm:$0xf] %vm330_vm0, %v13956_v1  ;;  %729 = vst.msk [vmem:[#allocation2 + $0x164] sm:$0xf] %vm330_vm0, %v13956_v1  ;;  %v633_v55 = vld [vmem:[#allocation2 + $0xfc] sm:$0x1] }
  0x39   : > { %733 = vst.msk [vmem:[#allocation2 + $0x170] sm:$0xf] %vm330_vm0, %v13956_v1  ;;  %737 = vst.msk [vmem:[#allocation2 + $0x17c] sm:$0xf] %vm330_vm0, %v13956_v1  ;;  %v634_v2 = vsel %vm9260_vm3, 0, %v633_v55  ;;  %v14098_v33 = vmov 0 }
  0x3a   : > { %741 = vst.msk [vmem:[#allocation2 + $0x188] sm:$0xf] %vm330_vm0, %v13956_v1  ;;  %745 = vst.msk [vmem:[#allocation2 + $0x194] sm:$0xf] %vm330_vm0, %v13956_v1  ;;  %vm1211_vm12 = vsmask.f32 4368 }
  0x3b   : > { %749 = vst.msk [vmem:[#allocation2 + $0x1a0] sm:$0xf] %vm330_vm0, %v13956_v1  ;;  %753 = vst.msk [vmem:[#allocation2 + $0x1ac] sm:$0xf] %vm330_vm0, %v13956_v1  ;;  %v979_v29 = vld [vmem:[#allocation2 + $0x1fc] sm:$0x8] }
  0x3c   : > { %757 = vst.msk [vmem:[#allocation2 + $0x1b8] sm:$0xf] %vm330_vm0, %v13956_v1  ;;  %761 = vst.msk [vmem:[#allocation2 + $0x1c4] sm:$0xf] %vm330_vm0, %v13956_v1  ;;  %s9158_s22 = smov 32   ;;  %v1237_v59 = vrot.slane %v9660_v49, 4 }
  0x3d   : > { %828 = vst.msk [vmem:[#allocation3 + $0xe0] sm:$0xf] %vm330_vm0, %v13956_v1  ;;  %832 = vst.msk [vmem:[#allocation3 + $0xec] sm:$0xf] %vm330_vm0, %v13956_v1  ;;  %vm2938_vm15 = vcmask 261120   ;;  %vm3020_vm1 = vcmask 523264  }
  0x3e   : > { %836 = vst.msk [vmem:[#allocation3 + $0xf8] sm:$0xf] %vm330_vm0, %v13956_v1  ;;  %840 = vst.msk [vmem:[#allocation3 + $0x104] sm:$0xf] %vm330_vm0, %v13956_v1  ;;  %s283_s8 = sand.u32 1, %s9137_s25  }
  0x3f   : > { %844 = vst.msk [vmem:[#allocation3 + $0x110] sm:$0xf] %vm330_vm0, %v13956_v1  ;;  %848 = vst.msk [vmem:[#allocation3 + $0x11c] sm:$0xf] %vm330_vm0, %v13956_v1  ;;  %s7686_s12 = sshll.u32 %s283_s8, 7 }
  0x40   : > { %852 = vst.msk [vmem:[#allocation3 + $0x128] sm:$0xf] %vm330_vm0, %v13956_v1  ;;  %856 = vst.msk [vmem:[#allocation3 + $0x134] sm:$0xf] %vm330_vm0, %v13956_v1  ;;  %s13730_s15 = scalar_lea.vmem [#allocation4], %s7686_s12 }
  0x41   : > { %860 = vst.msk [vmem:[#allocation3 + $0x140] sm:$0xf] %vm330_vm0, %v13956_v1  ;;  %864 = vst.msk [vmem:[#allocation3 + $0x14c] sm:$0xf] %vm330_vm0, %v13956_v1  ;;  %s7596_s17 = sshll.u32 %s13730_s15, 4  ;;  %s13894_s17 = int_to_ptr.vmem [resolvable:$true] %s7596_s17 }
  0x42   : > { %868 = vst.msk [vmem:[#allocation3 + $0x158] sm:$0xf] %vm330_vm0, %v13956_v1  ;;  %872 = vst.msk [vmem:[#allocation3 + $0x164] sm:$0xf] %vm330_vm0, %v13956_v1 }
  0x43   : > { %876 = vst.msk [vmem:[#allocation3 + $0x170] sm:$0xf] %vm330_vm0, %v13956_v1  ;;  %880 = vst.msk [vmem:[#allocation3 + $0x17c] sm:$0xf] %vm330_vm0, %v13956_v1 }
  0x44   : > { %884 = vst.msk [vmem:[#allocation3 + $0x188] sm:$0xf] %vm330_vm0, %v13956_v1  ;;  %888 = vst.msk [vmem:[#allocation3 + $0x194] sm:$0xf] %vm330_vm0, %v13956_v1 }
  0x45   : > { %892 = vst.msk [vmem:[#allocation3 + $0x1a0] sm:$0xf] %vm330_vm0, %v13956_v1  ;;  %896 = vst.msk [vmem:[#allocation3 + $0x1ac] sm:$0xf] %vm330_vm0, %v13956_v1 }
  0x46   : > { %898 = vst.msk [vmem:[#allocation2 + $0x1e0] sm:$0xf] %vm330_vm0, %v13956_v1  ;;  %899 = vst.msk [vmem:[#allocation2 + $0x1e4] sm:$0xf] %vm330_vm0, %v13956_v1 }
  0x47   : > { %900 = vst.msk [vmem:[#allocation2 + $0x1e8] sm:$0xf] %vm330_vm0, %v13956_v1  ;;  %901 = vst.msk [vmem:[#allocation2 + $0x1ec] sm:$0xf] %vm330_vm0, %v13956_v1 }
  0x48   : > { %902 = vst.msk [vmem:[#allocation2 + $0x1f0] sm:$0xf] %vm330_vm0, %v13956_v1  ;;  %903 = vst.msk [vmem:[#allocation2 + $0x1f4] sm:$0xf] %vm330_vm0, %v13956_v1 }
  0x49   : > { %905 = vst.msk [vmem:[#allocation2 + $0x2b8] sm:$0xf] %vm330_vm0, %v13956_v1  ;;  %906 = vst.msk [vmem:[#allocation2 + $0x2bc] sm:$0xf] %vm330_vm0, %v13956_v1 }
  0x4a   : > { %907 = vst.msk [vmem:[#allocation2 + $0x2c0] sm:$0xf] %vm330_vm0, %v13956_v1  ;;  %908 = vst.msk [vmem:[#allocation2 + $0x2c4] sm:$0xf] %vm330_vm0, %v13956_v1 }
  0x4b   : > { %909 = vst.msk [vmem:[#allocation2 + $0x2c8] sm:$0xf] %vm330_vm0, %v13956_v1  ;;  %910 = vst.msk [vmem:[#allocation2 + $0x2cc] sm:$0xf] %vm330_vm0, %v13956_v1 }
  0x4c   : > { %982 = vst.msk [vmem:[#allocation2 + $0x200] sm:$0xf] %vm330_vm0, %v13956_v1  ;;  %986 = vst.msk [vmem:[#allocation2 + $0x20c] sm:$0xf] %vm330_vm0, %v13956_v1 }
  0x4d   : > { %990 = vst.msk [vmem:[#allocation2 + $0x218] sm:$0xf] %vm330_vm0, %v13956_v1  ;;  %994 = vst.msk [vmem:[#allocation2 + $0x224] sm:$0xf] %vm330_vm0, %v13956_v1  ;;  %v911_v21 = vld [vmem:[#allocation2 + $0x1e0] sm:$0x1] }
  0x4e   : > { %998 = vst.msk [vmem:[#allocation2 + $0x230] sm:$0xf] %vm330_vm0, %v13956_v1  ;;  %1002 = vst.msk [vmem:[#allocation2 + $0x23c] sm:$0xf] %vm330_vm0, %v13956_v1  ;;  %v971_v22 = vld [vmem:[#allocation2 + $0x1e4] sm:$0x8] }
  0x4f   : > { %1006 = vst.msk [vmem:[#allocation2 + $0x248] sm:$0xf] %vm330_vm0, %v13956_v1  ;;  %1010 = vst.msk [vmem:[#allocation2 + $0x254] sm:$0xf] %vm330_vm0, %v13956_v1  ;;  %v912_v26 = vsel %vm9260_vm3, 0, %v911_v21 }
  0x50   : > { %1014 = vst.msk [vmem:[#allocation2 + $0x260] sm:$0xf] %vm330_vm0, %v13956_v1  ;;  %1018 = vst.msk [vmem:[#allocation2 + $0x26c] sm:$0xf] %vm330_vm0, %v13956_v1  ;;  %v914_v40 = vld [vmem:[#allocation2 + $0x1ec] sm:$0x1] }
  0x51   : > { %1022 = vst.msk [vmem:[#allocation2 + $0x278] sm:$0xf] %vm330_vm0, %v13956_v1  ;;  %1026 = vst.msk [vmem:[#allocation2 + $0x284] sm:$0xf] %vm330_vm0, %v13956_v1  ;;  %v915_v43 = vsel %vm9260_vm3, 0, %v914_v40 }
  0x52   : > { %1030 = vst.msk [vmem:[#allocation2 + $0x290] sm:$0xf] %vm330_vm0, %v13956_v1  ;;  %1034 = vst.msk [vmem:[#allocation2 + $0x29c] sm:$0xf] %vm330_vm0, %v13956_v1  ;;  %v975_v44 = vld [vmem:[#allocation2 + $0x1f0] sm:$0x8] }
  0x53   : > { %1038 = vst.msk [vmem:[#allocation2 + $0x2a8] sm:$0xf] %vm330_vm0, %v13956_v1  ;;  %1042 = vst.msk [vmem:[#allocation2 + $0x2b4] sm:$0xf] %vm330_vm0, %v13956_v1 }
  0x54   : > { %1109 = vst.msk [vmem:[#allocation3 + $0x1b8] sm:$0xf] %vm330_vm0, %v13956_v1  ;;  %1113 = vst.msk [vmem:[#allocation3 + $0x1c4] sm:$0xf] %vm330_vm0, %v13956_v1 }
  0x55   : > { %1117 = vst.msk [vmem:[#allocation3 + $0x1d0] sm:$0xf] %vm330_vm0, %v13956_v1  ;;  %1121 = vst.msk [vmem:[#allocation3 + $0x1dc] sm:$0xf] %vm330_vm0, %v13956_v1 }
  0x56   : > { %1125 = vst.msk [vmem:[#allocation3 + $0x1e8] sm:$0xf] %vm330_vm0, %v13956_v1  ;;  %1129 = vst.msk [vmem:[#allocation3 + $0x1f4] sm:$0xf] %vm330_vm0, %v13956_v1 }
  0x57   : > { %1133 = vst.msk [vmem:[#allocation3 + $0x200] sm:$0xf] %vm330_vm0, %v13956_v1  ;;  %1137 = vst.msk [vmem:[#allocation3 + $0x20c] sm:$0xf] %vm330_vm0, %v13956_v1 }
  0x58   : > { %1141 = vst.msk [vmem:[#allocation3 + $0x218] sm:$0xf] %vm330_vm0, %v13956_v1  ;;  %1145 = vst.msk [vmem:[#allocation3 + $0x224] sm:$0xf] %vm330_vm0, %v13956_v1 }
  0x59   : > { %1149 = vst.msk [vmem:[#allocation3 + $0x230] sm:$0xf] %vm330_vm0, %v13956_v1  ;;  %1153 = vst.msk [vmem:[#allocation3 + $0x23c] sm:$0xf] %vm330_vm0, %v13956_v1 }
  0x5a   : > { %1157 = vst.msk [vmem:[#allocation3 + $0x248] sm:$0xf] %vm330_vm0, %v13956_v1  ;;  %1161 = vst.msk [vmem:[#allocation3 + $0x254] sm:$0xf] %vm330_vm0, %v13956_v1 }
  0x5b   : > { %1165 = vst.msk [vmem:[#allocation3 + $0x260] sm:$0xf] %vm330_vm0, %v13956_v1  ;;  %1169 = vst.msk [vmem:[#allocation3 + $0x26c] sm:$0xf] %vm330_vm0, %v13956_v1 }
  0x5c   : > { %1173 = vst.msk [vmem:[#allocation3 + $0x278] sm:$0xf] %vm330_vm0, %v13956_v1  ;;  %1177 = vst.msk [vmem:[#allocation3 + $0x284] sm:$0xf] %vm330_vm0, %v13956_v1 }
  0x5d   : > { %vm9550_vm6 = vmand %vm407_vm4, %vm408_vm5  ;;  %697 = vst.msk [vmem:[#allocation2 + $0x104] sm:$0xf] %vm330_vm0, %v13956_v1  ;;  %vm9160_vm4 = vmmov 0  }
  0x5e   : > { %413 = vst.msk [vmem:[#allocation2 + $0x8] sm:$0xf] %vm330_vm0, %v13956_v1  ;;  %417 = vst.msk [vmem:[#allocation2 + $0x14] sm:$0xf] %vm330_vm0, %v13956_v1  ;;  %v699_v7 = vsel %vm9550_vm6, 0, %v698_v5  ;;  %v972_v27 = vsel %vm9550_vm6, 0, %v971_v22 }
  0x5f   : > { %485 = vst.msk [vmem:[#allocation2 + $0xe0] sm:$0xf] %vm330_vm0, %v13956_v1  ;;  %489 = vst.msk [vmem:[#allocation2 + $0xec] sm:$0xf] %vm330_vm0, %v13956_v1  ;;  %v415_v42 = vsel %vm9550_vm6, 0, %v414_v32  ;;  %v976_v61 = vsel %vm9550_vm6, 0, %v975_v44 }
  0x60   : > { %693 = vst.msk [vmem:[#allocation2 + $0xf8] sm:$0xf] %vm330_vm0, %v13956_v1  ;;  %765 = vst.msk [vmem:[#allocation2 + $0x1d0] sm:$0xf] %vm330_vm0, %v13956_v1  ;;  %v690_v5 = vld [vmem:[#allocation2 + $0xf4] sm:$0x8] }
  0x61   : > { %769 = vst.msk [vmem:[#allocation2 + $0x1dc] sm:$0xf] %vm330_vm0, %v13956_v1  ;;  %974 = vst.msk [vmem:[#allocation2 + $0x1e8] sm:$0xf] %vm330_vm0, %v13956_v1  ;;  %v419_v28 = vsel %vm9550_vm6, 0, %v418_v24 }
  0x62   : > { %978 = vst.msk [vmem:[#allocation2 + $0x1f4] sm:$0xf] %vm330_vm0, %v13956_v1  ;;  %1046 = vst.msk [vmem:[#allocation2 + $0x2c0] sm:$0xf] %vm330_vm0, %v13956_v1 }
  0x63   : > { %1050 = vst.msk [vmem:[#allocation2 + $0x2cc] sm:$0xf] %vm330_vm0, %v13956_v1  ;;  %5249 = vst.msk [vmem:[#allocation3 + $0xe0] sm:$0xf] %vm330_vm0, %v13956_v1 }
  0x64   : > { %5252 = vst.msk [vmem:[#allocation3 + $0x1b8] sm:$0xf] %vm330_vm0, %v13956_v1  ;;  %5260 = vst.msk [vmem:[#allocation3 + $0x1ac] sm:$0xf] %vm330_vm0, %v13956_v1  ;;  %v9642_v35 = vld [vmem:[#allocation2 + $0x104] sm:$0xf] }
  0x65   : > { %5264 = vst.msk [vmem:[#allocation3 + $0x284] sm:$0xf] %vm330_vm0, %v13956_v1  ;;  %638 = vst [vmem:[#allocation2 + $0x108] sm:$0x1] %v637_v4  ;;  %v631_v4 = vsel %vm9260_vm3, 0, %v630_v62  ;;  %v1664_v62 = vrot.slane %v1663_v37, 4 }
  0x66   : > { %700 = vst [vmem:[#allocation2 + $0x10c] sm:$0x8] %v699_v7  ;;  %641 = vst [vmem:[#allocation2 + $0x114] sm:$0x1] %v640_v8  ;;  %v8841_v8 = vld [vmem:[%s13949_s1 + $0x18] sm:$0xff]  }
  0x67   : > { %358 = vst [vmem:[#allocation2 + $0x24] sm:$0x1] %v357_v10  ;;  %919 = vst [vmem:[#allocation2 + $0x1f8] sm:$0x1] %v918_v12  ;;  %v691_v10 = vsel %vm9550_vm6, 0, %v690_v5  ;;  %3605 = vmatpush1.bf16.msra.mxu0 %v8841_v8 }
  0x68   : > { %1179 = vst.msk [vmem:[#allocation2 + $0x108] sm:$0xf] %vm330_vm0, %v9607_v14  ;;  %1180 = vst.msk [vmem:[#allocation2 + $0x10c] sm:$0xf] %vm330_vm0, %v9610_v15  ;;  %v1541_v12 = vld [vmem:[#allocation2 + $0x20] sm:$0x1]  ;;  %3606 = vmatprep.subr.bf16.mxu0 %v13956_v1 }
  0x69   : > { %1181 = vst.msk [vmem:[#allocation2 + $0x114] sm:$0xf] %vm330_vm0, %v300_v16  ;;  %913 = vst [vmem:[#allocation2 + $0x1e0] sm:$0x1] %v912_v26  ;;  %v694_v16 = vld [vmem:[#allocation2 + $0x100] sm:$0x8]  ;;  %v1542_v19 = vsel %vm9260_vm3, %v1229_v56, %v1541_v12  ;;  %v1659_v26 = vor.u32 %v9640_v34, %v9635_v31 }
  0x6a   : > { %973 = vst [vmem:[#allocation2 + $0x1e4] sm:$0x8] %v972_v27  ;;  %352 = vst [vmem:[#allocation2 + $0xc] sm:$0x1] %v351_v39  ;;  %v695_v22 = vsel %vm9550_vm6, 0, %v694_v16  ;;  %v354_v15 = vsel %vm9260_vm3, 0, %v353_v57 }
  0x6b   : > { %416 = vst [vmem:[#allocation2 + $0x10] sm:$0x8] %v415_v42  ;;  %916 = vst [vmem:[#allocation2 + $0x1ec] sm:$0x1] %v915_v43  ;;  %v7691_v32 = vld [vmem:[#allocation2 + $0xf8] sm:$0xf]  ;;  %v1219_v43 = vor.u32 %v1217_v18, %v9625_v25  ;;  %3607 = vmatpush1.bf16.msra.mxu0 %v8843_v30 }
  0x6c   : > { %vm9664_vm10 = vmor %vm1649_vm8, %vm1650_vm9  ;;  %977 = vst [vmem:[#allocation2 + $0x1f0] sm:$0x8] %v976_v61  ;;  %v9747_v34 = vld [vmem:[#allocation2 + $0x14] sm:$0xf]  ;;  %v422_v42 = vld [vmem:[#allocation2 + $0x28] sm:$0x8]  ;;  %3608 = vmatprep.subr.bf16.mxu0 %v13956_v1 }
  0x6d   : > { %v14093_v50 = vsel %vm9664_vm10, 4294967295, %v14092_v50  ;;  %vm9699_vm11 = vmand %vm330_vm0, %vm1535_vm7  ;;  %v1657_v7 = vsel %vm9664_vm10, %v1655_v41, %v9635_v31  ;;  %635 = vst [vmem:[#allocation2 + $0xfc] sm:$0x1] %v634_v2  ;;  %v980_v31 = vsel %vm9550_vm6, 0, %v979_v29  ;;  %v301_v41 = vld [vmem:[%s9599_s19 + $0xc] sm:$0xf] }
  0x6e   : > { %14094 = vst [vmem:[#allocation7_spill] sm:$0xff] %v14093_v50  ;;  %v14096_v6 = vsel %vm9699_vm11, 4294967295, %v14095_v6  ;;  %632 = vst [vmem:[#allocation2 + $0xf0] sm:$0x1] %v631_v4  ;;  %v1544_v13 = vld [vmem:[#allocation2 + $0x24] sm:$0xf] }
  0x6f   : > { %v9656_v47 = vld [vmem:[#allocation2 + $0x108] sm:$0xf]  ;;  %v9658_v48 = vld [vmem:[#allocation2 + $0x10c] sm:$0xf]  ;;  %14097 = vst [vmem:[#allocation8_spill] sm:$0xff] %v14096_v6  ;;  %v1545_v21 = vsel %vm9699_vm11, %v1236_v58, %v1544_v13  ;;  %vm9741_vm13 = vmor %vm345_vm2, %vm1211_vm12  ;;  %v423_v57 = vsel %vm9550_vm6, 0, %v422_v42 }
  0x70   : > { %v9671_v51 = vcombine.low %v9656_v47, %v9658_v48  ;;  %v9677_v54 = vld [vmem:[#allocation2 + $0x114] sm:$0xf]  ;;  %1829 = vst.msk [vmem:[#allocation2 + $0x1f8] sm:$0xf] %vm330_vm0, %v1657_v7  ;;  %692 = vst [vmem:[#allocation2 + $0xf4] sm:$0x8] %v691_v10  ;;  %v1228_v39 = vsel %vm9741_vm13, %v1220_v46, %v1227_v11 }
  0x71   : > { %v9691_v63 = vcombine.low %v9644_v36, %v9677_v54  ;;  %v8810_v9 = vld [vmem:[#allocation2 + $0x1e0] sm:$0xff]   ;;  %v1900_v17 = vld [vmem:[#allocation2 + $0xc] sm:$0xf]  ;;  %1543 = vst [vmem:[#allocation2 + $0x20] sm:$0x1] %v1542_v19  ;;  %v14099_v33 = vsel %vm9741_vm13, 4294967295, %v14098_v33  ;;  %vm9779_vm14 = vmand %vm330_vm0, %vm1649_vm8 }
  0x72   : > { %2875 = vrot.lane.b32.xlu0 %v9671_v51, %s9156_s10  ;;  %2542 = vrot.lane.b32.xlu1 %v8810_v9, %s9157_s16  ;;  %v9727_v20 = vld [vmem:[#allocation2 + $0x10] sm:$0xf]  ;;  %v9729_v23 = vld [vmem:[#allocation2 + $0x1ec] sm:$0xf]  ;;  %1546 = vst [vmem:[#allocation2 + $0x24] sm:$0xf] %v1545_v21 }
  0x73   : > { %696 = vst [vmem:[#allocation2 + $0x100] sm:$0x8] %v695_v22  ;;  %355 = vst [vmem:[#allocation2 + $0x18] sm:$0x1] %v354_v15  ;;  %v7890_v27 = vcombine.low %v1900_v17, %v9727_v20  ;;  %v9752_v38 = vld [vmem:[#allocation2 + $0x1f0] sm:$0xf] }
  0x74   : > { %420 = vst [vmem:[#allocation2 + $0x1c] sm:$0x8] %v419_v28  ;;  %14100 = vst [vmem:[#allocation9_spill] sm:$0xff] %v14099_v33  ;;  %v7944_v44 = vcombine.low %v9729_v23, %v9752_v38  ;;  %v9766_v45 = vld [vmem:[#allocation2 + $0xfc] sm:$0xf]  ;;  %v1660_v46 = vrot.slane %v1659_v26, 4 }
  0x75   : > { %981 = vst [vmem:[#allocation2 + $0x1fc] sm:$0x8] %v980_v31  ;;  %v7751_v55 = vld [vmem:[#allocation2 + $0x1e8] sm:$0xf]  ;;  %1540 = vst.msk [vmem:[#allocation2 + $0x1c] sm:$0xf] %vm330_vm0, %v1228_v39  ;;  %v7837_v56 = vcombine.low %v7691_v32, %v9766_v45 }
  0x76   : > { %2877 = vrot.lane.b32.xlu0 %v9691_v63, %s9156_s10  ;;  %2629 = vrot.lane.b32.xlu1 %v7890_v27, %s9156_s10  ;;  %v1239_v58 = vshrl.u32 %v301_v41, 16  ;;  %v8845_v14 = vld [vmem:[%s13949_s1 + $0x28] sm:$0xff]   ;;  %v14101_v25 = vmov 0  ;;  %424 = vst [vmem:[#allocation2 + $0x28] sm:$0x8] %v423_v57  ;;  %v1242_v60 = vshll.u32 %v301_v41, 16  ;;  %v7864_v2 = vcombine.low %v7751_v55, %v9729_v23 }
  0x77   : > { %v8815_v18 = vld [vmem:[#allocation2 + $0xf0] sm:$0xff]   ;;  %v14102_v25 = vsel %vm9779_vm14, 4294967295, %v14101_v25  ;;  %v702_v61 = vld [vmem:[#allocation2 + $0x118] sm:$0x8]  ;;  %v1548_v12 = vld [vmem:[#allocation2 + $0x2c] sm:$0x1]  ;;  %3609 = vmatpush1.bf16.msra.mxu0 %v8845_v14 }
  0x78   : > { %14103 = vst [vmem:[#allocation10_spill] sm:$0xff] %v14102_v25  ;;  %v9786_v4 = vld [vmem:[#allocation2 + $0x20] sm:$0xf]  ;;  %v9792_v8 = vld [vmem:[#allocation2 + $0x1f4] sm:$0xf]  ;;  %v1241_v11 = vrot.slane %v1239_v58, 7  ;;  %3610 = vmatprep.subr.bf16.mxu0 %v13956_v1 }
  0x79   : > { %v9788_v5 = vld [vmem:[#allocation2 + $0x24] sm:$0xf]  ;;  %v9794_v9 = vld [vmem:[#allocation2 + $0x1f8] sm:$0xf]  ;;  %v8847_v13 = vld [vmem:[%s13949_s1 + $0x30] sm:$0xff]   ;;  %v703_v19 = vsel %vm9550_vm6, 0, %v702_v61 }
  0x7a   : > { %2749 = vrot.lane.b32.xlu0 %v7944_v44, %s9158_s22  ;;  %2355 = vrot.lane.b32.xlu1 %v7837_v56, %s9158_s22  ;;  %v9790_v7 = vld [vmem:[#allocation2 + $0x100] sm:$0xf]  ;;  %v1537_v10 = vld [vmem:[#allocation2 + $0x18] sm:$0xf]  ;;  %v9803_v16 = vcombine.low %v9786_v4, %v9788_v5  ;;  %v920_v21 = vld [vmem:[#allocation2 + $0x204] sm:$0x1]  ;;  %v1244_v24 = vor.u32 %v1242_v60, %v1241_v11  ;;  %v7945_v42 = vcombine.low %v9792_v8, %v9794_v9 }
  0x7b   : > { %v1538_v17 = vsel %vm9699_vm11, %v1219_v43, %v1537_v10  ;;  %v983_v22 = vld [vmem:[#allocation2 + $0x208] sm:$0x8]  ;;  %v1665_v15 = vrot.slane %v1242_v60, 5  ;;  %v1246_v26 = vrot.slane %v1241_v11, 4  ;;  %704 = vst [vmem:[#allocation2 + $0x118] sm:$0x8] %v703_v19  ;;  %v7838_v29 = vcombine.low %v9790_v7, %v9642_v35  ;;  %3611 = vmatpush1.bf16.msra.mxu0 %v8847_v13 }
  0x7c   : > { %14104 = vst [vmem:[#allocation11_spill] sm:$0xff] %v9803_v16  ;;  %1539 = vst [vmem:[#allocation2 + $0x18] sm:$0xf] %v1538_v17  ;;  %v1831_v23 = vld [vmem:[#allocation2 + $0x1fc] sm:$0xf]  ;;  %v921_v27 = vsel %vm9260_vm3, 0, %v920_v21  ;;  %v1245_v43 = vsel %vm9741_vm13, %v1237_v59, %v1244_v24  ;;  %3612 = vmatprep.subr.bf16.mxu0 %v13956_v1 }
  0x7d   : > { %v984_v28 = vsel %vm9550_vm6, 0, %v983_v22  ;;  %v1832_v30 = vsel %vm9779_vm14, %v1660_v46, %v1831_v23  ;;  %1182 = vst.msk [vmem:[#allocation2 + $0x118] sm:$0xf] %vm330_vm0, %v301_v41  ;;  %922 = vst [vmem:[#allocation2 + $0x204] sm:$0x1] %v921_v27  ;;  %v1666_v32 = vsel %vm9664_vm10, %v1664_v62, %v1665_v15  ;;  %v1667_v31 = vrot.slane %v1239_v58, 4 }
  0x7e   : > { %2353 = vrot.lane.b32.xlu0 %v8815_v18, %s9158_s22  ;;  %2544 = vrot.lane.b32.xlu1 %v7864_v2, %s9157_s16  ;;  %985 = vst [vmem:[#allocation2 + $0x208] sm:$0x8] %v984_v28  ;;  %v302_v37 = vld [vmem:[%s9599_s19 + $0x10] sm:$0xf]  ;;  %v8849_v39 = vld [vmem:[%s13949_s1 + $0x38] sm:$0xff]   ;;  %v1549_v41 = vsel %vm9260_vm3, %v1246_v26, %v1548_v12  ;;  %vm3075_vm2 = vcmask 785408  }
  0x7f   : > { %1833 = vst [vmem:[#allocation2 + $0x1fc] sm:$0xf] %v1832_v30  ;;  %1834 = vst.msk [vmem:[#allocation2 + $0x204] sm:$0xf] %vm330_vm0, %v1666_v32  ;;  %v303_v44 = vld [vmem:[%s9599_s19 + $0x14] sm:$0xf]  ;;  %v1668_v57 = vor.u32 %v1667_v31, %v1665_v15  ;;  %3613 = vmatpush1.bf16.msra.mxu0 %v8849_v39 }
  0x80   : > { %v359_v55 = vld [vmem:[#allocation2 + $0x30] sm:$0x1]  ;;  %v426_v46 = vld [vmem:[#allocation2 + $0x34] sm:$0x8]  ;;  %v9835_v56 = vld [vmem:[#allocation2 + $0x1c] sm:$0xf]  ;;  %3614 = vmatprep.subr.bf16.mxu0 %v13956_v1 }
  0x81   : > { %1547 = vst.msk [vmem:[#allocation2 + $0x28] sm:$0xf] %vm330_vm0, %v1245_v43  ;;  %1550 = vst [vmem:[#allocation2 + $0x2c] sm:$0x1] %v1549_v41  ;;  %v360_v58 = vsel %vm9260_vm3, 0, %v359_v55  ;;  %v427_v14 = vsel %vm9550_vm6, 0, %v426_v46 }
  0x82   : > { %v1248_v18 = vshrl.u32 %v302_v37, 16  ;;  %v642_v59 = vld [vmem:[#allocation2 + $0x120] sm:$0x1]  ;;  %2814 = vrot.lane.b32.xlu0 %v9803_v16, %s9157_s16  ;;  %361 = vst [vmem:[#allocation2 + $0x30] sm:$0x1] %v360_v58  ;;  %v1251_v60 = vshll.u32 %v302_v37, 16  ;;  %2357 = vrot.lane.b32.xlu1 %v7838_v29, %s9158_s22 }
  0x83   : > { %428 = vst [vmem:[#allocation2 + $0x34] sm:$0x8] %v427_v14  ;;  %v1256_v61 = vshrl.u32 %v303_v44, 16  ;;  %v1259_v62 = vshll.u32 %v303_v44, 16  ;;  %v643_v2 = vsel %vm9260_vm3, 0, %v642_v59  ;;  %v1669_v11 = vrot.slane %v1668_v57, 4 }
  0x84   : > { %v706_v10 = vld [vmem:[#allocation2 + $0x124] sm:$0x8]  ;;  %v1250_v12 = vrot.slane %v1248_v18, 7  ;;  %644 = vst [vmem:[#allocation2 + $0x120] sm:$0x1] %v643_v2  ;;  %v1670_v19 = vrot.slane %v1248_v18, 4 }
  0x85   : > { %v707_v13 = vsel %vm9550_vm6, 0, %v706_v10  ;;  %v923_v17 = vld [vmem:[#allocation2 + $0x210] sm:$0x1]  ;;  %v9850_v21 = vld [vmem:[#allocation2 + $0x200] sm:$0xf]  ;;  %v1258_v22 = vrot.slane %v1256_v61, 7 }
  0x86   : > { %708 = vst [vmem:[#allocation2 + $0x124] sm:$0x8] %v707_v13  ;;  %1183 = vst.msk [vmem:[#allocation2 + $0x120] sm:$0xf] %vm330_vm0, %v302_v37  ;;  %v924_v15 = vsel %vm9260_vm3, 0, %v923_v17  ;;  %v1671_v23 = vrot.slane %v1251_v60, 5  ;;  %2751 = vrot.lane.b32.xlu0 %v7945_v42, %s9158_s22  ;;  %v1253_v37 = vor.u32 %v1251_v60, %v1250_v12 }
  0x87   : > { %v8851_v24 = vld [vmem:[%s13949_s1 + $0x40] sm:$0xff]   ;;  %v1903_v26 = vld [vmem:[#allocation2 + $0x18] sm:$0xf]  ;;  %v1254_v27 = vrot.slane %v1250_v12, 4  ;;  %1184 = vst.msk [vmem:[#allocation2 + $0x124] sm:$0xf] %vm330_vm0, %v303_v44  ;;  %v1261_v39 = vor.u32 %v1259_v62, %v1258_v22 }
  0x88   : > { %925 = vst [vmem:[#allocation2 + $0x210] sm:$0x1] %v924_v15  ;;  %v9859_v28 = vrot.slane %v1259_v62, 5  ;;  %v9862_v29 = vld [vmem:[%s9599_s19 + $0x18] sm:$0xf]  ;;  %v9867_v30 = vcombine.low %v1903_v26, %v9835_v56  ;;  %v1672_v43 = vor.u32 %v1671_v23, %v1670_v19  ;;  %v9879_v57 = vrot.slane %v1256_v61, 4  ;;  %3615 = vmatpush1.bf16.msra.mxu0 %v8851_v24 }
  0x89   : > { %v9869_v32 = vld [vmem:[#allocation2 + $0x118] sm:$0xf]  ;;  %v1835_v31 = vld [vmem:[#allocation2 + $0x208] sm:$0xf]  ;;  %v362_v41 = vld [vmem:[#allocation2 + $0x3c] sm:$0x1]  ;;  %v7891_v14 = vcombine.low %v9747_v34, %v1903_v26  ;;  %v1262_v60 = vsel %vm9741_vm13, %v1254_v27, %v1261_v39  ;;  %3616 = vmatprep.subr.bf16.mxu0 %v13956_v1  ;;  %v7865_v39 = vcombine.low %v9752_v38, %v9792_v8 }
  0x8a   : > { %14105 = vst [vmem:[#allocation12_spill] sm:$0xff] %v9867_v30  ;;  %v9871_v44 = vld [vmem:[#allocation2 + $0x1fc] sm:$0xf]  ;;  %v1836_v46 = vsel %vm9779_vm14, %v1669_v11, %v1835_v31  ;;  %v363_v42 = vsel %vm9260_vm3, 0, %v362_v41  ;;  %2812 = vrot.lane.b32.xlu1 %v9867_v30, %s9157_s16  ;;  %v9886_v18 = vld [vmem:[#allocation2 + $0x28] sm:$0xf] }
  0x8b   : > { %v7946_v58 = vcombine.low %v9871_v44, %v9850_v21  ;;  %v9888_v59 = vld [vmem:[#allocation2 + $0x2c] sm:$0xf]  ;;  %1837 = vst [vmem:[#allocation2 + $0x208] sm:$0xf] %v1836_v46  ;;  %v1673_v62 = vrot.slane %v1672_v43, 4  ;;  %v1263_v10 = vrot.slane %v1258_v22, 4 }
  0x8c   : > { %364 = vst [vmem:[#allocation2 + $0x3c] sm:$0x1] %v363_v42  ;;  %v8853_v61 = vld [vmem:[%s13949_s1 + $0x48] sm:$0xff]   ;;  %v1551_v2 = vld [vmem:[#allocation2 + $0x30] sm:$0xf]  ;;  %v1265_v11 = vshrl.u32 %v9862_v29, 16  ;;  %v9901_v13 = vcombine.low %v9886_v18, %v9888_v59 }
  0x8d   : > { %1554 = vst.msk [vmem:[#allocation2 + $0x34] sm:$0xf] %vm330_vm0, %v1262_v60  ;;  %v1555_v12 = vld [vmem:[#allocation2 + $0x38] sm:$0x1]  ;;  %2753 = vrot.lane.b32.xlu0 %v7946_v58, %s9158_s22  ;;  %v9903_v17 = vld [vmem:[#allocation2 + $0x11c] sm:$0xf]  ;;  %v1552_v19 = vsel %vm9699_vm11, %v1253_v37, %v1551_v2  ;;  %v1675_v22 = vsel %vm9664_vm10, %v1673_v62, %v9859_v28  ;;  %v1677_v58 = vor.u32 %v9879_v57, %v9859_v28 }
  0x8e   : > { %14106 = vst [vmem:[#allocation13_spill] sm:$0xff] %v9901_v13  ;;  %14107 = vst [vmem:[#allocation14_spill] sm:$0xff] %v9903_v17  ;;  %v1268_v15 = vshll.u32 %v9862_v29, 16  ;;  %v645_v23 = vld [vmem:[#allocation2 + $0x12c] sm:$0x1]  ;;  %v9914_v26 = vrot.slane %v1265_v11, 7  ;;  %v1556_v27 = vsel %vm9260_vm3, %v1263_v10, %v1555_v12  ;;  %2631 = vrot.lane.b32.xlu1 %v7891_v14, %s9156_s10  ;;  %3617 = vmatpush1.bf16.msra.mxu0 %v8853_v61 }
  0x8f   : > { %1553 = vst [vmem:[#allocation2 + $0x30] sm:$0xf] %v1552_v19  ;;  %v9911_v24 = vld [vmem:[#allocation2 + $0x120] sm:$0xf]  ;;  %1838 = vst.msk [vmem:[#allocation2 + $0x210] sm:$0xf] %vm330_vm0, %v1675_v22  ;;  %v9938_v8 = vcombine.low %v9869_v32, %v9903_v17  ;;  %3618 = vmatprep.subr.bf16.mxu0 %v13956_v1 }
  0x90   : > { %14108 = vst [vmem:[#allocation15_spill] sm:$0xff] %v9911_v24  ;;  %v646_v31 = vsel %vm9260_vm3, 0, %v645_v23  ;;  %v987_v37 = vld [vmem:[#allocation2 + $0x214] sm:$0x8]  ;;  %v9923_v43 = vld [vmem:[#allocation2 + $0x124] sm:$0xf]  ;;  %v1270_v14 = vor.u32 %v1268_v15, %v9914_v26 }
  0x91   : > { %14109 = vst [vmem:[#allocation16_spill] sm:$0xff] %v9923_v43  ;;  %1557 = vst [vmem:[#allocation2 + $0x38] sm:$0x1] %v1556_v27  ;;  %v9927_v46 = vld [vmem:[#allocation2 + $0x128] sm:$0xf]  ;;  %v988_v42 = vsel %vm9550_vm6, 0, %v987_v37  ;;  %2816 = vrot.lane.b32.xlu0 %v9901_v13, %s9157_s16 }
  0x92   : > { %647 = vst [vmem:[#allocation2 + $0x12c] sm:$0x1] %v646_v31  ;;  %14110 = vst [vmem:[#allocation17_spill] sm:$0xff] %v9927_v46  ;;  %v8855_v38 = vld [vmem:[%s13949_s1 + $0x50] sm:$0xff]   ;;  %v305_v62 = vld [vmem:[%s9599_s19 + $0x1c] sm:$0xf]  ;;  %2546 = vrot.lane.b32.xlu1 %v7865_v39, %s9157_s16 }
  0x93   : > { %1185 = vst.msk [vmem:[#allocation2 + $0x12c] sm:$0xf] %vm330_vm0, %v9862_v29  ;;  %989 = vst [vmem:[#allocation2 + $0x214] sm:$0x8] %v988_v42  ;;  %v430_v28 = vld [vmem:[#allocation2 + $0x40] sm:$0x8]  ;;  %v7892_v29 = vcombine.low %v9835_v56, %v9786_v4  ;;  %3619 = vmatpush1.bf16.msra.mxu0 %v8855_v38 }
  0x94   : > { %v9949_v57 = vld [vmem:[#allocation2 + $0x204] sm:$0xf]  ;;  %v431_v61 = vsel %vm9550_vm6, 0, %v430_v28  ;;  %v1273_v2 = vshrl.u32 %v305_v62, 16  ;;  %v1276_v10 = vshll.u32 %v305_v62, 16  ;;  %v1679_v12 = vrot.slane %v1265_v11, 4  ;;  %3620 = vmatprep.subr.bf16.mxu0 %v13956_v1 }
  0x95   : > { %v9955_v19 = vld [vmem:[#allocation2 + $0x208] sm:$0xf]  ;;  %v1558_v22 = vld [vmem:[#allocation2 + $0x3c] sm:$0xf]  ;;  %432 = vst [vmem:[#allocation2 + $0x40] sm:$0x8] %v431_v61  ;;  %2879 = vrot.lane.b32.xlu0 %v9938_v8, %s9156_s10 }
  0x96   : > { %v710_v23 = vld [vmem:[#allocation2 + $0x130] sm:$0x8]  ;;  %v1559_v27 = vsel %vm9699_vm11, %v1270_v14, %v1558_v22  ;;  %v1678_v31 = vrot.slane %v1677_v58, 4  ;;  %v1271_v37 = vrot.slane %v9914_v26, 4  ;;  %v1275_v42 = vrot.slane %v1273_v2, 7  ;;  %v8857_v4 = vld [vmem:[%s13949_s1 + $0x58] sm:$0xff]   ;;  %2633 = vrot.lane.b32.xlu1 %v7892_v29, %s9156_s10 }
  0x97   : > { %v1562_v28 = vld [vmem:[#allocation2 + $0x44] sm:$0x1]  ;;  %1560 = vst [vmem:[#allocation2 + $0x3c] sm:$0xf] %v1559_v27  ;;  %v711_v56 = vsel %vm9550_vm6, 0, %v710_v23  ;;  %v1680_v61 = vrot.slane %v1268_v15, 5  ;;  %v7947_v26 = vcombine.low %v9949_v57, %v9955_v19  ;;  %3621 = vmatpush1.bf16.msra.mxu0 %v8857_v4  ;;  %v10015_v4 = vcombine.low %v9794_v9, %v9871_v44 }
  0x98   : > { %v926_v11 = vld [vmem:[#allocation2 + $0x21c] sm:$0x1]  ;;  %v991_v39 = vld [vmem:[#allocation2 + $0x220] sm:$0x8]  ;;  %v9971_v58 = vld [vmem:[#allocation2 + $0x30] sm:$0xf]  ;;  %v1278_v14 = vor.u32 %v1276_v10, %v1275_v42  ;;  %3622 = vmatprep.subr.bf16.mxu0 %v13956_v1 }
  0x99   : > { %v9973_v38 = vld [vmem:[#allocation2 + $0x34] sm:$0xf]  ;;  %v1280_v22 = vrot.slane %v1275_v42, 4  ;;  %712 = vst [vmem:[#allocation2 + $0x130] sm:$0x8] %v711_v56  ;;  %v927_v23 = vsel %vm9260_vm3, 0, %v926_v11  ;;  %v1681_v56 = vor.u32 %v1680_v61, %v1679_v12  ;;  %2755 = vrot.lane.b32.xlu0 %v7947_v26, %s9158_s22 }
  0x9a   : > { %1186 = vst.msk [vmem:[#allocation2 + $0x130] sm:$0xf] %vm330_vm0, %v305_v62  ;;  %928 = vst [vmem:[#allocation2 + $0x21c] sm:$0x1] %v927_v23  ;;  %v992_v15 = vsel %vm9550_vm6, 0, %v991_v39  ;;  %v1279_v41 = vsel %vm9741_vm13, %v1271_v37, %v1278_v14  ;;  %v8859_v62 = vld [vmem:[%s13949_s1 + $0x60] sm:$0xff]   ;;  %v9996_v39 = vcombine.low %v9971_v58, %v9973_v38  ;;  %2359 = vrot.lane.b32.xlu1 %v9671_v51, %s9158_s22 }
  0x9b   : > { %v9981_v27 = vld [vmem:[%s9599_s19 + $0x20] sm:$0xf]  ;;  %v1839_v60 = vld [vmem:[#allocation2 + $0x214] sm:$0xf]  ;;  %v1563_v42 = vsel %vm9260_vm3, %v1280_v22, %v1562_v28  ;;  %993 = vst [vmem:[#allocation2 + $0x220] sm:$0x8] %v992_v15  ;;  %3623 = vmatpush1.bf16.msra.mxu0 %v8859_v62 }
  0x9c   : > { %v9989_v11 = vld [vmem:[%s9599_s19 + $0x24] sm:$0xf]  ;;  %14111 = vst [vmem:[#allocation18_spill] sm:$0xff] %v9996_v39  ;;  %v1840_v29 = vsel %vm9779_vm14, %v1678_v31, %v1839_v60  ;;  %1561 = vst.msk [vmem:[#allocation2 + $0x40] sm:$0xf] %vm330_vm0, %v1279_v41  ;;  %v1683_v37 = vrot.slane %v1276_v10, 5  ;;  %3624 = vmatprep.subr.bf16.mxu0 %v13956_v1 }
  0x9d   : > { %1564 = vst [vmem:[#allocation2 + $0x44] sm:$0x1] %v1563_v42  ;;  %v1685_v28 = vrot.slane %v1273_v2, 4  ;;  %v365_v14 = vld [vmem:[#allocation2 + $0x48] sm:$0x1]  ;;  %v1682_v61 = vrot.slane %v1681_v56, 4  ;;  %2818 = vrot.lane.b32.xlu0 %v9996_v39, %s9157_s16 }
  0x9e   : > { %v434_v12 = vld [vmem:[#allocation2 + $0x4c] sm:$0x8]  ;;  %1841 = vst [vmem:[#allocation2 + $0x214] sm:$0xf] %v1840_v29  ;;  %v366_v22 = vsel %vm9260_vm3, 0, %v365_v14  ;;  %v1282_v60 = vshrl.u32 %v9981_v27, 16  ;;  %2548 = vrot.lane.b32.xlu1 %v10015_v4, %s9157_s16 }
  0x9f   : > { %v435_v23 = vsel %vm9550_vm6, 0, %v434_v12  ;;  %v1686_v41 = vor.u32 %v1685_v28, %v1683_v37  ;;  %367 = vst [vmem:[#allocation2 + $0x48] sm:$0x1] %v366_v22  ;;  %v1285_v2 = vshll.u32 %v9981_v27, 16  ;;  %v1290_v10 = vshrl.u32 %v9989_v11, 16  ;;  %14112 = vst [vmem:[#allocation19_spill] sm:$0xff] %v10015_v4 }
  0xa0   : > { %436 = vst [vmem:[#allocation2 + $0x4c] sm:$0x8] %v435_v23  ;;  %v1293_v31 = vshll.u32 %v9989_v11, 16  ;;  %v10017_v26 = vld [vmem:[#allocation2 + $0x12c] sm:$0xf]  ;;  %v1684_v15 = vsel %vm9664_vm10, %v1682_v61, %v1683_v37  ;;  %v1284_v42 = vrot.slane %v1282_v60, 7  ;;  %v10037_v61 = vcombine.low %v9911_v24, %v9923_v43 }
  0xa1   : > { %14113 = vst [vmem:[#allocation20_spill] sm:$0xff] %v10017_v26  ;;  %v648_v56 = vld [vmem:[#allocation2 + $0x138] sm:$0x1]  ;;  %v8862_v29 = vld [vmem:[%s13949_s1 + $0x68] sm:$0xff]   ;;  %v10026_v14 = vld [vmem:[#allocation2 + $0x210] sm:$0xf] }
  0xa2   : > { %v10024_v28 = vld [vmem:[#allocation2 + $0x20c] sm:$0xf]  ;;  %v1687_v51 = vrot.slane %v1686_v41, 4  ;;  %1842 = vst.msk [vmem:[#allocation2 + $0x21c] sm:$0xf] %vm330_vm0, %v1684_v15  ;;  %v1292_v9 = vrot.slane %v1290_v10, 7  ;;  %v1287_v15 = vor.u32 %v1285_v2, %v1284_v42  ;;  %3625 = vmatpush1.bf16.msra.mxu0 %v8862_v29  ;;  %2881 = vrot.lane.b32.xlu0 %v10037_v61, %s9156_s10 }
  0xa3   : > { %v649_v44 = vsel %vm9260_vm3, 0, %v648_v56  ;;  %v714_v37 = vld [vmem:[#allocation2 + $0x13c] sm:$0x8]  ;;  %v1688_v12 = vrot.slane %v1282_v60, 4  ;;  %v10039_v22 = vld [vmem:[#allocation2 + $0x130] sm:$0xf]  ;;  %3626 = vmatprep.subr.bf16.mxu0 %v13956_v1 }
  0xa4   : > { %14114 = vst [vmem:[#allocation21_spill] sm:$0xff] %v10039_v22  ;;  %v1288_v23 = vrot.slane %v1284_v42, 4  ;;  %650 = vst [vmem:[#allocation2 + $0x138] sm:$0x1] %v649_v44  ;;  %v715_v41 = vsel %vm9550_vm6, 0, %v714_v37  ;;  %v1295_v56 = vor.u32 %v1293_v31, %v1292_v9  ;;  %v7893_v44 = vcombine.low %v9788_v5, %v9886_v18  ;;  %v8864_v18 = vld [vmem:[%s13949_s1 + $0x70] sm:$0xff]  }
  0xa5   : > { %v1843_v62 = vld [vmem:[#allocation2 + $0x220] sm:$0xf]  ;;  %716 = vst [vmem:[#allocation2 + $0x13c] sm:$0x8] %v715_v41  ;;  %1187 = vst.msk [vmem:[#allocation2 + $0x138] sm:$0xf] %vm330_vm0, %v9981_v27 }
  0xa6   : > { %v929_v55 = vld [vmem:[#allocation2 + $0x228] sm:$0x1]  ;;  %v1844_v37 = vsel %vm9779_vm14, %v1687_v51, %v1843_v62  ;;  %1188 = vst.msk [vmem:[#allocation2 + $0x13c] sm:$0xf] %vm330_vm0, %v9989_v11  ;;  %v1689_v41 = vrot.slane %v1285_v2, 5  ;;  %v1296_v40 = vsel %vm9741_vm13, %v1288_v23, %v1295_v56  ;;  %v10064_v5 = vrot.slane %v1293_v31, 5  ;;  %2635 = vrot.lane.b32.xlu1 %v7893_v44, %s9156_s10  ;;  %3627 = vmatpush1.bf16.msra.mxu0 %v8864_v18 }
  0xa7   : > { %v930_v42 = vsel %vm9260_vm3, 0, %v929_v55  ;;  %v10058_v60 = vld [vmem:[#allocation2 + $0x38] sm:$0xf]  ;;  %v10060_v27 = vld [vmem:[#allocation2 + $0x3c] sm:$0xf]  ;;  %v7948_v55 = vcombine.low %v10024_v28, %v10026_v14  ;;  %v1297_v62 = vrot.slane %v1292_v9, 4  ;;  %3628 = vmatprep.subr.bf16.mxu0 %v13956_v1 }
  0xa8   : > { %1845 = vst [vmem:[#allocation2 + $0x220] sm:$0xf] %v1844_v37  ;;  %931 = vst [vmem:[#allocation2 + $0x228] sm:$0x1] %v930_v42  ;;  %v1565_v2 = vld [vmem:[#allocation2 + $0x48] sm:$0xf]  ;;  %v1690_v51 = vor.u32 %v1689_v41, %v1688_v12  ;;  %v10089_v9 = vcombine.low %v10058_v60, %v10060_v27 }
  0xa9   : > { %1568 = vst.msk [vmem:[#allocation2 + $0x4c] sm:$0xf] %vm330_vm0, %v1296_v40  ;;  %v1566_v31 = vsel %vm9699_vm11, %v1287_v15, %v1565_v2  ;;  %v308_v29 = vld [vmem:[%s9599_s19 + $0x28] sm:$0xf]  ;;  %v368_v23 = vld [vmem:[#allocation2 + $0x54] sm:$0x1]  ;;  %2757 = vrot.lane.b32.xlu0 %v7948_v55, %s9158_s22 }
  0xaa   : > { %v10079_v56 = vld [vmem:[#allocation2 + $0x134] sm:$0xf]  ;;  %1567 = vst [vmem:[#allocation2 + $0x48] sm:$0xf] %v1566_v31  ;;  %v1691_v37 = vrot.slane %v1690_v51, 4  ;;  %v369_v42 = vsel %vm9260_vm3, 0, %v368_v23  ;;  %2361 = vrot.lane.b32.xlu1 %v9691_v63, %s9158_s22  ;;  %v10130_v63 = vcombine.low %v9927_v46, %v10017_v26 }
  0xab   : > { %14115 = vst [vmem:[#allocation22_spill] sm:$0xff] %v10079_v56  ;;  %v1299_v53 = vshrl.u32 %v308_v29, 16  ;;  %v1302_v40 = vshll.u32 %v308_v29, 16  ;;  %v8866_v12 = vld [vmem:[%s13949_s1 + $0x78] sm:$0xff]   ;;  %370 = vst [vmem:[#allocation2 + $0x54] sm:$0x1] %v369_v42 }
  0xac   : > { %v1569_v15 = vld [vmem:[#allocation2 + $0x50] sm:$0x1]  ;;  %14116 = vst [vmem:[#allocation23_spill] sm:$0xff] %v10089_v9  ;;  %v10091_v44 = vld [vmem:[#allocation2 + $0x138] sm:$0xf]  ;;  %v1693_v41 = vsel %vm9664_vm10, %v1691_v37, %v10064_v5  ;;  %v1694_v42 = vrot.slane %v1290_v10, 4  ;;  %3629 = vmatpush1.bf16.msra.mxu0 %v8866_v12 }
  0xad   : > { %14117 = vst [vmem:[#allocation24_spill] sm:$0xff] %v10091_v44  ;;  %v10096_v2 = vrot.slane %v1299_v53, 7  ;;  %v1570_v51 = vsel %vm9260_vm3, %v1297_v62, %v1569_v15  ;;  %v651_v31 = vld [vmem:[#allocation2 + $0x144] sm:$0x1]  ;;  %v10101_v18 = vld [vmem:[#allocation2 + $0x13c] sm:$0xf]  ;;  %v10116_v62 = vcombine.low %v9850_v21, %v9949_v57  ;;  %2820 = vrot.lane.b32.xlu0 %v10089_v9, %s9157_s16 }
  0xae   : > { %14118 = vst [vmem:[#allocation25_spill] sm:$0xff] %v10101_v18  ;;  %1846 = vst.msk [vmem:[#allocation2 + $0x228] sm:$0xf] %vm330_vm0, %v1693_v41  ;;  %v652_v23 = vsel %vm9260_vm3, 0, %v651_v31  ;;  %v10108_v37 = vld [vmem:[#allocation2 + $0x140] sm:$0xf]  ;;  %v1695_v57 = vor.u32 %v1694_v42, %v10064_v5 }
  0xaf   : > { %1571 = vst [vmem:[#allocation2 + $0x50] sm:$0x1] %v1570_v51  ;;  %14119 = vst [vmem:[#allocation26_spill] sm:$0xff] %v10108_v37  ;;  %v10120_v41 = vld [vmem:[#allocation2 + $0x214] sm:$0xf]  ;;  %v1304_v31 = vor.u32 %v1302_v40, %v10096_v2  ;;  %v1697_v15 = vrot.slane %v1299_v53, 4  ;;  %2550 = vrot.lane.b32.xlu1 %v10116_v62, %s9157_s16 }
  0xb0   : > { %14120 = vst [vmem:[#allocation27_spill] sm:$0xff] %v10116_v62  ;;  %653 = vst [vmem:[#allocation2 + $0x144] sm:$0x1] %v652_v23  ;;  %v10122_v51 = vld [vmem:[#allocation2 + $0x218] sm:$0xf]  ;;  %v1698_v42 = vrot.slane %v1302_v40, 5 }
  0xb1   : > { %1189 = vst.msk [vmem:[#allocation2 + $0x144] sm:$0xf] %vm330_vm0, %v308_v29  ;;  %v995_v11 = vld [vmem:[#allocation2 + $0x22c] sm:$0x8]  ;;  %v438_v23 = vld [vmem:[#allocation2 + $0x58] sm:$0x8]  ;;  %v7894_v29 = vcombine.low %v9888_v59, %v9971_v58  ;;  %2883 = vrot.lane.b32.xlu0 %v10130_v63, %s9156_s10  ;;  %v7949_v53 = vcombine.low %v10120_v41, %v10122_v51 }
  0xb2   : > { %v996_v21 = vsel %vm9550_vm6, 0, %v995_v11  ;;  %v309_v10 = vld [vmem:[%s9599_s19 + $0x2c] sm:$0xf]  ;;  %v10140_v12 = vld [vmem:[#allocation2 + $0x40] sm:$0xf]  ;;  %v439_v1 = vsel %vm9550_vm6, 0, %v438_v23  ;;  %v1699_v4 = vor.u32 %v1698_v42, %v1697_v15 }
  0xb3   : > { %997 = vst [vmem:[#allocation2 + $0x22c] sm:$0x8] %v996_v21  ;;  %v1572_v55 = vld [vmem:[#allocation2 + $0x54] sm:$0xf]  ;;  %v1307_v52 = vshrl.u32 %v309_v10, 16  ;;  %v1310_v5 = vshll.u32 %v309_v10, 16  ;;  %2637 = vrot.lane.b32.xlu1 %v7894_v29, %s9156_s10 }
  0xb4   : > { %v1573_v11 = vsel %vm9699_vm11, %v1304_v31, %v1572_v55  ;;  %440 = vst [vmem:[#allocation2 + $0x58] sm:$0x8] %v439_v1  ;;  %v10150_v59 = vld [vmem:[#allocation2 + $0x44] sm:$0xf]  ;;  %v1305_v58 = vrot.slane %v10096_v2, 4  ;;  %v1696_v49 = vrot.slane %v1695_v57, 4 }
  0xb5   : > { %1574 = vst [vmem:[#allocation2 + $0x54] sm:$0xf] %v1573_v11  ;;  %v1309_v21 = vrot.slane %v1307_v52, 7  ;;  %v1576_v23 = vld [vmem:[#allocation2 + $0x5c] sm:$0x1]  ;;  %v1703_v55 = vrot.slane %v1307_v52, 4  ;;  %v10158_v9 = vcombine.low %v10140_v12, %v10150_v59  ;;  %2759 = vrot.lane.b32.xlu0 %v7949_v53, %s9158_s22 }
  0xb6   : > { %v718_v62 = vld [vmem:[#allocation2 + $0x148] sm:$0x8]  ;;  %v932_v11 = vld [vmem:[#allocation2 + $0x234] sm:$0x1]  ;;  %v999_v2 = vld [vmem:[#allocation2 + $0x238] sm:$0x8] }
  0xb7   : > { %v1312_v1 = vor.u32 %v1310_v5, %v1309_v21  ;;  %v1314_v40 = vrot.slane %v1309_v21, 4  ;;  %v719_v31 = vsel %vm9550_vm6, 0, %v718_v62  ;;  %14121 = vst [vmem:[#allocation28_spill] sm:$0xff] %v10158_v9  ;;  %v1700_v39 = vrot.slane %v1699_v4, 4  ;;  %2363 = vrot.lane.b32.xlu1 %v9938_v8, %s9158_s22  ;;  %v1007_v26 = vld [vmem:[#allocation2 + $0x250] sm:$0x8] }
  0xb8   : > { %720 = vst [vmem:[#allocation2 + $0x148] sm:$0x8] %v719_v31  ;;  %v1701_v57 = vrot.slane %v1310_v5, 5  ;;  %v933_v29 = vsel %vm9260_vm3, 0, %v932_v11  ;;  %v1000_v4 = vsel %vm9550_vm6, 0, %v999_v2  ;;  %v10183_v21 = vcombine.low %v9955_v19, %v10024_v28 }
  0xb9   : > { %v1313_v15 = vsel %vm9741_vm13, %v1305_v58, %v1312_v1  ;;  %v1577_v62 = vsel %vm9260_vm3, %v1314_v40, %v1576_v23  ;;  %1190 = vst.msk [vmem:[#allocation2 + $0x148] sm:$0xf] %vm330_vm0, %v309_v10  ;;  %934 = vst [vmem:[#allocation2 + $0x234] sm:$0x1] %v933_v29  ;;  %v310_v58 = vld [vmem:[%s9599_s19 + $0x30] sm:$0xf]  ;;  %2822 = vrot.lane.b32.xlu0 %v10158_v9, %s9157_s16  ;;  %v10199_v28 = vcombine.low %v10039_v22, %v10079_v56 }
  0xba   : > { %v1847_v52 = vld [vmem:[#allocation2 + $0x22c] sm:$0xf]  ;;  %1575 = vst.msk [vmem:[#allocation2 + $0x58] sm:$0xf] %vm330_vm0, %v1313_v15  ;;  %1578 = vst [vmem:[#allocation2 + $0x5c] sm:$0x1] %v1577_v62  ;;  %v1702_v42 = vsel %vm9664_vm10, %v1700_v39, %v1701_v57  ;;  %v1704_v53 = vor.u32 %v1703_v55, %v1701_v57 }
  0xbb   : > { %v1848_v5 = vsel %vm9779_vm14, %v1696_v49, %v1847_v52  ;;  %1001 = vst [vmem:[#allocation2 + $0x238] sm:$0x8] %v1000_v4  ;;  %v10177_v10 = vld [vmem:[%s9599_s19 + $0x34] sm:$0xf]  ;;  %14122 = vst [vmem:[#allocation29_spill] sm:$0xff] %v10183_v21  ;;  %v1316_v1 = vshrl.u32 %v310_v58, 16  ;;  %2552 = vrot.lane.b32.xlu1 %v10183_v21, %s9157_s16  ;;  %v7895_v4 = vcombine.low %v9973_v38, %v10058_v60 }
  0xbc   : > { %1849 = vst [vmem:[#allocation2 + $0x22c] sm:$0xf] %v1848_v5  ;;  %1850 = vst.msk [vmem:[#allocation2 + $0x234] sm:$0xf] %vm330_vm0, %v1702_v42  ;;  %v371_v49 = vld [vmem:[#allocation2 + $0x60] sm:$0x1] }
  0xbd   : > { %v442_v23 = vld [vmem:[#allocation2 + $0x64] sm:$0x8]  ;;  %v10186_v40 = vld [vmem:[#allocation2 + $0x21c] sm:$0xf]  ;;  %v10188_v39 = vld [vmem:[#allocation2 + $0x220] sm:$0xf]  ;;  %2885 = vrot.lane.b32.xlu0 %v10199_v28, %s9156_s10 }
  0xbe   : > { %v372_v55 = vsel %vm9260_vm3, 0, %v371_v49  ;;  %v443_v8 = vsel %vm9550_vm6, 0, %v442_v23  ;;  %v1319_v31 = vshll.u32 %v310_v58, 16  ;;  %v13962_v19 = vshrl.u32 %v10177_v10, 16  ;;  %v10202_v57 = vld [vmem:[#allocation2 + $0x144] sm:$0xf] }
  0xbf   : > { %373 = vst [vmem:[#allocation2 + $0x60] sm:$0x1] %v372_v55  ;;  %444 = vst [vmem:[#allocation2 + $0x64] sm:$0x8] %v443_v8  ;;  %v1318_v11 = vrot.slane %v1316_v1, 7  ;;  %v1327_v2 = vshll.u32 %v10177_v10, 16  ;;  %v7950_v38 = vcombine.low %v10186_v40, %v10188_v39  ;;  %2639 = vrot.lane.b32.xlu1 %v7895_v4, %s9156_s10 }
  0xc0   : > { %14123 = vst [vmem:[#allocation30_spill] sm:$0xff] %v10202_v57  ;;  %v1705_v52 = vrot.slane %v1704_v53, 4  ;;  %v1326_v15 = vrot.slane %v13962_v19, 7  ;;  %v654_v62 = vld [vmem:[#allocation2 + $0x150] sm:$0x1]  ;;  %v14202_v25 = vld [vmem:[#allocation28_spill] sm:$0xff] }
  0xc1   : > { %v722_v29 = vld [vmem:[#allocation2 + $0x154] sm:$0x8]  ;;  %v10210_v5 = vld [vmem:[#allocation2 + $0x4c] sm:$0xf]  ;;  %v1322_v42 = vrot.slane %v1318_v11, 4  ;;  %v655_v49 = vsel %vm9260_vm3, 0, %v654_v62  ;;  %2761 = vrot.lane.b32.xlu0 %v7950_v38, %s9158_s22  ;;  %v10259_v38 = vcombine.low %v10026_v14, %v10120_v41  ;;  %v10279_v41 = vcombine.low %v10091_v44, %v10101_v18 }
  0xc2   : > { %v723_v53 = vsel %vm9550_vm6, 0, %v722_v29  ;;  %v10216_v23 = vld [vmem:[#allocation2 + $0x148] sm:$0xf]  ;;  %v1329_v55 = vor.u32 %v1327_v2, %v1326_v15  ;;  %656 = vst [vmem:[#allocation2 + $0x150] sm:$0x1] %v655_v49  ;;  %v1321_v29 = vor.u32 %v1319_v31, %v1318_v11  ;;  %v1706_v49 = vrot.slane %v1316_v1, 4 }
  0xc3   : > { %14124 = vst [vmem:[#allocation31_spill] sm:$0xff] %v10216_v23  ;;  %724 = vst [vmem:[#allocation2 + $0x154] sm:$0x8] %v723_v53  ;;  %v935_v8 = vld [vmem:[#allocation2 + $0x240] sm:$0x1]  ;;  %v1707_v62 = vrot.slane %v1319_v31, 5  ;;  %2365 = vrot.lane.b32.xlu1 %v10037_v61, %s9158_s22 }
  0xc4   : > { %v10222_v60 = vld [vmem:[#allocation2 + $0x48] sm:$0xf]  ;;  %v1851_v19 = vld [vmem:[#allocation2 + $0x238] sm:$0xf]  ;;  %1191 = vst.msk [vmem:[#allocation2 + $0x150] sm:$0xf] %vm330_vm0, %v310_v58  ;;  %v1330_v21 = vsel %vm9741_vm13, %v1322_v42, %v1329_v55 }
  0xc5   : > { %1192 = vst.msk [vmem:[#allocation2 + $0x154] sm:$0xf] %vm330_vm0, %v10177_v10  ;;  %v1852_v53 = vsel %vm9779_vm14, %v1705_v52, %v1851_v19  ;;  %1582 = vst.msk [vmem:[#allocation2 + $0x64] sm:$0xf] %vm330_vm0, %v1330_v21  ;;  %v936_v11 = vsel %vm9260_vm3, 0, %v935_v8  ;;  %v10239_v58 = vcombine.low %v10222_v60, %v10210_v5  ;;  %v10241_v9 = vrot.slane %v1327_v2, 5 }
  0xc6   : > { %1853 = vst [vmem:[#allocation2 + $0x238] sm:$0xf] %v1852_v53  ;;  %v1579_v1 = vld [vmem:[#allocation2 + $0x60] sm:$0xf]  ;;  %937 = vst [vmem:[#allocation2 + $0x240] sm:$0x1] %v936_v11  ;;  %v1708_v21 = vor.u32 %v1707_v62, %v1706_v49 }
  0xc7   : > { %14125 = vst [vmem:[#allocation32_spill] sm:$0xff] %v10239_v58  ;;  %v10244_v19 = vld [vmem:[%s9599_s19 + $0x38] sm:$0xf]  ;;  %v1580_v52 = vsel %vm9699_vm11, %v1321_v29, %v1579_v1  ;;  %v374_v4 = vld [vmem:[#allocation2 + $0x6c] sm:$0x1]  ;;  %v1331_v42 = vrot.slane %v1326_v15, 4  ;;  %2824 = vrot.lane.b32.xlu0 %v10239_v58, %s9157_s16  ;;  %2554 = vrot.lane.b32.xlu1 %v10259_v38, %s9157_s16 }
  0xc8   : > { %v13966_v31 = vshrl.u32 %v10244_v19, 16  ;;  %v1583_v55 = vld [vmem:[#allocation2 + $0x68] sm:$0x1]  ;;  %v10250_v8 = vld [vmem:[#allocation2 + $0x14c] sm:$0xf]  ;;  %v375_v2 = vsel %vm9260_vm3, 0, %v374_v4 }
  0xc9   : > { %14126 = vst [vmem:[#allocation33_spill] sm:$0xff] %v10250_v8  ;;  %1581 = vst [vmem:[#allocation2 + $0x60] sm:$0xf] %v1580_v52  ;;  %v13965_v53 = vshll.u32 %v10244_v19, 16  ;;  %v1709_v62 = vrot.slane %v1708_v21, 4  ;;  %v1584_v29 = vsel %vm9260_vm3, %v1331_v42, %v1583_v55 }
  0xca   : > { %14127 = vst [vmem:[#allocation34_spill] sm:$0xff] %v10259_v38  ;;  %376 = vst [vmem:[#allocation2 + $0x6c] sm:$0x1] %v375_v2  ;;  %v10263_v15 = vrot.slane %v13966_v31, 7  ;;  %v347_v49 = vld [vmem:[#allocation2] sm:$0x1] }
  0xcb   : > { %v410_v11 = vld [vmem:[#allocation2 + $0x4] sm:$0x8]  ;;  %v10267_v1 = vld [vmem:[#allocation2 + $0x150] sm:$0xf]  ;;  %1585 = vst [vmem:[#allocation2 + $0x68] sm:$0x1] %v1584_v29  ;;  %v1711_v4 = vsel %vm9664_vm10, %v1709_v62, %v10241_v9  ;;  %v7896_v62 = vcombine.low %v10060_v27, %v10140_v12  ;;  %2887 = vrot.lane.b32.xlu0 %v10279_v41, %s9156_s10 }
  0xcc   : > { %14128 = vst [vmem:[#allocation35_spill] sm:$0xff] %v10267_v1  ;;  %v10269_v52 = vld [vmem:[#allocation2 + $0x154] sm:$0xf]  ;;  %v348_v14 = vsel %vm9260_vm3, 0, %v347_v49  ;;  %v411_v61 = vsel %vm9550_vm6, 0, %v410_v11  ;;  %v1339_v18 = vrot.slane %v10263_v15, 4 }
  0xcd   : > { %14129 = vst [vmem:[#allocation36_spill] sm:$0xff] %v10269_v52  ;;  %349 = vst [vmem:[#allocation2] sm:$0x1] %v348_v14  ;;  %v657_v42 = vld [vmem:[#allocation2 + $0x15c] sm:$0x1]  ;;  %v1338_v14 = vor.u32 %v13965_v53, %v10263_v15  ;;  %2641 = vrot.lane.b32.xlu1 %v7896_v62, %s9156_s10 }
  0xce   : > { %412 = vst [vmem:[#allocation2 + $0x4] sm:$0x8] %v411_v61  ;;  %v10286_v55 = vld [vmem:[#allocation2 + $0x158] sm:$0xf]  ;;  %v10288_v2 = vld [vmem:[#allocation2 + $0x224] sm:$0xf] }
  0xcf   : > { %14130 = vst [vmem:[#allocation37_spill] sm:$0xff] %v10286_v55  ;;  %v10290_v29 = vld [vmem:[#allocation2 + $0x228] sm:$0xf]  ;;  %1854 = vst.msk [vmem:[#allocation2 + $0x240] sm:$0xf] %vm330_vm0, %v1711_v4  ;;  %v658_v49 = vsel %vm9260_vm3, 0, %v657_v42 }
  0xd0   : > { %659 = vst [vmem:[#allocation2 + $0x15c] sm:$0x1] %v658_v49  ;;  %v1003_v61 = vld [vmem:[#allocation2 + $0x244] sm:$0x8]  ;;  %v14131_v4 = vshrl.u32 %v10177_v10, 16  ;;  %v7951_v27 = vcombine.low %v10288_v2, %v10290_v29 }
  0xd1   : > { %v10306_v42 = vld [vmem:[#allocation2 + $0x50] sm:$0xf]  ;;  %1193 = vst.msk [vmem:[#allocation2 + $0x15c] sm:$0xf] %vm330_vm0, %v10244_v19  ;;  %v1004_v11 = vsel %vm9550_vm6, 0, %v1003_v61  ;;  %2367 = vrot.lane.b32.xlu1 %v10130_v63, %s9158_s22  ;;  %v14208_v6 = vld [vmem:[#allocation32_spill] sm:$0xff] }
  0xd2   : > { %v1712_v21 = vrot.slane %v14131_v4, 4  ;;  %v10316_v12 = vld [vmem:[#allocation2 + $0x54] sm:$0xf]  ;;  %1005 = vst [vmem:[#allocation2 + $0x244] sm:$0x8] %v1004_v11  ;;  %2763 = vrot.lane.b32.xlu0 %v7951_v27, %s9158_s22 }
  0xd3   : > { %v313_v49 = vld [vmem:[%s9599_s19 + $0x3c] sm:$0xf]  ;;  %v1586_v4 = vld [vmem:[#allocation2 + $0x6c] sm:$0xf]  ;;  %v446_v53 = vld [vmem:[#allocation2 + $0x70] sm:$0x8] }
  0xd4   : > { %v1713_v10 = vor.u32 %v1712_v21, %v10241_v9  ;;  %v1341_v31 = vshrl.u32 %v313_v49, 16  ;;  %v1344_v38 = vshll.u32 %v313_v49, 16  ;;  %v1587_v61 = vsel %vm9699_vm11, %v1338_v14, %v1586_v4  ;;  %v1590_v21 = vld [vmem:[#allocation2 + $0x74] sm:$0x1]  ;;  %v726_v22 = vld [vmem:[#allocation2 + $0x160] sm:$0x8] }
  0xd5   : > { %v447_v58 = vsel %vm9550_vm6, 0, %v446_v53  ;;  %1588 = vst [vmem:[#allocation2 + $0x6c] sm:$0xf] %v1587_v61  ;;  %v10329_v9 = vcombine.low %v10306_v42, %v10316_v12  ;;  %v14133_v14 = vshrl.u32 %v10244_v19, 16  ;;  %v10339_v53 = vld [vmem:[#allocation2 + $0x22c] sm:$0xf] }
  0xd6   : > { %v1714_v44 = vrot.slane %v1713_v10, 4  ;;  %448 = vst [vmem:[#allocation2 + $0x70] sm:$0x8] %v447_v58  ;;  %v1343_v11 = vrot.slane %v1341_v31, 7  ;;  %v10337_v58 = vcombine.low %v10122_v51, %v10186_v40  ;;  %v10341_v15 = vld [vmem:[#allocation2 + $0x230] sm:$0xf] }
  0xd7   : > { %14132 = vst [vmem:[#allocation38_spill] sm:$0xff] %v10329_v9  ;;  %v1715_v4 = vrot.slane %v14133_v14, 4  ;;  %v727_v27 = vsel %vm9550_vm6, 0, %v726_v22  ;;  %v938_v10 = vld [vmem:[#allocation2 + $0x24c] sm:$0x1]  ;;  %v14135_v61 = vshll.u32 %v10244_v19, 16  ;;  %v10349_v14 = vcombine.low %v10108_v37, %v10202_v57  ;;  %2826 = vrot.lane.b32.xlu0 %v10329_v9, %s9157_s16 }
  0xd8   : > { %v1346_v62 = vor.u32 %v1344_v38, %v1343_v11  ;;  %v1348_v56 = vrot.slane %v1343_v11, 4  ;;  %14134 = vst [vmem:[#allocation39_spill] sm:$0xff] %v10337_v58  ;;  %728 = vst [vmem:[#allocation2 + $0x160] sm:$0x8] %v727_v27  ;;  %v939_v22 = vsel %vm9260_vm3, 0, %v938_v10  ;;  %v7897_v10 = vcombine.low %v10150_v59, %v10222_v60  ;;  %2556 = vrot.lane.b32.xlu1 %v10337_v58, %s9157_s16 }
  0xd9   : > { %v1716_v11 = vrot.slane %v14135_v61, 5  ;;  %v1855_v63 = vld [vmem:[#allocation2 + $0x244] sm:$0xf]  ;;  %1194 = vst.msk [vmem:[#allocation2 + $0x160] sm:$0xf] %vm330_vm0, %v313_v49  ;;  %v7952_v59 = vcombine.low %v10339_v53, %v10341_v15 }
  0xda   : > { %v1347_v51 = vsel %vm9741_vm13, %v1339_v18, %v1346_v62  ;;  %v1591_v40 = vsel %vm9260_vm3, %v1348_v56, %v1590_v21  ;;  %v1856_v19 = vsel %vm9779_vm14, %v1714_v44, %v1855_v63  ;;  %940 = vst [vmem:[#allocation2 + $0x24c] sm:$0x1] %v939_v22  ;;  %v1008_v56 = vsel %vm9550_vm6, 0, %v1007_v26  ;;  %v314_v62 = vld [vmem:[%s9599_s19 + $0x40] sm:$0xf] }
  0xdb   : > { %1589 = vst.msk [vmem:[#allocation2 + $0x70] sm:$0xf] %vm330_vm0, %v1347_v51  ;;  %1592 = vst [vmem:[#allocation2 + $0x74] sm:$0x1] %v1591_v40  ;;  %v1717_v18 = vor.u32 %v1716_v11, %v1715_v4  ;;  %v1719_v21 = vrot.slane %v1344_v38, 5  ;;  %v1721_v44 = vrot.slane %v1341_v31, 4  ;;  %2889 = vrot.lane.b32.xlu0 %v10349_v14, %s9156_s10 }
  0xdc   : > { %v10367_v27 = vld [vmem:[%s9599_s19 + $0x44] sm:$0xf]  ;;  %1857 = vst [vmem:[#allocation2 + $0x244] sm:$0xf] %v1856_v19  ;;  %1009 = vst [vmem:[#allocation2 + $0x250] sm:$0x8] %v1008_v56  ;;  %2643 = vrot.lane.b32.xlu1 %v7897_v10, %s9156_s10 }
  0xdd   : > { %v377_v61 = vld [vmem:[#allocation2 + $0x78] sm:$0x1]  ;;  %v450_v63 = vld [vmem:[#allocation2 + $0x7c] sm:$0x8]  ;;  %v1350_v51 = vshrl.u32 %v314_v62, 16  ;;  %v1718_v49 = vrot.slane %v1717_v18, 4  ;;  %v1722_v31 = vor.u32 %v1721_v44, %v1719_v21 }
  0xde   : > { %v378_v26 = vsel %vm9260_vm3, 0, %v377_v61  ;;  %v451_v38 = vsel %vm9550_vm6, 0, %v450_v63  ;;  %v1353_v4 = vshll.u32 %v314_v62, 16  ;;  %v10379_v60 = vld [vmem:[#allocation2 + $0x58] sm:$0xf]  ;;  %v1358_v40 = vshrl.u32 %v10367_v27, 16 }
  0xdf   : > { %379 = vst [vmem:[#allocation2 + $0x78] sm:$0x1] %v378_v26  ;;  %452 = vst [vmem:[#allocation2 + $0x7c] sm:$0x8] %v451_v38  ;;  %v1352_v11 = vrot.slane %v1350_v51, 7  ;;  %v1720_v56 = vsel %vm9664_vm10, %v1718_v49, %v1719_v21  ;;  %v1361_v18 = vshll.u32 %v10367_v27, 16  ;;  %2765 = vrot.lane.b32.xlu0 %v7952_v59, %s9158_s22 }
  0xe0   : > { %v660_v22 = vld [vmem:[#allocation2 + $0x168] sm:$0x1]  ;;  %v730_v19 = vld [vmem:[#allocation2 + $0x16c] sm:$0x8]  ;;  %v941_v63 = vld [vmem:[#allocation2 + $0x258] sm:$0x1]  ;;  %2369 = vrot.lane.b32.xlu1 %v10199_v28, %s9158_s22 }
  0xe1   : > { %v661_v61 = vsel %vm9260_vm3, 0, %v660_v22  ;;  %v731_v44 = vsel %vm9550_vm6, 0, %v730_v19  ;;  %v10391_v26 = vld [vmem:[#allocation2 + $0x5c] sm:$0xf]  ;;  %v1723_v38 = vrot.slane %v1722_v31, 4  ;;  %v1356_v58 = vrot.slane %v1352_v11, 4 }
  0xe2   : > { %1858 = vst.msk [vmem:[#allocation2 + $0x24c] sm:$0xf] %vm330_vm0, %v1720_v56  ;;  %v1360_v9 = vrot.slane %v1358_v40, 7  ;;  %662 = vst [vmem:[#allocation2 + $0x168] sm:$0x1] %v661_v61  ;;  %v942_v21 = vsel %vm9260_vm3, 0, %v941_v63  ;;  %v1355_v56 = vor.u32 %v1353_v4, %v1352_v11 }
  0xe3   : > { %732 = vst [vmem:[#allocation2 + $0x16c] sm:$0x8] %v731_v44  ;;  %1195 = vst.msk [vmem:[#allocation2 + $0x168] sm:$0xf] %vm330_vm0, %v314_v62  ;;  %v1724_v49 = vrot.slane %v1350_v51, 4  ;;  %v1725_v22 = vrot.slane %v1353_v4, 5  ;;  %v10410_v62 = vcombine.low %v10379_v60, %v10391_v26  ;;  %v10420_v4 = vcombine.low %v10216_v23, %v10250_v8 }
  0xe4   : > { %1196 = vst.msk [vmem:[#allocation2 + $0x16c] sm:$0xf] %vm330_vm0, %v10367_v27  ;;  %v10400_v31 = vld [vmem:[#allocation2 + $0x15c] sm:$0xf]  ;;  %v10402_v19 = vld [vmem:[#allocation2 + $0x160] sm:$0xf]  ;;  %v1363_v57 = vor.u32 %v1361_v18, %v1360_v9  ;;  %v10414_v27 = vcombine.low %v10188_v39, %v10288_v2 }
  0xe5   : > { %14136 = vst [vmem:[#allocation40_spill] sm:$0xff] %v10400_v31  ;;  %943 = vst [vmem:[#allocation2 + $0x258] sm:$0x1] %v942_v21  ;;  %v10405_v61 = vld [vmem:[%s9599_s19 + $0x48] sm:$0xf]  ;;  %v1728_v63 = vrot.slane %v1361_v18, 5  ;;  %v1726_v2 = vor.u32 %v1725_v22, %v1724_v49  ;;  %2828 = vrot.lane.b32.xlu0 %v10410_v62, %s9157_s16 }
  0xe6   : > { %14137 = vst [vmem:[#allocation41_spill] sm:$0xff] %v10410_v62  ;;  %14138 = vst [vmem:[#allocation42_spill] sm:$0xff] %v10414_v27  ;;  %v1859_v51 = vld [vmem:[#allocation2 + $0x250] sm:$0xf]  ;;  %v380_v44 = vld [vmem:[#allocation2 + $0x84] sm:$0x1]  ;;  %v1364_v11 = vsel %vm9741_vm13, %v1356_v58, %v1363_v57  ;;  %2558 = vrot.lane.b32.xlu1 %v10414_v27, %s9157_s16 }
  0xe7   : > { %v1860_v59 = vsel %vm9779_vm14, %v1723_v38, %v1859_v51  ;;  %v1597_v21 = vld [vmem:[#allocation2 + $0x80] sm:$0x1]  ;;  %v663_v37 = vld [vmem:[#allocation2 + $0x174] sm:$0x1]  ;;  %v1593_v39 = vld [vmem:[#allocation2 + $0x78] sm:$0xf] }
  0xe8   : > { %1861 = vst [vmem:[#allocation2 + $0x250] sm:$0xf] %v1860_v59  ;;  %1596 = vst.msk [vmem:[#allocation2 + $0x7c] sm:$0xf] %vm330_vm0, %v1364_v11  ;;  %v381_v10 = vsel %vm9260_vm3, 0, %v380_v44  ;;  %v1365_v8 = vrot.slane %v1360_v9, 4  ;;  %v1594_v57 = vsel %vm9699_vm11, %v1355_v56, %v1593_v39 }
  0xe9   : > { %v1367_v38 = vshrl.u32 %v10405_v61, 16  ;;  %v10432_v51 = vld [vmem:[#allocation2 + $0x234] sm:$0xf]  ;;  %382 = vst [vmem:[#allocation2 + $0x84] sm:$0x1] %v381_v10  ;;  %v1370_v58 = vshll.u32 %v10405_v61, 16  ;;  %2891 = vrot.lane.b32.xlu0 %v10420_v4, %s9156_s10 }
  0xea   : > { %v664_v28 = vsel %vm9260_vm3, 0, %v663_v37  ;;  %v1011_v18 = vld [vmem:[#allocation2 + $0x25c] sm:$0x8]  ;;  %v1730_v59 = vrot.slane %v1358_v40, 4  ;;  %v10441_v49 = vld [vmem:[#allocation2 + $0x238] sm:$0xf]  ;;  %v1598_v56 = vsel %vm9260_vm3, %v1365_v8, %v1597_v21  ;;  %v7898_v8 = vcombine.low %v10210_v5, %v10306_v42 }
  0xeb   : > { %1595 = vst [vmem:[#allocation2 + $0x78] sm:$0xf] %v1594_v57  ;;  %v1727_v9 = vrot.slane %v1726_v2, 4  ;;  %v10443_v22 = vrot.slane %v1367_v38, 7  ;;  %665 = vst [vmem:[#allocation2 + $0x174] sm:$0x1] %v664_v28 }
  0xec   : > { %v1012_v10 = vsel %vm9550_vm6, 0, %v1011_v18  ;;  %v10449_v37 = vld [vmem:[#allocation2 + $0x164] sm:$0xf]  ;;  %v10451_v40 = vld [vmem:[#allocation2 + $0x168] sm:$0xf]  ;;  %v1731_v11 = vor.u32 %v1730_v59, %v1728_v63  ;;  %v1733_v27 = vrot.slane %v1367_v38, 4  ;;  %2645 = vrot.lane.b32.xlu1 %v7898_v8, %s9156_s10 }
  0xed   : > { %1599 = vst [vmem:[#allocation2 + $0x80] sm:$0x1] %v1598_v56  ;;  %1197 = vst.msk [vmem:[#allocation2 + $0x174] sm:$0xf] %vm330_vm0, %v10405_v61  ;;  %v10455_v44 = vld [vmem:[#allocation2 + $0x170] sm:$0xf]  ;;  %v1729_v2 = vsel %vm9664_vm10, %v1727_v9, %v1728_v63  ;;  %v1372_v18 = vor.u32 %v1370_v58, %v10443_v22  ;;  %v7953_v63 = vcombine.low %v10432_v51, %v10441_v49 }
  0xee   : > { %14139 = vst [vmem:[#allocation43_spill] sm:$0xff] %v10455_v44  ;;  %1013 = vst [vmem:[#allocation2 + $0x25c] sm:$0x8] %v1012_v10  ;;  %v10461_v21 = vld [vmem:[#allocation2 + $0x16c] sm:$0xf]  ;;  %v1732_v39 = vrot.slane %v1731_v11, 4 }
  0xef   : > { %v317_v57 = vld [vmem:[%s9599_s19 + $0x4c] sm:$0xf]  ;;  %v454_v61 = vld [vmem:[#allocation2 + $0x88] sm:$0x8]  ;;  %v10468_v28 = vld [vmem:[#allocation2 + $0x64] sm:$0xf]  ;;  %2767 = vrot.lane.b32.xlu0 %v7953_v63, %s9158_s22 }
  0xf0   : > { %1862 = vst.msk [vmem:[#allocation2 + $0x258] sm:$0xf] %vm330_vm0, %v1729_v2  ;;  %v455_v5 = vsel %vm9550_vm6, 0, %v454_v61  ;;  %v734_v42 = vld [vmem:[#allocation2 + $0x178] sm:$0x8]  ;;  %v1375_v56 = vshrl.u32 %v317_v57, 16  ;;  %2371 = vrot.lane.b32.xlu1 %v10279_v41, %s9158_s22 }
  0xf1   : > { %v10480_v9 = vld [vmem:[#allocation2 + $0x60] sm:$0xf]  ;;  %456 = vst [vmem:[#allocation2 + $0x88] sm:$0x8] %v455_v5  ;;  %v1378_v10 = vshll.u32 %v317_v57, 16  ;;  %v735_v2 = vsel %vm9550_vm6, 0, %v734_v42 }
  0xf2   : > { %v1373_v59 = vrot.slane %v10443_v22, 4  ;;  %736 = vst [vmem:[#allocation2 + $0x178] sm:$0x8] %v735_v2  ;;  %v944_v61 = vld [vmem:[#allocation2 + $0x264] sm:$0x1]  ;;  %v1377_v23 = vrot.slane %v1375_v56, 7  ;;  %v10496_v38 = vcombine.low %v10480_v9, %v10468_v28 }
  0xf3   : > { %v1600_v62 = vld [vmem:[#allocation2 + $0x84] sm:$0xf]  ;;  %1198 = vst.msk [vmem:[#allocation2 + $0x178] sm:$0xf] %vm330_vm0, %v317_v57  ;;  %v945_v5 = vsel %vm9260_vm3, 0, %v944_v61  ;;  %v1734_v11 = vrot.slane %v1370_v58, 5 }
  0xf4   : > { %v1015_v13 = vld [vmem:[#allocation2 + $0x268] sm:$0x8]  ;;  %v1601_v42 = vsel %vm9699_vm11, %v1372_v18, %v1600_v62  ;;  %946 = vst [vmem:[#allocation2 + $0x264] sm:$0x1] %v945_v5  ;;  %14140 = vst [vmem:[#allocation44_spill] sm:$0xff] %v10496_v38  ;;  %v1380_v57 = vor.u32 %v1378_v10, %v1377_v23  ;;  %v1737_v61 = vrot.slane %v1378_v10, 5  ;;  %v10500_v62 = vcombine.low %v10290_v29, %v10339_v53 }
  0xf5   : > { %v1016_v22 = vsel %vm9550_vm6, 0, %v1015_v13  ;;  %1602 = vst [vmem:[#allocation2 + $0x84] sm:$0xf] %v1601_v42  ;;  %v1863_v8 = vld [vmem:[#allocation2 + $0x25c] sm:$0xf]  ;;  %v1382_v58 = vrot.slane %v1377_v23, 4  ;;  %v1735_v42 = vor.u32 %v1734_v11, %v1733_v27  ;;  %v10518_v23 = vcombine.low %v10267_v1, %v10269_v52  ;;  %2830 = vrot.lane.b32.xlu0 %v10496_v38, %s9157_s16  ;;  %v10529_v11 = vpop.permute.xlu0 %2875 }
  0xf6   : > { %v1604_v2 = vld [vmem:[#allocation2 + $0x8c] sm:$0x1]  ;;  %1017 = vst [vmem:[#allocation2 + $0x268] sm:$0x8] %v1016_v22  ;;  %14141 = vst [vmem:[#allocation45_spill] sm:$0xff] %v10500_v62  ;;  %v1864_v13 = vsel %vm9779_vm14, %v1732_v39, %v1863_v8  ;;  %v1381_v10 = vsel %vm9741_vm13, %v1373_v59, %v1380_v57  ;;  %v1739_v22 = vrot.slane %v1375_v56, 4  ;;  %2560 = vrot.lane.b32.xlu1 %v10500_v62, %s9157_s16 }
  0xf7   : > { %v318_v18 = vld [vmem:[%s9599_s19 + $0x50] sm:$0xf]  ;;  %v10507_v63 = vld [vmem:[#allocation2 + $0x23c] sm:$0xf]  ;;  %v10509_v5 = vld [vmem:[#allocation2 + $0x240] sm:$0xf]  ;;  %v1605_v41 = vsel %vm9260_vm3, %v1382_v58, %v1604_v2  ;;  %v7899_v2 = vcombine.low %v10316_v12, %v10379_v60 }
  0xf8   : > { %1865 = vst [vmem:[#allocation2 + $0x25c] sm:$0xf] %v1864_v13  ;;  %v10514_v29 = vld [vmem:[%s9599_s19 + $0x54] sm:$0xf]  ;;  %v383_v53 = vld [vmem:[#allocation2 + $0x90] sm:$0x1]  ;;  %v1740_v57 = vor.u32 %v1739_v22, %v1737_v61 }
  0xf9   : > { %v1384_v46 = vshrl.u32 %v318_v18, 16  ;;  %v10520_v39 = vld [vmem:[#allocation2 + $0x174] sm:$0xf]  ;;  %1603 = vst.msk [vmem:[#allocation2 + $0x88] sm:$0xf] %vm330_vm0, %v1381_v10  ;;  %v384_v59 = vsel %vm9260_vm3, 0, %v383_v53  ;;  %2893 = vrot.lane.b32.xlu0 %v10518_v23, %s9156_s10 }
  0xfa   : > { %14142 = vst [vmem:[#allocation46_spill] sm:$0xff] %v10520_v39  ;;  %v458_v27 = vld [vmem:[#allocation2 + $0x94] sm:$0x8]  ;;  %v1387_v56 = vshll.u32 %v318_v18, 16  ;;  %1606 = vst [vmem:[#allocation2 + $0x8c] sm:$0x1] %v1605_v41  ;;  %2647 = vrot.lane.b32.xlu1 %v7899_v2, %s9156_s10 }
  0xfb   : > { %v1736_v8 = vrot.slane %v1735_v42, 4  ;;  %385 = vst [vmem:[#allocation2 + $0x90] sm:$0x1] %v384_v59  ;;  %v459_v13 = vsel %vm9550_vm6, 0, %v458_v27  ;;  %v1386_v10 = vrot.slane %v1384_v46, 7  ;;  %v1392_v53 = vshrl.u32 %v10514_v29, 16  ;;  %v10547_v27 = vpop.permute.xlu1 %2542 }
  0xfc   : > { %v666_v52 = vld [vmem:[#allocation2 + $0x180] sm:$0x1]  ;;  %v10535_v58 = vld [vmem:[#allocation2 + $0x178] sm:$0xf]  ;;  %460 = vst [vmem:[#allocation2 + $0x94] sm:$0x8] %v459_v13  ;;  %v7954_v13 = vcombine.low %v10507_v63, %v10509_v5 }
  0xfd   : > { %14143 = vst [vmem:[#allocation47_spill] sm:$0xff] %v10535_v58  ;;  %v1395_v38 = vshll.u32 %v10514_v29, 16  ;;  %v667_v42 = vsel %vm9260_vm3, 0, %v666_v52  ;;  %v1738_v41 = vsel %vm9664_vm10, %v1736_v8, %v1737_v61  ;;  %v1741_v12 = vrot.slane %v1740_v57, 4  ;;  %v738_v60 = vld [vmem:[#allocation2 + $0x184] sm:$0x8]  ;;  %v10557_v61 = vpop.permute.xlu0 %2877 }
  0xfe   : > { %668 = vst [vmem:[#allocation2 + $0x180] sm:$0x1] %v667_v42  ;;  %v1742_v59 = vrot.slane %v1384_v46, 4  ;;  %v10551_v1 = vld [vmem:[#allocation2 + $0x68] sm:$0xf]  ;;  %v1390_v62 = vrot.slane %v1386_v10, 4  ;;  %v1389_v8 = vor.u32 %v1387_v56, %v1386_v10  ;;  %2769 = vrot.lane.b32.xlu0 %v7954_v13, %s9158_s22  ;;  %2373 = vrot.lane.b32.xlu1 %v10349_v14, %s9158_s22 }
  0xff   : > { %1866 = vst.msk [vmem:[#allocation2 + $0x264] sm:$0xf] %vm330_vm0, %v1738_v41  ;;  %v1867_v52 = vld [vmem:[#allocation2 + $0x268] sm:$0xf]  ;;  %v1394_v43 = vrot.slane %v1392_v53, 7  ;;  %v739_v57 = vsel %vm9550_vm6, 0, %v738_v60 }
 0x100   : > { %v1611_v22 = vld [vmem:[#allocation2 + $0x98] sm:$0x1]  ;;  %1199 = vst.msk [vmem:[#allocation2 + $0x180] sm:$0xf] %vm330_vm0, %v318_v18  ;;  %v1868_v46 = vsel %vm9779_vm14, %v1741_v12, %v1867_v52  ;;  %v947_v42 = vld [vmem:[#allocation2 + $0x270] sm:$0x1]  ;;  %v10577_v12 = vpop.permute.xlu1 %2629 }
 0x101   : > { %v1019_v41 = vld [vmem:[#allocation2 + $0x274] sm:$0x8]  ;;  %v1743_v16 = vrot.slane %v1387_v56, 5  ;;  %v10563_v58 = vld [vmem:[#allocation2 + $0x6c] sm:$0xf]  ;;  %v1397_v24 = vor.u32 %v1395_v38, %v1394_v43  ;;  %v1399_v18 = vrot.slane %v1394_v43, 4 }
 0x102   : > { %1869 = vst [vmem:[#allocation2 + $0x268] sm:$0xf] %v1868_v46  ;;  %740 = vst [vmem:[#allocation2 + $0x184] sm:$0x8] %v739_v57  ;;  %v948_v17 = vsel %vm9260_vm3, 0, %v947_v42  ;;  %v1020_v30 = vsel %vm9550_vm6, 0, %v1019_v41  ;;  %v10599_v46 = vpop.permute.xlu0 %2749 }
 0x103   : > { %1200 = vst.msk [vmem:[#allocation2 + $0x184] sm:$0xf] %vm330_vm0, %v10514_v29  ;;  %949 = vst [vmem:[#allocation2 + $0x270] sm:$0x1] %v948_v17  ;;  %v1744_v56 = vor.u32 %v1743_v16, %v1742_v59  ;;  %v1746_v10 = vrot.slane %v1395_v38, 5  ;;  %v10575_v43 = vld [vmem:[%s13949_s1 + $0x80] sm:$0xff]   ;;  %v1398_v60 = vsel %vm9741_vm13, %v1390_v62, %v1397_v24  ;;  %v1612_v2 = vsel %vm9260_vm3, %v1399_v18, %v1611_v22 }
 0x104   : > { %1021 = vst [vmem:[#allocation2 + $0x274] sm:$0x8] %v1020_v30  ;;  %v1607_v52 = vld [vmem:[#allocation2 + $0x90] sm:$0xf]  ;;  %v1748_v29 = vrot.slane %v1392_v53, 4  ;;  %v10586_v16 = vcombine.low %v10551_v1, %v10563_v58  ;;  %v13995_v13 = vmov 0.0   ;;  %v10617_v14 = vpop.permute.xlu1 %2355 }
 0x105   : > { %v1608_v30 = vsel %vm9699_vm11, %v1389_v8, %v1607_v52  ;;  %1610 = vst.msk [vmem:[#allocation2 + $0x94] sm:$0xf] %vm330_vm0, %v1398_v60  ;;  %1613 = vst [vmem:[#allocation2 + $0x98] sm:$0x1] %v1612_v2  ;;  %v1745_v17 = vrot.slane %v1744_v56, 4  ;;  %8501 = vmatprep.subr.bf16.mxu0 %v13995_v13  ;;  %8665 = vmatprep.subr.bf16.mxu1 %v13995_v13  ;;  %v10605_v8 = vcombine.low %v10341_v15, %v10432_v51 }
 0x106   : > { %14144 = vst [vmem:[#allocation48_spill] sm:$0xff] %v10586_v16  ;;  %v10592_v38 = vld [vmem:[%s9599_s19 + $0x58] sm:$0xf]  ;;  %v386_v24 = vld [vmem:[#allocation2 + $0x9c] sm:$0x1]  ;;  %v1749_v62 = vor.u32 %v1748_v29, %v1746_v10  ;;  %8667 = vmatpush3.bf16.msra.mxu1 %v10575_v43  ;;  %2832 = vrot.lane.b32.xlu0 %v10586_v16, %s9157_s16  ;;  %v10634_v2 = vcombine.low %v10286_v55, %v10400_v31  ;;  %v2354_v51 = vpop.permute.xlu0 %2353 }
 0x107   : > { %1609 = vst [vmem:[#allocation2 + $0x90] sm:$0xf] %v1608_v30  ;;  %v387_v53 = vsel %vm9260_vm3, 0, %v386_v24  ;;  %v13997_v22 = vshrl.u32 %v10592_v38, 16  ;;  %v669_v59 = vld [vmem:[#allocation2 + $0x18c] sm:$0x1]  ;;  %v1747_v41 = vsel %vm9664_vm10, %v1745_v17, %v1746_v10  ;;  %8666 = vmatprep.subr.bf16.mxu1 %v13995_v13  ;;  %2562 = vrot.lane.b32.xlu1 %v10605_v8, %s9157_s16  ;;  %v7900_v13 = vcombine.low %v10391_v26, %v10480_v9 }
 0x108   : > { %14145 = vst [vmem:[#allocation49_spill] sm:$0xff] %v10605_v8  ;;  %v10607_v57 = vld [vmem:[#allocation2 + $0x17c] sm:$0xf]  ;;  %v10609_v42 = vld [vmem:[#allocation2 + $0x180] sm:$0xf]  ;;  %v14002_v18 = vshll.u32 %v10592_v38, 16  ;;  %v10660_v31 = vpop.permute.xlu1 %2544 }
 0x109   : > { %14146 = vst [vmem:[#allocation50_spill] sm:$0xff] %v10607_v57  ;;  %14147 = vst [vmem:[#allocation51_spill] sm:$0xff] %v10609_v42  ;;  %v670_v56 = vsel %vm9260_vm3, 0, %v669_v59  ;;  %v10619_v60 = vld [vmem:[#allocation2 + $0x244] sm:$0xf]  ;;  %v1750_v52 = vrot.slane %v1749_v62, 4 }
 0x10a   : > { %388 = vst [vmem:[#allocation2 + $0x9c] sm:$0x1] %v387_v53  ;;  %v10621_v15 = vld [vmem:[#allocation2 + $0x248] sm:$0xf]  ;;  %1870 = vst.msk [vmem:[#allocation2 + $0x270] sm:$0xf] %vm330_vm0, %v1747_v41  ;;  %2895 = vrot.lane.b32.xlu0 %v10634_v2, %s9156_s10  ;;  %v2815_v44 = vpop.permute.xlu0 %2814 }
 0x10b   : > { %14148 = vst [vmem:[#allocation52_spill] sm:$0xff] %v10621_v15  ;;  %671 = vst [vmem:[#allocation2 + $0x18c] sm:$0x1] %v670_v56  ;;  %v10627_v10 = vld [vmem:[%s9599_s19 + $0x5c] sm:$0xf]  ;;  %v1403_v30 = vrot.slane %v13997_v22, 7  ;;  %2649 = vrot.lane.b32.xlu1 %v7900_v13, %s9156_s10 }
 0x10c   : > { %14149 = vst [vmem:[#allocation53_spill] sm:$0xff] %v10634_v2  ;;  %v10636_v29 = vld [vmem:[#allocation2 + $0x188] sm:$0xf]  ;;  %1201 = vst.msk [vmem:[#allocation2 + $0x18c] sm:$0xf] %vm330_vm0, %v10592_v38  ;;  %v1412_v41 = vshll.u32 %v10627_v10, 16 }
 0x10d   : > { %14150 = vst [vmem:[#allocation54_spill] sm:$0xff] %v10636_v29  ;;  %v462_v17 = vld [vmem:[#allocation2 + $0xa0] sm:$0x8]  ;;  %v10643_v62 = vld [vmem:[#allocation2 + $0x184] sm:$0xf]  ;;  %v1407_v8 = vrot.slane %v1403_v30, 4 }
 0x10e   : > { %14151 = vst [vmem:[#allocation55_spill] sm:$0xff] %v10643_v62  ;;  %v1871_v53 = vld [vmem:[#allocation2 + $0x274] sm:$0xf]  ;;  %v463_v59 = vsel %vm9550_vm6, 0, %v462_v17  ;;  %v10648_v56 = vld [vmem:[#allocation2 + $0x8] sm:$0xf]  ;;  %v1406_v17 = vor.u32 %v14002_v18, %v1403_v30 }
 0x10f   : > { %v1872_v24 = vsel %vm9779_vm14, %v1750_v52, %v1871_v53  ;;  %464 = vst [vmem:[#allocation2 + $0xa0] sm:$0x8] %v463_v59  ;;  %v742_v16 = vld [vmem:[#allocation2 + $0x190] sm:$0x8]  ;;  %v14152_v26 = vshrl.u32 %v10627_v10, 16  ;;  %v8860_v22 = vld [vmem:[#allocation2] sm:$0xff]   ;;  %v7955_v52 = vcombine.low %v10619_v60, %v10621_v15  ;;  %2375 = vrot.lane.b32.xlu1 %v10420_v4, %s9158_s22  ;;  %v14158_v4 = vcombine.low %v9642_v35, %v9656_v47 }
 0x110   : > { %v10662_v55 = vld [vmem:[#allocation2 + $0x70] sm:$0xf]  ;;  %1873 = vst [vmem:[#allocation2 + $0x274] sm:$0xf] %v1872_v24  ;;  %v10670_v53 = vld [vmem:[#allocation2 + $0x74] sm:$0xf]  ;;  %v10680_v24 = vcombine.low %v10441_v49, %v10507_v63  ;;  %v2941_v15 = vsel %vm2938_vm15, %v8860_v22, %v2354_v51 }
 0x111   : > { %v1411_v9 = vrot.slane %v14152_v26, 7  ;;  %v743_v59 = vsel %vm9550_vm6, 0, %v742_v16  ;;  %v950_v18 = vld [vmem:[#allocation2 + $0x27c] sm:$0x1]  ;;  %v10674_v29 = vld [vmem:[#allocation2 + $0xc] sm:$0xf]  ;;  %2771 = vrot.lane.b32.xlu0 %v7955_v52, %s9158_s22  ;;  %v2752_v52 = vpop.permute.xlu0 %2751 }
 0x112   : > { %14153 = vst [vmem:[#allocation56_spill] sm:$0xff] %v10680_v24  ;;  %v1614_v26 = vld [vmem:[#allocation2 + $0x9c] sm:$0xf]  ;;  %v1618_v62 = vld [vmem:[#allocation2 + $0xa4] sm:$0x1]  ;;  %v951_v49 = vsel %vm9260_vm3, 0, %v950_v18 }
 0x113   : > { %v1414_v42 = vor.u32 %v1412_v41, %v1411_v9  ;;  %744 = vst [vmem:[#allocation2 + $0x190] sm:$0x8] %v743_v59  ;;  %v1023_v57 = vld [vmem:[#allocation2 + $0x280] sm:$0x8]  ;;  %v1615_v16 = vsel %vm9699_vm11, %v1406_v17, %v1614_v26  ;;  %v1416_v39 = vrot.slane %v1411_v9, 4  ;;  %v10691_v59 = vpop.permute.xlu1 %2357  ;;  %v14154_v17 = vshrl.u32 %v10592_v38, 16  ;;  %2564 = vrot.lane.b32.xlu1 %v10680_v24, %s9157_s16 }
 0x114   : > { %1202 = vst.msk [vmem:[#allocation2 + $0x190] sm:$0xf] %vm330_vm0, %v10627_v10  ;;  %v1024_v63 = vsel %vm9550_vm6, 0, %v1023_v57  ;;  %1616 = vst [vmem:[#allocation2 + $0x9c] sm:$0xf] %v1615_v16  ;;  %v14155_v26 = vshll.u32 %v10592_v38, 16  ;;  %v10711_v16 = vcombine.low %v10662_v55, %v10670_v53 }
 0x115   : > { %v1415_v13 = vsel %vm9741_vm13, %v1407_v8, %v1414_v42  ;;  %952 = vst [vmem:[#allocation2 + $0x27c] sm:$0x1] %v951_v49  ;;  %1025 = vst [vmem:[#allocation2 + $0x280] sm:$0x8] %v1024_v63  ;;  %v1751_v9 = vrot.slane %v14154_v17, 4  ;;  %v1619_v8 = vsel %vm9260_vm3, %v1416_v39, %v1618_v62  ;;  %v1755_v42 = vrot.slane %v1412_v41, 5 }
 0x116   : > { %v1752_v18 = vrot.slane %v14155_v26, 5  ;;  %v10702_v2 = vld [vmem:[%s9599_s19 + $0x60] sm:$0xf]  ;;  %v10705_v57 = vld [vmem:[%s9599_s19 + $0x64] sm:$0xf]  ;;  %v14156_v17 = vshrl.u32 %v10627_v10, 16  ;;  %v10726_v39 = vcombine.low %v10402_v19, %v10449_v37  ;;  %2834 = vrot.lane.b32.xlu0 %v10711_v16, %s9157_s16 }
 0x117   : > { %1617 = vst.msk [vmem:[#allocation2 + $0xa0] sm:$0xf] %vm330_vm0, %v1415_v13  ;;  %v389_v38 = vld [vmem:[#allocation2 + $0xa8] sm:$0x1]  ;;  %v466_v49 = vld [vmem:[#allocation2 + $0xac] sm:$0x8] }
 0x118   : > { %1620 = vst [vmem:[#allocation2 + $0xa4] sm:$0x1] %v1619_v8  ;;  %v1753_v63 = vor.u32 %v1752_v18, %v1751_v9  ;;  %v1757_v26 = vrot.slane %v14156_v17, 4  ;;  %v390_v22 = vsel %vm9260_vm3, 0, %v389_v38  ;;  %v467_v51 = vsel %vm9550_vm6, 0, %v466_v49 }
 0x119   : > { %391 = vst [vmem:[#allocation2 + $0xa8] sm:$0x1] %v390_v22  ;;  %468 = vst [vmem:[#allocation2 + $0xac] sm:$0x8] %v467_v51  ;;  %v1418_v62 = vshrl.u32 %v10702_v2, 16  ;;  %v1421_v10 = vshll.u32 %v10702_v2, 16  ;;  %v14157_v9 = vcombine.low %v9766_v45, %v9790_v7  ;;  %v3162_v8 = vsel %vm2938_vm15, %v14158_v4, %v2752_v52  ;;  %v2813_v51 = vpop.permute.xlu1 %2812 }
 0x11a   : > { %v14016_v41 = vshrl.u32 %v10705_v57, 16  ;;  %v672_v13 = vld [vmem:[#allocation2 + $0x198] sm:$0x1]  ;;  %v10740_v38 = vld [vmem:[#allocation2 + $0x24c] sm:$0xf]  ;;  %v1754_v17 = vrot.slane %v1753_v63, 4  ;;  %v3022_v45 = vsel %vm3020_vm1, %v2941_v15, %v10547_v27  ;;  %v2754_v15 = vpop.permute.xlu0 %2753  ;;  %2897 = vrot.lane.b32.xlu0 %v10726_v39, %s9156_s10 }
 0x11b   : > { %v3159_v18 = vsel %vm2938_vm15, %v14157_v9, %v10599_v46  ;;  %v10742_v49 = vld [vmem:[#allocation2 + $0x250] sm:$0xf]  ;;  %v1429_v22 = vshll.u32 %v10705_v57, 16  ;;  %v10749_v7 = vld [vmem:[#allocation2 + $0x7c] sm:$0xf]  ;;  %v1758_v46 = vor.u32 %v1757_v26, %v1755_v42  ;;  %v1420_v35 = vrot.slane %v1418_v62, 7 }
 0x11c   : > { %v10753_v47 = vrot.slane %v14016_v41, 7  ;;  %v746_v52 = vld [vmem:[#allocation2 + $0x19c] sm:$0x8]  ;;  %v3239_v63 = vsel %vm3020_vm1, %v3159_v18, %v2813_v51  ;;  %v3241_v9 = vsel %vm3020_vm1, %v3162_v8, %v2815_v44  ;;  %v1756_v4 = vsel %vm9664_vm10, %v1754_v17, %v1755_v42  ;;  %v953_v27 = vld [vmem:[#allocation2 + $0x288] sm:$0x1] }
 0x11d   : > { %v673_v30 = vsel %vm9260_vm3, 0, %v672_v13  ;;  %v3293_v26 = vsel %vm3075_vm2, %v3239_v63, %v10529_v11  ;;  %v10765_v41 = vld [vmem:[#allocation2 + $0x78] sm:$0xf]  ;;  %v10769_v18 = vcombine.low %v10509_v5, %v10619_v60  ;;  %v1759_v44 = vrot.slane %v1758_v46, 4  ;;  %1874 = vst.msk [vmem:[#allocation2 + $0x27c] sm:$0xf] %vm330_vm0, %v1756_v4  ;;  %v2632_v60 = vpop.permute.xlu1 %2631 }
 0x11e   : > { %v1875_v42 = vld [vmem:[#allocation2 + $0x280] sm:$0xf]  ;;  %v1423_v13 = vor.u32 %v1421_v10, %v1420_v35  ;;  %674 = vst [vmem:[#allocation2 + $0x198] sm:$0x1] %v673_v30  ;;  %3630 = vmatprep.mubr.bf16.mxu0 %v3293_v26  ;;  %v3077_v8 = vsel %vm3075_vm2, %v3022_v45, %v10577_v12  ;;  %v7956_v11 = vcombine.low %v10740_v38, %v10742_v49  ;;  %v1424_v17 = vrot.slane %v1420_v35, 4 }
 0x11f   : > { %14159 = vst [vmem:[#allocation57_spill] sm:$0xff] %v10769_v18  ;;  %v1431_v5 = vor.u32 %v1429_v22, %v10753_v47  ;;  %1203 = vst.msk [vmem:[#allocation2 + $0x198] sm:$0xf] %vm330_vm0, %v10702_v2  ;;  %3631 = vmatmul.mubr.bf16.vlgmr.msra.gmra.mrb[0].mxu0 %v3077_v8  ;;  %v3296_v30 = vsel %vm3075_vm2, %v3241_v9, %v10557_v61  ;;  %v1876_v12 = vsel %vm9779_vm14, %v1759_v44, %v1875_v42  ;;  %v10794_v46 = vld [vmem:[%s9599_s19 + $0x68] sm:$0xf]  ;;  %v2817_v44 = vpop.permute.xlu0 %2816 }
 0x120   : > { %v747_v51 = vsel %vm9550_vm6, 0, %v746_v52  ;;  %v954_v45 = vsel %vm9260_vm3, 0, %v953_v27  ;;  %v392_v35 = vld [vmem:[#allocation2 + $0xb4] sm:$0x1]  ;;  %3638 = vmatprep.mubr.bf16.mxu0 %v3296_v30  ;;  %v10798_v63 = vcombine.low %v10765_v41, %v10749_v7  ;;  %v10802_v61 = vcombine.low %v10451_v40, %v10461_v21  ;;  %1877 = vst [vmem:[#allocation2 + $0x280] sm:$0xf] %v1876_v12  ;;  %8502 = vmatpush3.bf16.msra.mxu0 %v10575_v43 }
 0x121   : > { %v1432_v9 = vsel %vm9741_vm13, %v1424_v17, %v1431_v5  ;;  %v1621_v52 = vld [vmem:[#allocation2 + $0xa8] sm:$0xf]  ;;  %748 = vst [vmem:[#allocation2 + $0x19c] sm:$0x8] %v747_v51  ;;  %955 = vst [vmem:[#allocation2 + $0x288] sm:$0x1] %v954_v45  ;;  %v14160_v27 = vcombine.low %v10648_v56, %v10674_v29  ;;  %v14161_v42 = vcombine.low %v10468_v28, %v10551_v1  ;;  %2773 = vrot.lane.b32.xlu0 %v7956_v11, %s9158_s22 }
 0x122   : > { %v1760_v4 = vrot.slane %v1418_v62, 4  ;;  %v1622_v8 = vsel %vm9699_vm11, %v1423_v13, %v1621_v52  ;;  %1624 = vst.msk [vmem:[#allocation2 + $0xac] sm:$0xf] %vm330_vm0, %v1432_v9  ;;  %1204 = vst.msk [vmem:[#allocation2 + $0x19c] sm:$0xf] %vm330_vm0, %v10705_v57  ;;  %v1761_v43 = vrot.slane %v1421_v10, 5  ;;  %v10832_v10 = vpop.permute.xlu1 %2546 }
 0x123   : > { %v2944_v26 = vsel %vm2938_vm15, %v14160_v27, %v10617_v14  ;;  %2651 = vrot.lane.b32.xlu1 %v14161_v42, %s9156_s10  ;;  %v393_v14 = vsel %vm9260_vm3, 0, %v392_v35  ;;  %v1625_v29 = vld [vmem:[#allocation2 + $0xb0] sm:$0x1]  ;;  %v675_v56 = vld [vmem:[#allocation2 + $0x1a4] sm:$0x1]  ;;  %v14162_v62 = vmov 0.0  }
 0x124   : > { %8503 = vmatprep.subr.bf16.mxu0 %v14162_v62  ;;  %v3024_v1 = vsel %vm3020_vm1, %v2944_v26, %v10660_v31  ;;  %1623 = vst [vmem:[#allocation2 + $0xa8] sm:$0xf] %v1622_v8  ;;  %394 = vst [vmem:[#allocation2 + $0xb4] sm:$0x1] %v393_v14  ;;  %v1433_v28 = vrot.slane %v10753_v47, 4  ;;  %v1435_v13 = vshrl.u32 %v10794_v46, 16  ;;  %v1762_v17 = vor.u32 %v1761_v43, %v1760_v4  ;;  %v2880_v4 = vpop.permute.xlu0 %2879 }
 0x125   : > { %v1438_v2 = vshll.u32 %v10794_v46, 16  ;;  %v1764_v5 = vrot.slane %v1429_v22, 5  ;;  %v676_v31 = vsel %vm9260_vm3, 0, %v675_v56  ;;  %v1027_v30 = vld [vmem:[#allocation2 + $0x28c] sm:$0x8]  ;;  %v14163_v12 = vshrl.u32 %v10705_v57, 16  ;;  %2836 = vrot.lane.b32.xlu0 %v10798_v63, %s9157_s16  ;;  %8565 = vmatprep.mubr.msk.bf16.mxu1 %vm9160_vm4, %v14162_v62 }
 0x126   : > { %v14164_v47 = vcombine.low %v9658_v48, %v9644_v36  ;;  %v1437_v35 = vrot.slane %v1435_v13, 7  ;;  %v1626_v11 = vsel %vm9260_vm3, %v1433_v28, %v1625_v29  ;;  %677 = vst [vmem:[#allocation2 + $0x1a4] sm:$0x1] %v676_v31  ;;  %v1028_v22 = vsel %vm9550_vm6, 0, %v1027_v30  ;;  %v10849_v9 = vld [vmem:[%s9599_s19 + $0x6c] sm:$0xf]  ;;  %v2634_v43 = vpop.permute.xlu1 %2633 }
 0x127   : > { %v1766_v51 = vrot.slane %v14163_v12, 4  ;;  %2377 = vrot.lane.b32.xlu1 %v10518_v23, %s9158_s22  ;;  %v1763_v57 = vrot.slane %v1762_v17, 4  ;;  %1627 = vst [vmem:[#allocation2 + $0xb0] sm:$0x1] %v1626_v11  ;;  %1205 = vst.msk [vmem:[#allocation2 + $0x1a4] sm:$0xf] %vm330_vm0, %v10794_v46  ;;  %v3080_v27 = vsel %vm3075_vm2, %v3024_v1, %v2632_v60  ;;  %v14165_v11 = vcombine.low %v9727_v20, %v9747_v34 }
 0x128   : > { %v3165_v45 = vsel %vm2938_vm15, %v14164_v47, %v2754_v15  ;;  %1029 = vst [vmem:[#allocation2 + $0x28c] sm:$0x8] %v1028_v22  ;;  %v470_v48 = vld [vmem:[#allocation2 + $0xb8] sm:$0x8]  ;;  %v1443_v15 = vshrl.u32 %v10849_v9, 16  ;;  %3639 = vmatmul.mubr.bf16.gmra.mrb[4].mxu0 %v3080_v27  ;;  %v1441_v29 = vrot.slane %v1437_v35, 4  ;;  %v2756_v30 = vpop.permute.xlu0 %2755 }
 0x129   : > { %v3243_v52 = vsel %vm3020_vm1, %v3165_v45, %v2817_v44  ;;  %v1767_v36 = vor.u32 %v1766_v51, %v1764_v5  ;;  %v10859_v42 = vld [vmem:[#allocation2 + $0x254] sm:$0xf]  ;;  %v1440_v44 = vor.u32 %v1438_v2, %v1437_v35  ;;  %v471_v23 = vsel %vm9550_vm6, 0, %v470_v48  ;;  %v750_v8 = vld [vmem:[#allocation2 + $0x1a8] sm:$0x8]  ;;  %2899 = vrot.lane.b32.xlu0 %v10802_v61, %s9156_s10 }
 0x12a   : > { %v3299_v26 = vsel %vm3075_vm2, %v3243_v52, %v2880_v4  ;;  %v10867_v14 = vld [vmem:[#allocation2 + $0x258] sm:$0xf]  ;;  %v1765_v60 = vsel %vm9664_vm10, %v1763_v57, %v1764_v5  ;;  %472 = vst [vmem:[#allocation2 + $0xb8] sm:$0x8] %v471_v23  ;;  %v1445_v56 = vrot.slane %v1443_v15, 7  ;;  %v1446_v1 = vshll.u32 %v10849_v9, 16  ;;  %v10896_v20 = vpop.permute.xlu1 %2359 }
 0x12b   : > { %3646 = vmatprep.mubr.bf16.mxu0 %v3299_v26  ;;  %v10872_v28 = vld [vmem:[#allocation2 + $0x80] sm:$0xf]  ;;  %1878 = vst.msk [vmem:[#allocation2 + $0x288] sm:$0xf] %vm330_vm0, %v1765_v60  ;;  %v1632_v17 = vld [vmem:[#allocation2 + $0xbc] sm:$0x1]  ;;  %2566 = vrot.lane.b32.xlu1 %v10769_v18, %s9157_s16  ;;  %v7902_v5 = vcombine.low %v10563_v58, %v10662_v55  ;;  %v2947_v22 = vsel %vm2938_vm15, %v14165_v11, %v10691_v59 }
 0x12c   : > { %v751_v31 = vsel %vm9550_vm6, 0, %v750_v8  ;;  %v10881_v12 = vld [vmem:[#allocation2 + $0x84] sm:$0xf]  ;;  %v1628_v51 = vld [vmem:[#allocation2 + $0xb4] sm:$0xf]  ;;  %v1768_v47 = vrot.slane %v1767_v36, 4  ;;  %v1448_v45 = vor.u32 %v1446_v1, %v1445_v56  ;;  %v7957_v52 = vcombine.low %v10859_v42, %v10867_v14 }
 0x12d   : > { %v1450_v35 = vrot.slane %v1445_v56, 4  ;;  %752 = vst [vmem:[#allocation2 + $0x1a8] sm:$0x8] %v751_v31  ;;  %v1629_v4 = vsel %vm9699_vm11, %v1440_v44, %v1628_v51  ;;  %v956_v55 = vld [vmem:[#allocation2 + $0x294] sm:$0x1]  ;;  %v1769_v57 = vrot.slane %v1435_v13, 4  ;;  %v3026_v13 = vsel %vm3020_vm1, %v2947_v22, %v10832_v10  ;;  %v2819_v44 = vpop.permute.xlu0 %2818 }
 0x12e   : > { %1206 = vst.msk [vmem:[#allocation2 + $0x1a8] sm:$0xf] %vm330_vm0, %v10849_v9  ;;  %v1031_v58 = vld [vmem:[#allocation2 + $0x298] sm:$0x8]  ;;  %1630 = vst [vmem:[#allocation2 + $0xb4] sm:$0xf] %v1629_v4  ;;  %v1449_v34 = vsel %vm9741_vm13, %v1441_v29, %v1448_v45  ;;  %v3083_v23 = vsel %vm3075_vm2, %v3026_v13, %v2634_v43  ;;  %v10919_v8 = vcombine.low %v10872_v28, %v10881_v12  ;;  %2775 = vrot.lane.b32.xlu0 %v7957_v52, %s9158_s22 }
 0x12f   : > { %v1633_v59 = vsel %vm9260_vm3, %v1450_v35, %v1632_v17  ;;  %v957_v9 = vsel %vm9260_vm3, 0, %v956_v55  ;;  %v1032_v36 = vsel %vm9550_vm6, 0, %v1031_v58  ;;  %v1879_v48 = vld [vmem:[#allocation2 + $0x28c] sm:$0xf]  ;;  %1631 = vst.msk [vmem:[#allocation2 + $0xb8] sm:$0xf] %vm330_vm0, %v1449_v34  ;;  %2653 = vrot.lane.b32.xlu1 %v7902_v5, %s9156_s10  ;;  %v14166_v17 = vcombine.low %v9677_v54, %v9869_v32 }
 0x130   : > { %1634 = vst [vmem:[#allocation2 + $0xbc] sm:$0x1] %v1633_v59  ;;  %958 = vst [vmem:[#allocation2 + $0x294] sm:$0x1] %v957_v9  ;;  %v10910_v27 = vld [vmem:[%s9599_s19 + $0x70] sm:$0xf]  ;;  %v1880_v10 = vsel %vm9779_vm14, %v1768_v47, %v1879_v48  ;;  %v2549_v47 = vpop.permute.xlu1 %2548  ;;  %3647 = vmatmul.mubr.bf16.gmra.mrb[8].mxu0 %v3083_v23 }
 0x131   : > { %1033 = vst [vmem:[#allocation2 + $0x298] sm:$0x8] %v1032_v36  ;;  %v10913_v26 = vld [vmem:[%s9599_s19 + $0x74] sm:$0xf]  ;;  %v1770_v60 = vrot.slane %v1438_v2, 5  ;;  %v3168_v31 = vsel %vm2938_vm15, %v14166_v17, %v2756_v30  ;;  %v1773_v5 = vrot.slane %v1446_v1, 5  ;;  %v2882_v22 = vpop.permute.xlu0 %2881 }
 0x132   : > { %v395_v29 = vld [vmem:[#allocation2 + $0xc0] sm:$0x1]  ;;  %v474_v56 = vld [vmem:[#allocation2 + $0xc4] sm:$0x8]  ;;  %1881 = vst [vmem:[#allocation2 + $0x28c] sm:$0xf] %v1880_v10  ;;  %v3245_v1 = vsel %vm3020_vm1, %v3168_v31, %v2819_v44  ;;  %2838 = vrot.lane.b32.xlu0 %v10919_v8, %s9157_s16 }
 0x133   : > { %v1775_v43 = vrot.slane %v1443_v15, 4  ;;  %v396_v51 = vsel %vm9260_vm3, 0, %v395_v29  ;;  %v678_v45 = vld [vmem:[#allocation2 + $0x1b0] sm:$0x1]  ;;  %v1771_v46 = vor.u32 %v1770_v60, %v1769_v57  ;;  %v475_v2 = vsel %vm9550_vm6, 0, %v474_v56  ;;  %v14167_v15 = vld [vmem:[#allocation52_spill] sm:$0xff] }
 0x134   : > { %397 = vst [vmem:[#allocation2 + $0xc0] sm:$0x1] %v396_v51  ;;  %v1452_v54 = vshrl.u32 %v10910_v27, 16  ;;  %v1455_v32 = vshll.u32 %v10910_v27, 16  ;;  %v10939_v30 = vcombine.low %v14167_v15, %v10740_v38  ;;  %476 = vst [vmem:[#allocation2 + $0xc4] sm:$0x8] %v475_v2  ;;  %v3302_v34 = vsel %vm3075_vm2, %v3245_v1, %v2882_v22  ;;  %v2636_v13 = vpop.permute.xlu1 %2635 }
 0x135   : > { %v1776_v35 = vor.u32 %v1775_v43, %v1773_v5  ;;  %v1460_v11 = vshrl.u32 %v10913_v26, 16  ;;  %v14169_v52 = vld [vmem:[#allocation53_spill] sm:$0xff]  ;;  %v1772_v4 = vrot.slane %v1771_v46, 4  ;;  %v1463_v58 = vshll.u32 %v10913_v26, 16  ;;  %v754_v9 = vld [vmem:[#allocation2 + $0x1b4] sm:$0x8]  ;;  %3654 = vmatprep.mubr.bf16.mxu0 %v3302_v34 }
 0x136   : > { %14168 = vst [vmem:[#allocation52_spill] sm:$0xff] %v10939_v30  ;;  %2379 = vrot.lane.b32.xlu1 %v14169_v52, %s9158_s22  ;;  %v1454_v55 = vrot.slane %v1452_v54, 7  ;;  %v679_v57 = vsel %vm9260_vm3, 0, %v678_v45  ;;  %v959_v36 = vld [vmem:[#allocation2 + $0x2a0] sm:$0x1]  ;;  %v14170_v48 = vld [vmem:[#allocation46_spill] sm:$0xff]  ;;  %v7903_v51 = vcombine.low %v10670_v53, %v10765_v41 }
 0x137   : > { %v1777_v59 = vrot.slane %v1776_v35, 4  ;;  %v10950_v38 = vrot.slane %v1460_v11, 7  ;;  %680 = vst [vmem:[#allocation2 + $0x1b0] sm:$0x1] %v679_v57  ;;  %v14171_v44 = vld [vmem:[#allocation43_spill] sm:$0xff]  ;;  %v1774_v29 = vsel %vm9664_vm10, %v1772_v4, %v1773_v5  ;;  %v14172_v31 = vld [vmem:[#allocation12_spill] sm:$0xff] }
 0x138   : > { %v10956_v23 = vcombine.low %v14171_v44, %v14170_v48  ;;  %v10958_v10 = vld [vmem:[#allocation2 + $0x25c] sm:$0xf]  ;;  %v10960_v60 = vld [vmem:[#allocation2 + $0x260] sm:$0xf]  ;;  %v1883_v56 = vld [vmem:[#allocation2 + $0x298] sm:$0xf]  ;;  %v1457_v17 = vor.u32 %v1455_v32, %v1454_v55  ;;  %v2950_v43 = vsel %vm2938_vm15, %v14172_v31, %v10896_v20  ;;  %v2362_v57 = vpop.permute.xlu1 %2361 }
 0x139   : > { %1207 = vst.msk [vmem:[#allocation2 + $0x1b0] sm:$0xf] %vm330_vm0, %v10910_v27  ;;  %v10971_v45 = vld [vmem:[#allocation2 + $0x88] sm:$0xf]  ;;  %v10973_v46 = vld [vmem:[#allocation2 + $0x8c] sm:$0xf]  ;;  %v1884_v5 = vsel %vm9779_vm14, %v1777_v59, %v1883_v56  ;;  %v3028_v1 = vsel %vm3020_vm1, %v2950_v43, %v2549_v47  ;;  %v2758_v27 = vpop.permute.xlu0 %2757  ;;  %v1465_v20 = vor.u32 %v1463_v58, %v10950_v38  ;;  %v7958_v47 = vcombine.low %v10958_v10, %v10960_v60 }
 0x13a   : > { %1882 = vst.msk [vmem:[#allocation2 + $0x294] sm:$0xf] %vm330_vm0, %v1774_v29  ;;  %v1458_v2 = vrot.slane %v1454_v55, 4  ;;  %2568 = vrot.lane.b32.xlu1 %v10939_v30, %s9157_s16  ;;  %1885 = vst [vmem:[#allocation2 + $0x298] sm:$0xf] %v1884_v5  ;;  %v755_v53 = vsel %vm9550_vm6, 0, %v754_v9  ;;  %v3086_v22 = vsel %vm3075_vm2, %v3028_v1, %v2636_v13  ;;  %2901 = vrot.lane.b32.xlu0 %v10956_v23, %s9156_s10 }
 0x13b   : > { %v960_v41 = vsel %vm9260_vm3, 0, %v959_v36  ;;  %v10987_v15 = vld [vmem:[%s9599_s19 + $0x78] sm:$0xf]  ;;  %v398_v35 = vld [vmem:[#allocation2 + $0xcc] sm:$0x1]  ;;  %v1778_v4 = vrot.slane %v1452_v54, 4  ;;  %3655 = vmatmul.mubr.bf16.gmra.mrb[12].mxu0 %v3086_v22  ;;  %v10996_v34 = vcombine.low %v10971_v45, %v10973_v46 }
 0x13c   : > { %v1635_v52 = vld [vmem:[#allocation2 + $0xc0] sm:$0xf]  ;;  %756 = vst [vmem:[#allocation2 + $0x1b4] sm:$0x8] %v755_v53  ;;  %961 = vst [vmem:[#allocation2 + $0x2a0] sm:$0x1] %v960_v41  ;;  %v1466_v59 = vsel %vm9741_vm13, %v1458_v2, %v1465_v20 }
 0x13d   : > { %v681_v55 = vld [vmem:[#allocation2 + $0x1bc] sm:$0x1]  ;;  %v1636_v9 = vsel %vm9699_vm11, %v1457_v17, %v1635_v52  ;;  %1208 = vst.msk [vmem:[#allocation2 + $0x1b4] sm:$0xf] %vm330_vm0, %v10913_v26  ;;  %v1779_v54 = vrot.slane %v1455_v32, 5  ;;  %v1782_v29 = vrot.slane %v1463_v58, 5  ;;  %v2821_v5 = vpop.permute.xlu0 %2820  ;;  %v11038_v26 = vcombine.low %v10742_v49, %v10859_v42 }
 0x13e   : > { %v1639_v36 = vld [vmem:[#allocation2 + $0xc8] sm:$0x1]  ;;  %v1035_v13 = vld [vmem:[#allocation2 + $0x2a4] sm:$0x8]  ;;  %1637 = vst [vmem:[#allocation2 + $0xc0] sm:$0xf] %v1636_v9  ;;  %2655 = vrot.lane.b32.xlu1 %v7903_v51, %s9156_s10  ;;  %2777 = vrot.lane.b32.xlu0 %v7958_v47, %s9158_s22 }
 0x13f   : > { %1638 = vst.msk [vmem:[#allocation2 + $0xc4] sm:$0xf] %vm330_vm0, %v1466_v59  ;;  %v399_v56 = vsel %vm9260_vm3, 0, %v398_v35  ;;  %v1467_v31 = vrot.slane %v10950_v38, 4  ;;  %v1469_v43 = vshrl.u32 %v10987_v15, 16  ;;  %v1780_v17 = vor.u32 %v1779_v54, %v1778_v4  ;;  %v14173_v20 = vld [vmem:[#allocation14_spill] sm:$0xff]  ;;  %v2551_v4 = vpop.permute.xlu1 %2550 }
 0x140   : > { %400 = vst [vmem:[#allocation2 + $0xcc] sm:$0x1] %v399_v56  ;;  %v1472_v32 = vshll.u32 %v10987_v15, 16  ;;  %v682_v2 = vsel %vm9260_vm3, 0, %v681_v55  ;;  %v1036_v58 = vsel %vm9550_vm6, 0, %v1035_v13  ;;  %v14174_v53 = vld [vmem:[#allocation15_spill] sm:$0xff] }
 0x141   : > { %v11016_v1 = vld [vmem:[%s9599_s19 + $0x7c] sm:$0xf]  ;;  %v14175_v38 = vcombine.low %v14173_v20, %v14174_v53  ;;  %v1471_v51 = vrot.slane %v1469_v43, 7  ;;  %v1640_v35 = vsel %vm9260_vm3, %v1467_v31, %v1639_v36  ;;  %683 = vst [vmem:[#allocation2 + $0x1bc] sm:$0x1] %v682_v2  ;;  %v1784_v22 = vrot.slane %v1460_v11, 4  ;;  %v2884_v31 = vpop.permute.xlu0 %2883 }
 0x142   : > { %1037 = vst [vmem:[#allocation2 + $0x2a4] sm:$0x8] %v1036_v58  ;;  %v478_v52 = vld [vmem:[#allocation2 + $0xd0] sm:$0x8]  ;;  %v1781_v55 = vrot.slane %v1780_v17, 4  ;;  %v1477_v59 = vshrl.u32 %v11016_v1, 16  ;;  %2381 = vrot.lane.b32.xlu1 %v10726_v39, %s9158_s22  ;;  %2840 = vrot.lane.b32.xlu0 %v10996_v34, %s9157_s16 }
 0x143   : > { %v3171_v41 = vsel %vm2938_vm15, %v14175_v38, %v2758_v27  ;;  %1641 = vst [vmem:[#allocation2 + $0xc8] sm:$0x1] %v1640_v35  ;;  %1209 = vst.msk [vmem:[#allocation2 + $0x1bc] sm:$0xf] %vm330_vm0, %v10987_v15  ;;  %v479_v27 = vsel %vm9550_vm6, 0, %v478_v52  ;;  %v1480_v9 = vshll.u32 %v11016_v1, 16  ;;  %v1785_v13 = vor.u32 %v1784_v22, %v1782_v29 }
 0x144   : > { %v3247_v54 = vsel %vm3020_vm1, %v3171_v41, %v2821_v5  ;;  %14176 = vst [vmem:[#allocation53_spill] sm:$0xff] %v11038_v26  ;;  %v14177_v11 = vld [vmem:[#allocation50_spill] sm:$0xff]  ;;  %v14178_v47 = vld [vmem:[#allocation47_spill] sm:$0xff]  ;;  %480 = vst [vmem:[#allocation2 + $0xd0] sm:$0x8] %v479_v27  ;;  %v1783_v17 = vsel %vm9664_vm10, %v1781_v55, %v1782_v29  ;;  %v1474_v5 = vor.u32 %v1472_v32, %v1471_v51  ;;  %v1475_v2 = vrot.slane %v1471_v51, 4  ;;  %v2638_v51 = vpop.permute.xlu1 %2637 }
 0x145   : > { %v11042_v36 = vcombine.low %v14178_v47, %v14177_v11  ;;  %v758_v56 = vld [vmem:[#allocation2 + $0x1c0] sm:$0x8]  ;;  %v1479_v49 = vrot.slane %v1477_v59, 7  ;;  %v962_v42 = vld [vmem:[#allocation2 + $0x2ac] sm:$0x1]  ;;  %v14179_v58 = vld [vmem:[#allocation11_spill] sm:$0xff]  ;;  %v3305_v53 = vsel %vm3075_vm2, %v3247_v54, %v2884_v31 }
 0x146   : > { %v2953_v20 = vsel %vm2938_vm15, %v14179_v58, %v2362_v57  ;;  %1886 = vst.msk [vmem:[#allocation2 + $0x2a0] sm:$0xf] %vm330_vm0, %v1783_v17  ;;  %v1786_v38 = vrot.slane %v1785_v13, 4  ;;  %v1646_v39 = vld [vmem:[#allocation2 + $0xd4] sm:$0x1]  ;;  %v759_v29 = vsel %vm9550_vm6, 0, %v758_v56  ;;  %3662 = vmatprep.mubr.bf16.mxu0 %v3305_v53  ;;  %2570 = vrot.lane.b32.xlu1 %v11038_v26, %s9157_s16 }
 0x147   : > { %v1039_v41 = vld [vmem:[#allocation2 + $0x2b0] sm:$0x8]  ;;  %v3030_v35 = vsel %vm3020_vm1, %v2953_v20, %v2551_v4  ;;  %v11061_v22 = vld [vmem:[#allocation2 + $0x264] sm:$0xf]  ;;  %v11063_v57 = vld [vmem:[#allocation2 + $0x268] sm:$0xf]  ;;  %v1482_v52 = vor.u32 %v1480_v9, %v1479_v49  ;;  %v7904_v4 = vcombine.low %v10749_v7, %v10872_v28  ;;  %2903 = vrot.lane.b32.xlu0 %v11042_v36, %s9156_s10 }
 0x148   : > { %v1484_v55 = vrot.slane %v1479_v49, 4  ;;  %760 = vst [vmem:[#allocation2 + $0x1c0] sm:$0x8] %v759_v29  ;;  %v963_v27 = vsel %vm9260_vm3, 0, %v962_v42  ;;  %v3089_v54 = vsel %vm3075_vm2, %v3030_v35, %v2638_v51  ;;  %v1642_v13 = vld [vmem:[#allocation2 + $0xcc] sm:$0xf]  ;;  %v2760_v49 = vpop.permute.xlu0 %2759  ;;  %v7959_v35 = vcombine.low %v11061_v22, %v11063_v57 }
 0x149   : > { %1210 = vst.msk [vmem:[#allocation2 + $0x1c0] sm:$0xf] %vm330_vm0, %v11016_v1  ;;  %964 = vst [vmem:[#allocation2 + $0x2ac] sm:$0x1] %v963_v27  ;;  %v1040_v56 = vsel %vm9550_vm6, 0, %v1039_v41  ;;  %v8909_v17 = vld [vmem:[%s13949_s1 + $0x88] sm:$0xff]   ;;  %3663 = vmatmul.mubr.bf16.gmra.mrb[16].mxu0 %v3089_v54  ;;  %v1643_v7 = vsel %vm9699_vm11, %v1474_v5, %v1642_v13  ;;  %v1483_v42 = vsel %vm9741_vm13, %v1475_v2, %v1482_v52 }
 0x14a   : > { %v401_v31 = vld [vmem:[#allocation2 + $0xd8] sm:$0x1]  ;;  %v1887_v28 = vld [vmem:[#allocation2 + $0x2a4] sm:$0xf]  ;;  %v1647_v58 = vsel %vm9260_vm3, %v1484_v55, %v1646_v39  ;;  %1041 = vst [vmem:[#allocation2 + $0x2b0] sm:$0x8] %v1040_v56  ;;  %8668 = vmatpush3.bf16.msra.mxu1 %v8909_v17  ;;  %8504 = vmatpush3.bf16.msra.mxu0 %v8909_v17 }
 0x14b   : > { %v1787_v20 = vrot.slane %v1469_v43, 4  ;;  %v482_v53 = vld [vmem:[#allocation2 + $0xdc] sm:$0x8]  ;;  %v11087_v29 = vld [vmem:[#allocation2 + $0x90] sm:$0xf]  ;;  %v1888_v5 = vsel %vm9779_vm14, %v1786_v38, %v1887_v28  ;;  %v1788_v2 = vrot.slane %v1472_v32, 5  ;;  %v2364_v43 = vpop.permute.xlu1 %2363  ;;  %2657 = vrot.lane.b32.xlu1 %v7904_v4, %s9156_s10  ;;  %2779 = vrot.lane.b32.xlu0 %v7959_v35, %s9158_s22 }
 0x14c   : > { %v11089_v41 = vld [vmem:[#allocation2 + $0x94] sm:$0xf]  ;;  %1644 = vst [vmem:[#allocation2 + $0xcc] sm:$0xf] %v1643_v7  ;;  %1645 = vst.msk [vmem:[#allocation2 + $0xd0] sm:$0xf] %vm330_vm0, %v1483_v42  ;;  %v2823_v1 = vpop.permute.xlu0 %2822 }
 0x14d   : > { %1648 = vst [vmem:[#allocation2 + $0xd4] sm:$0x1] %v1647_v58  ;;  %v1791_v39 = vrot.slane %v1480_v9, 5  ;;  %1889 = vst [vmem:[#allocation2 + $0x2a4] sm:$0xf] %v1888_v5  ;;  %v1793_v38 = vrot.slane %v1477_v59, 4  ;;  %v1789_v55 = vor.u32 %v1788_v2, %v1787_v20  ;;  %v11125_v58 = vcombine.low %v11087_v29, %v11089_v41 }
 0x14e   : > { %v402_v51 = vsel %vm9260_vm3, 0, %v401_v31  ;;  %v684_v52 = vld [vmem:[#allocation2 + $0x1c8] sm:$0x1]  ;;  %v762_v15 = vld [vmem:[#allocation2 + $0x1cc] sm:$0x8]  ;;  %v14180_v32 = vmov 0  }
 0x14f   : > { %6792 = vmatprep.subr.bf16.mxu1 %v14180_v32  ;;  %v11105_v9 = vld [vmem:[#allocation2 + $0x270] sm:$0xf]  ;;  %403 = vst [vmem:[#allocation2 + $0xd8] sm:$0x1] %v402_v51  ;;  %v483_v27 = vsel %vm9550_vm6, 0, %v482_v53  ;;  %v685_v54 = vsel %vm9260_vm3, 0, %v684_v52  ;;  %v1794_v56 = vor.u32 %v1793_v38, %v1791_v39  ;;  %v2553_v4 = vpop.permute.xlu1 %2552  ;;  %2383 = vrot.lane.b32.xlu1 %v10802_v61, %s9158_s22 }
 0x150   : > { %v965_v13 = vld [vmem:[#allocation2 + $0x2b8] sm:$0x1]  ;;  %v11112_v59 = vld [vmem:[#allocation2 + $0x274] sm:$0xf]  ;;  %484 = vst [vmem:[#allocation2 + $0xdc] sm:$0x8] %v483_v27  ;;  %v2886_v27 = vpop.permute.xlu0 %2885  ;;  %2842 = vrot.lane.b32.xlu0 %v11125_v58, %s9157_s16 }
 0x151   : > { %686 = vst [vmem:[#allocation2 + $0x1c8] sm:$0x1] %v685_v54  ;;  %v763_v31 = vsel %vm9550_vm6, 0, %v762_v15  ;;  %v966_v17 = vsel %vm9260_vm3, 0, %v965_v13  ;;  %v11120_v7 = vcombine.low %v11105_v9, %v11112_v59  ;;  %v1790_v28 = vrot.slane %v1789_v55, 4  ;;  %v14181_v5 = vld [vmem:[#allocation16_spill] sm:$0xff] }
 0x152   : > { %764 = vst [vmem:[#allocation2 + $0x1cc] sm:$0x8] %v763_v31  ;;  %967 = vst [vmem:[#allocation2 + $0x2b8] sm:$0x1] %v966_v17  ;;  %v404_v42 = vld [vmem:[#allocation2 + $0xe4] sm:$0x1]  ;;  %v11144_v54 = vcombine.low %v10867_v14, %v10958_v10 }
 0x153   : > { %v1795_v20 = vrot.slane %v1794_v56, 4  ;;  %v405_v53 = vsel %vm9260_vm3, 0, %v404_v42  ;;  %v14182_v2 = vld [vmem:[#allocation17_spill] sm:$0xff]  ;;  %v1792_v35 = vsel %vm9664_vm10, %v1790_v28, %v1791_v39  ;;  %v1891_v52 = vld [vmem:[#allocation2 + $0x2b0] sm:$0xf]  ;;  %8566 = vmatmul.mubr.msk.bf16.vlgmr.msra.gmra.mrb[0].mxu1 %vm2938_vm15, %v11120_v7  ;;  %v2640_v14 = vpop.permute.xlu1 %2639  ;;  %v14186_v10 = vld [vmem:[#allocation55_spill] sm:$0xff] }
 0x154   : > { %v14183_v38 = vcombine.low %v14181_v5, %v14182_v2  ;;  %406 = vst [vmem:[#allocation2 + $0xe4] sm:$0x1] %v405_v53  ;;  %v687_v15 = vld [vmem:[#allocation2 + $0x1d4] sm:$0x1]  ;;  %14184 = vst [vmem:[#allocation46_spill] sm:$0xff] %v11144_v54  ;;  %8569 = vmatprep.mubr.msk.bf16.mxu1 %vm9160_vm4, %v14162_v62  ;;  %v14185_v39 = vld [vmem:[#allocation13_spill] sm:$0xff]  ;;  %v2762_v5 = vpop.permute.xlu0 %2761  ;;  %2572 = vrot.lane.b32.xlu1 %v11144_v54, %s9157_s16  ;;  %v7905_v2 = vcombine.low %v10881_v12, %v10971_v45 }
 0x155   : > { %1890 = vst.msk [vmem:[#allocation2 + $0x2ac] sm:$0xf] %vm330_vm0, %v1792_v35  ;;  %v2956_v13 = vsel %vm2938_vm15, %v14185_v39, %v2364_v43  ;;  %v1043_v56 = vld [vmem:[#allocation2 + $0x2bc] sm:$0x8]  ;;  %v688_v28 = vsel %vm9260_vm3, 0, %v687_v15 }
 0x156   : > { %v3174_v51 = vsel %vm2938_vm15, %v14183_v38, %v2760_v49  ;;  %v1892_v49 = vsel %vm9779_vm14, %v1795_v20, %v1891_v52  ;;  %v3032_v61 = vsel %vm3020_vm1, %v2956_v13, %v2553_v4  ;;  %v14187_v31 = vld [vmem:[#allocation51_spill] sm:$0xff]  ;;  %v1044_v43 = vsel %vm9550_vm6, 0, %v1043_v56  ;;  %v486_v42 = vld [vmem:[#allocation2 + $0xe8] sm:$0x8]  ;;  %v11166_v53 = vld [vmem:[#allocation2 + $0x26c] sm:$0xf] }
 0x157   : > { %v3249_v55 = vsel %vm3020_vm1, %v3174_v51, %v2823_v1  ;;  %1893 = vst [vmem:[#allocation2 + $0x2b0] sm:$0xf] %v1892_v49  ;;  %v11159_v17 = vcombine.low %v14187_v31, %v14186_v10  ;;  %v3092_v20 = vsel %vm3075_vm2, %v3032_v61, %v2640_v14  ;;  %689 = vst [vmem:[#allocation2 + $0x1d4] sm:$0x1] %v688_v28  ;;  %v487_v4 = vsel %vm9550_vm6, 0, %v486_v42  ;;  %v14188_v56 = vld [vmem:[#allocation20_spill] sm:$0xff] }
 0x158   : > { %v3308_v1 = vsel %vm3075_vm2, %v3249_v55, %v2886_v27  ;;  %1045 = vst [vmem:[#allocation2 + $0x2bc] sm:$0x8] %v1044_v43  ;;  %v7787_v38 = vld [vmem:[#allocation2 + $0x278] sm:$0xf]  ;;  %v11174_v51 = vld [vmem:[#allocation2 + $0x27c] sm:$0xf]  ;;  %v2366_v55 = vpop.permute.xlu1 %2365  ;;  %v7960_v27 = vcombine.low %v11166_v53, %v11105_v9  ;;  %v2825_v49 = vpop.permute.xlu0 %2824  ;;  %2659 = vrot.lane.b32.xlu1 %v7905_v2, %s9156_s10  ;;  %v11211_v42 = vcombine.low %v10960_v60, %v11061_v22 }
 0x159   : > { %3670 = vmatprep.mubr.bf16.mxu0 %v3308_v1  ;;  %488 = vst [vmem:[#allocation2 + $0xe8] sm:$0x8] %v487_v4  ;;  %v11177_v35 = vcombine.low %v7787_v38, %v11174_v51  ;;  %v766_v52 = vld [vmem:[#allocation2 + $0x1d8] sm:$0x8]  ;;  %2905 = vrot.lane.b32.xlu0 %v11159_v17, %s9156_s10  ;;  %v11187_v45 = vld [vmem:[#allocation2 + $0x9c] sm:$0xf] }
 0x15a   : > { %3671 = vmatmul.mubr.bf16.gmra.mrb[20].mxu0 %v3092_v20  ;;  %v11179_v15 = vld [vmem:[#allocation2 + $0x98] sm:$0xf]  ;;  %v767_v12 = vsel %vm9550_vm6, 0, %v766_v52  ;;  %v11199_v13 = vld [vmem:[#allocation2 + $0x18c] sm:$0xf]  ;;  %14191 = vst [vmem:[#allocation43_spill] sm:$0xff] %v11211_v42 }
 0x15b   : > { %8570 = vmatmul.mubr.msk.bf16.gmra.mrb[4].mxu1 %vm2938_vm15, %v11177_v35  ;;  %768 = vst [vmem:[#allocation2 + $0x1d8] sm:$0x8] %v767_v12  ;;  %v11197_v9 = vcombine.low %v11179_v15, %v11187_v45  ;;  %v11201_v1 = vld [vmem:[#allocation2 + $0x284] sm:$0xf]  ;;  %v14189_v61 = vld [vmem:[#allocation21_spill] sm:$0xff]  ;;  %v14192_v2 = vld [vmem:[#allocation18_spill] sm:$0xff] }
 0x15c   : > { %8573 = vmatprep.mubr.msk.bf16.mxu1 %vm9160_vm4, %v14162_v62  ;;  %v2555_v39 = vpop.permute.xlu1 %2554  ;;  %v14190_v14 = vcombine.low %v14188_v56, %v14189_v61  ;;  %v11207_v43 = vld [vmem:[#allocation2 + $0x280] sm:$0xf]  ;;  %v2888_v4 = vpop.permute.xlu0 %2887  ;;  %2385 = vrot.lane.b32.xlu1 %v10956_v23, %s9158_s22  ;;  %v2959_v52 = vsel %vm2938_vm15, %v14192_v2, %v2366_v55  ;;  %v9049_v22 = vld [vmem:[#allocation2 + $0x188] sm:$0xf]  ;;  %v7906_v55 = vcombine.low %v10973_v46, %v11087_v29  ;;  %v11238_v61 = vld [vmem:[#allocation2 + $0xa4] sm:$0xf] }
 0x15d   : > { %2781 = vrot.lane.b32.xlu0 %v7960_v27, %s9158_s22  ;;  %v3034_v12 = vsel %vm3020_vm1, %v2959_v52, %v2555_v39  ;;  %v11236_v39 = vld [vmem:[#allocation2 + $0xa0] sm:$0xf]  ;;  %v11247_v46 = vld [vmem:[#allocation2 + $0x28c] sm:$0xf]  ;;  %v11323_v32 = vld [vmem:[#allocation2 + $0x198] sm:$0xf] }
 0x15e   : > { %v3177_v28 = vsel %vm2938_vm15, %v14190_v14, %v2762_v5  ;;  %v11221_v5 = vcombine.low %v11207_v43, %v11201_v1  ;;  %v11257_v52 = vcombine.low %v11236_v39, %v11238_v61  ;;  %v11332_v54 = vld [vmem:[#allocation2 + $0x29c] sm:$0xf]  ;;  %v11385_v33 = vld [vmem:[#allocation2 + $0x1a4] sm:$0xf]  ;;  %v11439_v30 = vld [vmem:[#allocation2 + $0x1a8] sm:$0xf] }
 0x15f   : > { %v3251_v20 = vsel %vm3020_vm1, %v3177_v28, %v2825_v49  ;;  %v11227_v49 = vcombine.low %v9049_v22, %v11199_v13  ;;  %v7961_v28 = vcombine.low %v11112_v59, %v7787_v38  ;;  %v14194_v59 = vld [vmem:[#allocation24_spill] sm:$0xff]  ;;  %v11265_v22 = vld [vmem:[#allocation2 + $0x194] sm:$0xf]  ;;  %14207 = vst [vmem:[#allocation50_spill] sm:$0xff] %v11385_v33  ;;  %14213 = vst [vmem:[#allocation11_spill] sm:$0xff] %v11439_v30 }
 0x160   : > { %v3311_v27 = vsel %vm3075_vm2, %v3251_v20, %v2888_v4  ;;  %v2642_v60 = vpop.permute.xlu1 %2641  ;;  %v2764_v56 = vpop.permute.xlu0 %2763  ;;  %2574 = vrot.lane.b32.xlu1 %v11211_v42, %s9157_s16  ;;  %v11245_v20 = vld [vmem:[#allocation2 + $0x288] sm:$0xf]  ;;  %v11441_v18 = vld [vmem:[#allocation2 + $0x1ac] sm:$0xf] }
 0x161   : > { %2844 = vrot.lane.b32.xlu0 %v11197_v9, %s9157_s16  ;;  %3678 = vmatprep.mubr.bf16.mxu0 %v3311_v27  ;;  %v3095_v23 = vsel %vm3075_vm2, %v3034_v12, %v2642_v60  ;;  %v11252_v4 = vcombine.low %v11245_v20, %v11247_v46  ;;  %v14193_v27 = vld [vmem:[#allocation22_spill] sm:$0xff]  ;;  %14214 = vst [vmem:[#allocation16_spill] sm:$0xff] %v11441_v18 }
 0x162   : > { %3679 = vmatmul.mubr.bf16.gmra.mrb[24].mxu0 %v3095_v23  ;;  %v14195_v38 = vcombine.low %v14193_v27, %v14194_v59  ;;  %v11263_v60 = vld [vmem:[#allocation2 + $0x190] sm:$0xf]  ;;  %v11271_v23 = vcombine.low %v11063_v57, %v11166_v53 }
 0x163   : > { %8574 = vmatmul.mubr.msk.bf16.gmra.mrb[8].mxu1 %vm2938_vm15, %v11221_v5  ;;  %v11286_v53 = vcombine.low %v11263_v60, %v11265_v22 }
 0x164   : > { %8577 = vmatprep.mubr.msk.bf16.mxu1 %vm9160_vm4, %v14162_v62  ;;  %v2368_v14 = vpop.permute.xlu1 %2367  ;;  %v2827_v29 = vpop.permute.xlu0 %2826  ;;  %2661 = vrot.lane.b32.xlu1 %v7906_v55, %s9156_s10  ;;  %v3180_v12 = vsel %vm2938_vm15, %v14195_v38, %v2764_v56  ;;  %14196 = vst [vmem:[#allocation12_spill] sm:$0xff] %v11271_v23  ;;  %v14197_v56 = vld [vmem:[#allocation23_spill] sm:$0xff] }
 0x165   : > { %2907 = vrot.lane.b32.xlu0 %v11227_v49, %s9156_s10  ;;  %v3253_v55 = vsel %vm3020_vm1, %v3180_v12, %v2827_v29  ;;  %v2962_v27 = vsel %vm2938_vm15, %v14197_v56, %v2368_v14  ;;  %v7907_v29 = vcombine.low %v11089_v41, %v11179_v15  ;;  %v11293_v14 = vld [vmem:[#allocation2 + $0x290] sm:$0xf]  ;;  %v7962_v41 = vcombine.low %v11174_v51, %v11207_v43  ;;  %v11305_v15 = vld [vmem:[#allocation2 + $0xa8] sm:$0xf]  ;;  %v11307_v56 = vld [vmem:[#allocation2 + $0xac] sm:$0xf] }
 0x166   : > { %v14199_v51 = vld [vmem:[#allocation25_spill] sm:$0xff]  ;;  %v14200_v43 = vld [vmem:[#allocation26_spill] sm:$0xff] }
 0x168   : > { %v2557_v2 = vpop.permute.xlu1 %2556  ;;  %2387 = vrot.lane.b32.xlu1 %v11042_v36, %s9158_s22 }
 0x169   : > { %2783 = vrot.lane.b32.xlu0 %v7961_v28, %s9158_s22  ;;  %v2890_v28 = vpop.permute.xlu0 %2889  ;;  %v3036_v38 = vsel %vm3020_vm1, %v2962_v27, %v2557_v2  ;;  %v11295_v2 = vld [vmem:[#allocation2 + $0x294] sm:$0xf] }
 0x16a   : > { %v3314_v59 = vsel %vm3075_vm2, %v3253_v55, %v2890_v28  ;;  %v11299_v55 = vcombine.low %v11293_v14, %v11295_v2 }
 0x16b   : > { %8578 = vmatmul.mubr.msk.bf16.gmra.mrb[12].mxu1 %vm2938_vm15, %v11252_v4  ;;  %3686 = vmatprep.mubr.bf16.mxu0 %v3314_v59 }
 0x16c   : > { %8581 = vmatprep.mubr.msk.bf16.mxu1 %vm9160_vm4, %v14162_v62  ;;  %v2644_v57 = vpop.permute.xlu1 %2643  ;;  %2576 = vrot.lane.b32.xlu1 %v11271_v23, %s9157_s16  ;;  %v11325_v23 = vld [vmem:[#allocation2 + $0x19c] sm:$0xf] }
 0x16d   : > { %2846 = vrot.lane.b32.xlu0 %v11257_v52, %s9157_s16  ;;  %v3098_v36 = vsel %vm3075_vm2, %v3036_v38, %v2644_v57  ;;  %v2766_v12 = vpop.permute.xlu0 %2765  ;;  %v11317_v38 = vcombine.low %v11305_v15, %v11307_v56  ;;  %v14201_v57 = vcombine.low %v14199_v51, %v14200_v43 }
 0x16e   : > { %3687 = vmatmul.mubr.bf16.gmra.mrb[28].mxu0 %v3098_v36 }
 0x16f   : > { %14198 = vst [vmem:[#allocation14_spill] sm:$0xff] %v11317_v38  ;;  %v3183_v36 = vsel %vm2938_vm15, %v14201_v57, %v2766_v12 }
 0x170   : > { %v2370_v28 = vpop.permute.xlu1 %2369  ;;  %2663 = vrot.lane.b32.xlu1 %v7907_v29, %s9156_s10 }
 0x171   : > { %2909 = vrot.lane.b32.xlu0 %v11286_v53, %s9156_s10  ;;  %v2829_v27 = vpop.permute.xlu0 %2828  ;;  %v2965_v50 = vsel %vm2938_vm15, %v14202_v25, %v2370_v28  ;;  %v7963_v28 = vcombine.low %v11201_v1, %v11245_v20  ;;  %v14204_v20 = vld [vmem:[#allocation30_spill] sm:$0xff] }
 0x172   : > { %v3255_v29 = vsel %vm3020_vm1, %v3183_v36, %v2829_v27  ;;  %v11346_v27 = vcombine.low %v11323_v32, %v11325_v23  ;;  %v11363_v36 = vld [vmem:[#allocation2 + $0xb4] sm:$0xf] }
 0x173   : > { %8582 = vmatmul.mubr.msk.bf16.gmra.mrb[16].mxu1 %vm2938_vm15, %v11299_v55 }
 0x174   : > { %8585 = vmatprep.mubr.msk.bf16.mxu1 %vm9160_vm4, %v14162_v62  ;;  %v2559_v59 = vpop.permute.xlu1 %2558  ;;  %2389 = vrot.lane.b32.xlu1 %v11159_v17, %s9158_s22 }
 0x175   : > { %2785 = vrot.lane.b32.xlu0 %v7962_v41, %s9158_s22  ;;  %v2892_v42 = vpop.permute.xlu0 %2891  ;;  %v11330_v41 = vld [vmem:[#allocation2 + $0x298] sm:$0xf]  ;;  %v3038_v43 = vsel %vm3020_vm1, %v2965_v50, %v2559_v59  ;;  %v7908_v50 = vcombine.low %v11187_v45, %v11236_v39  ;;  %v11361_v59 = vld [vmem:[#allocation2 + $0xb0] sm:$0xf]  ;;  %v11368_v45 = vld [vmem:[#allocation2 + $0x2a4] sm:$0xf] }
 0x176   : > { %v3317_v51 = vsel %vm3075_vm2, %v3255_v29, %v2892_v42  ;;  %v11339_v12 = vcombine.low %v11330_v41, %v11332_v54  ;;  %v11377_v1 = vcombine.low %v11361_v59, %v11363_v36 }
 0x177   : > { %3694 = vmatprep.mubr.bf16.mxu0 %v3317_v51 }
 0x178   : > { %v2646_v17 = vpop.permute.xlu1 %2645  ;;  %2578 = vrot.lane.b32.xlu1 %v11120_v7, %s9157_s16  ;;  %v11366_v7 = vld [vmem:[#allocation2 + $0x2a0] sm:$0xf]  ;;  %14203 = vst [vmem:[#allocation15_spill] sm:$0xff] %v11377_v1 }
 0x179   : > { %2848 = vrot.lane.b32.xlu0 %v11317_v38, %s9157_s16  ;;  %v3101_v57 = vsel %vm3075_vm2, %v3038_v43, %v2646_v17  ;;  %v2768_v25 = vpop.permute.xlu0 %2767  ;;  %v11372_v39 = vcombine.low %v11366_v7, %v11368_v45  ;;  %v14205_v43 = vld [vmem:[#allocation31_spill] sm:$0xff]  ;;  %v14215_v38 = vld [vmem:[#allocation38_spill] sm:$0xff] }
 0x17a   : > { %3695 = vmatmul.mubr.bf16.gmra.mrb[32].mxu0 %v3101_v57  ;;  %v14206_v17 = vcombine.low %v14204_v20, %v14205_v43 }
 0x17b   : > { %8586 = vmatmul.mubr.msk.bf16.gmra.mrb[20].mxu1 %vm2938_vm15, %v11339_v12 }
 0x17c   : > { %8589 = vmatprep.mubr.msk.bf16.mxu1 %vm9160_vm4, %v14162_v62  ;;  %v2372_v42 = vpop.permute.xlu1 %2371  ;;  %2665 = vrot.lane.b32.xlu1 %v7908_v50, %s9156_s10  ;;  %v3186_v57 = vsel %vm2938_vm15, %v14206_v17, %v2768_v25  ;;  %v11383_v50 = vld [vmem:[#allocation2 + $0x1a0] sm:$0xf] }
 0x17d   : > { %2911 = vrot.lane.b32.xlu0 %v11346_v27, %s9156_s10  ;;  %v2831_v29 = vpop.permute.xlu0 %2830  ;;  %v2968_v20 = vsel %vm2938_vm15, %v14208_v6, %v2372_v42  ;;  %v7909_v6 = vcombine.low %v11238_v61, %v11305_v15  ;;  %v11411_v42 = vld [vmem:[#allocation2 + $0x2ac] sm:$0xf] }
 0x17e   : > { %v3257_v26 = vsel %vm3020_vm1, %v3186_v57, %v2831_v29  ;;  %v11402_v29 = vcombine.low %v11383_v50, %v11385_v33 }
 0x180   : > { %v2561_v51 = vpop.permute.xlu1 %2560  ;;  %2391 = vrot.lane.b32.xlu1 %v11227_v49, %s9158_s22 }
 0x181   : > { %2787 = vrot.lane.b32.xlu0 %v7963_v28, %s9158_s22  ;;  %v2894_v28 = vpop.permute.xlu0 %2893  ;;  %v3040_v43 = vsel %vm3020_vm1, %v2968_v20, %v2561_v51  ;;  %v7964_v20 = vcombine.low %v11247_v46, %v11293_v14  ;;  %v14210_v46 = vld [vmem:[#allocation33_spill] sm:$0xff]  ;;  %v14211_v14 = vld [vmem:[#allocation35_spill] sm:$0xff] }
 0x182   : > { %v3320_v25 = vsel %vm3075_vm2, %v3257_v26, %v2894_v28  ;;  %v11409_v26 = vld [vmem:[#allocation2 + $0x2a8] sm:$0xf] }
 0x183   : > { %8590 = vmatmul.mubr.msk.bf16.gmra.mrb[24].mxu1 %vm2938_vm15, %v11372_v39  ;;  %3702 = vmatprep.mubr.bf16.mxu0 %v3320_v25  ;;  %v11415_v51 = vcombine.low %v11409_v26, %v11411_v42  ;;  %v11423_v25 = vld [vmem:[#allocation2 + $0xbc] sm:$0xf] }
 0x184   : > { %8593 = vmatprep.mubr.msk.bf16.mxu1 %vm9160_vm4, %v14162_v62  ;;  %v2648_v17 = vpop.permute.xlu1 %2647  ;;  %2580 = vrot.lane.b32.xlu1 %v11177_v35, %s9157_s16  ;;  %v11421_v35 = vld [vmem:[#allocation2 + $0xb8] sm:$0xf] }
 0x185   : > { %2850 = vrot.lane.b32.xlu0 %v11377_v1, %s9157_s16  ;;  %v3104_v49 = vsel %vm3075_vm2, %v3040_v43, %v2648_v17  ;;  %v2770_v57 = vpop.permute.xlu0 %2769  ;;  %v11433_v43 = vcombine.low %v11421_v35, %v11423_v25  ;;  %v14212_v17 = vcombine.low %v14210_v46, %v14211_v14  ;;  %v11448_v1 = vld [vmem:[#allocation2 + $0x2b4] sm:$0xf] }
 0x186   : > { %3703 = vmatmul.mubr.bf16.gmra.mrb[36].mxu0 %v3104_v49 }
 0x187   : > { %14209 = vst [vmem:[#allocation47_spill] sm:$0xff] %v11433_v43  ;;  %v3189_v49 = vsel %vm2938_vm15, %v14212_v17, %v2770_v57 }
 0x188   : > { %v2374_v28 = vpop.permute.xlu1 %2373  ;;  %2667 = vrot.lane.b32.xlu1 %v7909_v6, %s9156_s10 }
 0x189   : > { %2913 = vrot.lane.b32.xlu0 %v11402_v29, %s9156_s10  ;;  %v2833_v61 = vpop.permute.xlu0 %2832  ;;  %v2971_v33 = vsel %vm2938_vm15, %v14215_v38, %v2374_v28  ;;  %v7965_v28 = vcombine.low %v11295_v2, %v11330_v41  ;;  %v11490_v2 = vld [vmem:[#allocation2 + $0x1b4] sm:$0xf] }
 0x18a   : > { %v3259_v6 = vsel %vm3020_vm1, %v3189_v49, %v2833_v61  ;;  %v11462_v61 = vcombine.low %v11439_v30, %v11441_v18  ;;  %v11477_v49 = vld [vmem:[#allocation2 + $0xc4] sm:$0xf] }
 0x18b   : > { %8594 = vmatmul.mubr.msk.bf16.gmra.mrb[28].mxu1 %vm2938_vm15, %v11415_v51 }
 0x18c   : > { %8597 = vmatprep.mubr.msk.bf16.mxu1 %vm9160_vm4, %v14162_v62  ;;  %v2563_v15 = vpop.permute.xlu1 %2562  ;;  %2393 = vrot.lane.b32.xlu1 %v11286_v53, %s9158_s22 }
 0x18d   : > { %2789 = vrot.lane.b32.xlu0 %v7964_v20, %s9158_s22  ;;  %v2896_v24 = vpop.permute.xlu0 %2895  ;;  %v11446_v20 = vld [vmem:[#allocation2 + $0x2b0] sm:$0xf]  ;;  %v3042_v14 = vsel %vm3020_vm1, %v2971_v33, %v2563_v15  ;;  %v7910_v33 = vcombine.low %v11307_v56, %v11361_v59  ;;  %v1945_v15 = vld [vmem:[#allocation2 + $0xc0] sm:$0xf] }
 0x18e   : > { %v3323_v46 = vsel %vm3075_vm2, %v3259_v6, %v2896_v24  ;;  %v11455_v57 = vcombine.low %v11446_v20, %v11448_v1  ;;  %v11482_v56 = vcombine.low %v1945_v15, %v11477_v49  ;;  %v14216_v59 = vld [vmem:[#allocation36_spill] sm:$0xff] }
 0x18f   : > { %3710 = vmatprep.mubr.bf16.mxu0 %v3323_v46  ;;  %v14217_v46 = vld [vmem:[#allocation37_spill] sm:$0xff] }
 0x190   : > { %v2650_v53 = vpop.permute.xlu1 %2649  ;;  %2582 = vrot.lane.b32.xlu1 %v11221_v5, %s9157_s16 }
 0x191   : > { %2852 = vrot.lane.b32.xlu0 %v11433_v43, %s9157_s16  ;;  %v3107_v17 = vsel %vm3075_vm2, %v3042_v14, %v2650_v53  ;;  %v2772_v24 = vpop.permute.xlu0 %2771  ;;  %v14218_v14 = vcombine.low %v14216_v59, %v14217_v46 }
 0x192   : > { %3711 = vmatmul.mubr.bf16.gmra.mrb[40].mxu0 %v3107_v17  ;;  %v11488_v17 = vld [vmem:[#allocation2 + $0x1b0] sm:$0xf] }
 0x193   : > { %8598 = vmatmul.mubr.msk.bf16.gmra.mrb[32].mxu1 %vm2938_vm15, %v11455_v57  ;;  %v3192_v53 = vsel %vm2938_vm15, %v14218_v14, %v2772_v24  ;;  %v11503_v59 = vcombine.low %v11488_v17, %v11490_v2 }
 0x194   : > { %8601 = vmatprep.mubr.msk.bf16.mxu1 %vm9160_vm4, %v14162_v62  ;;  %v2376_v38 = vpop.permute.xlu1 %2375  ;;  %2669 = vrot.lane.b32.xlu1 %v7910_v33, %s9156_s10  ;;  %v14219_v33 = vld [vmem:[#allocation41_spill] sm:$0xff] }
 0x195   : > { %2915 = vrot.lane.b32.xlu0 %v11462_v61, %s9156_s10  ;;  %v2835_v6 = vpop.permute.xlu0 %2834 }
 0x196   : > { %v3261_v41 = vsel %vm3020_vm1, %v3192_v53, %v2835_v6 }
 0x198   : > { %v2565_v5 = vpop.permute.xlu1 %2564  ;;  %2395 = vrot.lane.b32.xlu1 %v11346_v27, %s9158_s22  ;;  %v7911_v27 = vcombine.low %v11363_v36, %v11421_v35  ;;  %v14220_v36 = vld [vmem:[#allocation40_spill] sm:$0xff] }
 0x199   : > { %2791 = vrot.lane.b32.xlu0 %v7965_v28, %s9158_s22  ;;  %v2898_v43 = vpop.permute.xlu0 %2897  ;;  %v2974_v28 = vsel %vm2938_vm15, %v14219_v33, %v2376_v38  ;;  %v1947_v38 = vld [vmem:[#allocation2 + $0xc8] sm:$0xf]  ;;  %v14221_v35 = vcombine.low %v14220_v36, %v10402_v19  ;;  %v11550_v36 = vld [vmem:[#allocation2 + $0xd0] sm:$0xf] }
 0x19a   : > { %v3326_v18 = vsel %vm3075_vm2, %v3261_v41, %v2898_v43  ;;  %v3044_v30 = vsel %vm3020_vm1, %v2974_v28, %v2565_v5  ;;  %v11514_v5 = vld [vmem:[#allocation2 + $0xcc] sm:$0xf]  ;;  %v11525_v41 = vld [vmem:[#allocation2 + $0x1b8] sm:$0xf]  ;;  %v14222_v28 = vld [vmem:[#allocation44_spill] sm:$0xff] }
 0x19b   : > { %3718 = vmatprep.mubr.bf16.mxu0 %v3326_v18  ;;  %v7966_v18 = vcombine.low %v11332_v54, %v11366_v7  ;;  %v11527_v54 = vld [vmem:[#allocation2 + $0x1bc] sm:$0xf] }
 0x19c   : > { %v2652_v24 = vpop.permute.xlu1 %2651  ;;  %2584 = vrot.lane.b32.xlu1 %v11252_v4, %s9157_s16  ;;  %v11519_v4 = vcombine.low %v1947_v38, %v11514_v5 }
 0x19d   : > { %2854 = vrot.lane.b32.xlu0 %v11482_v56, %s9157_s16  ;;  %v3110_v6 = vsel %vm3075_vm2, %v3044_v30, %v2652_v24  ;;  %v2774_v46 = vpop.permute.xlu0 %2773 }
 0x19e   : > { %3719 = vmatmul.mubr.bf16.gmra.mrb[44].mxu0 %v3110_v6  ;;  %v3195_v53 = vsel %vm2938_vm15, %v14221_v35, %v2774_v46  ;;  %v11540_v46 = vcombine.low %v11525_v41, %v11527_v54  ;;  %v11552_v35 = vld [vmem:[#allocation2 + $0xd4] sm:$0xf] }
 0x1a0   : > { %v2378_v43 = vpop.permute.xlu1 %2377  ;;  %2671 = vrot.lane.b32.xlu1 %v7911_v27, %s9156_s10 }
 0x1a1   : > { %2917 = vrot.lane.b32.xlu0 %v11503_v59, %s9156_s10  ;;  %v2837_v14 = vpop.permute.xlu0 %2836  ;;  %v2977_v24 = vsel %vm2938_vm15, %v14222_v28, %v2378_v43 }
 0x1a2   : > { %v3263_v7 = vsel %vm3020_vm1, %v3195_v53, %v2837_v14 }
 0x1a4   : > { %v2567_v30 = vpop.permute.xlu1 %2566  ;;  %2397 = vrot.lane.b32.xlu1 %v11402_v29, %s9158_s22  ;;  %v7912_v29 = vcombine.low %v11423_v25, %v1945_v15  ;;  %v11558_v25 = vcombine.low %v11550_v36, %v11552_v35  ;;  %v14223_v15 = vcombine.low %v10449_v37, %v10451_v40 }
 0x1a5   : > { %2793 = vrot.lane.b32.xlu0 %v7966_v18, %s9158_s22  ;;  %v2900_v33 = vpop.permute.xlu0 %2899  ;;  %v3046_v27 = vsel %vm3020_vm1, %v2977_v24, %v2567_v30  ;;  %v7967_v30 = vcombine.low %v11368_v45, %v11409_v26  ;;  %v11564_v45 = vld [vmem:[#allocation2 + $0x1c0] sm:$0xf]  ;;  %v11566_v26 = vld [vmem:[#allocation2 + $0x1c4] sm:$0xf] }
 0x1a6   : > { %v3329_v6 = vsel %vm3075_vm2, %v3263_v7, %v2900_v33  ;;  %v14224_v24 = vld [vmem:[#allocation48_spill] sm:$0xff]  ;;  %v11579_v40 = vcombine.low %v11564_v45, %v11566_v26 }
 0x1a7   : > { %3726 = vmatprep.mubr.bf16.mxu0 %v3329_v6 }
 0x1a8   : > { %v2654_v19 = vpop.permute.xlu1 %2653  ;;  %2586 = vrot.lane.b32.xlu1 %v11299_v55, %s9157_s16 }
 0x1a9   : > { %2856 = vrot.lane.b32.xlu0 %v11519_v4, %s9157_s16  ;;  %v3113_v18 = vsel %vm3075_vm2, %v3046_v27, %v2654_v19  ;;  %v2776_v14 = vpop.permute.xlu0 %2775 }
 0x1aa   : > { %3727 = vmatmul.mubr.bf16.gmra.mrb[48].mxu0 %v3113_v18  ;;  %v3198_v7 = vsel %vm2938_vm15, %v14223_v15, %v2776_v14  ;;  %v11592_v15 = vld [vmem:[#allocation2 + $0xd8] sm:$0xf] }
 0x1ac   : > { %v2380_v43 = vpop.permute.xlu1 %2379  ;;  %2673 = vrot.lane.b32.xlu1 %v7912_v29, %s9156_s10  ;;  %v7803_v29 = vld [vmem:[#allocation2 + $0x2b8] sm:$0xf] }
 0x1ad   : > { %2919 = vrot.lane.b32.xlu0 %v11540_v46, %s9156_s10  ;;  %v2839_v53 = vpop.permute.xlu0 %2838  ;;  %v2980_v6 = vsel %vm2938_vm15, %v14224_v24, %v2380_v43  ;;  %v11585_v43 = vld [vmem:[#allocation2 + $0x2bc] sm:$0xf]  ;;  %v11609_v24 = vld [vmem:[#allocation2 + $0x1c8] sm:$0xf] }
 0x1ae   : > { %v3265_v33 = vsel %vm3020_vm1, %v3198_v7, %v2839_v53  ;;  %v7968_v53 = vcombine.low %v11411_v42, %v11446_v20  ;;  %v11594_v7 = vld [vmem:[#allocation2 + $0xdc] sm:$0xf] }
 0x1af   : > { %v7971_v20 = vcombine.low %v11592_v15, %v11594_v7 }
 0x1b0   : > { %v2569_v55 = vpop.permute.xlu1 %2568  ;;  %2399 = vrot.lane.b32.xlu1 %v11462_v61, %s9158_s22  ;;  %v7913_v61 = vcombine.low %v11477_v49, %v1947_v38  ;;  %v968_v49 = vld [vmem:[#allocation2 + $0x2c4] sm:$0x1] }
 0x1b1   : > { %2795 = vrot.lane.b32.xlu0 %v7967_v30, %s9158_s22  ;;  %v2902_v28 = vpop.permute.xlu0 %2901  ;;  %v3048_v19 = vsel %vm3020_vm1, %v2980_v6, %v2569_v55  ;;  %v7977_v55 = vcombine.low %v7803_v29, %v11585_v43  ;;  %v969_v38 = vsel %vm9260_vm3, 0, %v968_v49  ;;  %v11611_v6 = vld [vmem:[#allocation2 + $0x1cc] sm:$0xf] }
 0x1b2   : > { %v3332_v27 = vsel %vm3075_vm2, %v3265_v33, %v2902_v28  ;;  %970 = vst [vmem:[#allocation2 + $0x2c4] sm:$0x1] %v969_v38  ;;  %v14225_v33 = vcombine.low %v10461_v21, %v14171_v44  ;;  %v7974_v44 = vcombine.low %v11609_v24, %v11611_v6  ;;  %v1953_v38 = vld [vmem:[#allocation2 + $0xe0] sm:$0xf] }
 0x1b3   : > { %3734 = vmatprep.mubr.bf16.mxu0 %v3332_v27  ;;  %8602 = vmatmul.mubr.msk.bf16.gmra.mrb[36].mxu1 %vm2938_vm15, %v7977_v55 }
 0x1b4   : > { %v2656_v37 = vpop.permute.xlu1 %2655  ;;  %2588 = vrot.lane.b32.xlu1 %v11339_v12, %s9157_s16  ;;  %8605 = vmatprep.mubr.msk.bf16.mxu1 %vm9160_vm4, %v14162_v62 }
 0x1b5   : > { %2858 = vrot.lane.b32.xlu0 %v11558_v25, %s9157_s16  ;;  %v3116_v18 = vsel %vm3075_vm2, %v3048_v19, %v2656_v37  ;;  %v2778_v14 = vpop.permute.xlu0 %2777 }
 0x1b6   : > { %3735 = vmatmul.mubr.bf16.gmra.mrb[52].mxu0 %v3116_v18  ;;  %v3201_v28 = vsel %vm2938_vm15, %v14225_v33, %v2778_v14 }
 0x1b8   : > { %v2382_v30 = vpop.permute.xlu1 %2381  ;;  %2675 = vrot.lane.b32.xlu1 %v7913_v61, %s9156_s10 }
 0x1b9   : > { %2921 = vrot.lane.b32.xlu0 %v11579_v40, %s9156_s10  ;;  %v2841_v12 = vpop.permute.xlu0 %2840  ;;  %v2983_v37 = vsel %vm2938_vm15, %v10711_v16, %v2382_v30  ;;  %v7914_v16 = vcombine.low %v11514_v5, %v11550_v36  ;;  %v7806_v30 = vld [vmem:[#allocation2 + $0x2c4] sm:$0xf] }
 0x1ba   : > { %v3267_v27 = vsel %vm3020_vm1, %v3201_v28, %v2841_v12  ;;  %v7969_v12 = vcombine.low %v11448_v1, %v7803_v29  ;;  %v14226_v1 = vcombine.low %v14170_v48, %v14178_v47  ;;  %v11641_v28 = vld [vmem:[#allocation2 + $0x1d0] sm:$0xf] }
 0x1bc   : > { %v2571_v42 = vpop.permute.xlu1 %2570  ;;  %2401 = vrot.lane.b32.xlu1 %v11503_v59, %s9158_s22  ;;  %v7805_v59 = vld [vmem:[#allocation2 + $0x2c0] sm:$0xf] }
 0x1bd   : > { %2797 = vrot.lane.b32.xlu0 %v7968_v53, %s9158_s22  ;;  %v2904_v19 = vpop.permute.xlu0 %2903  ;;  %v3050_v61 = vsel %vm3020_vm1, %v2983_v37, %v2571_v42  ;;  %v7978_v49 = vcombine.low %v7805_v59, %v7806_v30  ;;  %v1954_v42 = vld [vmem:[#allocation2 + $0xe4] sm:$0xf] }
 0x1be   : > { %v3335_v18 = vsel %vm3075_vm2, %v3267_v27, %v2904_v19  ;;  %v7972_v36 = vcombine.low %v1953_v38, %v1954_v42  ;;  %v7746_v27 = vld [vmem:[#allocation2 + $0x1d4] sm:$0xf] }
 0x1bf   : > { %3742 = vmatprep.mubr.bf16.mxu0 %v3335_v18  ;;  %8606 = vmatmul.mubr.msk.bf16.gmra.mrb[40].mxu1 %vm2938_vm15, %v7978_v49  ;;  %v7975_v47 = vcombine.low %v11641_v28, %v7746_v27 }
 0x1c0   : > { %v2658_v21 = vpop.permute.xlu1 %2657  ;;  %2590 = vrot.lane.b32.xlu1 %v11372_v39, %s9157_s16  ;;  %8609 = vmatprep.mubr.msk.bf16.mxu1 %vm9160_vm4, %v14162_v62  ;;  %v1047_v39 = vld [vmem:[#allocation2 + $0x2c8] sm:$0x8] }
 0x1c1   : > { %2860 = vrot.lane.b32.xlu0 %v7971_v20, %s9157_s16  ;;  %v3119_v14 = vsel %vm3075_vm2, %v3050_v61, %v2658_v21  ;;  %v2780_v53 = vpop.permute.xlu0 %2779  ;;  %v1048_v33 = vsel %vm9550_vm6, 0, %v1047_v39 }
 0x1c2   : > { %3743 = vmatmul.mubr.bf16.gmra.mrb[56].mxu0 %v3119_v14  ;;  %v3204_v29 = vsel %vm2938_vm15, %v14226_v1, %v2780_v53  ;;  %1049 = vst [vmem:[#allocation2 + $0x2c8] sm:$0x8] %v1048_v33  ;;  %v7970_v53 = vcombine.low %v11585_v43, %v7805_v59  ;;  %v14228_v33 = vld [vmem:[#allocation54_spill] sm:$0xff] }
 0x1c3   : > { %v14229_v1 = vcombine.low %v14186_v10, %v14228_v33  ;;  %v7935_v10 = vcombine.low %v11199_v13, %v11263_v60  ;;  %v7936_v60 = vcombine.low %v11265_v22, %v11323_v32  ;;  %v7937_v22 = vcombine.low %v11325_v23, %v11383_v50  ;;  %v14230_v50 = vld [vmem:[#allocation11_spill] sm:$0xff] }
 0x1c4   : > { %v2384_v55 = vpop.permute.xlu1 %2383  ;;  %2677 = vrot.lane.b32.xlu1 %v7914_v16, %s9156_s10 }
 0x1c5   : > { %2923 = vrot.lane.b32.xlu0 %v7974_v44, %s9156_s10  ;;  %v2843_v20 = vpop.permute.xlu0 %2842  ;;  %v2986_v18 = vsel %vm2938_vm15, %v10798_v63, %v2384_v55  ;;  %v7915_v63 = vcombine.low %v11552_v35, %v11592_v15 }
 0x1c6   : > { %v3269_v19 = vsel %vm3020_vm1, %v3204_v29, %v2843_v20 }
 0x1c8   : > { %v2573_v5 = vpop.permute.xlu1 %2572  ;;  %2403 = vrot.lane.b32.xlu1 %v11540_v46, %s9158_s22 }
 0x1c9   : > { %2799 = vrot.lane.b32.xlu0 %v7969_v12, %s9158_s22  ;;  %v3052_v21 = vsel %vm3020_vm1, %v2986_v18, %v2573_v5  ;;  %v8916_v16 = vld [vmem:[#allocation2 + $0x2c8] sm:$0xff]  }
 0x1ca   : > { %8610 = vmatmul.mubr.msk.bf16.gmra.mrb[44].mxu1 %vm2938_vm15, %v8916_v16  ;;  %v8913_v12 = vld [vmem:[#allocation2 + $0xe8] sm:$0xff]  }
 0x1cb   : > { %v2906_v37 = vpop.permute.xlu0 %2905 }
 0x1cc   : > { %v3338_v61 = vsel %vm3075_vm2, %v3269_v19, %v2906_v37  ;;  %v2660_v48 = vpop.permute.xlu1 %2659  ;;  %2592 = vrot.lane.b32.xlu1 %v11415_v51, %s9157_s16  ;;  %v14227_v51 = vcombine.low %v14177_v11, %v14187_v31  ;;  %v8915_v11 = vld [vmem:[#allocation2 + $0x1d8] sm:$0xff]  }
 0x1cd   : > { %2862 = vrot.lane.b32.xlu0 %v7972_v36, %s9157_s16  ;;  %3750 = vmatprep.mubr.bf16.mxu0 %v3338_v61  ;;  %v3122_v44 = vsel %vm3075_vm2, %v3052_v21, %v2660_v48 }
 0x1ce   : > { %3751 = vmatmul.mubr.bf16.gmra.mrb[60].mxu0 %v3122_v44 }
 0x1cf   : > { %v2782_v14 = vpop.permute.xlu0 %2781 }
 0x1d0   : > { %v2386_v46 = vpop.permute.xlu1 %2385  ;;  %2679 = vrot.lane.b32.xlu1 %v7915_v63, %s9156_s10  ;;  %v3207_v35 = vsel %vm2938_vm15, %v14227_v51, %v2782_v14 }
 0x1d1   : > { %2925 = vrot.lane.b32.xlu0 %v7975_v47, %s9156_s10  ;;  %v2989_v43 = vsel %vm2938_vm15, %v10919_v8, %v2386_v46 }
 0x1d3   : > { %v2845_v30 = vpop.permute.xlu0 %2844 }
 0x1d4   : > { %v2575_v55 = vpop.permute.xlu1 %2574  ;;  %v3271_v15 = vsel %vm3020_vm1, %v3207_v35, %v2845_v30  ;;  %2405 = vrot.lane.b32.xlu1 %v11579_v40, %s9158_s22  ;;  %v7916_v40 = vcombine.low %v11594_v7, %v1953_v38 }
 0x1d5   : > { %2801 = vrot.lane.b32.xlu0 %v7970_v53, %s9158_s22  ;;  %v3054_v42 = vsel %vm3020_vm1, %v2989_v43, %v2575_v55 }
 0x1d7   : > { %v2908_v49 = vpop.permute.xlu0 %2907 }
 0x1d8   : > { %v3341_v59 = vsel %vm3075_vm2, %v3271_v15, %v2908_v49  ;;  %v2662_v20 = vpop.permute.xlu1 %2661  ;;  %2594 = vrot.lane.b32.xlu1 %v11455_v57, %s9157_s16 }
 0x1d9   : > { %2864 = vrot.lane.b32.xlu0 %v8913_v12, %s9157_s16  ;;  %3758 = vmatprep.mubr.bf16.mxu0 %v3341_v59  ;;  %v3125_v31 = vsel %vm3075_vm2, %v3054_v42, %v2662_v20 }
 0x1da   : > { %3759 = vmatmul.mubr.bf16.gmra.mrb[64].mxu0 %v3125_v31 }
 0x1db   : > { %v2784_v39 = vpop.permute.xlu0 %2783 }
 0x1dc   : > { %v2388_v8 = vpop.permute.xlu1 %2387  ;;  %2681 = vrot.lane.b32.xlu1 %v7916_v40, %s9156_s10  ;;  %v3210_v29 = vsel %vm2938_vm15, %v14229_v1, %v2784_v39 }
 0x1dd   : > { %2927 = vrot.lane.b32.xlu0 %v8915_v11, %s9156_s10  ;;  %v2992_v57 = vsel %vm2938_vm15, %v10996_v34, %v2388_v8 }
 0x1df   : > { %v2847_v5 = vpop.permute.xlu0 %2846 }
 0x1e0   : > { %v2577_v36 = vpop.permute.xlu1 %2576  ;;  %v3273_v27 = vsel %vm3020_vm1, %v3210_v29, %v2847_v5 }
 0x1e1   : > { %v3056_v38 = vsel %vm3020_vm1, %v2992_v57, %v2577_v36 }
 0x1e3   : > { %v2910_v19 = vpop.permute.xlu0 %2909 }
 0x1e4   : > { %v3344_v7 = vsel %vm3075_vm2, %v3273_v27, %v2910_v19  ;;  %v2664_v37 = vpop.permute.xlu1 %2663  ;;  %v14231_v19 = vld [vmem:[#allocation50_spill] sm:$0xff] }
 0x1e5   : > { %3766 = vmatprep.mubr.bf16.mxu0 %v3344_v7  ;;  %v3128_v18 = vsel %vm3075_vm2, %v3056_v38, %v2664_v37  ;;  %v7938_v57 = vcombine.low %v14231_v19, %v14230_v50  ;;  %v1146_v50 = vld [vmem:[#allocation3 + $0x22c] sm:$0x8] }
 0x1e6   : > { %3767 = vmatmul.mubr.bf16.gmra.mrb[68].mxu0 %v3128_v18 }
 0x1e7   : > { %v2786_v61 = vpop.permute.xlu0 %2785 }
 0x1e8   : > { %v2390_v21 = vpop.permute.xlu1 %2389  ;;  %v3213_v44 = vsel %vm2938_vm15, %v7935_v10, %v2786_v61  ;;  %v14232_v61 = vld [vmem:[#allocation14_spill] sm:$0xff] }
 0x1e9   : > { %v2995_v63 = vsel %vm2938_vm15, %v11125_v58, %v2390_v21 }
 0x1eb   : > { %v2849_v48 = vpop.permute.xlu0 %2848 }
 0x1ec   : > { %v2579_v47 = vpop.permute.xlu1 %2578  ;;  %v3275_v34 = vsel %vm3020_vm1, %v3213_v44, %v2849_v48 }
 0x1ed   : > { %v3058_v53 = vsel %vm3020_vm1, %v2995_v63, %v2579_v47  ;;  %v14233_v63 = vld [vmem:[#allocation16_spill] sm:$0xff] }
 0x1ef   : > { %v2912_v14 = vpop.permute.xlu0 %2911 }
 0x1f0   : > { %v3347_v46 = vsel %vm3075_vm2, %v3275_v34, %v2912_v14  ;;  %v2666_v16 = vpop.permute.xlu1 %2665 }
 0x1f1   : > { %3774 = vmatprep.mubr.bf16.mxu0 %v3347_v46  ;;  %v3131_v30 = vsel %vm3075_vm2, %v3058_v53, %v2666_v16  ;;  %v7939_v46 = vcombine.low %v14233_v63, %v11488_v17  ;;  %v801_v17 = vld [vmem:[#allocation3 + $0x150] sm:$0x1] }
 0x1f2   : > { %3775 = vmatmul.mubr.bf16.gmra.mrb[72].mxu0 %v3131_v30 }
 0x1f3   : > { %v2788_v55 = vpop.permute.xlu0 %2787 }
 0x1f4   : > { %v2392_v13 = vpop.permute.xlu1 %2391  ;;  %v3216_v35 = vsel %vm2938_vm15, %v7936_v60, %v2788_v55  ;;  %v14234_v60 = vld [vmem:[#allocation15_spill] sm:$0xff] }
 0x1f5   : > { %v2998_v49 = vsel %vm2938_vm15, %v11197_v9, %v2392_v13 }
 0x1f7   : > { %v2851_v12 = vpop.permute.xlu0 %2850 }
 0x1f8   : > { %v2581_v51 = vpop.permute.xlu1 %2580  ;;  %v3277_v58 = vsel %vm3020_vm1, %v3216_v35, %v2851_v12 }
 0x1f9   : > { %v3060_v59 = vsel %vm3020_vm1, %v2998_v49, %v2581_v51  ;;  %v520_v49 = vld [vmem:[#allocation3 + $0x78] sm:$0x1] }
 0x1fb   : > { %v2914_v15 = vpop.permute.xlu0 %2913 }
 0x1fc   : > { %v3350_v43 = vsel %vm3075_vm2, %v3277_v58, %v2914_v15  ;;  %v2668_v42 = vpop.permute.xlu1 %2667 }
 0x1fd   : > { %3782 = vmatprep.mubr.bf16.mxu0 %v3350_v43  ;;  %v3134_v20 = vsel %vm3075_vm2, %v3060_v59, %v2668_v42  ;;  %v521_v59 = vsel %vm9260_vm3, 0, %v520_v49  ;;  %v802_v42 = vsel %vm9260_vm3, 0, %v801_v17  ;;  %v7942_v17 = vcombine.low %v11566_v26, %v11609_v24 }
 0x1fe   : > { %3783 = vmatmul.mubr.bf16.gmra.mrb[76].mxu0 %v3134_v20  ;;  %522 = vst [vmem:[#allocation3 + $0x78] sm:$0x1] %v521_v59  ;;  %803 = vst [vmem:[#allocation3 + $0x150] sm:$0x1] %v802_v42 }
 0x1ff   : > { %v2790_v11 = vpop.permute.xlu0 %2789 }
 0x200   : > { %v2394_v32 = vpop.permute.xlu1 %2393  ;;  %v3219_v40 = vsel %vm2938_vm15, %v7937_v22, %v2790_v11 }
 0x201   : > { %v3001_v5 = vsel %vm2938_vm15, %v11257_v52, %v2394_v32  ;;  %v7940_v32 = vcombine.low %v11490_v2, %v11525_v41 }
 0x203   : > { %v2853_v31 = vpop.permute.xlu0 %2852 }
 0x204   : > { %v2583_v39 = vpop.permute.xlu1 %2582  ;;  %v3279_v9 = vsel %vm3020_vm1, %v3219_v40, %v2853_v31 }
 0x205   : > { %v3062_v33 = vsel %vm3020_vm1, %v3001_v5, %v2583_v39 }
 0x207   : > { %v2916_v8 = vpop.permute.xlu0 %2915 }
 0x208   : > { %v3353_v36 = vsel %vm3075_vm2, %v3279_v9, %v2916_v8  ;;  %v2670_v1 = vpop.permute.xlu1 %2669 }
 0x209   : > { %3790 = vmatprep.mubr.bf16.mxu0 %v3353_v36  ;;  %v3137_v29 = vsel %vm3075_vm2, %v3062_v33, %v2670_v1  ;;  %v14235_v33 = vld [vmem:[#allocation47_spill] sm:$0xff] }
 0x20a   : > { %3791 = vmatmul.mubr.bf16.gmra.mrb[80].mxu0 %v3137_v29 }
 0x20b   : > { %v2792_v27 = vpop.permute.xlu0 %2791 }
 0x20c   : > { %v2396_v23 = vpop.permute.xlu1 %2395  ;;  %v3222_v37 = vsel %vm2938_vm15, %v7938_v57, %v2792_v27  ;;  %v865_v27 = vld [vmem:[#allocation3 + $0x154] sm:$0x8] }
 0x20d   : > { %v3004_v21 = vsel %vm2938_vm15, %v14232_v61, %v2396_v23  ;;  %v866_v41 = vsel %vm9550_vm6, 0, %v865_v27  ;;  %v7941_v61 = vcombine.low %v11527_v54, %v11564_v45 }
 0x20e   : > { %867 = vst [vmem:[#allocation3 + $0x154] sm:$0x8] %v866_v41 }
 0x20f   : > { %v2855_v7 = vpop.permute.xlu0 %2854 }
 0x210   : > { %v2585_v38 = vpop.permute.xlu1 %2584  ;;  %v3281_v52 = vsel %vm3020_vm1, %v3222_v37, %v2855_v7  ;;  %v1147_v7 = vsel %vm9550_vm6, 0, %v1146_v50 }
 0x211   : > { %v3064_v48 = vsel %vm3020_vm1, %v3004_v21, %v2585_v38  ;;  %1148 = vst [vmem:[#allocation3 + $0x22c] sm:$0x8] %v1147_v7 }
 0x213   : > { %v2918_v18 = vpop.permute.xlu0 %2917 }
 0x214   : > { %v3356_v10 = vsel %vm3075_vm2, %v3281_v52, %v2918_v18  ;;  %v2672_v47 = vpop.permute.xlu1 %2671 }
 0x215   : > { %3798 = vmatprep.mubr.bf16.mxu0 %v3356_v10  ;;  %v3140_v44 = vsel %vm3075_vm2, %v3064_v48, %v2672_v47  ;;  %v584_v48 = vld [vmem:[#allocation3 + $0x7c] sm:$0x8]  ;;  %v1082_v47 = vld [vmem:[#allocation3 + $0x228] sm:$0x1] }
 0x216   : > { %3799 = vmatmul.mubr.bf16.gmra.mrb[84].mxu0 %v3140_v44  ;;  %v585_v44 = vsel %vm9550_vm6, 0, %v584_v48  ;;  %v807_v48 = vld [vmem:[#allocation3 + $0x168] sm:$0x1] }
 0x217   : > { %v2794_v34 = vpop.permute.xlu0 %2793  ;;  %586 = vst [vmem:[#allocation3 + $0x7c] sm:$0x8] %v585_v44 }
 0x218   : > { %v2398_v14 = vpop.permute.xlu1 %2397  ;;  %v3225_v30 = vsel %vm2938_vm15, %v7939_v46, %v2794_v34  ;;  %v1083_v34 = vsel %vm9260_vm3, 0, %v1082_v47 }
 0x219   : > { %v3007_v12 = vsel %vm2938_vm15, %v14234_v60, %v2398_v14  ;;  %1084 = vst [vmem:[#allocation3 + $0x228] sm:$0x1] %v1083_v34  ;;  %v804_v60 = vld [vmem:[#allocation3 + $0x15c] sm:$0x1] }
 0x21b   : > { %v2857_v53 = vpop.permute.xlu0 %2856 }
 0x21c   : > { %v2587_v16 = vpop.permute.xlu1 %2586  ;;  %v3283_v55 = vsel %vm3020_vm1, %v3225_v30, %v2857_v53 }
 0x21d   : > { %v3066_v35 = vsel %vm3020_vm1, %v3007_v12, %v2587_v16  ;;  %v523_v16 = vld [vmem:[#allocation3 + $0x84] sm:$0x1] }
 0x21f   : > { %v2920_v13 = vpop.permute.xlu0 %2919 }
 0x220   : > { %v3359_v51 = vsel %vm3075_vm2, %v3283_v55, %v2920_v13  ;;  %v2674_v58 = vpop.permute.xlu1 %2673  ;;  %v524_v13 = vsel %vm9260_vm3, 0, %v523_v16  ;;  %v1154_v16 = vld [vmem:[#allocation3 + $0x244] sm:$0x8] }
 0x221   : > { %3806 = vmatprep.mubr.bf16.mxu0 %v3359_v51  ;;  %v3143_v15 = vsel %vm3075_vm2, %v3066_v35, %v2674_v58  ;;  %525 = vst [vmem:[#allocation3 + $0x84] sm:$0x1] %v524_v13  ;;  %v805_v51 = vsel %vm9260_vm3, 0, %v804_v60  ;;  %v592_v13 = vld [vmem:[#allocation3 + $0x94] sm:$0x8] }
 0x222   : > { %3807 = vmatmul.mubr.bf16.gmra.mrb[88].mxu0 %v3143_v15  ;;  %806 = vst [vmem:[#allocation3 + $0x15c] sm:$0x1] %v805_v51  ;;  %v1088_v60 = vld [vmem:[#allocation3 + $0x240] sm:$0x1] }
 0x223   : > { %v2796_v43 = vpop.permute.xlu0 %2795  ;;  %v1089_v51 = vsel %vm9260_vm3, 0, %v1088_v60  ;;  %v885_v60 = vld [vmem:[#allocation3 + $0x190] sm:$0x8] }
 0x224   : > { %v2400_v20 = vpop.permute.xlu1 %2399  ;;  %v3228_v8 = vsel %vm2938_vm15, %v7940_v32, %v2796_v43  ;;  %1090 = vst [vmem:[#allocation3 + $0x240] sm:$0x1] %v1089_v51 }
 0x225   : > { %v3010_v1 = vsel %vm2938_vm15, %v14235_v33, %v2400_v20  ;;  %v1150_v33 = vld [vmem:[#allocation3 + $0x238] sm:$0x8] }
 0x226   : > { %v11739_v11 = vpop.f32.mrb[0].mxu1 }
 0x227   : > { %v8567_v22 = vpop.f32.mrb[1].mxu1  ;;  %v2859_v31 = vpop.permute.xlu0 %2858 }
 0x228   : > { %v11743_v39 = vpop.f32.mrb[2].mxu1  ;;  %v2589_v9 = vpop.permute.xlu1 %2588  ;;  %v3285_v5 = vsel %vm3020_vm1, %v3228_v8, %v2859_v31  ;;  %v1085_v8 = vld [vmem:[#allocation3 + $0x234] sm:$0x1] }
 0x229   : > { %v8568_v40 = vpop.f32.mrb[3].mxu1  ;;  %v3068_v23 = vsel %vm3020_vm1, %v3010_v1, %v2589_v9  ;;  %v869_v9 = vld [vmem:[#allocation3 + $0x160] sm:$0x8]  ;;  %v1086_v24 = vsel %vm9260_vm3, 0, %v1085_v8  ;;  %v1091_v8 = vld [vmem:[#allocation3 + $0x24c] sm:$0x1] }
 0x22a   : > { %v588_v40 = vld [vmem:[#allocation3 + $0x88] sm:$0x8]  ;;  %v870_v26 = vsel %vm9550_vm6, 0, %v869_v9  ;;  %1087 = vst [vmem:[#allocation3 + $0x234] sm:$0x1] %v1086_v24  ;;  %v14238_v24 = vld [vmem:[#allocation29_spill] sm:$0xff] }
 0x22b   : > { %v2922_v36 = vpop.permute.xlu0 %2921  ;;  %871 = vst [vmem:[#allocation3 + $0x160] sm:$0x8] %v870_v26 }
 0x22c   : > { %v3362_v29 = vsel %vm3075_vm2, %v3285_v5, %v2922_v36  ;;  %v2676_v2 = vpop.permute.xlu1 %2675  ;;  %v589_v36 = vsel %vm9550_vm6, 0, %v588_v40 }
 0x22d   : > { %3814 = vmatprep.mubr.bf16.mxu0 %v3362_v29  ;;  %v3146_v57 = vsel %vm3075_vm2, %v3068_v23, %v2676_v2  ;;  %590 = vst [vmem:[#allocation3 + $0x88] sm:$0x8] %v589_v36  ;;  %v1151_v29 = vsel %vm9550_vm6, 0, %v1150_v33  ;;  %v1092_v36 = vsel %vm9260_vm3, 0, %v1091_v8 }
 0x22e   : > { %v4009_v19 = vpop.f32.mrb[4].mxu1  ;;  %3815 = vmatmul.mubr.bf16.gmra.mrb[92].mxu0 %v3146_v57  ;;  %1152 = vst [vmem:[#allocation3 + $0x238] sm:$0x8] %v1151_v29  ;;  %v7943_v57 = vcombine.low %v11611_v6, %v11641_v28  ;;  %1093 = vst [vmem:[#allocation3 + $0x24c] sm:$0x1] %v1092_v36 }
 0x22f   : > { %v8571_v38 = vpop.f32.mrb[5].mxu1  ;;  %v2798_v37 = vpop.permute.xlu0 %2797 }
 0x230   : > { %v2402_v52 = vpop.permute.xlu1 %2401  ;;  %v11756_v18 = vpop.f32.mrb[6].mxu1  ;;  %v3231_v63 = vsel %vm2938_vm15, %v7941_v61, %v2798_v37 }
 0x231   : > { %v8572_v21 = vpop.f32.mrb[7].mxu1  ;;  %v3013_v54 = vsel %vm2938_vm15, %v11482_v56, %v2402_v52 }
 0x233   : > { %v2861_v10 = vpop.permute.xlu0 %2860 }
 0x234   : > { %v2591_v14 = vpop.permute.xlu1 %2590  ;;  %v3287_v46 = vsel %vm3020_vm1, %v3231_v63, %v2861_v10  ;;  %v526_v10 = vld [vmem:[#allocation3 + $0x90] sm:$0x1] }
 0x235   : > { %v3070_v30 = vsel %vm3020_vm1, %v3013_v54, %v2591_v14  ;;  %v527_v34 = vsel %vm9260_vm3, 0, %v526_v10  ;;  %v808_v14 = vsel %vm9260_vm3, 0, %v807_v48  ;;  %v14240_v48 = vld [vmem:[#allocation39_spill] sm:$0xff] }
 0x236   : > { %v11775_v56 = vpop.f32.mrb[8].mxu1  ;;  %528 = vst [vmem:[#allocation3 + $0x90] sm:$0x1] %v527_v34  ;;  %809 = vst [vmem:[#allocation3 + $0x168] sm:$0x1] %v808_v14 }
 0x237   : > { %v2924_v53 = vpop.permute.xlu0 %2923  ;;  %v8575_v58 = vpop.f32.mrb[9].mxu1  ;;  %v1094_v34 = vld [vmem:[#allocation3 + $0x258] sm:$0x1] }
 0x238   : > { %v3365_v45 = vsel %vm3075_vm2, %v3287_v46, %v2924_v53  ;;  %v2678_v55 = vpop.permute.xlu1 %2677  ;;  %v4020_v49 = vpop.f32.mrb[10].mxu1  ;;  %v873_v53 = vld [vmem:[#allocation3 + $0x16c] sm:$0x8]  ;;  %v529_v58 = vld [vmem:[#allocation3 + $0x9c] sm:$0x1] }
 0x239   : > { %3822 = vmatprep.mubr.bf16.mxu0 %v3365_v45  ;;  %v3149_v12 = vsel %vm3075_vm2, %v3070_v30, %v2678_v55  ;;  %v8576_v43 = vpop.f32.mrb[11].mxu1  ;;  %v874_v45 = vsel %vm9550_vm6, 0, %v873_v53  ;;  %v810_v49 = vld [vmem:[#allocation3 + $0x174] sm:$0x1]  ;;  %v14241_v53 = vld [vmem:[#allocation42_spill] sm:$0xff] }
 0x23a   : > { %3823 = vmatmul.mubr.bf16.gmra.mrb[96].mxu0 %v3149_v12  ;;  %875 = vst [vmem:[#allocation3 + $0x16c] sm:$0x8] %v874_v45  ;;  %v593_v12 = vsel %vm9550_vm6, 0, %v592_v13  ;;  %v604_v13 = vld [vmem:[#allocation3 + $0xb8] sm:$0x8] }
 0x23b   : > { %v2800_v35 = vpop.permute.xlu0 %2799  ;;  %594 = vst [vmem:[#allocation3 + $0x94] sm:$0x8] %v593_v12  ;;  %v14242_v12 = vld [vmem:[#allocation45_spill] sm:$0xff]  ;;  %v605_v51 = vsel %vm9550_vm6, 0, %v604_v13 }
 0x23c   : > { %v2404_v15 = vpop.permute.xlu1 %2403  ;;  %v3234_v20 = vsel %vm2938_vm15, %v7942_v17, %v2800_v35  ;;  %v14236_v35 = vld [vmem:[#allocation19_spill] sm:$0xff]  ;;  %v811_v17 = vsel %vm9260_vm3, 0, %v810_v49  ;;  %606 = vst [vmem:[#allocation3 + $0xb8] sm:$0x8] %v605_v51  ;;  %v14246_v51 = vld [vmem:[#allocation52_spill] sm:$0xff] }
 0x23d   : > { %v3016_v32 = vsel %vm2938_vm15, %v11519_v4, %v2404_v15  ;;  %v530_v15 = vsel %vm9260_vm3, 0, %v529_v58  ;;  %812 = vst [vmem:[#allocation3 + $0x174] sm:$0x1] %v811_v17  ;;  %v1097_v58 = vld [vmem:[#allocation3 + $0x264] sm:$0x1] }
 0x23e   : > { %v11794_v2 = vpop.f32.mrb[12].mxu1  ;;  %531 = vst [vmem:[#allocation3 + $0x9c] sm:$0x1] %v530_v15  ;;  %v1166_v15 = vld [vmem:[#allocation3 + $0x268] sm:$0x8]  ;;  %v1098_v49 = vsel %vm9260_vm3, 0, %v1097_v58 }
 0x23f   : > { %v2863_v59 = vpop.permute.xlu0 %2862  ;;  %v8579_v41 = vpop.f32.mrb[13].mxu1  ;;  %v1167_v17 = vsel %vm9550_vm6, 0, %v1166_v15  ;;  %1099 = vst [vmem:[#allocation3 + $0x264] sm:$0x1] %v1098_v49 }
 0x240   : > { %v2593_v42 = vpop.permute.xlu1 %2592  ;;  %v3289_v22 = vsel %vm3020_vm1, %v3234_v20, %v2863_v59  ;;  %v11796_v19 = vpop.f32.mrb[14].mxu1  ;;  %v14237_v20 = vld [vmem:[#allocation27_spill] sm:$0xff]  ;;  %1168 = vst [vmem:[#allocation3 + $0x268] sm:$0x8] %v1167_v17  ;;  %v4910_v17 = vld [vmem:[#allocation3 + $0x78] sm:$0xf] }
 0x241   : > { %v3072_v4 = vsel %vm3020_vm1, %v3016_v32, %v2593_v42  ;;  %v8580_v7 = vpop.f32.mrb[15].mxu1  ;;  %v532_v41 = vld [vmem:[#allocation3 + $0xa8] sm:$0x1] }
 0x242   : > { %v533_v7 = vsel %vm9260_vm3, 0, %v532_v41 }
 0x243   : > { %v2926_v31 = vpop.permute.xlu0 %2925  ;;  %534 = vst [vmem:[#allocation3 + $0xa8] sm:$0x1] %v533_v7 }
 0x244   : > { %v3368_v5 = vsel %vm3075_vm2, %v3289_v22, %v2926_v31  ;;  %v2680_v1 = vpop.permute.xlu1 %2679  ;;  %v596_v22 = vld [vmem:[#allocation3 + $0xa0] sm:$0x8]  ;;  %v877_v31 = vld [vmem:[#allocation3 + $0x178] sm:$0x8] }
 0x245   : > { %3830 = vmatprep.mubr.bf16.mxu0 %v3368_v5  ;;  %v3152_v27 = vsel %vm3075_vm2, %v3072_v4, %v2680_v1  ;;  %v597_v40 = vsel %vm9550_vm6, 0, %v596_v22  ;;  %v878_v9 = vsel %vm9550_vm6, 0, %v877_v31  ;;  %v1158_v5 = vld [vmem:[#allocation3 + $0x250] sm:$0x8]  ;;  %v538_v31 = vld [vmem:[#allocation3 + $0xc0] sm:$0x1] }
 0x246   : > { %3831 = vmatmul.mubr.bf16.gmra.mrb[100].mxu0 %v3152_v27  ;;  %v4033_v37 = vpop.f32.mrb[16].mxu1  ;;  %598 = vst [vmem:[#allocation3 + $0xa0] sm:$0x8] %v597_v40  ;;  %879 = vst [vmem:[#allocation3 + $0x178] sm:$0x8] %v878_v9  ;;  %v1159_v26 = vsel %vm9550_vm6, 0, %v1158_v5 }
 0x247   : > { %v2802_v23 = vpop.permute.xlu0 %2801  ;;  %v8583_v52 = vpop.f32.mrb[17].mxu1  ;;  %1160 = vst [vmem:[#allocation3 + $0x250] sm:$0x8] %v1159_v26  ;;  %v881_v37 = vld [vmem:[#allocation3 + $0x184] sm:$0x8]  ;;  %v539_v9 = vsel %vm9260_vm3, 0, %v538_v31 }
 0x248   : > { %v2406_v50 = vpop.permute.xlu1 %2405  ;;  %v3237_v21 = vsel %vm2938_vm15, %v7943_v57, %v2802_v23  ;;  %v11817_v30 = vpop.f32.mrb[18].mxu1  ;;  %v14239_v57 = vld [vmem:[#allocation34_spill] sm:$0xff]  ;;  %v882_v52 = vsel %vm9550_vm6, 0, %v881_v37  ;;  %v819_v40 = vld [vmem:[#allocation3 + $0x198] sm:$0x1]  ;;  %v14244_v26 = vld [vmem:[#allocation56_spill] sm:$0xff] }
 0x249   : > { %v3019_v6 = vsel %vm2938_vm15, %v11558_v25, %v2406_v50  ;;  %v1155_v25 = vsel %vm9550_vm6, 0, %v1154_v16  ;;  %v8584_v55 = vpop.f32.mrb[19].mxu1  ;;  %v813_v50 = vld [vmem:[#allocation3 + $0x180] sm:$0x1]  ;;  %883 = vst [vmem:[#allocation3 + $0x184] sm:$0x8] %v882_v52 }
 0x24a   : > { %1156 = vst [vmem:[#allocation3 + $0x244] sm:$0x8] %v1155_v25  ;;  %v820_v8 = vsel %vm9260_vm3, 0, %v819_v40  ;;  %540 = vst [vmem:[#allocation3 + $0xc0] sm:$0x1] %v539_v9 }
 0x24b   : > { %v2865_v38 = vpop.permute.xlu0 %2864  ;;  %821 = vst [vmem:[#allocation3 + $0x198] sm:$0x1] %v820_v8  ;;  %v889_v5 = vld [vmem:[#allocation3 + $0x19c] sm:$0x8] }
 0x24c   : > { %v2595_v61 = vpop.permute.xlu1 %2594  ;;  %v3291_v47 = vsel %vm3020_vm1, %v3237_v21, %v2865_v38  ;;  %v814_v38 = vsel %vm9260_vm3, 0, %v813_v50  ;;  %v608_v50 = vld [vmem:[#allocation3 + $0xc4] sm:$0x8] }
 0x24d   : > { %v3074_v63 = vsel %vm3020_vm1, %v3019_v6, %v2595_v61  ;;  %815 = vst [vmem:[#allocation3 + $0x180] sm:$0x1] %v814_v38  ;;  %v1162_v61 = vld [vmem:[#allocation3 + $0x25c] sm:$0x8]  ;;  %v1095_v6 = vsel %vm9260_vm3, 0, %v1094_v34  ;;  %v609_v37 = vsel %vm9550_vm6, 0, %v608_v50 }
 0x24e   : > { %v11831_v43 = vpop.f32.mrb[20].mxu1  ;;  %v1163_v21 = vsel %vm9550_vm6, 0, %v1162_v61  ;;  %1096 = vst [vmem:[#allocation3 + $0x258] sm:$0x1] %v1095_v6  ;;  %v11922_v38 = vld [vmem:[%s13950_s2] ss:$0 sm:$0xff] }
 0x24f   : > { %v2928_v44 = vpop.permute.xlu0 %2927  ;;  %v8587_v59 = vpop.f32.mrb[21].mxu1  ;;  %1164 = vst [vmem:[#allocation3 + $0x25c] sm:$0x8] %v1163_v21  ;;  %610 = vst [vmem:[#allocation3 + $0xc4] sm:$0x8] %v609_v37 }
 0x250   : > { %v3371_v28 = vsel %vm3075_vm2, %v3291_v47, %v2928_v44  ;;  %v2682_v46 = vpop.permute.xlu1 %2681  ;;  %v4044_v42 = vpop.f32.mrb[22].mxu1  ;;  %v600_v44 = vld [vmem:[#allocation3 + $0xac] sm:$0x8]  ;;  %v541_v6 = vld [vmem:[#allocation3 + $0xcc] sm:$0x1] }
 0x251   : > { %3838 = vmatprep.mubr.bf16.mxu0 %v3371_v28  ;;  %v3155_v54 = vsel %vm3075_vm2, %v3074_v63, %v2682_v46  ;;  %v8588_v32 = vpop.f32.mrb[23].mxu1  ;;  %v601_v14 = vsel %vm9550_vm6, 0, %v600_v44  ;;  %v535_v28 = vld [vmem:[#allocation3 + $0xb4] sm:$0x1]  ;;  %v816_v46 = vld [vmem:[#allocation3 + $0x18c] sm:$0x1] }
 0x252   : > { %3839 = vmatmul.mubr.bf16.gmra.mrb[104].mxu0 %v3155_v54  ;;  %602 = vst [vmem:[#allocation3 + $0xac] sm:$0x8] %v601_v14  ;;  %v536_v63 = vsel %vm9260_vm3, 0, %v535_v28  ;;  %v817_v54 = vsel %vm9260_vm3, 0, %v816_v46  ;;  %v14243_v32 = vld [vmem:[#allocation49_spill] sm:$0xff]  ;;  %v542_v28 = vsel %vm9260_vm3, 0, %v541_v6 }
 0x253   : > { %8505 = vmatprep.mubr.msk.bf16.mxu0 %vm9160_vm4, %v14162_v62  ;;  %537 = vst [vmem:[#allocation3 + $0xb4] sm:$0x1] %v536_v63  ;;  %818 = vst [vmem:[#allocation3 + $0x18c] sm:$0x1] %v817_v54  ;;  %v822_v63 = vld [vmem:[#allocation3 + $0x1a4] sm:$0x1] }
 0x254   : > { %543 = vst [vmem:[#allocation3 + $0xcc] sm:$0x1] %v542_v28  ;;  %v823_v54 = vsel %vm9260_vm3, 0, %v822_v63  ;;  %v14248_v6 = vld [vmem:[#allocation53_spill] sm:$0xff]  ;;  %v5210_v63 = vld [vmem:[#allocation3 + $0x22c] sm:$0xf] }
 0x255   : > { %824 = vst [vmem:[#allocation3 + $0x1a4] sm:$0x1] %v823_v54 }
 0x256   : > { %v11849_v33 = vpop.f32.mrb[24].mxu1 }
 0x257   : > { %v8591_v4 = vpop.f32.mrb[25].mxu1 }
 0x258   : > { %v11851_v1 = vpop.f32.mrb[26].mxu1  ;;  %v1170_v4 = vld [vmem:[#allocation3 + $0x274] sm:$0x8] }
 0x259   : > { %v8592_v29 = vpop.f32.mrb[27].mxu1 }
 0x25a   : > { %8506 = vmatmul.mubr.msk.bf16.vlgmr.msra.gmra.mrb[0].mxu0 %vm2938_vm15, %v14236_v35  ;;  %v886_v35 = vsel %vm9550_vm6, 0, %v885_v60 }
 0x25b   : > { %8509 = vmatprep.mubr.msk.bf16.mxu0 %vm9160_vm4, %v14162_v62  ;;  %887 = vst [vmem:[#allocation3 + $0x190] sm:$0x8] %v886_v35 }
 0x25e   : > { %v4057_v27 = vpop.f32.mrb[28].mxu1 }
 0x25f   : > { %v8595_v23 = vpop.f32.mrb[29].mxu1  ;;  %v1171_v27 = vsel %vm9550_vm6, 0, %v1170_v4 }
 0x260   : > { %v11865_v10 = vpop.f32.mrb[30].mxu1  ;;  %1172 = vst [vmem:[#allocation3 + $0x274] sm:$0x8] %v1171_v27 }
 0x261   : > { %v8596_v47 = vpop.f32.mrb[31].mxu1 }
 0x262   : > { %8510 = vmatmul.mubr.msk.bf16.gmra.mrb[4].mxu0 %vm2938_vm15, %v14237_v20  ;;  %v11934_v47 = vld [vmem:[%s13951_s3] ss:$0 sm:$0xff] }
 0x263   : > { %8513 = vmatprep.mubr.msk.bf16.mxu0 %vm9160_vm4, %v14162_v62 }
 0x266   : > { %v11883_v45 = vpop.f32.mrb[32].mxu1 }
 0x267   : > { %v8599_v16 = vpop.f32.mrb[33].mxu1 }
 0x268   : > { %v4068_v25 = vpop.f32.mrb[34].mxu1 }
 0x269   : > { %v8600_v55 = vpop.f32.mrb[35].mxu1 }
 0x26a   : > { %8514 = vmatmul.mubr.msk.bf16.gmra.mrb[8].mxu0 %vm2938_vm15, %v14238_v24  ;;  %v890_v24 = vsel %vm9550_vm6, 0, %v889_v5  ;;  %v4914_v5 = vld [vmem:[#allocation3 + $0x80] sm:$0x1] }
 0x26b   : > { %8517 = vmatprep.mubr.msk.bf16.mxu0 %vm9160_vm4, %v14162_v62  ;;  %891 = vst [vmem:[#allocation3 + $0x19c] sm:$0x8] %v890_v24  ;;  %v893_v24 = vld [vmem:[#allocation3 + $0x1a8] sm:$0x8] }
 0x272   : > { %8518 = vmatmul.mubr.msk.bf16.gmra.mrb[12].mxu0 %vm2938_vm15, %v14239_v57  ;;  %v1100_v57 = vld [vmem:[#allocation3 + $0x270] sm:$0x1] }
 0x273   : > { %8521 = vmatprep.mubr.msk.bf16.mxu0 %vm9160_vm4, %v14162_v62  ;;  %v1101_v52 = vsel %vm9260_vm3, 0, %v1100_v57  ;;  %v1103_v57 = vld [vmem:[#allocation3 + $0x27c] sm:$0x1] }
 0x274   : > { %1102 = vst [vmem:[#allocation3 + $0x270] sm:$0x1] %v1101_v52  ;;  %v1104_v54 = vsel %vm9260_vm3, 0, %v1103_v57 }
 0x275   : > { %1105 = vst [vmem:[#allocation3 + $0x27c] sm:$0x1] %v1104_v54 }
 0x27a   : > { %8522 = vmatmul.mubr.msk.bf16.gmra.mrb[16].mxu0 %vm2938_vm15, %v14240_v48  ;;  %v14245_v48 = vld [vmem:[#allocation57_spill] sm:$0xff] }
 0x27b   : > { %8525 = vmatprep.mubr.msk.bf16.mxu0 %vm9160_vm4, %v14162_v62 }
 0x282   : > { %8526 = vmatmul.mubr.msk.bf16.gmra.mrb[20].mxu0 %vm2938_vm15, %v14241_v53 }
 0x283   : > { %8529 = vmatprep.mubr.msk.bf16.mxu0 %vm9160_vm4, %v14162_v62 }
 0x286   : > { %v11897_v59 = vpop.f32.mrb[36].mxu1 }
 0x287   : > { %v8603_v42 = vpop.f32.mrb[37].mxu1 }
 0x288   : > { %v11899_v20 = vpop.f32.mrb[38].mxu1 }
 0x289   : > { %v8604_v22 = vpop.f32.mrb[39].mxu1 }
 0x28a   : > { %8530 = vmatmul.mubr.msk.bf16.gmra.mrb[24].mxu0 %vm2938_vm15, %v14242_v12 }
 0x28b   : > { %8533 = vmatprep.mubr.msk.bf16.mxu0 %vm9160_vm4, %v14162_v62 }
 0x292   : > { %8534 = vmatmul.mubr.msk.bf16.gmra.mrb[28].mxu0 %vm2938_vm15, %v14243_v32  ;;  %v4081_v36 = vpop.f32.mrb[40].mxu1 }
 0x293   : > { %8537 = vmatprep.mubr.msk.bf16.mxu0 %vm9160_vm4, %v14162_v62  ;;  %v8607_v29 = vpop.f32.mrb[41].mxu1 }
 0x294   : > { %v11917_v23 = vpop.f32.mrb[42].mxu1 }
 0x295   : > { %v8608_v41 = vpop.f32.mrb[43].mxu1 }
 0x29a   : > { %8538 = vmatmul.mubr.msk.bf16.gmra.mrb[32].mxu0 %vm2938_vm15, %v14244_v26  ;;  %v612_v26 = vld [vmem:[#allocation3 + $0xd0] sm:$0x8] }
 0x29b   : > { %8541 = vmatprep.mubr.msk.bf16.mxu0 %vm9160_vm4, %v14162_v62 }
 0x29d   : > { %v11946_v16 = vpop.f32.mrb[44].mxu1 }
 0x29e   : > { %v8611_v55 = vpop.f32.mrb[45].mxu1 }
 0x29f   : > { %v4092_v13 = vpop.f32.mrb[46].mxu1 }
 0x2a0   : > { %v8612_v35 = vpop.f32.mrb[47].mxu1 }
 0x2a1   : > { %v3752_v7 = vpop.f32.mrb[60].mxu0  ;;  %v490_v35 = vld [vmem:[#allocation3] sm:$0x1] }
 0x2a2   : > { %v4002_v61 = vadd.f32 %v11739_v11, %v3752_v7  ;;  %v3754_v21 = vpop.f32.mrb[61].mxu0  ;;  %8542 = vmatmul.mubr.msk.bf16.gmra.mrb[36].mxu0 %vm2938_vm15, %v14245_v48 }
 0x2a3   : > { %v3755_v44 = vpop.f32.mrb[62].mxu0  ;;  %8545 = vmatprep.mubr.msk.bf16.mxu0 %vm9160_vm4, %v14162_v62  ;;  %v1174_v21 = vld [vmem:[#allocation3 + $0x280] sm:$0x8] }
 0x2a4   : > { %v4133_v34 = vmul.f32 %v11922_v38, %v4002_v61  ;;  %v4005_v14 = vadd.f32 %v11743_v39, %v3755_v44  ;;  %v3757_v11 = vpop.f32.mrb[63].mxu0  ;;  %v613_v61 = vsel %vm9550_vm6, 0, %v612_v26  ;;  %v1106_v26 = vld [vmem:[#allocation3 + $0x1b4] sm:$0x8] }
 0x2a5   : > { %614 = vst [vmem:[#allocation3 + $0xd0] sm:$0x8] %v613_v61 }
 0x2a6   : > { %v4194_v46 = vadd.f32 %v11934_v47, %v4133_v34  ;;  %v4134_v53 = vmul.f32 %v11922_v38, %v4005_v14 }
 0x2a8   : > { %v4248_v25 = vmax.f32 %v4194_v46, 0.0  ;;  %v4195_v39 = vadd.f32 %v11934_v47, %v4134_v53  ;;  %v894_v53 = vsel %vm9550_vm6, 0, %v893_v24 }
 0x2a9   : > { %895 = vst [vmem:[#allocation3 + $0x1a8] sm:$0x8] %v894_v53 }
 0x2aa   : > { %v8318_v60 = vpack.c.bf16 %v4248_v25, %v4248_v25  ;;  %v4249_v12 = vmax.f32 %v4195_v39, 0.0  ;;  %8546 = vmatmul.mubr.msk.bf16.gmra.mrb[40].mxu0 %vm2938_vm15, %v14246_v51  ;;  %v1175_v51 = vsel %vm9550_vm6, 0, %v1174_v21 }
 0x2ab   : > { %8549 = vmatprep.mubr.msk.bf16.mxu0 %vm9160_vm4, %v14162_v62  ;;  %1176 = vst [vmem:[#allocation3 + $0x280] sm:$0x8] %v1175_v51  ;;  %v1052_v51 = vld [vmem:[#allocation3 + $0x1b0] sm:$0x1] }
 0x2ac   : > { %4456 = vst.msk [vmem:[#allocation3 + $0x150] sm:$0xf] %vm330_vm0, %v8318_v60  ;;  %v4646_v58 = vshrl.u32 %v8318_v60, 16  ;;  %v4649_v15 = vshll.u32 %v8318_v60, 16  ;;  %v8319_v49 = vpack.c.bf16 %v4249_v12, %v4249_v12 }
 0x2ad   : > { %v3760_v42 = vpop.f32.mrb[64].mxu0 }
 0x2ae   : > { %v4648_v32 = vrot.slane %v4646_v58, 7  ;;  %v5059_v22 = vrot.slane %v4646_v58, 4  ;;  %v5060_v31 = vrot.slane %v4649_v15, 5  ;;  %4457 = vst.msk [vmem:[#allocation3 + $0x154] sm:$0xf] %vm330_vm0, %v8319_v49  ;;  %v4654_v40 = vshrl.u32 %v8319_v49, 16 }
 0x2af   : > { %v3762_v9 = vpop.f32.mrb[65].mxu0  ;;  %v4657_v8 = vshll.u32 %v8319_v49, 16  ;;  %v771_v42 = vld [vmem:[#allocation3 + $0xd8] sm:$0x1] }
 0x2b0   : > { %v3763_v36 = vpop.f32.mrb[66].mxu0  ;;  %v4651_v4 = vor.u32 %v4649_v15, %v4648_v32  ;;  %v4652_v29 = vrot.slane %v4648_v32, 4  ;;  %v5061_v27 = vor.u32 %v5060_v31, %v5059_v22  ;;  %v4656_v41 = vrot.slane %v4654_v40, 7  ;;  %v1076_v31 = vld [vmem:[#allocation3 + $0x210] sm:$0x1] }
 0x2b1   : > { %v3765_v50 = vpop.f32.mrb[67].mxu0  ;;  %v5063_v7 = vrot.slane %v4657_v8, 5  ;;  %v5065_v37 = vrot.slane %v4654_v40, 4  ;;  %v4013_v52 = vadd.f32 %v11756_v18, %v3763_v36  ;;  %v11965_v18 = vld [vmem:[#allocation3 + $0x158] sm:$0xf]  ;;  %v772_v22 = vsel %vm9260_vm3, 0, %v771_v42 }
 0x2b2   : > { %v4911_v44 = vsel %vm9699_vm11, %v4651_v4, %v4910_v17  ;;  %v5062_v34 = vrot.slane %v5061_v27, 4  ;;  %v4659_v14 = vor.u32 %v4657_v8, %v4656_v41  ;;  %v4661_v11 = vrot.slane %v4656_v41, 4  ;;  %8550 = vmatmul.mubr.msk.bf16.gmra.mrb[44].mxu0 %vm2938_vm15, %v14248_v6  ;;  %14249 = vst [vmem:[#allocation17_spill] sm:$0xff] %v11965_v18  ;;  %773 = vst [vmem:[#allocation3 + $0xd8] sm:$0x1] %v772_v22  ;;  %v14254_v50 = vld [vmem:[#allocation46_spill] sm:$0xff] }
 0x2b3   : > { %4912 = vst [vmem:[#allocation3 + $0x78] sm:$0xf] %v4911_v44  ;;  %v5066_v28 = vor.u32 %v5065_v37, %v5063_v7  ;;  %v4136_v46 = vmul.f32 %v11922_v38, %v4013_v52  ;;  %8553 = vmatprep.mubr.msk.bf16.mxu0 %vm9160_vm4, %v14162_v62  ;;  %v5349_v12 = vld [vmem:[#allocation3 + $0x150] sm:$0xf]  ;;  %v491_v17 = vsel %vm9260_vm3, 0, %v490_v35 }
 0x2b4   : > { %v4660_v39 = vsel %vm9741_vm13, %v4652_v29, %v4659_v14  ;;  %v4915_v55 = vsel %vm9260_vm3, %v4661_v11, %v4914_v5  ;;  %v5064_v60 = vsel %vm9664_vm10, %v5062_v34, %v5063_v7  ;;  %492 = vst [vmem:[#allocation3] sm:$0x1] %v491_v17  ;;  %v825_v5 = vld [vmem:[#allocation3 + $0xdc] sm:$0x8]  ;;  %v1107_v29 = vsel %vm9550_vm6, 0, %v1106_v26 }
 0x2b5   : > { %4913 = vst.msk [vmem:[#allocation3 + $0x7c] sm:$0xf] %vm330_vm0, %v4660_v39  ;;  %4916 = vst [vmem:[#allocation3 + $0x80] sm:$0x1] %v4915_v55  ;;  %v5067_v58 = vrot.slane %v5066_v28, 4  ;;  %v4197_v15 = vadd.f32 %v11934_v47, %v4136_v46  ;;  %v826_v36 = vsel %vm9550_vm6, 0, %v825_v5 }
 0x2b6   : > { %5209 = vst.msk [vmem:[#allocation3 + $0x228] sm:$0xf] %vm330_vm0, %v5064_v60  ;;  %v11982_v49 = vld [vmem:[#allocation3 + $0x154] sm:$0xf]  ;;  %827 = vst [vmem:[#allocation3 + $0xdc] sm:$0x8] %v826_v36 }
 0x2b7   : > { %14252 = vst [vmem:[#allocation13_spill] sm:$0xff] %v11982_v49  ;;  %v8102_v32 = vcombine.low %v5349_v12, %v11982_v49  ;;  %v5211_v9 = vsel %vm9779_vm14, %v5067_v58, %v5210_v63  ;;  %v4251_v8 = vmax.f32 %v4197_v15, 0.0  ;;  %1108 = vst [vmem:[#allocation3 + $0x1b4] sm:$0x8] %v1107_v29  ;;  %v5402_v28 = vld [vmem:[#allocation3 + $0x224] sm:$0xf] }
 0x2b8   : > { %5212 = vst [vmem:[#allocation3 + $0x22c] sm:$0xf] %v5211_v9  ;;  %v4917_v63 = vld [vmem:[#allocation3 + $0x84] sm:$0xf]  ;;  %v1053_v58 = vsel %vm9260_vm3, 0, %v1052_v51  ;;  %v14257_v5 = vld [vmem:[#allocation43_spill] sm:$0xff] }
 0x2b9   : > { %5697 = vrot.lane.b32.xlu1 %v8102_v32, %s9158_s22  ;;  %6159 = vrot.lane.b32.xlu0 %v8102_v32, %s9156_s10  ;;  %v8320_v24 = vpack.c.bf16 %v4251_v8, %v4251_v8  ;;  %v3768_v4 = vpop.f32.mrb[68].mxu0  ;;  %v544_v39 = vld [vmem:[#allocation3 + $0x4] sm:$0x8]  ;;  %v493_v15 = vld [vmem:[#allocation3 + $0xc] sm:$0x1] }
 0x2ba   : > { %v4018_v27 = vadd.f32 %v11775_v56, %v3768_v4  ;;  %v3770_v41 = vpop.f32.mrb[69].mxu0  ;;  %8554 = vmatmul.mubr.msk.bf16.gmra.mrb[48].mxu0 %vm2938_vm15, %v14254_v50  ;;  %v5295_v6 = vld [vmem:[#allocation3 + $0x78] sm:$0xf]  ;;  %v545_v12 = vsel %vm9550_vm6, 0, %v544_v39  ;;  %1054 = vst [vmem:[#allocation3 + $0x1b0] sm:$0x1] %v1053_v58 }
 0x2bb   : > { %4458 = vst.msk [vmem:[#allocation3 + $0x15c] sm:$0xf] %vm330_vm0, %v8320_v24  ;;  %v4663_v57 = vshrl.u32 %v8320_v24, 16  ;;  %v4666_v7 = vshll.u32 %v8320_v24, 16  ;;  %v3771_v37 = vpop.f32.mrb[70].mxu0  ;;  %8557 = vmatprep.mubr.msk.bf16.mxu0 %vm9160_vm4, %v14162_v62  ;;  %v494_v22 = vsel %vm9260_vm3, 0, %v493_v15 }
 0x2bc   : > { %v4137_v52 = vmul.f32 %v11922_v38, %v4018_v27  ;;  %v3773_v61 = vpop.f32.mrb[71].mxu0  ;;  %v5296_v21 = vld [vmem:[#allocation3 + $0x7c] sm:$0xf]  ;;  %v12006_v44 = vld [vmem:[#allocation3 + $0x80] sm:$0xf] }
 0x2bd   : > { %v12008_v56 = vrot.slane %v4663_v57, 7  ;;  %v5068_v34 = vrot.slane %v4663_v57, 4  ;;  %v5069_v14 = vrot.slane %v4666_v7, 5  ;;  %v8149_v11 = vcombine.low %v5296_v21, %v12006_v44  ;;  %v5403_v54 = vld [vmem:[#allocation3 + $0x228] sm:$0xf] }
 0x2be   : > { %v4198_v46 = vadd.f32 %v11934_v47, %v4137_v52  ;;  %v12012_v53 = vcombine.low %v5295_v6, %v5296_v21  ;;  %546 = vst [vmem:[#allocation3 + $0x4] sm:$0x8] %v545_v12  ;;  %v774_v9 = vld [vmem:[#allocation3 + $0xe4] sm:$0x1]  ;;  %v8196_v36 = vcombine.low %v5402_v28, %v5403_v54  ;;  %495 = vst [vmem:[#allocation3 + $0xc] sm:$0x1] %v494_v22 }
 0x2bf   : > { %v4668_v55 = vor.u32 %v4666_v7, %v12008_v56  ;;  %5941 = vrot.lane.b32.xlu1 %v8149_v11, %s9156_s10  ;;  %v12016_v60 = vld [vmem:[#allocation3 + $0x22c] sm:$0xf]  ;;  %v5070_v42 = vor.u32 %v5069_v14, %v5068_v34  ;;  %v775_v24 = vsel %vm9260_vm3, 0, %v774_v9  ;;  %v4669_v27 = vrot.slane %v12008_v56, 4  ;;  %v12048_v7 = vld [vmem:[#allocation3 + $0x230] sm:$0xf] }
 0x2c0   : > { %14255 = vst [vmem:[#allocation55_spill] sm:$0xff] %v12012_v53  ;;  %v4252_v35 = vmax.f32 %v4198_v46, 0.0  ;;  %6102 = vrot.lane.b32.xlu0 %v12012_v53, %s9157_s16  ;;  %v12027_v32 = vcombine.low %v5403_v54, %v12016_v60  ;;  %776 = vst [vmem:[#allocation3 + $0xe4] sm:$0x1] %v775_v24  ;;  %v829_v37 = vld [vmem:[#allocation3 + $0xe8] sm:$0x8] }
 0x2c1   : > { %v4918_v17 = vsel %vm9699_vm11, %v4668_v55, %v4917_v63  ;;  %v5071_v41 = vrot.slane %v5070_v42, 4  ;;  %v548_v6 = vld [vmem:[#allocation3 + $0x10] sm:$0x8]  ;;  %v830_v56 = vsel %vm9550_vm6, 0, %v829_v37  ;;  %v1055_v28 = vld [vmem:[#allocation3 + $0x1bc] sm:$0x1] }
 0x2c2   : > { %14256 = vst [vmem:[#allocation51_spill] sm:$0xff] %v12027_v32  ;;  %4919 = vst [vmem:[#allocation3 + $0x84] sm:$0xf] %v4918_v17  ;;  %v8321_v8 = vpack.c.bf16 %v4252_v35, %v4252_v35  ;;  %8558 = vmatmul.mubr.msk.bf16.gmra.mrb[52].mxu0 %vm2938_vm15, %v14257_v5  ;;  %v12033_v26 = vld [vmem:[#allocation3 + $0x15c] sm:$0xf]  ;;  %v549_v15 = vsel %vm9550_vm6, 0, %v548_v6 }
 0x2c3   : > { %14258 = vst [vmem:[#allocation20_spill] sm:$0xff] %v12033_v26  ;;  %5865 = vrot.lane.b32.xlu1 %v12027_v32, %s9157_s16  ;;  %8561 = vmatprep.mubr.msk.bf16.mxu0 %vm9160_vm4, %v14162_v62  ;;  %v12046_v57 = vcombine.low %v11965_v18, %v12033_v26  ;;  %v4921_v62 = vld [vmem:[#allocation3 + $0x8c] sm:$0x1]  ;;  %831 = vst [vmem:[#allocation3 + $0xe8] sm:$0x8] %v830_v56  ;;  %v1056_v17 = vsel %vm9260_vm3, 0, %v1055_v28 }
 0x2c4   : > { %4459 = vst.msk [vmem:[#allocation3 + $0x160] sm:$0xf] %vm330_vm0, %v8321_v8  ;;  %v4671_v4 = vshrl.u32 %v8321_v8, 16  ;;  %v4674_v29 = vshll.u32 %v8321_v8, 16  ;;  %6047 = vrot.lane.b32.xlu0 %v8196_v36, %s9158_s22  ;;  %v1110_v12 = vld [vmem:[#allocation3 + $0x1c0] sm:$0x8] }
 0x2c5   : > { %v3776_v50 = vpop.f32.mrb[72].mxu0  ;;  %v12060_v58 = vld [vmem:[#allocation3 + $0x164] sm:$0xf]  ;;  %v14260_v8 = vld [vmem:[#allocation12_spill] sm:$0xff]  ;;  %550 = vst [vmem:[#allocation3 + $0x10] sm:$0x8] %v549_v15 }
 0x2c6   : > { %v4673_v52 = vrot.slane %v4671_v4, 7  ;;  %v5072_v61 = vrot.slane %v4674_v29, 5  ;;  %v5074_v21 = vrot.slane %v4671_v4, 4  ;;  %v4026_v34 = vadd.f32 %v11794_v2, %v3776_v50  ;;  %v3778_v14 = vpop.f32.mrb[73].mxu0  ;;  %v5214_v2 = vld [vmem:[#allocation3 + $0x238] sm:$0xf] }
 0x2c7   : > { %v3779_v11 = vpop.f32.mrb[74].mxu0  ;;  %14259 = vst [vmem:[#allocation21_spill] sm:$0xff] %v12060_v58  ;;  %1057 = vst [vmem:[#allocation3 + $0x1bc] sm:$0x1] %v1056_v17  ;;  %v1111_v4 = vsel %vm9550_vm6, 0, %v1110_v12 }
 0x2c8   : > { %v4676_v63 = vor.u32 %v4674_v29, %v4673_v52  ;;  %v4678_v46 = vrot.slane %v4673_v52, 4  ;;  %v5073_v54 = vsel %vm9664_vm10, %v5071_v41, %v5072_v61  ;;  %v5075_v39 = vor.u32 %v5074_v21, %v5072_v61  ;;  %6161 = vrot.lane.b32.xlu0 %v12046_v57, %s9156_s10  ;;  %v3781_v55 = vpop.f32.mrb[75].mxu0  ;;  %1112 = vst [vmem:[#allocation3 + $0x1c0] sm:$0x8] %v1111_v4  ;;  %v1114_v28 = vld [vmem:[#allocation3 + $0x1cc] sm:$0x8] }
 0x2c9   : > { %5213 = vst.msk [vmem:[#allocation3 + $0x234] sm:$0xf] %vm330_vm0, %v5073_v54  ;;  %v4139_v51 = vmul.f32 %v11922_v38, %v4026_v34  ;;  %v4029_v35 = vadd.f32 %v11796_v19, %v3779_v11  ;;  %v8197_v19 = vcombine.low %v12016_v60, %v12048_v7  ;;  %v12095_v14 = vld [vmem:[#allocation3 + $0x84] sm:$0xf]  ;;  %v833_v11 = vld [vmem:[#allocation3 + $0xf4] sm:$0x8] }
 0x2ca   : > { %v4677_v42 = vsel %vm9741_vm13, %v4669_v27, %v4676_v63  ;;  %v4922_v22 = vsel %vm9260_vm3, %v4678_v46, %v4921_v62  ;;  %v5076_v9 = vrot.slane %v5075_v39, 4  ;;  %8562 = vmatmul.mubr.msk.bf16.gmra.mrb[56].mxu0 %vm2938_vm15, %v14260_v8  ;;  %v496_v27 = vld [vmem:[#allocation3 + $0x18] sm:$0x1]  ;;  %v777_v62 = vld [vmem:[#allocation3 + $0xf0] sm:$0x1]  ;;  %v834_v56 = vsel %vm9550_vm6, 0, %v833_v11 }
 0x2cb   : > { %4920 = vst.msk [vmem:[#allocation3 + $0x88] sm:$0xf] %vm330_vm0, %v4677_v42  ;;  %4923 = vst [vmem:[#allocation3 + $0x8c] sm:$0x1] %v4922_v22  ;;  %v4200_v5 = vadd.f32 %v11934_v47, %v4139_v51  ;;  %v4140_v36 = vmul.f32 %v11922_v38, %v4029_v35  ;;  %v12077_v24 = vld [vmem:[#allocation3 + $0x160] sm:$0xf] }
 0x2cc   : > { %14261 = vst [vmem:[#allocation18_spill] sm:$0xff] %v12077_v24  ;;  %v5215_v29 = vsel %vm9779_vm14, %v5076_v9, %v5214_v2  ;;  %6049 = vrot.lane.b32.xlu0 %v8197_v19, %s9158_s22  ;;  %v12086_v60 = vcombine.low %v12077_v24, %v12060_v58  ;;  %v497_v52 = vsel %vm9260_vm3, 0, %v496_v27  ;;  %v778_v61 = vsel %vm9260_vm3, 0, %v777_v62  ;;  %835 = vst [vmem:[#allocation3 + $0xf4] sm:$0x8] %v834_v56 }
 0x2cd   : > { %5216 = vst [vmem:[#allocation3 + $0x238] sm:$0xf] %v5215_v29  ;;  %v4254_v50 = vmax.f32 %v4200_v5, 0.0  ;;  %v4201_v37 = vadd.f32 %v11934_v47, %v4140_v36  ;;  %498 = vst [vmem:[#allocation3 + $0x18] sm:$0x1] %v497_v52  ;;  %v1115_v55 = vsel %vm9550_vm6, 0, %v1114_v28  ;;  %v12108_v2 = vcombine.low %v12006_v44, %v12095_v14 }
 0x2ce   : > { %779 = vst [vmem:[#allocation3 + $0xf0] sm:$0x1] %v778_v61  ;;  %1116 = vst [vmem:[#allocation3 + $0x1cc] sm:$0x8] %v1115_v55  ;;  %v4924_v19 = vld [vmem:[#allocation3 + $0x90] sm:$0xf] }
 0x2cf   : > { %v8322_v21 = vpack.c.bf16 %v4254_v50, %v4254_v50  ;;  %v4255_v34 = vmax.f32 %v4201_v37, 0.0  ;;  %14262 = vst [vmem:[#allocation22_spill] sm:$0xff] %v12108_v2  ;;  %v4928_v37 = vld [vmem:[#allocation3 + $0x98] sm:$0x1]  ;;  %v552_v52 = vld [vmem:[#allocation3 + $0x1c] sm:$0x8] }
 0x2d0   : > { %6163 = vrot.lane.b32.xlu0 %v12086_v60, %s9156_s10  ;;  %v12099_v6 = vld [vmem:[#allocation3 + $0x234] sm:$0xf]  ;;  %v1058_v11 = vld [vmem:[#allocation3 + $0x1c8] sm:$0x1]  ;;  %v4893_v49 = vld [vmem:[#allocation3 + $0x5c] sm:$0x1] }
 0x2d1   : > { %4460 = vst.msk [vmem:[#allocation3 + $0x168] sm:$0xf] %vm330_vm0, %v8322_v21  ;;  %v4680_v63 = vshrl.u32 %v8322_v21, 16  ;;  %v4683_v46 = vshll.u32 %v8322_v21, 16  ;;  %v8323_v54 = vpack.c.bf16 %v4255_v34, %v4255_v34  ;;  %v3784_v39 = vpop.f32.mrb[76].mxu0  ;;  %v12116_v15 = vcombine.low %v12048_v7, %v12099_v6 }
 0x2d2   : > { %v3786_v12 = vpop.f32.mrb[77].mxu0  ;;  %v12110_v51 = vld [vmem:[#allocation3 + $0x88] sm:$0xf]  ;;  %v12112_v35 = vld [vmem:[#allocation3 + $0x8c] sm:$0xf] }
 0x2d3   : > { %v4682_v17 = vrot.slane %v4680_v63, 7  ;;  %v5077_v42 = vrot.slane %v4680_v63, 4  ;;  %v5078_v22 = vrot.slane %v4683_v46, 5  ;;  %4461 = vst.msk [vmem:[#allocation3 + $0x16c] sm:$0xf] %vm330_vm0, %v8323_v54  ;;  %v4688_v9 = vshrl.u32 %v8323_v54, 16 }
 0x2d4   : > { %v3787_v8 = vpop.f32.mrb[78].mxu0  ;;  %v4691_v5 = vshll.u32 %v8323_v54, 16  ;;  %6104 = vrot.lane.b32.xlu0 %v12108_v2, %s9157_s16  ;;  %v12127_v34 = vcombine.low %v12110_v51, %v12112_v35  ;;  %v5407_v54 = vld [vmem:[#allocation3 + $0x238] sm:$0xf]  ;;  %v780_v39 = vld [vmem:[#allocation3 + $0xfc] sm:$0x1] }
 0x2d5   : > { %v4037_v44 = vadd.f32 %v11817_v30, %v3787_v8  ;;  %v3789_v36 = vpop.f32.mrb[79].mxu0  ;;  %v4685_v7 = vor.u32 %v4683_v46, %v4682_v17  ;;  %v4686_v29 = vrot.slane %v4682_v17, 4  ;;  %v5079_v27 = vor.u32 %v5078_v22, %v5077_v42  ;;  %v499_v30 = vld [vmem:[#allocation3 + $0x24] sm:$0x1] }
 0x2d6   : > { %v4690_v50 = vrot.slane %v4688_v9, 7  ;;  %v5081_v62 = vrot.slane %v4691_v5, 5  ;;  %v5083_v61 = vrot.slane %v4688_v9, 4  ;;  %14263 = vst [vmem:[#allocation24_spill] sm:$0xff] %v12127_v34  ;;  %v553_v17 = vsel %vm9550_vm6, 0, %v552_v52 }
 0x2d7   : > { %v4142_v21 = vmul.f32 %v11922_v38, %v4037_v44  ;;  %v4925_v56 = vsel %vm9699_vm11, %v4685_v7, %v4924_v19  ;;  %v5080_v28 = vrot.slane %v5079_v27, 4  ;;  %v1059_v42 = vsel %vm9260_vm3, 0, %v1058_v11  ;;  %v5218_v19 = vld [vmem:[#allocation3 + $0x244] sm:$0xf]  ;;  %554 = vst [vmem:[#allocation3 + $0x1c] sm:$0x8] %v553_v17 }
 0x2d8   : > { %v4693_v63 = vor.u32 %v4691_v5, %v4690_v50  ;;  %v4695_v46 = vrot.slane %v4690_v50, 4  ;;  %4926 = vst [vmem:[#allocation3 + $0x90] sm:$0xf] %v4925_v56  ;;  %v5084_v55 = vor.u32 %v5083_v61, %v5081_v62  ;;  %6106 = vrot.lane.b32.xlu0 %v12127_v34, %s9157_s16  ;;  %1060 = vst [vmem:[#allocation3 + $0x1c8] sm:$0x1] %v1059_v42  ;;  %v500_v5 = vsel %vm9260_vm3, 0, %v499_v30 }
 0x2d9   : > { %v4203_v12 = vadd.f32 %v11934_v47, %v4142_v21  ;;  %v5082_v8 = vsel %vm9664_vm10, %v5080_v28, %v5081_v62  ;;  %v12146_v44 = vld [vmem:[#allocation3 + $0x170] sm:$0xf]  ;;  %501 = vst [vmem:[#allocation3 + $0x24] sm:$0x1] %v500_v5  ;;  %v781_v27 = vsel %vm9260_vm3, 0, %v780_v39 }
 0x2da   : > { %v4694_v22 = vsel %vm9741_vm13, %v4686_v29, %v4693_v63  ;;  %v4929_v9 = vsel %vm9260_vm3, %v4695_v46, %v4928_v37  ;;  %14264 = vst [vmem:[#allocation23_spill] sm:$0xff] %v12146_v44  ;;  %v5085_v36 = vrot.slane %v5084_v55, 4  ;;  %5217 = vst.msk [vmem:[#allocation3 + $0x240] sm:$0xf] %vm330_vm0, %v5082_v8  ;;  %v8198_v29 = vcombine.low %v12099_v6, %v5407_v54  ;;  %v12153_v50 = vld [vmem:[#allocation3 + $0x168] sm:$0xf] }
 0x2db   : > { %4927 = vst.msk [vmem:[#allocation3 + $0x94] sm:$0xf] %vm330_vm0, %v4694_v22  ;;  %4930 = vst [vmem:[#allocation3 + $0x98] sm:$0x1] %v4929_v9  ;;  %v4257_v7 = vmax.f32 %v4203_v12, 0.0 }
 0x2dc   : > { %14265 = vst [vmem:[#allocation25_spill] sm:$0xff] %v12153_v50  ;;  %782 = vst [vmem:[#allocation3 + $0xfc] sm:$0x1] %v781_v27  ;;  %v12155_v37 = vld [vmem:[#allocation3 + $0x16c] sm:$0xf]  ;;  %v5219_v62 = vsel %vm9779_vm14, %v5085_v36, %v5218_v19  ;;  %6051 = vrot.lane.b32.xlu0 %v8198_v29, %s9158_s22 }
 0x2dd   : > { %14266 = vst [vmem:[#allocation26_spill] sm:$0xff] %v12155_v37  ;;  %v8324_v61 = vpack.c.bf16 %v4257_v7, %v4257_v7  ;;  %5220 = vst [vmem:[#allocation3 + $0x244] sm:$0xf] %v5219_v62  ;;  %v3792_v21 = vpop.f32.mrb[80].mxu0  ;;  %v837_v11 = vld [vmem:[#allocation3 + $0x100] sm:$0x8] }
 0x2de   : > { %v4042_v28 = vadd.f32 %v11831_v43, %v3792_v21  ;;  %v3794_v63 = vpop.f32.mrb[81].mxu0  ;;  %v838_v46 = vsel %vm9550_vm6, 0, %v837_v11  ;;  %v1118_v54 = vld [vmem:[#allocation3 + $0x1d8] sm:$0x8]  ;;  %v4931_v42 = vld [vmem:[#allocation3 + $0x9c] sm:$0xf] }
 0x2df   : > { %4462 = vst.msk [vmem:[#allocation3 + $0x174] sm:$0xf] %vm330_vm0, %v8324_v61  ;;  %v4697_v30 = vshrl.u32 %v8324_v61, 16  ;;  %v4700_v56 = vshll.u32 %v8324_v61, 16  ;;  %v3795_v39 = vpop.f32.mrb[82].mxu0  ;;  %v1119_v12 = vsel %vm9550_vm6, 0, %v1118_v54 }
 0x2e0   : > { %v12168_v55 = vld [vmem:[#allocation3 + $0x90] sm:$0xf]  ;;  %839 = vst [vmem:[#allocation3 + $0x100] sm:$0x8] %v838_v46  ;;  %v4143_v22 = vmul.f32 %v11922_v38, %v4042_v28  ;;  %v3797_v9 = vpop.f32.mrb[83].mxu0 }
 0x2e1   : > { %v4699_v17 = vrot.slane %v4697_v30, 7  ;;  %v556_v8 = vld [vmem:[#allocation3 + $0x28] sm:$0x8]  ;;  %1120 = vst [vmem:[#allocation3 + $0x1d8] sm:$0x8] %v1119_v12  ;;  %v5086_v43 = vrot.slane %v4697_v30, 4 }
 0x2e2   : > { %v5087_v19 = vrot.slane %v4700_v56, 5  ;;  %v5302_v5 = vld [vmem:[#allocation3 + $0x94] sm:$0xf]  ;;  %v557_v36 = vsel %vm9550_vm6, 0, %v556_v8  ;;  %v4204_v27 = vadd.f32 %v11934_v47, %v4143_v22  ;;  %v502_v28 = vld [vmem:[#allocation3 + $0x30] sm:$0x1] }
 0x2e3   : > { %v4702_v29 = vor.u32 %v4700_v56, %v4699_v17  ;;  %558 = vst [vmem:[#allocation3 + $0x28] sm:$0x8] %v557_v36  ;;  %v1061_v62 = vld [vmem:[#allocation3 + $0x1d4] sm:$0x1]  ;;  %v12179_v61 = vcombine.low %v12168_v55, %v5302_v5  ;;  %v503_v56 = vsel %vm9260_vm3, 0, %v502_v28 }
 0x2e4   : > { %v1062_v21 = vsel %vm9260_vm3, 0, %v1061_v62  ;;  %v4258_v30 = vmax.f32 %v4204_v27, 0.0  ;;  %v5088_v63 = vor.u32 %v5087_v19, %v5086_v43  ;;  %v783_v46 = vld [vmem:[#allocation3 + $0x108] sm:$0x1]  ;;  %504 = vst [vmem:[#allocation3 + $0x30] sm:$0x1] %v503_v56 }
 0x2e5   : > { %14267 = vst [vmem:[#allocation28_spill] sm:$0xff] %v12179_v61  ;;  %v4932_v11 = vsel %vm9699_vm11, %v4702_v29, %v4931_v42  ;;  %1063 = vst [vmem:[#allocation3 + $0x1d4] sm:$0x1] %v1062_v21  ;;  %6108 = vrot.lane.b32.xlu0 %v12179_v61, %s9157_s16  ;;  %v784_v39 = vsel %vm9260_vm3, 0, %v783_v46  ;;  %v841_v12 = vld [vmem:[#allocation3 + $0x10c] sm:$0x8] }
 0x2e6   : > { %4933 = vst [vmem:[#allocation3 + $0x9c] sm:$0xf] %v4932_v11  ;;  %v8325_v54 = vpack.c.bf16 %v4258_v30, %v4258_v30  ;;  %785 = vst [vmem:[#allocation3 + $0x108] sm:$0x1] %v784_v39  ;;  %v842_v9 = vsel %vm9550_vm6, 0, %v841_v12  ;;  %v5089_v43 = vrot.slane %v5088_v63, 4 }
 0x2e7   : > { %v1122_v8 = vld [vmem:[#allocation3 + $0x1e4] sm:$0x8]  ;;  %843 = vst [vmem:[#allocation3 + $0x10c] sm:$0x8] %v842_v9  ;;  %v4703_v11 = vrot.slane %v4699_v17, 4 }
 0x2e8   : > { %4463 = vst.msk [vmem:[#allocation3 + $0x178] sm:$0xf] %vm330_vm0, %v8325_v54  ;;  %v4705_v42 = vshrl.u32 %v8325_v54, 16  ;;  %v4708_v22 = vshll.u32 %v8325_v54, 16  ;;  %v1123_v5 = vsel %vm9550_vm6, 0, %v1122_v8 }
 0x2e9   : > { %v3800_v19 = vpop.f32.mrb[84].mxu0  ;;  %1124 = vst [vmem:[#allocation3 + $0x1e4] sm:$0x8] %v1123_v5  ;;  %v4935_v30 = vld [vmem:[#allocation3 + $0xa4] sm:$0x1] }
 0x2ea   : > { %v4707_v36 = vrot.slane %v4705_v42, 7  ;;  %v5090_v29 = vrot.slane %v4708_v22, 5  ;;  %v5092_v27 = vrot.slane %v4705_v42, 4  ;;  %v4050_v62 = vadd.f32 %v11849_v33, %v3800_v19  ;;  %v3802_v21 = vpop.f32.mrb[85].mxu0  ;;  %v5222_v12 = vld [vmem:[#allocation3 + $0x250] sm:$0xf] }
 0x2eb   : > { %v3803_v28 = vpop.f32.mrb[86].mxu0  ;;  %v560_v8 = vld [vmem:[#allocation3 + $0x34] sm:$0x8]  ;;  %v1064_v19 = vld [vmem:[#allocation3 + $0x1e0] sm:$0x1] }
 0x2ec   : > { %v4710_v56 = vor.u32 %v4708_v22, %v4707_v36  ;;  %v4712_v46 = vrot.slane %v4707_v36, 4  ;;  %v5091_v63 = vsel %vm9664_vm10, %v5089_v43, %v5090_v29  ;;  %v5093_v54 = vor.u32 %v5092_v27, %v5090_v29  ;;  %v3805_v39 = vpop.f32.mrb[87].mxu0  ;;  %v505_v29 = vld [vmem:[#allocation3 + $0x3c] sm:$0x1]  ;;  %v786_v21 = vld [vmem:[#allocation3 + $0x114] sm:$0x1] }
 0x2ed   : > { %5221 = vst.msk [vmem:[#allocation3 + $0x24c] sm:$0xf] %vm330_vm0, %v5091_v63  ;;  %v4145_v9 = vmul.f32 %v11922_v38, %v4050_v62  ;;  %v4053_v42 = vadd.f32 %v11851_v1, %v3803_v28  ;;  %v561_v36 = vsel %vm9550_vm6, 0, %v560_v8  ;;  %v1065_v1 = vsel %vm9260_vm3, 0, %v1064_v19  ;;  %v4879_v34 = vld [vmem:[#allocation3 + $0x44] sm:$0x1] }
 0x2ee   : > { %v4711_v33 = vsel %vm9741_vm13, %v4703_v11, %v4710_v56  ;;  %v4936_v17 = vsel %vm9260_vm3, %v4712_v46, %v4935_v30  ;;  %v5094_v22 = vrot.slane %v5093_v54, 4  ;;  %562 = vst [vmem:[#allocation3 + $0x34] sm:$0x8] %v561_v36  ;;  %1066 = vst [vmem:[#allocation3 + $0x1e0] sm:$0x1] %v1065_v1  ;;  %v506_v62 = vsel %vm9260_vm3, 0, %v505_v29 }
 0x2ef   : > { %4934 = vst.msk [vmem:[#allocation3 + $0xa0] sm:$0xf] %vm330_vm0, %v4711_v33  ;;  %4937 = vst [vmem:[#allocation3 + $0xa4] sm:$0x1] %v4936_v17  ;;  %v4206_v43 = vadd.f32 %v11934_v47, %v4145_v9  ;;  %v4146_v5 = vmul.f32 %v11922_v38, %v4053_v42  ;;  %v12217_v11 = vld [vmem:[#allocation3 + $0x178] sm:$0xf] }
 0x2f0   : > { %v5223_v27 = vsel %vm9779_vm14, %v5094_v22, %v5222_v12  ;;  %14268 = vst [vmem:[#allocation30_spill] sm:$0xff] %v12217_v11  ;;  %507 = vst [vmem:[#allocation3 + $0x3c] sm:$0x1] %v506_v62  ;;  %v787_v56 = vsel %vm9260_vm3, 0, %v786_v21  ;;  %v12222_v46 = vld [vmem:[#allocation3 + $0x174] sm:$0xf] }
 0x2f1   : > { %5224 = vst [vmem:[#allocation3 + $0x250] sm:$0xf] %v5223_v27  ;;  %v4260_v30 = vmax.f32 %v4206_v43, 0.0  ;;  %v4207_v28 = vadd.f32 %v11934_v47, %v4146_v5  ;;  %14269 = vst [vmem:[#allocation31_spill] sm:$0xff] %v12222_v46  ;;  %v845_v17 = vld [vmem:[#allocation3 + $0x118] sm:$0x8] }
 0x2f2   : > { %788 = vst [vmem:[#allocation3 + $0x114] sm:$0x1] %v787_v56  ;;  %v846_v8 = vsel %vm9550_vm6, 0, %v845_v17  ;;  %v4938_v29 = vld [vmem:[#allocation3 + $0xa8] sm:$0xf] }
 0x2f3   : > { %v8326_v54 = vpack.c.bf16 %v4260_v30, %v4260_v30  ;;  %v4261_v39 = vmax.f32 %v4207_v28, 0.0  ;;  %847 = vst [vmem:[#allocation3 + $0x118] sm:$0x8] %v846_v8  ;;  %v564_v30 = vld [vmem:[#allocation3 + $0x40] sm:$0x8] }
 0x2f4   : > { %v1126_v17 = vld [vmem:[#allocation3 + $0x1f0] sm:$0x8]  ;;  %v565_v8 = vsel %vm9550_vm6, 0, %v564_v30  ;;  %v12241_v30 = vld [vmem:[#allocation3 + $0x17c] sm:$0xf] }
 0x2f5   : > { %4464 = vst.msk [vmem:[#allocation3 + $0x180] sm:$0xf] %vm330_vm0, %v8326_v54  ;;  %v4714_v12 = vshrl.u32 %v8326_v54, 16  ;;  %v4717_v9 = vshll.u32 %v8326_v54, 16  ;;  %v8327_v42 = vpack.c.bf16 %v4261_v39, %v4261_v39  ;;  %v3808_v33 = vpop.f32.mrb[88].mxu0  ;;  %14270 = vst [vmem:[#allocation32_spill] sm:$0xff] %v12241_v30 }
 0x2f6   : > { %v3810_v22 = vpop.f32.mrb[89].mxu0  ;;  %v1067_v33 = vld [vmem:[#allocation3 + $0x1ec] sm:$0x1]  ;;  %566 = vst [vmem:[#allocation3 + $0x40] sm:$0x8] %v565_v8  ;;  %v14276_v8 = vmov 0  }
 0x2f7   : > { %v4716_v19 = vrot.slane %v4714_v12, 7  ;;  %v5095_v43 = vrot.slane %v4714_v12, 4  ;;  %v5096_v5 = vrot.slane %v4717_v9, 5  ;;  %4465 = vst.msk [vmem:[#allocation3 + $0x184] sm:$0xf] %vm330_vm0, %v8327_v42  ;;  %v4722_v36 = vshrl.u32 %v8327_v42, 16 }
 0x2f8   : > { %v3811_v1 = vpop.f32.mrb[90].mxu0  ;;  %v4725_v27 = vshll.u32 %v8327_v42, 16  ;;  %v4942_v22 = vld [vmem:[#allocation3 + $0xb0] sm:$0x1] }
 0x2f9   : > { %v4061_v62 = vadd.f32 %v11865_v10, %v3811_v1  ;;  %v3813_v21 = vpop.f32.mrb[91].mxu0  ;;  %v4719_v28 = vor.u32 %v4717_v9, %v4716_v19  ;;  %v4720_v56 = vrot.slane %v4716_v19, 4  ;;  %v5097_v54 = vor.u32 %v5096_v5, %v5095_v43  ;;  %v5226_v19 = vld [vmem:[#allocation3 + $0x25c] sm:$0xf] }
 0x2fa   : > { %v4724_v39 = vrot.slane %v4722_v36, 7  ;;  %v5099_v12 = vrot.slane %v4725_v27, 5  ;;  %v5101_v63 = vrot.slane %v4722_v36, 4  ;;  %v1068_v5 = vsel %vm9260_vm3, 0, %v1067_v33 }
 0x2fb   : > { %v4148_v6 = vmul.f32 %v11922_v38, %v4061_v62  ;;  %v4939_v42 = vsel %vm9699_vm11, %v4719_v28, %v4938_v29  ;;  %v5098_v10 = vrot.slane %v5097_v54, 4  ;;  %v1127_v36 = vsel %vm9550_vm6, 0, %v1126_v17  ;;  %v508_v62 = vld [vmem:[#allocation3 + $0x48] sm:$0x1]  ;;  %1069 = vst [vmem:[#allocation3 + $0x1ec] sm:$0x1] %v1068_v5 }
 0x2fc   : > { %v4727_v1 = vor.u32 %v4725_v27, %v4724_v39  ;;  %v4729_v21 = vrot.slane %v4724_v39, 4  ;;  %4940 = vst [vmem:[#allocation3 + $0xa8] sm:$0xf] %v4939_v42  ;;  %v5102_v9 = vor.u32 %v5101_v63, %v5099_v12  ;;  %1128 = vst [vmem:[#allocation3 + $0x1f0] sm:$0x8] %v1127_v36 }
 0x2fd   : > { %v4209_v43 = vadd.f32 %v11934_v47, %v4148_v6  ;;  %v5100_v63 = vsel %vm9664_vm10, %v5098_v10, %v5099_v12  ;;  %v509_v6 = vsel %vm9260_vm3, 0, %v508_v62  ;;  %v789_v28 = vld [vmem:[#allocation3 + $0x120] sm:$0x1]  ;;  %v12251_v54 = vld [vmem:[#allocation3 + $0x188] sm:$0xf] }
 0x2fe   : > { %v4728_v29 = vsel %vm9741_vm13, %v4720_v56, %v4727_v1  ;;  %v4943_v27 = vsel %vm9260_vm3, %v4729_v21, %v4942_v22  ;;  %14271 = vst [vmem:[#allocation33_spill] sm:$0xff] %v12251_v54  ;;  %v5103_v39 = vrot.slane %v5102_v9, 4  ;;  %5225 = vst.msk [vmem:[#allocation3 + $0x258] sm:$0xf] %vm330_vm0, %v5100_v63  ;;  %v790_v33 = vsel %vm9260_vm3, 0, %v789_v28 }
 0x2ff   : > { %4941 = vst.msk [vmem:[#allocation3 + $0xac] sm:$0xf] %vm330_vm0, %v4728_v29  ;;  %4944 = vst [vmem:[#allocation3 + $0xb0] sm:$0x1] %v4943_v27  ;;  %v4263_v56 = vmax.f32 %v4209_v43, 0.0 }
 0x300   : > { %510 = vst [vmem:[#allocation3 + $0x48] sm:$0x1] %v509_v6  ;;  %v12257_v17 = vld [vmem:[#allocation3 + $0x180] sm:$0xf]  ;;  %791 = vst [vmem:[#allocation3 + $0x120] sm:$0x1] %v790_v33  ;;  %v5227_v42 = vsel %vm9779_vm14, %v5103_v39, %v5226_v19 }
 0x301   : > { %14272 = vst [vmem:[#allocation35_spill] sm:$0xff] %v12257_v17  ;;  %v849_v22 = vld [vmem:[#allocation3 + $0x124] sm:$0x8]  ;;  %v8328_v10 = vpack.c.bf16 %v4263_v56, %v4263_v56  ;;  %v1130_v21 = vld [vmem:[#allocation3 + $0x1fc] sm:$0x8]  ;;  %v3816_v9 = vpop.f32.mrb[92].mxu0 }
 0x302   : > { %v12259_v12 = vld [vmem:[#allocation3 + $0x184] sm:$0xf]  ;;  %v850_v1 = vsel %vm9550_vm6, 0, %v849_v22  ;;  %5228 = vst [vmem:[#allocation3 + $0x25c] sm:$0xf] %v5227_v42  ;;  %v1131_v43 = vsel %vm9550_vm6, 0, %v1130_v21  ;;  %v4066_v19 = vadd.f32 %v11883_v45, %v3816_v9 }
 0x303   : > { %14273 = vst [vmem:[#allocation38_spill] sm:$0xff] %v12259_v12  ;;  %851 = vst [vmem:[#allocation3 + $0x124] sm:$0x8] %v850_v1  ;;  %v4731_v36 = vshrl.u32 %v8328_v10, 16  ;;  %v4734_v62 = vshll.u32 %v8328_v10, 16  ;;  %v3818_v29 = vpop.f32.mrb[93].mxu0 }
 0x304   : > { %4466 = vst.msk [vmem:[#allocation3 + $0x18c] sm:$0xf] %vm330_vm0, %v8328_v10  ;;  %1132 = vst [vmem:[#allocation3 + $0x1fc] sm:$0x8] %v1131_v43  ;;  %v3819_v27 = vpop.f32.mrb[94].mxu0  ;;  %v4149_v28 = vmul.f32 %v11922_v38, %v4066_v19 }
 0x305   : > { %v4733_v63 = vrot.slane %v4731_v36, 7  ;;  %v4945_v6 = vld [vmem:[#allocation3 + $0xb4] sm:$0xf]  ;;  %v3821_v39 = vpop.f32.mrb[95].mxu0  ;;  %v5104_v56 = vrot.slane %v4731_v36, 4  ;;  %v5105_v33 = vrot.slane %v4734_v62, 5 }
 0x306   : > { %v568_v22 = vld [vmem:[#allocation3 + $0x4c] sm:$0x8]  ;;  %v1070_v42 = vld [vmem:[#allocation3 + $0x1f8] sm:$0x1]  ;;  %v4210_v21 = vadd.f32 %v11934_v47, %v4149_v28  ;;  %v511_v38 = vld [vmem:[#allocation3 + $0x54] sm:$0x1] }
 0x307   : > { %v4736_v1 = vor.u32 %v4734_v62, %v4733_v63  ;;  %v569_v10 = vsel %vm9550_vm6, 0, %v568_v22  ;;  %v1071_v45 = vsel %vm9260_vm3, 0, %v1070_v42  ;;  %v5106_v36 = vor.u32 %v5105_v33, %v5104_v56  ;;  %v792_v19 = vld [vmem:[#allocation3 + $0x12c] sm:$0x1]  ;;  %v5230_v5 = vld [vmem:[#allocation3 + $0x268] sm:$0xf] }
 0x308   : > { %v4264_v43 = vmax.f32 %v4210_v21, 0.0  ;;  %570 = vst [vmem:[#allocation3 + $0x4c] sm:$0x8] %v569_v10  ;;  %1072 = vst [vmem:[#allocation3 + $0x1f8] sm:$0x1] %v1071_v45  ;;  %v512_v62 = vsel %vm9260_vm3, 0, %v511_v38 }
 0x309   : > { %v4946_v9 = vsel %vm9699_vm11, %v4736_v1, %v4945_v6  ;;  %513 = vst [vmem:[#allocation3 + $0x54] sm:$0x1] %v512_v62  ;;  %v793_v29 = vsel %vm9260_vm3, 0, %v792_v19  ;;  %v5107_v28 = vrot.slane %v5106_v36, 4  ;;  %v4737_v21 = vrot.slane %v4733_v63, 4 }
 0x30a   : > { %4947 = vst [vmem:[#allocation3 + $0xb4] sm:$0xf] %v4946_v9  ;;  %v8329_v47 = vpack.c.bf16 %v4264_v43, %v4264_v43  ;;  %794 = vst [vmem:[#allocation3 + $0x12c] sm:$0x1] %v793_v29  ;;  %v4949_v10 = vld [vmem:[#allocation3 + $0xbc] sm:$0x1] }
 0x30b   : > { %v853_v9 = vld [vmem:[#allocation3 + $0x130] sm:$0x8]  ;;  %v1073_v36 = vld [vmem:[#allocation3 + $0x204] sm:$0x1] }
 0x30c   : > { %4467 = vst.msk [vmem:[#allocation3 + $0x190] sm:$0xf] %vm330_vm0, %v8329_v47  ;;  %v4739_v27 = vshrl.u32 %v8329_v47, 16  ;;  %v4742_v6 = vshll.u32 %v8329_v47, 16  ;;  %v572_v47 = vld [vmem:[#allocation3 + $0x58] sm:$0x8] }
 0x30d   : > { %v3824_v39 = vpop.f32.mrb[96].mxu0 }
 0x30e   : > { %v4741_v22 = vrot.slane %v4739_v27, 7  ;;  %v5108_v42 = vrot.slane %v4742_v6, 5  ;;  %v5110_v1 = vrot.slane %v4739_v27, 4  ;;  %v4074_v56 = vadd.f32 %v11897_v59, %v3824_v39  ;;  %v3826_v33 = vpop.f32.mrb[97].mxu0  ;;  %v12293_v59 = vld [vmem:[%s13950_s2] ss:$0 sm:$0xff] }
 0x30f   : > { %v3827_v45 = vpop.f32.mrb[98].mxu0  ;;  %v1134_v39 = vld [vmem:[#allocation3 + $0x208] sm:$0x8] }
 0x310   : > { %v4744_v43 = vor.u32 %v4742_v6, %v4741_v22  ;;  %v4746_v38 = vrot.slane %v4741_v22, 4  ;;  %v5109_v62 = vsel %vm9664_vm10, %v5107_v28, %v5108_v42  ;;  %v5111_v19 = vor.u32 %v5110_v1, %v5108_v42  ;;  %v3829_v29 = vpop.f32.mrb[99].mxu0 }
 0x311   : > { %5229 = vst.msk [vmem:[#allocation3 + $0x264] sm:$0xf] %vm330_vm0, %v5109_v62  ;;  %v4151_v63 = vmul.f32 %v12293_v59, %v4074_v56  ;;  %v4077_v27 = vadd.f32 %v11899_v20, %v3827_v45  ;;  %v573_v6 = vsel %vm9550_vm6, 0, %v572_v47  ;;  %v854_v28 = vsel %vm9550_vm6, 0, %v853_v9  ;;  %v12311_v20 = vld [vmem:[%s13951_s3] ss:$0 sm:$0xff] }
 0x312   : > { %v4745_v22 = vsel %vm9741_vm13, %v4737_v21, %v4744_v43  ;;  %v4950_v42 = vsel %vm9260_vm3, %v4746_v38, %v4949_v10  ;;  %v5112_v1 = vrot.slane %v5111_v19, 4  ;;  %574 = vst [vmem:[#allocation3 + $0x58] sm:$0x8] %v573_v6  ;;  %855 = vst [vmem:[#allocation3 + $0x130] sm:$0x8] %v854_v28  ;;  %v1074_v56 = vsel %vm9260_vm3, 0, %v1073_v36 }
 0x313   : > { %4948 = vst.msk [vmem:[#allocation3 + $0xb8] sm:$0xf] %vm330_vm0, %v4745_v22  ;;  %4951 = vst [vmem:[#allocation3 + $0xbc] sm:$0x1] %v4950_v42  ;;  %v4212_v33 = vadd.f32 %v12311_v20, %v4151_v63  ;;  %v4152_v21 = vmul.f32 %v12293_v59, %v4077_v27  ;;  %v1135_v10 = vsel %vm9550_vm6, 0, %v1134_v39 }
 0x314   : > { %1075 = vst [vmem:[#allocation3 + $0x204] sm:$0x1] %v1074_v56  ;;  %v12317_v45 = vld [vmem:[#allocation3 + $0x18c] sm:$0xf]  ;;  %v12319_v9 = vld [vmem:[#allocation3 + $0x190] sm:$0xf]  ;;  %v5231_v43 = vsel %vm9779_vm14, %v5112_v1, %v5230_v5 }
 0x315   : > { %14274 = vst [vmem:[#allocation36_spill] sm:$0xff] %v12317_v45  ;;  %14275 = vst [vmem:[#allocation37_spill] sm:$0xff] %v12319_v9  ;;  %v4266_v62 = vmax.f32 %v4212_v33, 0.0  ;;  %v4213_v19 = vadd.f32 %v12311_v20, %v4152_v21  ;;  %v514_v29 = vld [vmem:[#allocation3 + $0x60] sm:$0x1]  ;;  %v8947_v21 = vld [vmem:[%s13952_s4] sm:$0xff]  }
 0x316   : > { %1136 = vst [vmem:[#allocation3 + $0x208] sm:$0x8] %v1135_v10  ;;  %5232 = vst [vmem:[#allocation3 + $0x268] sm:$0xf] %v5231_v43  ;;  %v515_v63 = vsel %vm9260_vm3, 0, %v514_v29  ;;  %6793 = vmatpush1.bf16.msra.mxu1 %v8947_v21 }
 0x317   : > { %v8330_v47 = vpack.c.bf16 %v4266_v62, %v4266_v62  ;;  %v4267_v36 = vmax.f32 %v4213_v19, 0.0  ;;  %v795_v27 = vld [vmem:[#allocation3 + $0x138] sm:$0x1]  ;;  %516 = vst [vmem:[#allocation3 + $0x60] sm:$0x1] %v515_v63  ;;  %6794 = vmatprep.subr.bf16.mxu1 %v14276_v8 }
 0x318   : > { %v796_v6 = vsel %vm9260_vm3, 0, %v795_v27  ;;  %v857_v42 = vld [vmem:[#allocation3 + $0x13c] sm:$0x8]  ;;  %v1138_v33 = vld [vmem:[#allocation3 + $0x214] sm:$0x8] }
 0x319   : > { %4468 = vst.msk [vmem:[#allocation3 + $0x198] sm:$0xf] %vm330_vm0, %v8330_v47  ;;  %v4748_v5 = vshrl.u32 %v8330_v47, 16  ;;  %v4751_v28 = vshll.u32 %v8330_v47, 16  ;;  %v8331_v39 = vpack.c.bf16 %v4267_v36, %v4267_v36  ;;  %v3832_v22 = vpop.f32.mrb[100].mxu0  ;;  %v858_v56 = vsel %vm9550_vm6, 0, %v857_v42 }
 0x31a   : > { %797 = vst [vmem:[#allocation3 + $0x138] sm:$0x1] %v796_v6  ;;  %v3834_v1 = vpop.f32.mrb[101].mxu0  ;;  %859 = vst [vmem:[#allocation3 + $0x13c] sm:$0x8] %v858_v56  ;;  %v1139_v6 = vsel %vm9550_vm6, 0, %v1138_v33 }
 0x31b   : > { %v4750_v10 = vrot.slane %v4748_v5, 7  ;;  %v5113_v43 = vrot.slane %v4748_v5, 4  ;;  %v5114_v62 = vrot.slane %v4751_v28, 5  ;;  %4469 = vst.msk [vmem:[#allocation3 + $0x19c] sm:$0xf] %vm330_vm0, %v8331_v39  ;;  %v4756_v19 = vshrl.u32 %v8331_v39, 16 }
 0x31c   : > { %v3835_v29 = vpop.f32.mrb[102].mxu0  ;;  %v4952_v47 = vld [vmem:[#allocation3 + $0xc0] sm:$0xf]  ;;  %v4759_v36 = vshll.u32 %v8331_v39, 16  ;;  %v4956_v5 = vld [vmem:[#allocation3 + $0xc8] sm:$0x1] }
 0x31d   : > { %v4085_v63 = vadd.f32 %v11917_v23, %v3835_v29  ;;  %v3837_v27 = vpop.f32.mrb[103].mxu0  ;;  %v4753_v22 = vor.u32 %v4751_v28, %v4750_v10  ;;  %v4754_v42 = vrot.slane %v4750_v10, 4  ;;  %v5115_v1 = vor.u32 %v5114_v62, %v5113_v43  ;;  %1140 = vst [vmem:[#allocation3 + $0x214] sm:$0x8] %v1139_v6  ;;  %v576_v39 = vld [vmem:[#allocation3 + $0x64] sm:$0x8] }
 0x31e   : > { %v4758_v38 = vrot.slane %v4756_v19, 7  ;;  %v5117_v52 = vrot.slane %v4759_v36, 5  ;;  %v5119_v41 = vrot.slane %v4756_v19, 4  ;;  %v8948_v28 = vld [vmem:[%s13952_s4 + $0x8] sm:$0xff]   ;;  %v577_v62 = vsel %vm9550_vm6, 0, %v576_v39 }
 0x31f   : > { %v4154_v56 = vmul.f32 %v12293_v59, %v4085_v63  ;;  %v4953_v23 = vsel %vm9699_vm11, %v4753_v22, %v4952_v47  ;;  %v5116_v29 = vrot.slane %v5115_v1, 4  ;;  %v1077_v19 = vsel %vm9260_vm3, 0, %v1076_v31  ;;  %v517_v63 = vld [vmem:[#allocation3 + $0x6c] sm:$0x1]  ;;  %v5234_v27 = vld [vmem:[#allocation3 + $0x274] sm:$0xf]  ;;  %6795 = vmatpush1.bf16.msra.mxu1 %v8948_v28 }
 0x320   : > { %v4761_v33 = vor.u32 %v4759_v36, %v4758_v38  ;;  %v4763_v21 = vrot.slane %v4758_v38, 4  ;;  %4954 = vst [vmem:[#allocation3 + $0xc0] sm:$0xf] %v4953_v23  ;;  %v5120_v10 = vor.u32 %v5119_v41, %v5117_v52  ;;  %578 = vst [vmem:[#allocation3 + $0x64] sm:$0x8] %v577_v62  ;;  %v518_v41 = vsel %vm9260_vm3, 0, %v517_v63  ;;  %6796 = vmatprep.subr.bf16.mxu1 %v14276_v8 }
 0x321   : > { %v4215_v43 = vadd.f32 %v12311_v20, %v4154_v56  ;;  %v5118_v36 = vsel %vm9664_vm10, %v5116_v29, %v5117_v52  ;;  %1078 = vst [vmem:[#allocation3 + $0x210] sm:$0x1] %v1077_v19  ;;  %v798_v6 = vld [vmem:[#allocation3 + $0x144] sm:$0x1]  ;;  %519 = vst [vmem:[#allocation3 + $0x6c] sm:$0x1] %v518_v41 }
 0x322   : > { %v4762_v47 = vsel %vm9741_vm13, %v4754_v42, %v4761_v33  ;;  %v4957_v38 = vsel %vm9260_vm3, %v4763_v21, %v4956_v5  ;;  %v5121_v31 = vrot.slane %v5120_v10, 4  ;;  %5233 = vst.msk [vmem:[#allocation3 + $0x270] sm:$0xf] %vm330_vm0, %v5118_v36  ;;  %v799_v42 = vsel %vm9260_vm3, 0, %v798_v6  ;;  %v8950_v52 = vld [vmem:[%s13952_s4 + $0x10] sm:$0xff]  }
 0x323   : > { %4955 = vst.msk [vmem:[#allocation3 + $0xc4] sm:$0xf] %vm330_vm0, %v4762_v47  ;;  %4958 = vst [vmem:[#allocation3 + $0xc8] sm:$0x1] %v4957_v38  ;;  %v4269_v22 = vmax.f32 %v4215_v43, 0.0  ;;  %6797 = vmatpush1.bf16.msra.mxu1 %v8950_v52  ;;  %v8952_v43 = vld [vmem:[%s13952_s4 + $0x18] sm:$0xff]  }
 0x324   : > { %800 = vst [vmem:[#allocation3 + $0x144] sm:$0x1] %v799_v42  ;;  %v12368_v1 = vld [vmem:[#allocation3 + $0x198] sm:$0xf]  ;;  %v5235_v5 = vsel %vm9779_vm14, %v5121_v31, %v5234_v27  ;;  %v12372_v39 = vld [vmem:[#allocation3 + $0x194] sm:$0xf]  ;;  %6798 = vmatprep.subr.bf16.mxu1 %v14276_v8 }
 0x325   : > { %14277 = vst [vmem:[#allocation41_spill] sm:$0xff] %v12368_v1  ;;  %v8332_v56 = vpack.c.bf16 %v4269_v22, %v4269_v22  ;;  %14278 = vst [vmem:[#allocation40_spill] sm:$0xff] %v12372_v39  ;;  %v3840_v23 = vpop.f32.mrb[104].mxu0  ;;  %v580_v19 = vld [vmem:[#allocation3 + $0x70] sm:$0x8] }
 0x326   : > { %5236 = vst [vmem:[#allocation3 + $0x274] sm:$0xf] %v5235_v5  ;;  %v4090_v28 = vadd.f32 %v11946_v16, %v3840_v23  ;;  %v3842_v10 = vpop.f32.mrb[105].mxu0  ;;  %v861_v63 = vld [vmem:[#allocation3 + $0x148] sm:$0x8]  ;;  %v581_v31 = vsel %vm9550_vm6, 0, %v580_v19 }
 0x327   : > { %4470 = vst.msk [vmem:[#allocation3 + $0x1a4] sm:$0xf] %vm330_vm0, %v8332_v56  ;;  %v4765_v33 = vshrl.u32 %v8332_v56, 16  ;;  %v4768_v21 = vshll.u32 %v8332_v56, 16  ;;  %v3843_v62 = vpop.f32.mrb[106].mxu0  ;;  %v862_v22 = vsel %vm9550_vm6, 0, %v861_v63  ;;  %6799 = vmatpush1.bf16.msra.mxu1 %v8952_v43 }
 0x328   : > { %5258 = vst.msk [vmem:[#allocation3 + $0x1a4] sm:$0xf] %vm330_vm0, %v14276_v8  ;;  %v4155_v36 = vmul.f32 %v12293_v59, %v4090_v28  ;;  %v3845_v27 = vpop.f32.mrb[107].mxu0  ;;  %v1079_v16 = vld [vmem:[#allocation3 + $0x21c] sm:$0x1]  ;;  %6800 = vmatprep.subr.bf16.mxu1 %v14276_v8  ;;  %v8955_v23 = vld [vmem:[%s13952_s4 + $0x20] sm:$0xff]  }
 0x329   : > { %v12384_v47 = vrot.slane %v4765_v33, 7  ;;  %v5122_v38 = vrot.slane %v4765_v33, 4  ;;  %v4959_v41 = vld [vmem:[#allocation3 + $0xcc] sm:$0xf]  ;;  %v5123_v6 = vrot.slane %v4768_v21, 5  ;;  %v1080_v42 = vsel %vm9260_vm3, 0, %v1079_v16 }
 0x32a   : > { %v4216_v5 = vadd.f32 %v12311_v20, %v4155_v36  ;;  %582 = vst [vmem:[#allocation3 + $0x70] sm:$0x8] %v581_v31  ;;  %863 = vst [vmem:[#allocation3 + $0x148] sm:$0x8] %v862_v22  ;;  %v1142_v56 = vld [vmem:[#allocation3 + $0x220] sm:$0x8] }
 0x32b   : > { %v4770_v52 = vor.u32 %v4768_v21, %v12384_v47  ;;  %1081 = vst [vmem:[#allocation3 + $0x21c] sm:$0x1] %v1080_v42  ;;  %v1143_v33 = vsel %vm9550_vm6, 0, %v1142_v56  ;;  %v5124_v21 = vor.u32 %v5123_v6, %v5122_v38  ;;  %6801 = vmatpush1.bf16.msra.mxu1 %v8955_v23  ;;  %v12403_v62 = vld [vmem:[#allocation3 + $0x270] sm:$0xf]  ;;  %v8957_v27 = vld [vmem:[%s13952_s4 + $0x28] sm:$0xff]  }
 0x32c   : > { %v4270_v10 = vmax.f32 %v4216_v5, 0.0  ;;  %1144 = vst [vmem:[#allocation3 + $0x220] sm:$0x8] %v1143_v33  ;;  %14279 = vst [vmem:[#allocation44_spill] sm:$0xff] %v12403_v62  ;;  %6802 = vmatprep.subr.bf16.mxu1 %v14276_v8  ;;  %v8959_v5 = vld [vmem:[%s13952_s4 + $0x30] sm:$0xff]  }
 0x32d   : > { %v4960_v28 = vsel %vm9699_vm11, %v4770_v52, %v4959_v41  ;;  %v3881_v43 = vpop.f32.mrb[0].mxu0  ;;  %v12405_v19 = vld [vmem:[#allocation3 + $0x274] sm:$0xf]  ;;  %v5125_v52 = vrot.slane %v5124_v21, 4  ;;  %v4865_v9 = vld [vmem:[#allocation3 + $0x2c] sm:$0x1] }
 0x32e   : > { %4961 = vst [vmem:[#allocation3 + $0xcc] sm:$0xf] %v4960_v28  ;;  %14280 = vst [vmem:[#allocation48_spill] sm:$0xff] %v12405_v19  ;;  %v8333_v63 = vpack.c.bf16 %v4270_v10, %v4270_v10  ;;  %v4103_v3 = vmul.f32 %v12293_v59, %v3881_v43  ;;  %v8507_v36 = vpop.f32.mrb[1].mxu0  ;;  %v4771_v10 = vrot.slane %v12384_v47, 4  ;;  %v8962_v47 = vld [vmem:[%s13952_s4 + $0x38] sm:$0xff]  }
 0x32f   : > { %5254 = vst.msk [vmem:[#allocation3 + $0xcc] sm:$0xf] %vm330_vm0, %v14276_v8  ;;  %v3884_v16 = vpop.f32.mrb[2].mxu0  ;;  %6803 = vmatpush1.bf16.msra.mxu1 %v8957_v27  ;;  %v4963_v43 = vld [vmem:[#allocation3 + $0xd4] sm:$0x1] }
 0x330   : > { %4471 = vst.msk [vmem:[#allocation3 + $0x1a8] sm:$0xf] %vm330_vm0, %v8333_v63  ;;  %v4773_v41 = vshrl.u32 %v8333_v63, 16  ;;  %v4776_v6 = vshll.u32 %v8333_v63, 16  ;;  %v4164_v31 = vadd.f32 %v12311_v20, %v4103_v3  ;;  %v4104_v22 = vmul.f32 %v12293_v59, %v3884_v16  ;;  %v8508_v42 = vpop.f32.mrb[3].mxu0  ;;  %6804 = vmatprep.subr.bf16.mxu1 %v14276_v8 }
 0x331   : > { %5259 = vst.msk [vmem:[#allocation3 + $0x1a8] sm:$0xf] %vm330_vm0, %v14276_v8  ;;  %v5238_v16 = vld [vmem:[#allocation3 + $0x280] sm:$0xf] }
 0x332   : > { %v4775_v56 = vrot.slane %v4773_v41, 7  ;;  %v5126_v23 = vrot.slane %v4776_v6, 5  ;;  %v5128_v33 = vrot.slane %v4773_v41, 4  ;;  %v4218_v28 = vmax.f32 %v4164_v31, 0.0 }
 0x333   : > { %v4165_v63 = vadd.f32 %v12311_v20, %v4104_v22  ;;  %6805 = vmatpush1.bf16.msra.mxu1 %v8959_v5 }
 0x334   : > { %v4778_v21 = vor.u32 %v4776_v6, %v4775_v56  ;;  %v4780_v3 = vrot.slane %v4775_v56, 4  ;;  %v5127_v36 = vsel %vm9664_vm10, %v5125_v52, %v5126_v23  ;;  %v5129_v27 = vor.u32 %v5128_v33, %v5126_v23  ;;  %6806 = vmatprep.subr.bf16.mxu1 %v14276_v8 }
 0x335   : > { %5237 = vst.msk [vmem:[#allocation3 + $0x27c] sm:$0xf] %vm330_vm0, %v5127_v36  ;;  %v8298_v42 = vpack.c.bf16 %v4218_v28, %v4218_v28  ;;  %v4219_v38 = vmax.f32 %v4165_v63, 0.0  ;;  %v3889_v41 = vpop.f32.mrb[4].mxu0  ;;  %v8964_v36 = vld [vmem:[%s13952_s4 + $0x40] sm:$0xff]  }
 0x336   : > { %v4779_v31 = vsel %vm9741_vm13, %v4771_v10, %v4778_v21  ;;  %v4964_v6 = vsel %vm9260_vm3, %v4780_v3, %v4963_v43  ;;  %v5130_v22 = vrot.slane %v5129_v27, 4  ;;  %5262 = vst.msk [vmem:[#allocation3 + $0x27c] sm:$0xf] %vm330_vm0, %v14276_v8  ;;  %v8511_v52 = vpop.f32.mrb[5].mxu0  ;;  %v4838_v27 = vld [vmem:[#allocation3] sm:$0xf] }
 0x337   : > { %4962 = vst.msk [vmem:[#allocation3 + $0xd0] sm:$0xf] %vm330_vm0, %v4779_v31  ;;  %4965 = vst [vmem:[#allocation3 + $0xd4] sm:$0x1] %v4964_v6  ;;  %v4476_v5 = vshrl.u32 %v8298_v42, 16  ;;  %v4479_v56 = vshll.u32 %v8298_v42, 16  ;;  %v8299_v23 = vpack.c.bf16 %v4219_v38, %v4219_v38  ;;  %6807 = vmatpush1.bf16.msra.mxu1 %v8962_v47 }
 0x338   : > { %4436 = vst.msk [vmem:[#allocation3 + $0xd8] sm:$0xf] %vm330_vm0, %v8298_v42  ;;  %v3892_v33 = vpop.f32.mrb[6].mxu0  ;;  %v5239_v28 = vsel %vm9779_vm14, %v5130_v22, %v5238_v16  ;;  %5255 = vst.msk [vmem:[#allocation3 + $0xd0] sm:$0xf] %vm330_vm0, %v14276_v8  ;;  %6808 = vmatprep.subr.bf16.mxu1 %v14276_v8 }
 0x339   : > { %5256 = vst.msk [vmem:[#allocation3 + $0xd4] sm:$0xf] %vm330_vm0, %v14276_v8  ;;  %5247 = vst.msk [vmem:[#allocation3 + $0xd8] sm:$0xf] %vm330_vm0, %v14276_v8  ;;  %v4106_v10 = vmul.f32 %v12293_v59, %v3892_v33  ;;  %v8512_v43 = vpop.f32.mrb[7].mxu0  ;;  %v4478_v63 = vrot.slane %v4476_v5, 7 }
 0x33a   : > { %5240 = vst [vmem:[#allocation3 + $0x280] sm:$0xf] %v5239_v28  ;;  %v4969_v21 = vrot.slane %v4476_v5, 4  ;;  %v4970_v38 = vrot.slane %v4479_v56, 5  ;;  %4437 = vst.msk [vmem:[#allocation3 + $0xdc] sm:$0xf] %vm330_vm0, %v8299_v23 }
 0x33b   : > { %v4484_v3 = vshrl.u32 %v8299_v23, 16  ;;  %5263 = vst.msk [vmem:[#allocation3 + $0x280] sm:$0xf] %vm330_vm0, %v14276_v8  ;;  %v4487_v16 = vshll.u32 %v8299_v23, 16  ;;  %5248 = vst.msk [vmem:[#allocation3 + $0xdc] sm:$0xf] %vm330_vm0, %v14276_v8  ;;  %v4167_v42 = vadd.f32 %v12311_v20, %v4106_v10  ;;  %v4481_v41 = vor.u32 %v4479_v56, %v4478_v63  ;;  %6809 = vmatpush1.bf16.msra.mxu1 %v8964_v36 }
 0x33c   : > { %v4971_v31 = vor.u32 %v4970_v38, %v4969_v21  ;;  %v4482_v47 = vrot.slane %v4478_v63, 4  ;;  %v4844_v22 = vld [vmem:[#allocation3 + $0x8] sm:$0x1]  ;;  %v8968_v10 = vld [vmem:[%s13952_s4 + $0x48] sm:$0xff]   ;;  %v5170_v21 = vld [vmem:[#allocation3 + $0x1b4] sm:$0xf]  ;;  %6810 = vmatprep.subr.bf16.mxu1 %v14276_v8 }
 0x33d   : > { %v4486_v6 = vrot.slane %v4484_v3, 7  ;;  %v4973_v52 = vrot.slane %v4487_v16, 5  ;;  %v4975_v5 = vrot.slane %v4484_v3, 4  ;;  %v4221_v33 = vmax.f32 %v4167_v42, 0.0  ;;  %v3897_v7 = vpop.f32.mrb[8].mxu0 }
 0x33e   : > { %v4839_v28 = vsel %vm9699_vm11, %v4481_v41, %v4838_v27  ;;  %v4972_v43 = vrot.slane %v4971_v31, 4  ;;  %v4107_v38 = vmul.f32 %v12293_v59, %v3897_v7  ;;  %v8515_v3 = vpop.f32.mrb[9].mxu0  ;;  %v8970_v7 = vld [vmem:[%s13952_s4 + $0x50] sm:$0xff]  }
 0x33f   : > { %v4489_v23 = vor.u32 %v4487_v16, %v4486_v6  ;;  %v4491_v29 = vrot.slane %v4486_v6, 4  ;;  %4840 = vst [vmem:[#allocation3] sm:$0xf] %v4839_v28  ;;  %v4976_v56 = vor.u32 %v4975_v5, %v4973_v52  ;;  %v8300_v63 = vpack.c.bf16 %v4221_v33, %v4221_v33  ;;  %v3900_v42 = vpop.f32.mrb[10].mxu0  ;;  %6811 = vmatpush1.bf16.msra.mxu1 %v8968_v10  ;;  %v5321_v3 = vld [vmem:[#allocation3 + $0xe0] sm:$0xf] }
 0x340   : > { %5244 = vst.msk [vmem:[#allocation3] sm:$0xf] %vm330_vm0, %v14276_v8  ;;  %v4974_v16 = vsel %vm9664_vm10, %v4972_v43, %v4973_v52  ;;  %6812 = vmatprep.subr.bf16.mxu1 %v14276_v8  ;;  %v4847_v43 = vld [vmem:[#allocation3 + $0xc] sm:$0xf] }
 0x341   : > { %v4490_v27 = vsel %vm9741_vm13, %v4482_v47, %v4489_v23  ;;  %v4845_v36 = vsel %vm9260_vm3, %v4491_v29, %v4844_v22  ;;  %v4977_v41 = vrot.slane %v4976_v56, 4  ;;  %5168 = vst.msk [vmem:[#allocation3 + $0x1b0] sm:$0xf] %vm330_vm0, %v4974_v16  ;;  %4438 = vst.msk [vmem:[#allocation3 + $0xe4] sm:$0xf] %vm330_vm0, %v8300_v63  ;;  %v4493_v31 = vshrl.u32 %v8300_v63, 16 }
 0x342   : > { %4841 = vst.msk [vmem:[#allocation3 + $0x4] sm:$0xf] %vm330_vm0, %v4490_v27  ;;  %4846 = vst [vmem:[#allocation3 + $0x8] sm:$0x1] %v4845_v36  ;;  %v4496_v6 = vshll.u32 %v8300_v63, 16  ;;  %v4168_v29 = vadd.f32 %v12311_v20, %v4107_v38  ;;  %v8516_v47 = vpop.f32.mrb[11].mxu0 }
 0x343   : > { %5245 = vst.msk [vmem:[#allocation3 + $0x4] sm:$0xf] %vm330_vm0, %v14276_v8  ;;  %5246 = vst.msk [vmem:[#allocation3 + $0x8] sm:$0xf] %vm330_vm0, %v14276_v8  ;;  %v8927_v22 = vld [vmem:[#allocation3 + $0xd8] sm:$0xff]   ;;  %v5171_v52 = vsel %vm9779_vm14, %v4977_v41, %v5170_v21  ;;  %v4495_v5 = vrot.slane %v4493_v31, 7  ;;  %6813 = vmatpush1.bf16.msra.mxu1 %v8970_v7 }
 0x344   : > { %5250 = vst.msk [vmem:[#allocation3 + $0x1b0] sm:$0xf] %vm330_vm0, %v14276_v8  ;;  %v4978_v33 = vrot.slane %v4493_v31, 4  ;;  %v4979_v28 = vrot.slane %v4496_v6, 5  ;;  %5172 = vst [vmem:[#allocation3 + $0x1b4] sm:$0xf] %v5171_v52  ;;  %5667 = vrot.lane.b32.xlu1 %v8927_v22, %s9158_s22  ;;  %6814 = vmatprep.subr.bf16.mxu1 %v14276_v8 }
 0x345   : > { %v4222_v23 = vmax.f32 %v4168_v29, 0.0  ;;  %5251 = vst.msk [vmem:[#allocation3 + $0x1b4] sm:$0xf] %vm330_vm0, %v14276_v8  ;;  %v4498_v56 = vor.u32 %v4496_v6, %v4495_v5  ;;  %v3905_v10 = vpop.f32.mrb[12].mxu0  ;;  %v8973_v21 = vld [vmem:[%s13952_s4 + $0x58] sm:$0xff]  }
 0x346   : > { %v4980_v63 = vor.u32 %v4979_v28, %v4978_v33  ;;  %v4109_v36 = vmul.f32 %v12293_v59, %v3905_v10  ;;  %v8519_v16 = vpop.f32.mrb[13].mxu0 }
 0x347   : > { %v8301_v38 = vpack.c.bf16 %v4222_v23, %v4222_v23  ;;  %v4848_v27 = vsel %vm9699_vm11, %v4498_v56, %v4847_v43  ;;  %v3908_v31 = vpop.f32.mrb[14].mxu0  ;;  %6815 = vmatpush1.bf16.msra.mxu1 %v8973_v21  ;;  %v8976_v23 = vld [vmem:[%s13952_s4 + $0x60] sm:$0xff]   ;;  %v4499_v56 = vrot.slane %v4495_v5, 4 }
 0x348   : > { %4849 = vst [vmem:[#allocation3 + $0xc] sm:$0xf] %v4848_v27  ;;  %v12503_v6 = vld [vmem:[#allocation3 + $0xe4] sm:$0xf]  ;;  %v4170_v7 = vadd.f32 %v12311_v20, %v4109_v36  ;;  %v4110_v29 = vmul.f32 %v12293_v59, %v3908_v31  ;;  %v8520_v47 = vpop.f32.mrb[15].mxu0  ;;  %v4981_v52 = vrot.slane %v4980_v63, 4  ;;  %6816 = vmatprep.subr.bf16.mxu1 %v14276_v8 }
 0x349   : > { %4439 = vst.msk [vmem:[#allocation3 + $0xe8] sm:$0xf] %vm330_vm0, %v8301_v38  ;;  %v4501_v42 = vshrl.u32 %v8301_v38, 16  ;;  %v4504_v41 = vshll.u32 %v8301_v38, 16  ;;  %v8088_v22 = vcombine.low %v5321_v3, %v12503_v6  ;;  %v4851_v38 = vld [vmem:[#allocation3 + $0x14] sm:$0x1] }
 0x34a   : > { %v4224_v10 = vmax.f32 %v4170_v7, 0.0  ;;  %v4171_v27 = vadd.f32 %v12311_v20, %v4110_v29  ;;  %v12517_v47 = vld [vmem:[#allocation3 + $0xec] sm:$0xf] }
 0x34b   : > { %v4503_v33 = vrot.slane %v4501_v42, 7  ;;  %v4982_v28 = vrot.slane %v4504_v41, 5  ;;  %v4984_v43 = vrot.slane %v4501_v42, 4  ;;  %5669 = vrot.lane.b32.xlu1 %v8088_v22, %s9158_s22  ;;  %v5174_v42 = vld [vmem:[#allocation3 + $0x1c0] sm:$0xf]  ;;  %6817 = vmatpush1.bf16.msra.mxu1 %v8976_v23 }
 0x34c   : > { %v8929_v21 = vld [vmem:[#allocation3 + $0x1b0] sm:$0xff]   ;;  %v8302_v31 = vpack.c.bf16 %v4224_v10, %v4224_v10  ;;  %v4225_v5 = vmax.f32 %v4171_v27, 0.0  ;;  %6818 = vmatprep.subr.bf16.mxu1 %v14276_v8 }
 0x34d   : > { %v4506_v36 = vor.u32 %v4504_v41, %v4503_v33  ;;  %v4508_v3 = vrot.slane %v4503_v33, 4  ;;  %v4983_v63 = vsel %vm9664_vm10, %v4981_v52, %v4982_v28  ;;  %v4985_v16 = vor.u32 %v4984_v43, %v4982_v28  ;;  %v3913_v22 = vpop.f32.mrb[16].mxu0  ;;  %v8979_v52 = vld [vmem:[%s13952_s4 + $0x68] sm:$0xff]  }
 0x34e   : > { %5173 = vst.msk [vmem:[#allocation3 + $0x1bc] sm:$0xf] %vm330_vm0, %v4983_v63  ;;  %4440 = vst.msk [vmem:[#allocation3 + $0xf0] sm:$0xf] %vm330_vm0, %v8302_v31  ;;  %v4510_v33 = vshrl.u32 %v8302_v31, 16  ;;  %v4513_v28 = vshll.u32 %v8302_v31, 16  ;;  %v8303_v43 = vpack.c.bf16 %v4225_v5, %v4225_v5 }
 0x34f   : > { %v4507_v7 = vsel %vm9741_vm13, %v4499_v56, %v4506_v36  ;;  %v4852_v29 = vsel %vm9260_vm3, %v4508_v3, %v4851_v38  ;;  %v4986_v41 = vrot.slane %v4985_v16, 4  ;;  %5835 = vrot.lane.b32.xlu1 %v8929_v21, %s9157_s16  ;;  %v8523_v56 = vpop.f32.mrb[17].mxu0  ;;  %v4854_v5 = vld [vmem:[#allocation3 + $0x18] sm:$0xf]  ;;  %6819 = vmatpush1.bf16.msra.mxu1 %v8979_v52 }
 0x350   : > { %4850 = vst.msk [vmem:[#allocation3 + $0x10] sm:$0xf] %vm330_vm0, %v4507_v7  ;;  %4853 = vst [vmem:[#allocation3 + $0x14] sm:$0x1] %v4852_v29  ;;  %v12529_v10 = vld [vmem:[#allocation3 + $0xe8] sm:$0xf]  ;;  %6820 = vmatprep.subr.bf16.mxu1 %v14276_v8 }
 0x351   : > { %v5175_v23 = vsel %vm9779_vm14, %v4986_v41, %v5174_v42  ;;  %v3916_v38 = vpop.f32.mrb[18].mxu0  ;;  %v8089_v27 = vcombine.low %v12529_v10, %v12517_v47  ;;  %v4512_v3 = vrot.slane %v4510_v33, 7  ;;  %v4987_v63 = vrot.slane %v4510_v33, 4  ;;  %4441 = vst.msk [vmem:[#allocation3 + $0xf4] sm:$0xf] %vm330_vm0, %v8303_v43  ;;  %v8981_v42 = vld [vmem:[%s13952_s4 + $0x70] sm:$0xff]  }
 0x352   : > { %5176 = vst [vmem:[#allocation3 + $0x1c0] sm:$0xf] %v5175_v23  ;;  %v4988_v16 = vrot.slane %v4513_v28, 5  ;;  %v4518_v21 = vshrl.u32 %v8303_v43, 16  ;;  %v8524_v31 = vpop.f32.mrb[19].mxu0  ;;  %v4521_v7 = vshll.u32 %v8303_v43, 16  ;;  %v4112_v29 = vmul.f32 %v12293_v59, %v3916_v38 }
 0x353   : > { %v4515_v41 = vor.u32 %v4513_v28, %v4512_v3  ;;  %v4858_v23 = vld [vmem:[#allocation3 + $0x20] sm:$0x1]  ;;  %5671 = vrot.lane.b32.xlu1 %v8089_v27, %s9158_s22  ;;  %v5375_v33 = vld [vmem:[#allocation3 + $0x1b8] sm:$0xf]  ;;  %v4516_v4 = vrot.slane %v4512_v3, 4  ;;  %6821 = vmatpush1.bf16.msra.mxu1 %v8981_v42  ;;  %v8984_v42 = vld [vmem:[%s13952_s4 + $0x78] sm:$0xff]  }
 0x354   : > { %v4989_v22 = vor.u32 %v4988_v16, %v4987_v63  ;;  %v4520_v56 = vrot.slane %v4518_v21, 7  ;;  %v4991_v31 = vrot.slane %v4521_v7, 5  ;;  %v4993_v36 = vrot.slane %v4518_v21, 4  ;;  %v5178_v63 = vld [vmem:[#allocation3 + $0x1cc] sm:$0xf]  ;;  %6822 = vmatprep.subr.bf16.mxu1 %v14276_v8 }
 0x355   : > { %v4173_v43 = vadd.f32 %v12311_v20, %v4112_v29  ;;  %v5376_v38 = vld [vmem:[#allocation3 + $0x1bc] sm:$0xf]  ;;  %v4855_v52 = vsel %vm9699_vm11, %v4515_v41, %v4854_v5  ;;  %v3921_v27 = vpop.f32.mrb[20].mxu0  ;;  %v12550_v3 = vld [vmem:[#allocation3 + $0xf8] sm:$0xf] }
 0x356   : > { %v4990_v19 = vrot.slane %v4989_v22, 4  ;;  %v4523_v62 = vor.u32 %v4521_v7, %v4520_v56  ;;  %v4525_v28 = vrot.slane %v4520_v56, 4  ;;  %4856 = vst [vmem:[#allocation3 + $0x18] sm:$0xf] %v4855_v52  ;;  %v4994_v16 = vor.u32 %v4993_v36, %v4991_v31  ;;  %v8527_v36 = vpop.f32.mrb[21].mxu0 }
 0x357   : > { %v4227_v32 = vmax.f32 %v4173_v43, 0.0  ;;  %v8112_v1 = vcombine.low %v5375_v33, %v5376_v38  ;;  %v12548_v39 = vld [vmem:[#allocation3 + $0x10] sm:$0xf]  ;;  %v4113_v29 = vmul.f32 %v12293_v59, %v3921_v27  ;;  %v12561_v22 = vld [vmem:[#allocation3 + $0x14] sm:$0xf]  ;;  %6823 = vmatpush1.bf16.msra.mxu1 %v8984_v42 }
 0x358   : > { %v4524_v21 = vsel %vm9741_vm13, %v4516_v4, %v4523_v62  ;;  %v4859_v5 = vsel %vm9260_vm3, %v4525_v28, %v4858_v23  ;;  %v4992_v7 = vsel %vm9664_vm10, %v4990_v19, %v4991_v31  ;;  %v12559_v41 = vld [vmem:[#allocation3 + $0xf0] sm:$0xf]  ;;  %v4995_v4 = vrot.slane %v4994_v16, 4  ;;  %v3924_v19 = vpop.f32.mrb[22].mxu0  ;;  %v12570_v23 = vld [vmem:[#allocation3 + $0xf4] sm:$0xf] }
 0x359   : > { %4857 = vst.msk [vmem:[#allocation3 + $0x1c] sm:$0xf] %vm330_vm0, %v4524_v21  ;;  %4860 = vst [vmem:[#allocation3 + $0x20] sm:$0x1] %v4859_v5  ;;  %v8304_v62 = vpack.c.bf16 %v4227_v32, %v4227_v32  ;;  %5837 = vrot.lane.b32.xlu1 %v8112_v1, %s9157_s16  ;;  %v5377_v56 = vld [vmem:[#allocation3 + $0x1c0] sm:$0xf]  ;;  %v4174_v33 = vadd.f32 %v12311_v20, %v4113_v29  ;;  %v8090_v42 = vcombine.low %v12559_v41, %v12570_v23 }
 0x35a   : > { %5177 = vst.msk [vmem:[#allocation3 + $0x1c8] sm:$0xf] %vm330_vm0, %v4992_v7  ;;  %v8528_v31 = vpop.f32.mrb[23].mxu0  ;;  %v8183_v43 = vcombine.low %v5376_v38, %v5377_v56  ;;  %v5268_v52 = vld [vmem:[#allocation3 + $0xc] sm:$0xf]  ;;  %v5179_v28 = vsel %vm9779_vm14, %v4995_v4, %v5178_v63 }
 0x35b   : > { %4442 = vst.msk [vmem:[#allocation3 + $0xfc] sm:$0xf] %vm330_vm0, %v8304_v62  ;;  %v4527_v32 = vshrl.u32 %v8304_v62, 16  ;;  %v4530_v16 = vshll.u32 %v8304_v62, 16  ;;  %v8135_v1 = vcombine.low %v5268_v52, %v12548_v39  ;;  %5180 = vst [vmem:[#allocation3 + $0x1cc] sm:$0xf] %v5179_v28 }
 0x35c   : > { %v4228_v27 = vmax.f32 %v4174_v33, 0.0  ;;  %6021 = vrot.lane.b32.xlu0 %v8183_v43, %s9158_s22  ;;  %v5378_v21 = vld [vmem:[#allocation3 + $0x1c4] sm:$0xf] }
 0x35d   : > { %v4529_v7 = vrot.slane %v4527_v32, 7  ;;  %v4996_v63 = vrot.slane %v4527_v32, 4  ;;  %v4997_v29 = vrot.slane %v4530_v16, 5  ;;  %5913 = vrot.lane.b32.xlu1 %v8135_v1, %s9156_s10  ;;  %v4861_v36 = vld [vmem:[#allocation3 + $0x24] sm:$0xf]  ;;  %v3929_v33 = vpop.f32.mrb[24].mxu0  ;;  %v8113_v31 = vcombine.low %v5377_v56, %v5378_v21 }
 0x35e   : > { %v8305_v4 = vpack.c.bf16 %v4228_v27, %v4228_v27  ;;  %v5271_v43 = vld [vmem:[#allocation3 + $0x18] sm:$0xf]  ;;  %v4115_v32 = vmul.f32 %v12293_v59, %v3929_v33  ;;  %v8531_v8 = vpop.f32.mrb[25].mxu0 }
 0x35f   : > { %v4532_v62 = vor.u32 %v4530_v16, %v4529_v7  ;;  %v4998_v19 = vor.u32 %v4997_v29, %v4996_v63  ;;  %v3932_v16 = vpop.f32.mrb[26].mxu0  ;;  %v4533_v8 = vrot.slane %v4529_v7, 4 }
 0x360   : > { %4443 = vst.msk [vmem:[#allocation3 + $0x100] sm:$0xf] %vm330_vm0, %v8305_v4  ;;  %v4535_v52 = vshrl.u32 %v8305_v4, 16  ;;  %v4538_v28 = vshll.u32 %v8305_v4, 16  ;;  %6135 = vrot.lane.b32.xlu0 %v8090_v42, %s9156_s10  ;;  %v12590_v1 = vld [vmem:[#allocation3 + $0x1c] sm:$0xf]  ;;  %v4176_v5 = vadd.f32 %v12311_v20, %v4115_v32  ;;  %v4116_v45 = vmul.f32 %v12293_v59, %v3932_v16 }
 0x361   : > { %v4862_v27 = vsel %vm9699_vm11, %v4532_v62, %v4861_v36  ;;  %v4999_v38 = vrot.slane %v4998_v19, 4  ;;  %5839 = vrot.lane.b32.xlu1 %v8113_v31, %s9157_s16  ;;  %v12596_v56 = vcombine.low %v5271_v43, %v12590_v1  ;;  %v8532_v33 = vpop.f32.mrb[27].mxu0  ;;  %v12600_v54 = vld [vmem:[#allocation3 + $0x1c8] sm:$0xf] }
 0x362   : > { %4863 = vst [vmem:[#allocation3 + $0x24] sm:$0xf] %v4862_v27  ;;  %v4537_v63 = vrot.slane %v4535_v52, 7  ;;  %v5000_v29 = vrot.slane %v4538_v28, 5  ;;  %v5002_v4 = vrot.slane %v4535_v52, 4  ;;  %v4230_v32 = vmax.f32 %v4176_v5, 0.0 }
 0x363   : > { %v5182_v52 = vld [vmem:[#allocation3 + $0x1d8] sm:$0xf]  ;;  %v4177_v7 = vadd.f32 %v12311_v20, %v4116_v45  ;;  %v8136_v45 = vcombine.low %v12561_v22, %v5271_v43 }
 0x364   : > { %v4540_v36 = vor.u32 %v4538_v28, %v4537_v63  ;;  %v4542_v62 = vrot.slane %v4537_v63, 4  ;;  %v5001_v19 = vsel %vm9664_vm10, %v4999_v38, %v5000_v29  ;;  %v5003_v31 = vor.u32 %v5002_v4, %v5000_v29  ;;  %6078 = vrot.lane.b32.xlu0 %v12596_v56, %s9157_s16  ;;  %v12614_v63 = vld [vmem:[#allocation3 + $0x20] sm:$0xf] }
 0x365   : > { %5181 = vst.msk [vmem:[#allocation3 + $0x1d4] sm:$0xf] %vm330_vm0, %v5001_v19  ;;  %5673 = vrot.lane.b32.xlu1 %v8090_v42, %s9158_s22  ;;  %v8184_v38 = vcombine.low %v5378_v21, %v12600_v54  ;;  %v8306_v29 = vpack.c.bf16 %v4230_v32, %v4230_v32  ;;  %v4231_v5 = vmax.f32 %v4177_v7, 0.0  ;;  %v3937_v4 = vpop.f32.mrb[28].mxu0  ;;  %v12618_v42 = vld [vmem:[#allocation3 + $0xfc] sm:$0xf]  ;;  %v8137_v7 = vcombine.low %v12590_v1, %v12614_v63 }
 0x366   : > { %v4541_v27 = vsel %vm9741_vm13, %v4533_v8, %v4540_v36  ;;  %v4866_v28 = vsel %vm9260_vm3, %v4542_v62, %v4865_v9  ;;  %v5004_v16 = vrot.slane %v5003_v31, 4  ;;  %v8535_v21 = vpop.f32.mrb[29].mxu0  ;;  %v4872_v8 = vld [vmem:[#allocation3 + $0x38] sm:$0x1] }
 0x367   : > { %4864 = vst.msk [vmem:[#allocation3 + $0x28] sm:$0xf] %vm330_vm0, %v4541_v27  ;;  %4867 = vst [vmem:[#allocation3 + $0x2c] sm:$0x1] %v4866_v28  ;;  %v12620_v33 = vld [vmem:[#allocation3 + $0x100] sm:$0xf]  ;;  %v8307_v19 = vpack.c.bf16 %v4231_v5, %v4231_v5 }
 0x368   : > { %v5183_v9 = vsel %vm9779_vm14, %v5004_v16, %v5182_v52  ;;  %6023 = vrot.lane.b32.xlu0 %v8184_v38, %s9158_s22  ;;  %4444 = vst.msk [vmem:[#allocation3 + $0x108] sm:$0xf] %vm330_vm0, %v8306_v29  ;;  %v4544_v36 = vshrl.u32 %v8306_v29, 16  ;;  %v4547_v62 = vshll.u32 %v8306_v29, 16  ;;  %v3940_v43 = vpop.f32.mrb[30].mxu0  ;;  %v8091_v52 = vcombine.low %v12550_v3, %v12618_v42 }
 0x369   : > { %5184 = vst [vmem:[#allocation3 + $0x1d8] sm:$0xf] %v5183_v9  ;;  %5915 = vrot.lane.b32.xlu1 %v8136_v45, %s9156_s10  ;;  %v4118_v31 = vmul.f32 %v12293_v59, %v3940_v43  ;;  %v8536_v32 = vpop.f32.mrb[31].mxu0  ;;  %v5380_v27 = vld [vmem:[#allocation3 + $0x1cc] sm:$0xf]  ;;  %v4552_v29 = vshrl.u32 %v8307_v19, 16 }
 0x36a   : > { %v12634_v28 = vld [vmem:[#allocation3 + $0x1d0] sm:$0xf]  ;;  %v4546_v16 = vrot.slane %v4544_v36, 7  ;;  %v5005_v38 = vrot.slane %v4544_v36, 4  ;;  %v5006_v4 = vrot.slane %v4547_v62, 5  ;;  %v4555_v45 = vshll.u32 %v8307_v19, 16 }
 0x36b   : > { %4445 = vst.msk [vmem:[#allocation3 + $0x10c] sm:$0xf] %vm330_vm0, %v8307_v19  ;;  %v4868_v5 = vld [vmem:[#allocation3 + $0x30] sm:$0xf]  ;;  %v4179_v59 = vadd.f32 %v12311_v20, %v4118_v31  ;;  %v4554_v43 = vrot.slane %v4552_v29, 7  ;;  %v8185_v1 = vcombine.low %v5380_v27, %v12634_v28  ;;  %v5011_v17 = vrot.slane %v4552_v29, 4 }
 0x36c   : > { %6137 = vrot.lane.b32.xlu0 %v8091_v52, %s9156_s10  ;;  %v4549_v9 = vor.u32 %v4547_v62, %v4546_v16  ;;  %v5007_v21 = vor.u32 %v5006_v4, %v5005_v38  ;;  %v12641_v32 = vld [vmem:[#allocation3 + $0x104] sm:$0xf]  ;;  %v4550_v36 = vrot.slane %v4546_v16, 4  ;;  %v5009_v12 = vrot.slane %v4555_v45, 5 }
 0x36d   : > { %5917 = vrot.lane.b32.xlu1 %v8137_v7, %s9156_s10  ;;  %v4233_v30 = vmax.f32 %v4179_v59, 0.0  ;;  %v4557_v31 = vor.u32 %v4555_v45, %v4554_v43  ;;  %v4559_v61 = vrot.slane %v4554_v43, 4  ;;  %v3945_v62 = vpop.f32.mrb[32].mxu0  ;;  %v12649_v7 = vld [vmem:[%s13950_s2] ss:$0 sm:$0xff] }
 0x36e   : > { %v4869_v19 = vsel %vm9699_vm11, %v4549_v9, %v4868_v5  ;;  %v5008_v20 = vrot.slane %v5007_v21, 4  ;;  %v5012_v38 = vor.u32 %v5011_v17, %v5009_v12  ;;  %v4119_v16 = vmul.f32 %v12649_v7, %v3945_v62  ;;  %v8539_v29 = vpop.f32.mrb[33].mxu0  ;;  %v5186_v17 = vld [vmem:[#allocation3 + $0x1e4] sm:$0xf]  ;;  %v12663_v43 = vld [vmem:[#allocation3 + $0x110] sm:$0xf] }
 0x36f   : > { %4870 = vst [vmem:[#allocation3 + $0x30] sm:$0xf] %v4869_v19  ;;  %v8308_v4 = vpack.c.bf16 %v4233_v30, %v4233_v30  ;;  %v12652_v59 = vld [vmem:[#allocation3 + $0x108] sm:$0xf]  ;;  %v4558_v5 = vsel %vm9741_vm13, %v4550_v36, %v4557_v31  ;;  %v4873_v45 = vsel %vm9260_vm3, %v4559_v61, %v4872_v8  ;;  %v3948_v9 = vpop.f32.mrb[34].mxu0  ;;  %v8092_v21 = vcombine.low %v12620_v33, %v12641_v32 }
 0x370   : > { %6025 = vrot.lane.b32.xlu0 %v8185_v1, %s9158_s22  ;;  %v5010_v30 = vsel %vm9664_vm10, %v5008_v20, %v5009_v12  ;;  %14281 = vst [vmem:[#allocation54_spill] sm:$0xff] %v12663_v43  ;;  %4871 = vst.msk [vmem:[#allocation3 + $0x34] sm:$0xf] %vm330_vm0, %v4558_v5  ;;  %v5013_v1 = vrot.slane %v5012_v38, 4  ;;  %v12671_v12 = vld [vmem:[%s13951_s3] ss:$0 sm:$0xff]  ;;  %v12677_v20 = vcombine.low %v12600_v54, %v5380_v27 }
 0x371   : > { %5675 = vrot.lane.b32.xlu1 %v8091_v52, %s9158_s22  ;;  %4874 = vst [vmem:[#allocation3 + $0x38] sm:$0x1] %v4873_v45  ;;  %5185 = vst.msk [vmem:[#allocation3 + $0x1e0] sm:$0xf] %vm330_vm0, %v5010_v30  ;;  %v4561_v61 = vshrl.u32 %v8308_v4, 16  ;;  %v4564_v8 = vshll.u32 %v8308_v4, 16  ;;  %v4180_v52 = vadd.f32 %v12671_v12, %v4119_v16 }
 0x372   : > { %4446 = vst.msk [vmem:[#allocation3 + $0x114] sm:$0xf] %vm330_vm0, %v8308_v4  ;;  %v8540_v36 = vpop.f32.mrb[35].mxu0  ;;  %v12674_v19 = vld [vmem:[#allocation3 + $0x10c] sm:$0xf]  ;;  %14282 = vst [vmem:[#allocation11_spill] sm:$0xff] %v12677_v20  ;;  %v5187_v38 = vsel %vm9779_vm14, %v5013_v1, %v5186_v17 }
 0x373   : > { %v12679_v31 = vld [vmem:[#allocation3 + $0x24] sm:$0xf]  ;;  %v4563_v4 = vrot.slane %v4561_v61, 7  ;;  %v5014_v29 = vrot.slane %v4561_v61, 4  ;;  %v5015_v5 = vrot.slane %v4564_v8, 5  ;;  %v4234_v45 = vmax.f32 %v4180_v52, 0.0 }
 0x374   : > { %6139 = vrot.lane.b32.xlu0 %v8092_v21, %s9156_s10  ;;  %5188 = vst [vmem:[#allocation3 + $0x1e4] sm:$0xf] %v5187_v38  ;;  %v4875_v16 = vld [vmem:[#allocation3 + $0x3c] sm:$0xf]  ;;  %v12692_v30 = vcombine.low %v12614_v63, %v12679_v31  ;;  %v5382_v17 = vld [vmem:[#allocation3 + $0x1d4] sm:$0xf] }
 0x375   : > { %5841 = vrot.lane.b32.xlu1 %v12677_v20, %s9157_s16  ;;  %v4566_v27 = vor.u32 %v4564_v8, %v4563_v4  ;;  %v5016_v9 = vor.u32 %v5015_v5, %v5014_v29  ;;  %v8309_v1 = vpack.c.bf16 %v4234_v45, %v4234_v45  ;;  %v3953_v61 = vpop.f32.mrb[36].mxu0  ;;  %v5275_v36 = vld [vmem:[#allocation3 + $0x28] sm:$0xf]  ;;  %v12694_v62 = vld [vmem:[#allocation3 + $0x2c] sm:$0xf] }
 0x376   : > { %v4121_v38 = vmul.f32 %v12649_v7, %v3953_v61  ;;  %v8543_v8 = vpop.f32.mrb[37].mxu0  ;;  %v5383_v46 = vld [vmem:[#allocation3 + $0x1d8] sm:$0xf] }
 0x377   : > { %v4876_v52 = vsel %vm9699_vm11, %v4566_v27, %v4875_v16  ;;  %4447 = vst.msk [vmem:[#allocation3 + $0x118] sm:$0xf] %vm330_vm0, %v8309_v1  ;;  %v4569_v63 = vshrl.u32 %v8309_v1, 16  ;;  %v4572_v54 = vshll.u32 %v8309_v1, 16  ;;  %v3956_v29 = vpop.f32.mrb[38].mxu0  ;;  %v12706_v16 = vcombine.low %v5275_v36, %v12694_v62 }
 0x378   : > { %6080 = vrot.lane.b32.xlu0 %v12692_v30, %s9157_s16  ;;  %4877 = vst [vmem:[#allocation3 + $0x3c] sm:$0xf] %v4876_v52  ;;  %v4182_v5 = vadd.f32 %v12671_v12, %v4121_v38  ;;  %v4122_v45 = vmul.f32 %v12649_v7, %v3956_v29  ;;  %v8544_v20 = vpop.f32.mrb[39].mxu0  ;;  %v12709_v27 = vcombine.low %v12634_v28, %v5382_v17  ;;  %v5017_v61 = vrot.slane %v5016_v9, 4  ;;  %v5190_v9 = vld [vmem:[#allocation3 + $0x1f0] sm:$0xf] }
 0x379   : > { %5677 = vrot.lane.b32.xlu1 %v8092_v21, %s9158_s22  ;;  %14283 = vst [vmem:[#allocation50_spill] sm:$0xff] %v12706_v16  ;;  %v4571_v52 = vrot.slane %v4569_v63, 7  ;;  %v5018_v8 = vrot.slane %v4572_v54, 5  ;;  %v5020_v11 = vrot.slane %v4569_v63, 4  ;;  %v4567_v1 = vrot.slane %v4563_v4, 4 }
 0x37a   : > { %14284 = vst [vmem:[#allocation14_spill] sm:$0xff] %v12709_v27  ;;  %v4236_v21 = vmax.f32 %v4182_v5, 0.0  ;;  %v4183_v44 = vadd.f32 %v12671_v12, %v4122_v45  ;;  %v8186_v5 = vcombine.low %v5382_v17, %v5383_v46  ;;  %v12756_v24 = vld [vmem:[#allocation3 + $0x1e0] sm:$0xf] }
 0x37b   : > { %v4574_v20 = vor.u32 %v4572_v54, %v4571_v52  ;;  %v4576_v38 = vrot.slane %v4571_v52, 4  ;;  %v5019_v29 = vsel %vm9664_vm10, %v5017_v61, %v5018_v8  ;;  %v5021_v28 = vor.u32 %v5020_v11, %v5018_v8  ;;  %v12724_v11 = vld [vmem:[#allocation3 + $0x1dc] sm:$0xf]  ;;  %v12726_v8 = vld [vmem:[#allocation3 + $0x114] sm:$0xf] }
 0x37c   : > { %6082 = vrot.lane.b32.xlu0 %v12706_v16, %s9157_s16  ;;  %5189 = vst.msk [vmem:[#allocation3 + $0x1ec] sm:$0xf] %vm330_vm0, %v5019_v29  ;;  %v8310_v4 = vpack.c.bf16 %v4236_v21, %v4236_v21  ;;  %v4237_v63 = vmax.f32 %v4183_v44, 0.0  ;;  %v8138_v61 = vcombine.low %v12679_v31, %v5275_v36  ;;  %14285 = vst [vmem:[#allocation16_spill] sm:$0xff] %v12726_v8 }
 0x37d   : > { %5843 = vrot.lane.b32.xlu1 %v12709_v27, %s9157_s16  ;;  %v4575_v45 = vsel %vm9741_vm13, %v4567_v1, %v4574_v20  ;;  %v4880_v54 = vsel %vm9260_vm3, %v4576_v38, %v4879_v34  ;;  %v5022_v52 = vrot.slane %v5021_v28, 4  ;;  %v3961_v37 = vpop.f32.mrb[40].mxu0  ;;  %v8093_v36 = vcombine.low %v12652_v59, %v12674_v19  ;;  %v12738_v20 = vld [vmem:[#allocation3 + $0x34] sm:$0xf]  ;;  %v4886_v38 = vld [vmem:[#allocation3 + $0x50] sm:$0x1] }
 0x37e   : > { %4878 = vst.msk [vmem:[#allocation3 + $0x40] sm:$0xf] %vm330_vm0, %v4575_v45  ;;  %4881 = vst [vmem:[#allocation3 + $0x44] sm:$0x1] %v4880_v54  ;;  %v4578_v44 = vshrl.u32 %v8310_v4, 16  ;;  %v4581_v17 = vshll.u32 %v8310_v4, 16  ;;  %v8311_v21 = vpack.c.bf16 %v4237_v63, %v4237_v63 }
 0x37f   : > { %4448 = vst.msk [vmem:[#allocation3 + $0x120] sm:$0xf] %vm330_vm0, %v8310_v4  ;;  %v8547_v1 = vpop.f32.mrb[41].mxu0  ;;  %v12731_v34 = vld [vmem:[#allocation3 + $0x118] sm:$0xf]  ;;  %v5191_v37 = vsel %vm9779_vm14, %v5022_v52, %v5190_v9  ;;  %v12745_v52 = vcombine.low %v5383_v46, %v12724_v11 }
 0x380   : > { %6027 = vrot.lane.b32.xlu0 %v8186_v5, %s9158_s22  ;;  %14286 = vst [vmem:[#allocation15_spill] sm:$0xff] %v12731_v34  ;;  %v3964_v31 = vpop.f32.mrb[42].mxu0  ;;  %5192 = vst [vmem:[#allocation3 + $0x1f0] sm:$0xf] %v5191_v37  ;;  %v4580_v29 = vrot.slane %v4578_v44, 7  ;;  %v5023_v28 = vrot.slane %v4578_v44, 4 }
 0x381   : > { %5919 = vrot.lane.b32.xlu1 %v8138_v61, %s9156_s10  ;;  %v5024_v4 = vrot.slane %v4581_v17, 5  ;;  %4449 = vst.msk [vmem:[#allocation3 + $0x124] sm:$0xf] %vm330_vm0, %v8311_v21  ;;  %v4586_v63 = vshrl.u32 %v8311_v21, 16  ;;  %v8548_v5 = vpop.f32.mrb[43].mxu0  ;;  %v4589_v45 = vshll.u32 %v8311_v21, 16  ;;  %v4124_v54 = vmul.f32 %v12649_v7, %v3964_v31 }
 0x382   : > { %v4882_v9 = vld [vmem:[#allocation3 + $0x48] sm:$0xf]  ;;  %14287 = vst [vmem:[#allocation47_spill] sm:$0xff] %v12745_v52  ;;  %v5277_v61 = vld [vmem:[#allocation3 + $0x30] sm:$0xf]  ;;  %v4583_v1 = vor.u32 %v4581_v17, %v4580_v29  ;;  %v4584_v37 = vrot.slane %v4580_v29, 4 }
 0x383   : > { %v5025_v27 = vor.u32 %v5024_v4, %v5023_v28  ;;  %v4588_v2 = vrot.slane %v4586_v63, 7  ;;  %v12749_v44 = vcombine.low %v5277_v61, %v12738_v20  ;;  %v5027_v50 = vrot.slane %v4589_v45, 5 }
 0x384   : > { %6141 = vrot.lane.b32.xlu0 %v8093_v36, %s9156_s10  ;;  %v5029_v5 = vrot.slane %v4586_v63, 4  ;;  %v4185_v21 = vadd.f32 %v12671_v12, %v4124_v54  ;;  %v4883_v46 = vsel %vm9699_vm11, %v4583_v1, %v4882_v9 }
 0x385   : > { %14288 = vst [vmem:[#allocation19_spill] sm:$0xff] %v12749_v44  ;;  %5845 = vrot.lane.b32.xlu1 %v12745_v52, %s9157_s16  ;;  %v5026_v17 = vrot.slane %v5025_v27, 4  ;;  %v4591_v31 = vor.u32 %v4589_v45, %v4588_v2  ;;  %v4593_v28 = vrot.slane %v4588_v2, 4  ;;  %4884 = vst [vmem:[#allocation3 + $0x48] sm:$0xf] %v4883_v46  ;;  %v3969_v53 = vpop.f32.mrb[44].mxu0  ;;  %v8139_v46 = vcombine.low %v12694_v62, %v5277_v61 }
 0x386   : > { %v5030_v4 = vor.u32 %v5029_v5, %v5027_v50  ;;  %v4239_v58 = vmax.f32 %v4185_v21, 0.0  ;;  %v5194_v52 = vld [vmem:[#allocation3 + $0x1fc] sm:$0xf]  ;;  %v4125_v2 = vmul.f32 %v12649_v7, %v3969_v53  ;;  %v8551_v27 = vpop.f32.mrb[45].mxu0  ;;  %v12767_v9 = vld [vmem:[#allocation3 + $0x120] sm:$0xf]  ;;  %v8187_v21 = vcombine.low %v12724_v11, %v12756_v24 }
 0x387   : > { %v4592_v29 = vsel %vm9741_vm13, %v4584_v37, %v4591_v31  ;;  %v4887_v63 = vsel %vm9260_vm3, %v4593_v28, %v4886_v38  ;;  %v5028_v54 = vsel %vm9664_vm10, %v5026_v17, %v5027_v50  ;;  %v3972_v38 = vpop.f32.mrb[46].mxu0  ;;  %v12774_v37 = vld [vmem:[#allocation3 + $0x128] sm:$0xf]  ;;  %v12780_v17 = vld [vmem:[#allocation3 + $0x11c] sm:$0xf] }
 0x388   : > { %6084 = vrot.lane.b32.xlu0 %v12749_v44, %s9157_s16  ;;  %4885 = vst.msk [vmem:[#allocation3 + $0x4c] sm:$0xf] %vm330_vm0, %v4592_v29  ;;  %4888 = vst [vmem:[#allocation3 + $0x50] sm:$0x1] %v4887_v63  ;;  %v5031_v45 = vrot.slane %v5030_v4, 4  ;;  %v8312_v1 = vpack.c.bf16 %v4239_v58, %v4239_v58  ;;  %v4186_v5 = vadd.f32 %v12671_v12, %v4125_v2  ;;  %v8552_v53 = vpop.f32.mrb[47].mxu0 }
 0x389   : > { %5193 = vst.msk [vmem:[#allocation3 + $0x1f8] sm:$0xf] %vm330_vm0, %v5028_v54  ;;  %5679 = vrot.lane.b32.xlu1 %v8093_v36, %s9158_s22  ;;  %v12772_v50 = vld [vmem:[#allocation3 + $0x124] sm:$0xf]  ;;  %14289 = vst [vmem:[#allocation27_spill] sm:$0xff] %v12780_v17  ;;  %v8094_v2 = vcombine.low %v12663_v43, %v12726_v8 }
 0x38a   : > { %v5195_v58 = vsel %vm9779_vm14, %v5031_v45, %v5194_v52  ;;  %4450 = vst.msk [vmem:[#allocation3 + $0x12c] sm:$0xf] %vm330_vm0, %v8312_v1  ;;  %v4595_v36 = vshrl.u32 %v8312_v1, 16  ;;  %v4598_v31 = vshll.u32 %v8312_v1, 16  ;;  %v4240_v4 = vmax.f32 %v4186_v5, 0.0 }
 0x38b   : > { %5196 = vst [vmem:[#allocation3 + $0x1fc] sm:$0xf] %v5195_v58  ;;  %v12788_v29 = vld [vmem:[#allocation3 + $0x38] sm:$0xf]  ;;  %v4889_v52 = vld [vmem:[#allocation3 + $0x54] sm:$0xf] }
 0x38c   : > { %6029 = vrot.lane.b32.xlu0 %v8187_v21, %s9158_s22  ;;  %v4597_v11 = vrot.slane %v4595_v36, 7  ;;  %v5032_v61 = vrot.slane %v4595_v36, 4  ;;  %v5033_v63 = vrot.slane %v4598_v31, 5  ;;  %v8313_v54 = vpack.c.bf16 %v4240_v4, %v4240_v4  ;;  %v5386_v27 = vld [vmem:[#allocation3 + $0x1e4] sm:$0xf] }
 0x38d   : > { %5921 = vrot.lane.b32.xlu1 %v8139_v46, %s9156_s10  ;;  %v12795_v45 = vld [vmem:[#allocation3 + $0x1e8] sm:$0xf]  ;;  %v3977_v5 = vpop.f32.mrb[48].mxu0  ;;  %v8140_v53 = vcombine.low %v12738_v20, %v12788_v29  ;;  %v12877_v43 = vld [vmem:[#allocation3 + $0x134] sm:$0xf] }
 0x38e   : > { %v4600_v1 = vor.u32 %v4598_v31, %v4597_v11  ;;  %v5034_v38 = vor.u32 %v5033_v63, %v5032_v61  ;;  %4451 = vst.msk [vmem:[#allocation3 + $0x130] sm:$0xf] %vm330_vm0, %v8313_v54  ;;  %v4603_v21 = vshrl.u32 %v8313_v54, 16  ;;  %v4606_v58 = vshll.u32 %v8313_v54, 16  ;;  %v8555_v36 = vpop.f32.mrb[49].mxu0 }
 0x38f   : > { %v4127_v46 = vmul.f32 %v12649_v7, %v3977_v5  ;;  %v3980_v31 = vpop.f32.mrb[50].mxu0  ;;  %v8188_v61 = vcombine.low %v5386_v27, %v12795_v45  ;;  %v4601_v18 = vrot.slane %v4597_v11, 4 }
 0x390   : > { %6143 = vrot.lane.b32.xlu0 %v8094_v2, %s9156_s10  ;;  %v4890_v4 = vsel %vm9699_vm11, %v4600_v1, %v4889_v52  ;;  %v5035_v62 = vrot.slane %v5034_v38, 4  ;;  %v4605_v20 = vrot.slane %v4603_v21, 7  ;;  %v5036_v63 = vrot.slane %v4606_v58, 5  ;;  %v8556_v26 = vpop.f32.mrb[51].mxu0  ;;  %v12814_v38 = vld [vmem:[%s13952_s4 + $0x80] sm:$0xff]  }
 0x391   : > { %5923 = vrot.lane.b32.xlu1 %v8140_v53, %s9156_s10  ;;  %4891 = vst [vmem:[#allocation3 + $0x54] sm:$0xf] %v4890_v4  ;;  %v5038_v28 = vrot.slane %v4603_v21, 4  ;;  %v4188_v54 = vadd.f32 %v12671_v12, %v4127_v46  ;;  %v4128_v5 = vmul.f32 %v12649_v7, %v3980_v31  ;;  %v5198_v26 = vld [vmem:[#allocation3 + $0x208] sm:$0xf]  ;;  %8613 = vmatprep.subr.bf16.mxu1 %v12814_v38 }
 0x392   : > { %v4608_v36 = vor.u32 %v4606_v58, %v4605_v20  ;;  %v4610_v44 = vrot.slane %v4605_v20, 4  ;;  %v5037_v52 = vsel %vm9664_vm10, %v5035_v62, %v5036_v63  ;;  %v8095_v58 = vcombine.low %v12731_v34, %v12780_v17  ;;  %v12825_v46 = vld [vmem:[#allocation3 + $0x3c] sm:$0xf]  ;;  %v5389_v34 = vld [vmem:[#allocation3 + $0x1f0] sm:$0xf] }
 0x393   : > { %v5039_v1 = vor.u32 %v5038_v28, %v5036_v63  ;;  %5197 = vst.msk [vmem:[#allocation3 + $0x204] sm:$0xf] %vm330_vm0, %v5037_v52  ;;  %v4242_v11 = vmax.f32 %v4188_v54, 0.0  ;;  %v4189_v53 = vadd.f32 %v12671_v12, %v4128_v5  ;;  %v12846_v52 = vld [vmem:[#allocation3 + $0x1ec] sm:$0xf] }
 0x394   : > { %6031 = vrot.lane.b32.xlu0 %v8188_v61, %s9158_s22  ;;  %v4609_v21 = vsel %vm9741_vm13, %v4601_v18, %v4608_v36  ;;  %v4894_v28 = vsel %vm9260_vm3, %v4610_v44, %v4893_v49  ;;  %v12830_v61 = vcombine.low %v12756_v24, %v5386_v27  ;;  %v12832_v18 = vld [vmem:[#allocation3 + $0x12c] sm:$0xf]  ;;  %v12836_v44 = vpop.permute.xlu0 %6159 }
 0x395   : > { %5681 = vrot.lane.b32.xlu1 %v8094_v2, %s9158_s22  ;;  %v5040_v62 = vrot.slane %v5039_v1, 4  ;;  %4892 = vst.msk [vmem:[#allocation3 + $0x58] sm:$0xf] %vm330_vm0, %v4609_v21  ;;  %4895 = vst [vmem:[#allocation3 + $0x5c] sm:$0x1] %v4894_v28  ;;  %v8314_v4 = vpack.c.bf16 %v4242_v11, %v4242_v11  ;;  %v4243_v31 = vmax.f32 %v4189_v53, 0.0  ;;  %v12851_v11 = vcombine.low %v12788_v29, %v12825_v46 }
 0x396   : > { %v3985_v2 = vpop.f32.mrb[52].mxu0  ;;  %14290 = vst [vmem:[#allocation29_spill] sm:$0xff] %v12830_v61  ;;  %v12834_v49 = vld [vmem:[#allocation3 + $0x130] sm:$0xf]  ;;  %14291 = vst [vmem:[#allocation34_spill] sm:$0xff] %v12836_v44  ;;  %v12865_v29 = vcombine.low %v12795_v45, %v12846_v52 }
 0x397   : > { %v5199_v20 = vsel %vm9779_vm14, %v5040_v62, %v5198_v26  ;;  %v8559_v63 = vpop.f32.mrb[53].mxu0  ;;  %4452 = vst.msk [vmem:[#allocation3 + $0x138] sm:$0xf] %vm330_vm0, %v8314_v4  ;;  %v4612_v24 = vshrl.u32 %v8314_v4, 16  ;;  %v4615_v27 = vshll.u32 %v8314_v4, 16  ;;  %v8315_v5 = vpack.c.bf16 %v4243_v31, %v4243_v31  ;;  %14292 = vst [vmem:[#allocation39_spill] sm:$0xff] %v12851_v11 }
 0x398   : > { %6145 = vrot.lane.b32.xlu0 %v8095_v58, %s9156_s10  ;;  %5200 = vst [vmem:[#allocation3 + $0x208] sm:$0xf] %v5199_v20  ;;  %v3988_v36 = vpop.f32.mrb[54].mxu0  ;;  %v12853_v53 = vld [vmem:[#allocation3 + $0x40] sm:$0xf]  ;;  %v12858_v2 = vpop.permute.xlu0 %6102  ;;  %14294 = vst [vmem:[#allocation45_spill] sm:$0xff] %v12865_v29 }
 0x399   : > { %5847 = vrot.lane.b32.xlu1 %v12830_v61, %s9157_s16  ;;  %v4130_v1 = vmul.f32 %v12649_v7, %v3988_v36  ;;  %v8560_v26 = vpop.f32.mrb[55].mxu0  ;;  %v12855_v21 = vld [vmem:[#allocation3 + $0x44] sm:$0xf]  ;;  %v4614_v28 = vrot.slane %v4612_v24, 7  ;;  %v5041_v62 = vrot.slane %v4612_v24, 4  ;;  %v5042_v4 = vrot.slane %v4615_v27, 5 }
 0x39a   : > { %4453 = vst.msk [vmem:[#allocation3 + $0x13c] sm:$0xf] %vm330_vm0, %v8315_v5  ;;  %v4620_v31 = vshrl.u32 %v8315_v5, 16  ;;  %14293 = vst [vmem:[#allocation42_spill] sm:$0xff] %v12858_v2  ;;  %v4896_v20 = vld [vmem:[#allocation3 + $0x60] sm:$0xf]  ;;  %v12870_v44 = vcombine.low %v12853_v53, %v12855_v21 }
 0x39b   : > { %v4623_v63 = vshll.u32 %v8315_v5, 16  ;;  %v4191_v36 = vadd.f32 %v12671_v12, %v4130_v1  ;;  %v4617_v26 = vor.u32 %v4615_v27, %v4614_v28  ;;  %v5043_v54 = vor.u32 %v5042_v4, %v5041_v62  ;;  %v4900_v61 = vld [vmem:[#allocation3 + $0x68] sm:$0x1] }
 0x39c   : > { %6086 = vrot.lane.b32.xlu0 %v12851_v11, %s9157_s16  ;;  %v4622_v24 = vrot.slane %v4620_v31, 7  ;;  %v4618_v5 = vrot.slane %v4614_v28, 4  ;;  %v5047_v1 = vrot.slane %v4620_v31, 4 }
 0x39d   : > { %5683 = vrot.lane.b32.xlu1 %v8095_v58, %s9158_s22  ;;  %v5045_v2 = vrot.slane %v4623_v63, 5  ;;  %v4245_v17 = vmax.f32 %v4191_v36, 0.0  ;;  %v4897_v11 = vsel %vm9699_vm11, %v4617_v26, %v4896_v20  ;;  %v5044_v45 = vrot.slane %v5043_v54, 4  ;;  %v3993_v62 = vpop.f32.mrb[56].mxu0  ;;  %v12890_v36 = vld [vmem:[#allocation3 + $0x140] sm:$0xf]  ;;  %v12892_v26 = vpop.permute.xlu0 %6047 }
 0x39e   : > { %v4625_v8 = vor.u32 %v4623_v63, %v4622_v24  ;;  %v4627_v27 = vrot.slane %v4622_v24, 4  ;;  %4898 = vst [vmem:[#allocation3 + $0x60] sm:$0xf] %v4897_v11  ;;  %v4131_v58 = vmul.f32 %v12649_v7, %v3993_v62  ;;  %v8563_v28 = vpop.f32.mrb[57].mxu0  ;;  %v12879_v31 = vld [vmem:[#allocation3 + $0x138] sm:$0xf]  ;;  %v8189_v7 = vcombine.low %v12846_v52, %v5389_v34 }
 0x39f   : > { %v5048_v4 = vor.u32 %v5047_v1, %v5045_v2  ;;  %v8316_v16 = vpack.c.bf16 %v4245_v17, %v4245_v17  ;;  %v5046_v11 = vsel %vm9664_vm10, %v5044_v45, %v5045_v2  ;;  %v5202_v17 = vld [vmem:[#allocation3 + $0x214] sm:$0xf]  ;;  %v3996_v63 = vpop.f32.mrb[58].mxu0  ;;  %14295 = vst [vmem:[#allocation49_spill] sm:$0xff] %v12892_v26  ;;  %v8141_v52 = vcombine.low %v12825_v46, %v12853_v53 }
 0x3a0   : > { %6088 = vrot.lane.b32.xlu0 %v12870_v44, %s9157_s16  ;;  %v4626_v20 = vsel %vm9741_vm13, %v4618_v5, %v4625_v8  ;;  %v4901_v54 = vsel %vm9260_vm3, %v4627_v27, %v4900_v61  ;;  %5201 = vst.msk [vmem:[#allocation3 + $0x210] sm:$0xf] %vm330_vm0, %v5046_v11  ;;  %v4192_v24 = vadd.f32 %v12671_v12, %v4131_v58  ;;  %v8564_v5 = vpop.f32.mrb[59].mxu0  ;;  %v4903_v12 = vld [vmem:[#allocation3 + $0x6c] sm:$0xf] }
 0x3a1   : > { %5849 = vrot.lane.b32.xlu1 %v12865_v29, %s9157_s16  ;;  %4899 = vst.msk [vmem:[#allocation3 + $0x64] sm:$0xf] %vm330_vm0, %v4626_v20  ;;  %4902 = vst [vmem:[#allocation3 + $0x68] sm:$0x1] %v4901_v54  ;;  %v5049_v8 = vrot.slane %v5048_v4, 4  ;;  %v4629_v61 = vshrl.u32 %v8316_v16, 16  ;;  %v8096_v20 = vcombine.low %v12767_v9, %v12772_v50  ;;  %v12922_v5 = vpop.permute.xlu1 %5697 }
 0x3a2   : > { %4454 = vst.msk [vmem:[#allocation3 + $0x144] sm:$0xf] %vm330_vm0, %v8316_v16  ;;  %v4632_v2 = vshll.u32 %v8316_v16, 16  ;;  %v12898_v1 = vld [vmem:[#allocation3 + $0x13c] sm:$0xf]  ;;  %v4246_v58 = vmax.f32 %v4192_v24, 0.0 }
 0x3a3   : > { %v5203_v27 = vsel %vm9779_vm14, %v5049_v8, %v5202_v17  ;;  %v4631_v62 = vrot.slane %v4629_v61, 7  ;;  %v5050_v4 = vrot.slane %v4629_v61, 4  ;;  %v5390_v16 = vld [vmem:[#allocation3 + $0x1f4] sm:$0xf]  ;;  %v5284_v63 = vld [vmem:[#allocation3 + $0x4c] sm:$0xf]  ;;  %v12914_v8 = vpop.permute.xlu0 %6161 }
 0x3a4   : > { %v5051_v28 = vrot.slane %v4632_v2, 5  ;;  %6033 = vrot.lane.b32.xlu0 %v8189_v7, %s9158_s22  ;;  %5204 = vst [vmem:[#allocation3 + $0x214] sm:$0xf] %v5203_v27  ;;  %v8317_v11 = vpack.c.bf16 %v4246_v58, %v4246_v58  ;;  %v12912_v17 = vcombine.low %v5389_v34, %v5390_v16  ;;  %14297 = vst [vmem:[#allocation57_spill] sm:$0xff] %v12914_v8  ;;  %v5283_v24 = vld [vmem:[#allocation3 + $0x48] sm:$0xf] }
 0x3a5   : > { %5925 = vrot.lane.b32.xlu1 %v8141_v52, %s9156_s10  ;;  %v4634_v53 = vor.u32 %v4632_v2, %v4631_v62  ;;  %14298 = vst [vmem:[#allocation52_spill] sm:$0xff] %v12922_v5  ;;  %v12924_v34 = vcombine.low %v5283_v24, %v5284_v63  ;;  %v4907_v58 = vld [vmem:[#allocation3 + $0x74] sm:$0x1]  ;;  %v12931_v45 = vpop.permute.xlu1 %5941  ;;  %v8142_v13 = vcombine.low %v12855_v21, %v5283_v24 }
 0x3a6   : > { %v5052_v54 = vor.u32 %v5051_v28, %v5050_v4  ;;  %14296 = vst [vmem:[#allocation56_spill] sm:$0xff] %v12912_v17  ;;  %4455 = vst.msk [vmem:[#allocation3 + $0x148] sm:$0xf] %vm330_vm0, %v8317_v11  ;;  %v4637_v61 = vshrl.u32 %v8317_v11, 16  ;;  %v4640_v2 = vshll.u32 %v8317_v11, 16  ;;  %v8097_v21 = vcombine.low %v12774_v37, %v12832_v18 }
 0x3a7   : > { %v4904_v7 = vsel %vm9699_vm11, %v4634_v53, %v4903_v12  ;;  %v5391_v28 = vld [vmem:[#allocation3 + $0x1f8] sm:$0xf]  ;;  %v4635_v12 = vrot.slane %v4631_v62, 4  ;;  %14299 = vst [vmem:[#allocation8_spill] sm:$0xff] %v12931_v45  ;;  %v8965_v45 = vld [vmem:[#allocation3] sm:$0xff]  }
 0x3a8   : > { %6147 = vrot.lane.b32.xlu0 %v8096_v20, %s9156_s10  ;;  %4905 = vst [vmem:[#allocation3 + $0x6c] sm:$0xf] %v4904_v7  ;;  %v5053_v52 = vrot.slane %v5052_v54, 4  ;;  %v4639_v27 = vrot.slane %v4637_v61, 7  ;;  %v5054_v4 = vrot.slane %v4640_v2, 5  ;;  %v5056_v48 = vrot.slane %v4637_v61, 4  ;;  %v12933_v54 = vpop.permute.xlu0 %6049 }
 0x3a9   : > { %5851 = vrot.lane.b32.xlu1 %v12912_v17, %s9157_s16  ;;  %14300 = vst [vmem:[#allocation53_spill] sm:$0xff] %v12933_v54  ;;  %v5206_v61 = vld [vmem:[#allocation3 + $0x220] sm:$0xf]  ;;  %v8190_v62 = vcombine.low %v5390_v16, %v5391_v28  ;;  %v12954_v24 = vpop.permute.xlu1 %5865 }
 0x3aa   : > { %v4642_v53 = vor.u32 %v4640_v2, %v4639_v27  ;;  %v4644_v11 = vrot.slane %v4639_v27, 4  ;;  %v5055_v7 = vsel %vm9664_vm10, %v5053_v52, %v5054_v4  ;;  %v5057_v46 = vor.u32 %v5056_v48, %v5054_v4  ;;  %v12943_v52 = vld [vmem:[#allocation3 + $0x144] sm:$0xf]  ;;  %14303 = vst [vmem:[#allocation10_spill] sm:$0xff] %v12954_v24 }
 0x3ab   : > { %5205 = vst.msk [vmem:[#allocation3 + $0x21c] sm:$0xf] %vm330_vm0, %v5055_v7  ;;  %14301 = vst [vmem:[#allocation9_spill] sm:$0xff] %v12943_v52 }
 0x3ac   : > { %6090 = vrot.lane.b32.xlu0 %v12924_v34, %s9157_s16  ;;  %v4643_v17 = vsel %vm9741_vm13, %v4635_v12, %v4642_v53  ;;  %v4908_v2 = vsel %vm9260_vm3, %v4644_v11, %v4907_v58  ;;  %v5058_v27 = vrot.slane %v5057_v46, 4  ;;  %v5392_v46 = vld [vmem:[#allocation3 + $0x1fc] sm:$0xf]  ;;  %v12956_v48 = vpop.permute.xlu0 %6163  ;;  %v5286_v11 = vld [vmem:[#allocation3 + $0x54] sm:$0xf] }
 0x3ad   : > { %5685 = vrot.lane.b32.xlu1 %v8096_v20, %s9158_s22  ;;  %4906 = vst.msk [vmem:[#allocation3 + $0x70] sm:$0xf] %vm330_vm0, %v4643_v17  ;;  %4909 = vst [vmem:[#allocation3 + $0x74] sm:$0x1] %v4908_v2  ;;  %v5285_v20 = vld [vmem:[#allocation3 + $0x50] sm:$0xf]  ;;  %v12966_v53 = vcombine.low %v5391_v28, %v5392_v46 }
 0x3ae   : > { %v12945_v4 = vld [vmem:[#allocation3 + $0x148] sm:$0xf]  ;;  %v5207_v25 = vsel %vm9779_vm14, %v5058_v27, %v5206_v61  ;;  %v8143_v16 = vcombine.low %v5284_v63, %v5285_v20  ;;  %v5393_v17 = vld [vmem:[#allocation3 + $0x200] sm:$0xf]  ;;  %14304 = vst [vmem:[#allocation46_spill] sm:$0xff] %v12956_v48  ;;  %v8098_v63 = vcombine.low %v12834_v49, %v12877_v43  ;;  %v12973_v61 = vcombine.low %v5285_v20, %v5286_v11 }
 0x3af   : > { %14302 = vst [vmem:[#allocation7_spill] sm:$0xff] %v12945_v4  ;;  %5208 = vst [vmem:[#allocation3 + $0x220] sm:$0xf] %v5207_v25  ;;  %v8191_v40 = vcombine.low %v5392_v46, %v5393_v17  ;;  %v5288_v2 = vld [vmem:[#allocation3 + $0x5c] sm:$0xf]  ;;  %v14313_v48 = vcombine.low %v12503_v6, %v12529_v10 }
 0x3b0   : > { %6035 = vrot.lane.b32.xlu0 %v8190_v62, %s9158_s22  ;;  %v12962_v58 = vpop.permute.xlu0 %6104  ;;  %14306 = vst [vmem:[#allocation12_spill] sm:$0xff] %v12966_v53  ;;  %v5287_v62 = vld [vmem:[#allocation3 + $0x58] sm:$0xf] }
 0x3b1   : > { %5927 = vrot.lane.b32.xlu1 %v8142_v13, %s9156_s10  ;;  %14305 = vst [vmem:[#allocation43_spill] sm:$0xff] %v12962_v58  ;;  %v5394_v13 = vld [vmem:[#allocation3 + $0x204] sm:$0xf]  ;;  %v12980_v25 = vcombine.low %v5287_v62, %v5288_v2  ;;  %v8144_v0 = vcombine.low %v5286_v11, %v5287_v62  ;;  %v5289_v11 = vld [vmem:[#allocation3 + $0x60] sm:$0xf] }
 0x3b4   : > { %6149 = vrot.lane.b32.xlu0 %v8097_v21, %s9156_s10  ;;  %v12975_v27 = vpop.permute.xlu0 %6106 }
 0x3b5   : > { %5929 = vrot.lane.b32.xlu1 %v8143_v16, %s9156_s10  ;;  %14307 = vst [vmem:[#allocation58_spill] sm:$0xff] %v12975_v27  ;;  %v5395_v16 = vld [vmem:[#allocation3 + $0x208] sm:$0xf] }
 0x3b6   : > { %v5668_v12 = vpop.permute.xlu1 %5667 }
 0x3b8   : > { %6037 = vrot.lane.b32.xlu0 %v8191_v40, %s9158_s22  ;;  %v12988_v20 = vpop.permute.xlu0 %6051  ;;  %v8192_v40 = vcombine.low %v5394_v13, %v5395_v16 }
 0x3b9   : > { %5687 = vrot.lane.b32.xlu1 %v8097_v21, %s9158_s22  ;;  %v12982_v21 = vcombine.low %v5393_v17, %v5394_v13  ;;  %14309 = vst [vmem:[#allocation60_spill] sm:$0xff] %v12988_v20  ;;  %v8145_v20 = vcombine.low %v5288_v2, %v5289_v11 }
 0x3bb   : > { %14308 = vst [vmem:[#allocation59_spill] sm:$0xff] %v12982_v21 }
 0x3bc   : > { %6151 = vrot.lane.b32.xlu0 %v8098_v63, %s9156_s10  ;;  %v12994_v17 = vpop.permute.xlu0 %6108 }
 0x3bd   : > { %5853 = vrot.lane.b32.xlu1 %v12966_v53, %s9157_s16  ;;  %v12971_v7 = vpop.permute.xlu1 %5669  ;;  %14310 = vst [vmem:[#allocation61_spill] sm:$0xff] %v12994_v17  ;;  %v8099_v53 = vcombine.low %v12879_v31, %v12898_v1 }
 0x3c0   : > { %6092 = vrot.lane.b32.xlu0 %v12973_v61, %s9157_s16 }
 0x3c1   : > { %5689 = vrot.lane.b32.xlu1 %v8098_v63, %s9158_s22  ;;  %v5836_v28 = vpop.permute.xlu1 %5835  ;;  %v5396_v63 = vld [vmem:[#allocation3 + $0x20c] sm:$0xf] }
 0x3c2   : > { %v13000_v24 = vcombine.low %v5395_v16, %v5396_v63 }
 0x3c4   : > { %6094 = vrot.lane.b32.xlu0 %v12980_v25, %s9157_s16  ;;  %14311 = vst [vmem:[#allocation62_spill] sm:$0xff] %v13000_v24 }
 0x3c5   : > { %5855 = vrot.lane.b32.xlu1 %v12982_v21, %s9157_s16  ;;  %v12990_v46 = vpop.permute.xlu1 %5671  ;;  %v5290_v21 = vld [vmem:[#allocation3 + $0x64] sm:$0xf] }
 0x3c6   : > { %v13005_v13 = vcombine.low %v5289_v11, %v5290_v21  ;;  %v5398_v11 = vld [vmem:[#allocation3 + $0x214] sm:$0xf] }
 0x3c8   : > { %6039 = vrot.lane.b32.xlu0 %v8192_v40, %s9158_s22  ;;  %14312 = vst [vmem:[#allocation63_spill] sm:$0xff] %v13005_v13  ;;  %v5397_v40 = vld [vmem:[#allocation3 + $0x210] sm:$0xf] }
 0x3c9   : > { %5931 = vrot.lane.b32.xlu1 %v8144_v0, %s9156_s10  ;;  %v8193_v16 = vcombine.low %v5396_v63, %v5397_v40  ;;  %v6194_v63 = vsel %vm2938_vm15, %v8965_v45, %v5668_v12  ;;  %v13031_v12 = vld [vmem:[#allocation3 + $0x14c] sm:$0xf] }
 0x3cb   : > { %v12998_v29 = vpop.permute.xlu1 %5837 }
 0x3cc   : > { %6153 = vrot.lane.b32.xlu0 %v8099_v53, %s9156_s10 }
 0x3cd   : > { %5857 = vrot.lane.b32.xlu1 %v13000_v24, %s9157_s16  ;;  %v5291_v24 = vld [vmem:[#allocation3 + $0x68] sm:$0xf] }
 0x3ce   : > { %v6022_v62 = vpop.permute.xlu0 %6021  ;;  %v8146_v2 = vcombine.low %v5290_v21, %v5291_v24  ;;  %v5292_v21 = vld [vmem:[#allocation3 + $0x6c] sm:$0xf] }
 0x3cf   : > { %v5914_v0 = vpop.permute.xlu1 %5913  ;;  %v6386_v27 = vsel %vm2938_vm15, %v14313_v48, %v6022_v62  ;;  %v13041_v62 = vcombine.low %v5291_v24, %v5292_v21  ;;  %v5400_v24 = vld [vmem:[#allocation3 + $0x21c] sm:$0xf] }
 0x3d0   : > { %6096 = vrot.lane.b32.xlu0 %v13005_v13, %s9157_s16 }
 0x3d1   : > { %5691 = vrot.lane.b32.xlu1 %v8099_v53, %s9158_s22  ;;  %v8100_v53 = vcombine.low %v12890_v36, %v12943_v52  ;;  %14315 = vst [vmem:[#allocation65_spill] sm:$0xff] %v13041_v62 }
 0x3d2   : > { %v6136_v5 = vpop.permute.xlu0 %6135 }
 0x3d3   : > { %v13010_v17 = vpop.permute.xlu1 %5839 }
 0x3d4   : > { %6041 = vrot.lane.b32.xlu0 %v8193_v16, %s9158_s22  ;;  %v5399_v16 = vld [vmem:[#allocation3 + $0x218] sm:$0xf] }
 0x3d5   : > { %5933 = vrot.lane.b32.xlu1 %v8145_v20, %s9156_s10  ;;  %v6265_v20 = vsel %vm3020_vm1, %v6194_v63, %v5836_v28  ;;  %v8194_v48 = vcombine.low %v5398_v11, %v5399_v16  ;;  %v13036_v28 = vcombine.low %v5397_v40, %v5398_v11  ;;  %v9054_v40 = vld [vmem:[#allocation3 + $0x168] sm:$0xf] }
 0x3d6   : > { %v6079_v54 = vpop.permute.xlu0 %6078  ;;  %v6313_v10 = vsel %vm3075_vm2, %v6265_v20, %v5914_v0 }
 0x3d7   : > { %v6457_v8 = vsel %vm3020_vm1, %v6386_v27, %v6079_v54  ;;  %v13022_v13 = vpop.permute.xlu1 %5673  ;;  %14314 = vst [vmem:[#allocation64_spill] sm:$0xff] %v13036_v28 }
 0x3d8   : > { %6155 = vrot.lane.b32.xlu0 %v8100_v53, %s9156_s10  ;;  %v6505_v6 = vsel %vm3075_vm2, %v6457_v8, %v6136_v5  ;;  %v8101_v8 = vcombine.low %v12945_v4, %v13031_v12 }
 0x3d9   : > { %5935 = vrot.lane.b32.xlu1 %v8146_v2, %s9156_s10  ;;  %6824 = vmatprep.mubr.bf16.mxu1 %v6505_v6  ;;  %v9055_v2 = vld [vmem:[#allocation3 + $0x16c] sm:$0xf]  ;;  %v5293_v6 = vld [vmem:[#allocation3 + $0x70] sm:$0xf] }
 0x3da   : > { %6825 = vmatmul.mubr.bf16.vlgmr.msra.gmra.mrb[48].mxu1 %v6313_v10  ;;  %v6024_v45 = vpop.permute.xlu0 %6023  ;;  %v13048_v11 = vcombine.low %v9054_v40, %v9055_v2  ;;  %v5294_v10 = vld [vmem:[#allocation3 + $0x74] sm:$0xf] }
 0x3db   : > { %v5916_v54 = vpop.permute.xlu1 %5915  ;;  %8614 = vmatpush3.bf16.msra.mxu1 %v12814_v38  ;;  %v13062_v58 = vcombine.low %v5293_v6, %v5294_v10 }
 0x3dc   : > { %6043 = vrot.lane.b32.xlu0 %v8194_v48, %s9158_s22  ;;  %v9056_v48 = vld [vmem:[#allocation3 + $0xc] sm:$0xf] }
 0x3dd   : > { %5693 = vrot.lane.b32.xlu1 %v8100_v53, %s9158_s22  ;;  %v5267_v53 = vld [vmem:[#allocation3 + $0x8] sm:$0xf] }
 0x3de   : > { %v6138_v27 = vpop.permute.xlu0 %6137 }
 0x3df   : > { %v5918_v5 = vpop.permute.xlu1 %5917 }
 0x3e0   : > { %6157 = vrot.lane.b32.xlu0 %v8101_v8, %s9156_s10 }
 0x3e1   : > { %5859 = vrot.lane.b32.xlu1 %v13036_v28, %s9157_s16  ;;  %v8064_v28 = vcombine.low %v5267_v53, %v9056_v48  ;;  %v13069_v53 = vcombine.low %v5399_v16, %v5400_v24  ;;  %v13071_v48 = vld [vmem:[#allocation3 + $0x240] sm:$0xf] }
 0x3e2   : > { %v6026_v38 = vpop.permute.xlu0 %6025 }
 0x3e3   : > { %v13043_v0 = vpop.permute.xlu1 %5675  ;;  %v6197_v4 = vsel %vm2938_vm15, %v8064_v28, %v12971_v7  ;;  %v14318_v7 = vcombine.low %v12570_v23, %v12550_v3  ;;  %v14319_v28 = vcombine.low %v12548_v39, %v12561_v22  ;;  %v13114_v39 = vld [vmem:[#allocation3 + $0x98] sm:$0xf] }
 0x3e4   : > { %6098 = vrot.lane.b32.xlu0 %v13041_v62, %s9157_s16  ;;  %v14317_v62 = vcombine.low %v12517_v47, %v12559_v41  ;;  %v13081_v41 = vld [vmem:[#allocation3 + $0x23c] sm:$0xf] }
 0x3e5   : > { %5695 = vrot.lane.b32.xlu1 %v8101_v8, %s9158_s22  ;;  %v14316_v8 = vcombine.low %v12095_v14, %v12110_v51  ;;  %v6267_v14 = vsel %vm3020_vm1, %v6197_v4, %v12998_v29  ;;  %v6392_v16 = vsel %vm2938_vm15, %v14318_v7, %v6026_v38  ;;  %v8199_v4 = vcombine.low %v13081_v41, %v13071_v48 }
 0x3e6   : > { %v6140_v63 = vpop.permute.xlu0 %6139  ;;  %v6389_v40 = vsel %vm2938_vm15, %v14317_v62, %v6024_v45  ;;  %v6316_v47 = vsel %vm3075_vm2, %v6267_v14, %v5916_v54  ;;  %v6200_v38 = vsel %vm2938_vm15, %v14319_v28, %v12990_v46  ;;  %v14321_v28 = vcombine.low %v12112_v35, %v12168_v55  ;;  %v9062_v35 = vld [vmem:[#allocation3 + $0x238] sm:$0xf] }
 0x3e7   : > { %v13050_v20 = vpop.permute.xlu1 %5841  ;;  %v13173_v55 = vcombine.low %v9062_v35, %v13081_v41 }
 0x3e8   : > { %6165 = vrot.lane.b32.xlu0 %v13048_v11, %s9156_s10 }
 0x3e9   : > { %5943 = vrot.lane.b32.xlu1 %v14316_v8, %s9156_s10  ;;  %v8147_v8 = vcombine.low %v5292_v21, %v5293_v6  ;;  %v9057_v21 = vld [vmem:[#allocation3 + $0x78] sm:$0xf] }
 0x3ea   : > { %v6081_v2 = vpop.permute.xlu0 %6080  ;;  %v8148_v6 = vcombine.low %v5294_v10, %v9057_v21  ;;  %v6203_v10 = vsel %vm2938_vm15, %v12596_v56, %v13022_v13 }
 0x3eb   : > { %v6459_v52 = vsel %vm3020_vm1, %v6389_v40, %v6081_v2  ;;  %v13067_v26 = vpop.permute.xlu1 %5677  ;;  %v13104_v40 = vld [vmem:[#allocation3 + $0x9c] sm:$0xf] }
 0x3ec   : > { %6100 = vrot.lane.b32.xlu0 %v13062_v58, %s9157_s16  ;;  %v6508_v51 = vsel %vm3075_vm2, %v6459_v52, %v6138_v27  ;;  %v13092_v27 = vld [vmem:[#allocation3 + $0x220] sm:$0xf]  ;;  %v13118_v46 = vcombine.low %v13114_v39, %v13104_v40 }
 0x3ed   : > { %5861 = vrot.lane.b32.xlu1 %v13069_v53, %s9157_s16  ;;  %6832 = vmatprep.mubr.bf16.mxu1 %v6508_v51  ;;  %v8195_v23 = vcombine.low %v5400_v24, %v13092_v27  ;;  %v9058_v51 = vld [vmem:[#allocation3 + $0x170] sm:$0xf] }
 0x3ee   : > { %6833 = vmatmul.mubr.bf16.gmra.mrb[52].mxu1 %v6316_v47  ;;  %v6083_v29 = vpop.permute.xlu0 %6082  ;;  %v9059_v47 = vld [vmem:[#allocation3 + $0x174] sm:$0xf] }
 0x3ef   : > { %v6461_v52 = vsel %vm3020_vm1, %v6392_v16, %v6083_v29  ;;  %v13090_v45 = vpop.permute.xlu1 %5843  ;;  %v13129_v7 = vcombine.low %v9058_v51, %v9059_v47  ;;  %v9063_v51 = vld [vmem:[#allocation3 + $0x224] sm:$0xf]  ;;  %v13190_v47 = vld [vmem:[#allocation3 + $0xac] sm:$0xf] }
 0x3f0   : > { %6053 = vrot.lane.b32.xlu0 %v8199_v4, %s9158_s22  ;;  %v6511_v54 = vsel %vm3075_vm2, %v6461_v52, %v6140_v63  ;;  %v6269_v63 = vsel %vm3020_vm1, %v6200_v38, %v13010_v17  ;;  %v13137_v4 = vld [vmem:[#allocation3 + $0x244] sm:$0xf]  ;;  %v13139_v52 = vld [vmem:[#allocation3 + $0x248] sm:$0xf]  ;;  %v13188_v41 = vcombine.low %v13092_v27, %v9063_v51  ;;  %v6206_v27 = vsel %vm2938_vm15, %v12692_v30, %v13043_v0 }
 0x3f1   : > { %5699 = vrot.lane.b32.xlu1 %v12046_v57, %s9158_s22  ;;  %6839 = vmatprep.mubr.bf16.mxu1 %v6511_v54  ;;  %v9038_v57 = vld [vmem:[%s13952_s4 + $0x88] sm:$0xff]   ;;  %v6319_v24 = vsel %vm3075_vm2, %v6269_v63, %v5918_v5  ;;  %v14320_v5 = vcombine.low %v12618_v42, %v12620_v33  ;;  %v6271_v42 = vsel %vm3020_vm1, %v6203_v10, %v13050_v20  ;;  %v13153_v20 = vld [vmem:[#allocation3 + $0xa4] sm:$0xf]  ;;  %v13195_v10 = vld [vmem:[#allocation3 + $0xa8] sm:$0xf] }
 0x3f2   : > { %v6028_v3 = vpop.permute.xlu0 %6027  ;;  %8615 = vmatprep.subr.bf16.mxu1 %v9038_v57  ;;  %v8200_v54 = vcombine.low %v13137_v4, %v13139_v52  ;;  %v14323_v0 = vld [vmem:[#allocation54_spill] sm:$0xff] }
 0x3f3   : > { %v5920_v62 = vpop.permute.xlu1 %5919  ;;  %8616 = vmatpush3.bf16.msra.mxu1 %v9038_v57  ;;  %v6395_v2 = vsel %vm2938_vm15, %v14320_v5, %v6028_v3  ;;  %v9060_v57 = vld [vmem:[#allocation3 + $0x178] sm:$0xf]  ;;  %v9066_v51 = vld [vmem:[#allocation3 + $0x184] sm:$0xf] }
 0x3f4   : > { %6045 = vrot.lane.b32.xlu0 %v8195_v23, %s9158_s22  ;;  %v6322_v56 = vsel %vm3075_vm2, %v6271_v42, %v5920_v62  ;;  %v13151_v23 = vld [vmem:[#allocation3 + $0xa0] sm:$0xf] }
 0x3f5   : > { %5937 = vrot.lane.b32.xlu1 %v8147_v8, %s9156_s10  ;;  %v13162_v62 = vcombine.low %v13151_v23, %v13153_v20 }
 0x3f6   : > { %6840 = vmatmul.mubr.bf16.gmra.mrb[56].mxu1 %v6319_v24  ;;  %v6142_v22 = vpop.permute.xlu0 %6141  ;;  %v9061_v24 = vld [vmem:[#allocation3 + $0x17c] sm:$0xf] }
 0x3f7   : > { %v13120_v17 = vpop.permute.xlu1 %5845 }
 0x3f8   : > { %6110 = vrot.lane.b32.xlu0 %v13118_v46, %s9157_s16 }
 0x3f9   : > { %5939 = vrot.lane.b32.xlu1 %v8148_v6, %s9156_s10  ;;  %v13175_v6 = vld [vmem:[#allocation3 + $0x250] sm:$0xf] }
 0x3fa   : > { %v6085_v14 = vpop.permute.xlu0 %6084 }
 0x3fb   : > { %v6463_v16 = vsel %vm3020_vm1, %v6395_v2, %v6085_v14  ;;  %v13135_v29 = vpop.permute.xlu1 %5679 }
 0x3fc   : > { %6167 = vrot.lane.b32.xlu0 %v13129_v7, %s9156_s10  ;;  %v6514_v33 = vsel %vm3075_vm2, %v6463_v16, %v6142_v22  ;;  %v13168_v22 = vcombine.low %v9060_v57, %v9061_v24  ;;  %v14322_v16 = vcombine.low %v12641_v32, %v12652_v59  ;;  %v9064_v57 = vld [vmem:[#allocation3 + $0x94] sm:$0xf]  ;;  %v6273_v32 = vsel %vm3020_vm1, %v6206_v27, %v13090_v45  ;;  %v14325_v27 = vld [vmem:[#allocation50_spill] sm:$0xff] }
 0x3fd   : > { %5867 = vrot.lane.b32.xlu1 %v12116_v15, %s9157_s16  ;;  %6846 = vmatprep.mubr.bf16.mxu1 %v6514_v33  ;;  %v8152_v24 = vcombine.low %v9064_v57, %v13114_v39 }
 0x3fe   : > { %6847 = vmatmul.mubr.bf16.gmra.mrb[60].mxu1 %v6322_v56  ;;  %v6030_v13 = vpop.permute.xlu0 %6029  ;;  %v13203_v56 = vcombine.low %v13195_v10, %v13190_v47 }
 0x3ff   : > { %v5922_v3 = vpop.permute.xlu1 %5921  ;;  %v6398_v42 = vsel %vm2938_vm15, %v14322_v16, %v6030_v13  ;;  %v14324_v13 = vcombine.low %v12674_v19, %v14323_v0  ;;  %v5414_v19 = vld [vmem:[#allocation3 + $0x254] sm:$0xf] }
 0x400   : > { %6055 = vrot.lane.b32.xlu0 %v8200_v54, %s9158_s22  ;;  %v6325_v30 = vsel %vm3075_vm2, %v6273_v32, %v5922_v3  ;;  %v13243_v32 = vld [vmem:[#allocation3 + $0xb4] sm:$0xf] }
 0x401   : > { %5945 = vrot.lane.b32.xlu1 %v14321_v28, %s9156_s10 }
 0x402   : > { %v6144_v38 = vpop.permute.xlu0 %6143 }
 0x403   : > { %v5924_v8 = vpop.permute.xlu1 %5923 }
 0x404   : > { %6112 = vrot.lane.b32.xlu0 %v13162_v62, %s9157_s16 }
 0x405   : > { %5701 = vrot.lane.b32.xlu1 %v12086_v60, %s9158_s22  ;;  %v13181_v60 = vld [vmem:[#allocation3 + $0x24c] sm:$0xf] }
 0x406   : > { %v6032_v63 = vpop.permute.xlu0 %6031  ;;  %v8201_v2 = vcombine.low %v13181_v60, %v13175_v6 }
 0x407   : > { %v13170_v21 = vpop.permute.xlu1 %5681  ;;  %v6401_v35 = vsel %vm2938_vm15, %v14324_v13, %v6032_v63 }
 0x408   : > { %6169 = vrot.lane.b32.xlu0 %v13168_v22, %s9156_s10 }
 0x409   : > { %5869 = vrot.lane.b32.xlu1 %v13173_v55, %s9157_s16 }
 0x40a   : > { %v6146_v5 = vpop.permute.xlu0 %6145 }
 0x40b   : > { %v13185_v14 = vpop.permute.xlu1 %5847 }
 0x40c   : > { %6057 = vrot.lane.b32.xlu0 %v8201_v2, %s9158_s22  ;;  %v9065_v2 = vld [vmem:[#allocation3 + $0x180] sm:$0xf] }
 0x40d   : > { %5863 = vrot.lane.b32.xlu1 %v13188_v41, %s9157_s16  ;;  %v13223_v45 = vcombine.low %v9065_v2, %v9066_v51  ;;  %v9068_v2 = vld [vmem:[#allocation3 + $0x18c] sm:$0xf] }
 0x40e   : > { %v6087_v33 = vpop.permute.xlu0 %6086 }
 0x40f   : > { %v6465_v54 = vsel %vm3020_vm1, %v6398_v42, %v6087_v33  ;;  %v13209_v28 = vpop.permute.xlu1 %5683 }
 0x410   : > { %6114 = vrot.lane.b32.xlu0 %v13203_v56, %s9157_s16  ;;  %v6517_v59 = vsel %vm3075_vm2, %v6465_v54, %v6144_v38  ;;  %v13228_v38 = vld [vmem:[#allocation3 + $0x258] sm:$0xf]  ;;  %v6209_v54 = vsel %vm2938_vm15, %v14325_v27, %v13067_v26  ;;  %v13278_v27 = vld [vmem:[#allocation3 + $0x260] sm:$0xf] }
 0x411   : > { %5947 = vrot.lane.b32.xlu1 %v8152_v24, %s9156_s10  ;;  %6854 = vmatprep.mubr.bf16.mxu1 %v6517_v59  ;;  %v8202_v33 = vcombine.low %v5414_v19, %v13228_v38  ;;  %v13241_v24 = vcombine.low %v13071_v48, %v13137_v4  ;;  %v13251_v59 = vld [vmem:[#allocation3 + $0xb0] sm:$0xf] }
 0x412   : > { %6855 = vmatmul.mubr.bf16.gmra.mrb[64].mxu1 %v6325_v30  ;;  %v6089_v39 = vpop.permute.xlu0 %6088  ;;  %v13255_v48 = vcombine.low %v13251_v59, %v13243_v32  ;;  %v14326_v30 = vld [vmem:[#allocation16_spill] sm:$0xff] }
 0x413   : > { %v6467_v16 = vsel %vm3020_vm1, %v6401_v35, %v6089_v39  ;;  %v13226_v42 = vpop.permute.xlu1 %5849  ;;  %v9067_v39 = vld [vmem:[#allocation3 + $0x188] sm:$0xf] }
 0x414   : > { %6171 = vrot.lane.b32.xlu0 %v13223_v45, %s9156_s10  ;;  %v6520_v3 = vsel %vm3075_vm2, %v6467_v16, %v6146_v5  ;;  %v6275_v5 = vsel %vm3020_vm1, %v6209_v54, %v13120_v17  ;;  %v8153_v17 = vcombine.low %v13104_v40, %v13151_v23  ;;  %v13268_v51 = vcombine.low %v9067_v39, %v9068_v2  ;;  %v14329_v16 = vld [vmem:[#allocation19_spill] sm:$0xff] }
 0x415   : > { %5703 = vrot.lane.b32.xlu1 %v13048_v11, %s9158_s22  ;;  %6861 = vmatprep.mubr.bf16.mxu1 %v6520_v3  ;;  %v6328_v11 = vsel %vm3075_vm2, %v6275_v5, %v5924_v8  ;;  %v14327_v8 = vld [vmem:[#allocation15_spill] sm:$0xff]  ;;  %v6212_v3 = vsel %vm2938_vm15, %v14329_v16, %v13135_v29 }
 0x416   : > { %v6034_v63 = vpop.permute.xlu0 %6033  ;;  %v14328_v0 = vcombine.low %v14326_v30, %v14327_v8  ;;  %v13294_v30 = vld [vmem:[#allocation3 + $0xb8] sm:$0xf]  ;;  %v13296_v8 = vld [vmem:[#allocation3 + $0xbc] sm:$0xf]  ;;  %v13314_v2 = vld [vmem:[#allocation3 + $0x268] sm:$0xf] }
 0x417   : > { %v5926_v57 = vpop.permute.xlu1 %5925 }
 0x418   : > { %6059 = vrot.lane.b32.xlu0 %v8202_v33, %s9158_s22  ;;  %v6404_v13 = vsel %vm2938_vm15, %v14328_v0, %v6034_v63  ;;  %v13276_v33 = vld [vmem:[#allocation3 + $0x25c] sm:$0xf]  ;;  %v6277_v63 = vsel %vm3020_vm1, %v6212_v3, %v13185_v14  ;;  %v13292_v14 = vcombine.low %v13139_v52, %v13181_v60  ;;  %v8154_v0 = vcombine.low %v13153_v20, %v13195_v10  ;;  %v9069_v60 = vld [vmem:[#allocation3 + $0x190] sm:$0xf]  ;;  %v13320_v20 = vld [vmem:[#allocation3 + $0x264] sm:$0xf] }
 0x419   : > { %5871 = vrot.lane.b32.xlu1 %v13241_v24, %s9157_s16  ;;  %v6331_v29 = vsel %vm3075_vm2, %v6277_v63, %v5926_v57  ;;  %v13303_v57 = vcombine.low %v13294_v30, %v13296_v8  ;;  %v8204_v16 = vcombine.low %v13320_v20, %v13314_v2  ;;  %v13327_v63 = vld [vmem:[#allocation3 + $0xc4] sm:$0xf] }
 0x41a   : > { %6862 = vmatmul.mubr.bf16.gmra.mrb[68].mxu1 %v6328_v11  ;;  %v6148_v26 = vpop.permute.xlu0 %6147  ;;  %v8203_v11 = vcombine.low %v13276_v33, %v13278_v27  ;;  %14330 = vst [vmem:[#allocation54_spill] sm:$0xff] %v13292_v14 }
 0x41b   : > { %v13257_v4 = vpop.permute.xlu1 %5851 }
 0x41c   : > { %6116 = vrot.lane.b32.xlu0 %v13255_v48, %s9157_s16 }
 0x41d   : > { %5949 = vrot.lane.b32.xlu1 %v8153_v17, %s9156_s10 }
 0x41e   : > { %v6091_v35 = vpop.permute.xlu0 %6090 }
 0x41f   : > { %v6469_v40 = vsel %vm3020_vm1, %v6404_v13, %v6091_v35  ;;  %v13274_v23 = vpop.permute.xlu1 %5685  ;;  %v9070_v13 = vld [vmem:[#allocation3 + $0x194] sm:$0xf] }
 0x420   : > { %6173 = vrot.lane.b32.xlu0 %v13268_v51, %s9156_s10  ;;  %v6523_v54 = vsel %vm3075_vm2, %v6469_v40, %v6148_v26  ;;  %v13310_v35 = vcombine.low %v9069_v60, %v9070_v13  ;;  %v13325_v40 = vcombine.low %v13175_v6, %v5414_v19  ;;  %v14334_v6 = vld [vmem:[#allocation39_spill] sm:$0xff] }
 0x421   : > { %5705 = vrot.lane.b32.xlu1 %v13129_v7, %s9158_s22  ;;  %6868 = vmatprep.mubr.bf16.mxu1 %v6523_v54  ;;  %v13332_v54 = vld [vmem:[#allocation3 + $0xc0] sm:$0xf]  ;;  %v6215_v19 = vsel %vm2938_vm15, %v14334_v6, %v13170_v21  ;;  %v13373_v6 = vcombine.low %v13228_v38, %v13276_v33  ;;  %v8156_v38 = vcombine.low %v13243_v32, %v13294_v30 }
 0x422   : > { %6869 = vmatmul.mubr.bf16.gmra.mrb[72].mxu1 %v6331_v29  ;;  %v6036_v5 = vpop.permute.xlu0 %6035  ;;  %14331 = vst [vmem:[#allocation50_spill] sm:$0xff] %v13325_v40  ;;  %v8207_v60 = vcombine.low %v13332_v54, %v13327_v63  ;;  %v13383_v33 = vld [vmem:[#allocation3 + $0x1a0] sm:$0xf] }
 0x423   : > { %v5928_v17 = vpop.permute.xlu1 %5927 }
 0x424   : > { %6061 = vrot.lane.b32.xlu0 %v8203_v11, %s9158_s22 }
 0x425   : > { %5873 = vrot.lane.b32.xlu1 %v13292_v14, %s9157_s16  ;;  %v13348_v14 = vld [vmem:[#allocation3 + $0x19c] sm:$0xf] }
 0x426   : > { %v6150_v7 = vpop.permute.xlu0 %6149 }
 0x427   : > { %v5930_v26 = vpop.permute.xlu1 %5929 }
 0x428   : > { %6118 = vrot.lane.b32.xlu0 %v13303_v57, %s9157_s16 }
 0x429   : > { %5951 = vrot.lane.b32.xlu1 %v8154_v0, %s9156_s10 }
 0x42a   : > { %v6038_v52 = vpop.permute.xlu0 %6037 }
 0x42b   : > { %v13312_v39 = vpop.permute.xlu1 %5687 }
 0x42c   : > { %6175 = vrot.lane.b32.xlu0 %v13310_v35, %s9156_s10 }
 0x42d   : > { %5707 = vrot.lane.b32.xlu1 %v13168_v22, %s9158_s22  ;;  %v14332_v22 = vld [vmem:[#allocation27_spill] sm:$0xff] }
 0x42e   : > { %v6152_v10 = vpop.permute.xlu0 %6151  ;;  %v14333_v29 = vcombine.low %v14332_v22, %v12767_v9  ;;  %v6279_v9 = vsel %vm3020_vm1, %v6215_v19, %v13226_v42  ;;  %v14335_v22 = vcombine.low %v12772_v50, %v12774_v37  ;;  %v5420_v50 = vld [vmem:[#allocation3 + $0x26c] sm:$0xf] }
 0x42f   : > { %v5854_v3 = vpop.permute.xlu1 %5853  ;;  %v6334_v21 = vsel %vm3075_vm2, %v6279_v9, %v5928_v17  ;;  %v9072_v17 = vld [vmem:[#allocation3 + $0x270] sm:$0xf]  ;;  %v5316_v19 = vld [vmem:[#allocation3 + $0xcc] sm:$0xf]  ;;  %v5370_v9 = vld [vmem:[#allocation3 + $0x1a4] sm:$0xf] }
 0x430   : > { %6063 = vrot.lane.b32.xlu0 %v8204_v16, %s9158_s22  ;;  %v6407_v11 = vsel %vm2938_vm15, %v14333_v29, %v6036_v5  ;;  %v6410_v29 = vsel %vm2938_vm15, %v14335_v22, %v6038_v52  ;;  %v8205_v52 = vcombine.low %v5420_v50, %v9072_v17  ;;  %v8157_v17 = vcombine.low %v13296_v8, %v13332_v54 }
 0x431   : > { %5875 = vrot.lane.b32.xlu1 %v13325_v40, %s9157_s16  ;;  %v8155_v40 = vcombine.low %v13190_v47, %v13251_v59  ;;  %v9071_v59 = vld [vmem:[#allocation3 + $0x198] sm:$0xf]  ;;  %v14337_v8 = vcombine.low %v12877_v43, %v12879_v31 }
 0x432   : > { %v6093_v0 = vpop.permute.xlu0 %6092 }
 0x433   : > { %v6471_v13 = vsel %vm3020_vm1, %v6407_v11, %v6093_v0  ;;  %v13344_v16 = vpop.permute.xlu1 %5689  ;;  %v8210_v11 = vcombine.low %v9071_v59, %v13348_v14 }
 0x434   : > { %6120 = vrot.lane.b32.xlu0 %v8207_v60, %s9157_s16  ;;  %v6526_v5 = vsel %vm3075_vm2, %v6471_v13, %v6150_v7  ;;  %v5315_v13 = vld [vmem:[#allocation3 + $0xc8] sm:$0xf] }
 0x435   : > { %5953 = vrot.lane.b32.xlu1 %v8155_v40, %s9156_s10  ;;  %6876 = vmatprep.mubr.bf16.mxu1 %v6526_v5  ;;  %v6218_v40 = vsel %vm2938_vm15, %v12870_v44, %v13209_v28  ;;  %v8208_v28 = vcombine.low %v5315_v13, %v5316_v19  ;;  %v13422_v19 = vcombine.low %v13314_v2, %v5420_v50 }
 0x436   : > { %6877 = vmatmul.mubr.bf16.gmra.mrb[76].mxu1 %v6334_v21  ;;  %v6095_v47 = vpop.permute.xlu0 %6094 }
 0x437   : > { %v6473_v42 = vsel %vm3020_vm1, %v6410_v29, %v6095_v47  ;;  %v13362_v0 = vpop.permute.xlu1 %5855  ;;  %v6221_v29 = vsel %vm2938_vm15, %v12924_v34, %v13274_v23  ;;  %v13398_v47 = vld [vmem:[#allocation3 + $0x278] sm:$0xf]  ;;  %v9073_v34 = vld [vmem:[#allocation3 + $0x274] sm:$0xf] }
 0x438   : > { %6177 = vrot.lane.b32.xlu0 %v8210_v11, %s9156_s10  ;;  %v6529_v7 = vsel %vm3075_vm2, %v6473_v42, %v6152_v10  ;;  %v6281_v10 = vsel %vm3020_vm1, %v6218_v40, %v13257_v4  ;;  %v8211_v4 = vcombine.low %v13383_v33, %v5370_v9  ;;  %v6283_v59 = vsel %vm3020_vm1, %v6221_v29, %v5854_v3  ;;  %v9030_v3 = vld [vmem:[#allocation3 + $0xd0] sm:$0xff]  }
 0x439   : > { %5709 = vrot.lane.b32.xlu1 %v13223_v45, %s9158_s22  ;;  %6883 = vmatprep.mubr.bf16.mxu1 %v6529_v7  ;;  %v6337_v45 = vsel %vm3075_vm2, %v6281_v10, %v5930_v26  ;;  %v14336_v26 = vcombine.low %v12832_v18, %v12834_v49  ;;  %v8206_v23 = vcombine.low %v9073_v34, %v13398_v47  ;;  %v14343_v34 = vld [vmem:[#allocation43_spill] sm:$0xff] }
 0x43a   : > { %v6040_v37 = vpop.permute.xlu0 %6039  ;;  %v13409_v7 = vcombine.low %v13278_v27, %v13320_v20 }
 0x43b   : > { %v5932_v60 = vpop.permute.xlu1 %5931  ;;  %v6413_v21 = vsel %vm2938_vm15, %v14336_v26, %v6040_v37 }
 0x43c   : > { %6065 = vrot.lane.b32.xlu0 %v8205_v52, %s9158_s22  ;;  %v6340_v18 = vsel %vm3075_vm2, %v6283_v59, %v5932_v60  ;;  %v9033_v52 = vld [vmem:[#allocation3 + $0x1a8] sm:$0xff]   ;;  %v14339_v59 = vld [vmem:[#allocation49_spill] sm:$0xff] }
 0x43d   : > { %5877 = vrot.lane.b32.xlu1 %v13373_v6, %s9157_s16 }
 0x43e   : > { %6884 = vmatmul.mubr.bf16.gmra.mrb[80].mxu1 %v6337_v45  ;;  %v6154_v44 = vpop.permute.xlu0 %6153  ;;  %v6224_v45 = vsel %vm2938_vm15, %v12973_v61, %v13312_v39  ;;  %v14338_v61 = vcombine.low %v12898_v1, %v12890_v36  ;;  %v9074_v1 = vld [vmem:[#allocation3 + $0x150] sm:$0xf] }
 0x43f   : > { %v5858_v5 = vpop.permute.xlu1 %5857  ;;  %v6285_v2 = vsel %vm3020_vm1, %v6224_v45, %v13362_v0  ;;  %v6227_v0 = vsel %vm2938_vm15, %v12980_v25, %v13344_v16  ;;  %v8172_v29 = vcombine.low %v13031_v12, %v9074_v1  ;;  %v14340_v16 = vld [vmem:[#allocation9_spill] sm:$0xff] }
 0x440   : > { %6122 = vrot.lane.b32.xlu0 %v8208_v28, %s9157_s16 }
 0x441   : > { %5955 = vrot.lane.b32.xlu1 %v8156_v38, %s9156_s10  ;;  %v6425_v25 = vsel %vm2938_vm15, %v8172_v29, %v14339_v59 }
 0x442   : > { %v6097_v22 = vpop.permute.xlu0 %6096 }
 0x443   : > { %v6475_v32 = vsel %vm3020_vm1, %v6413_v21, %v6097_v22  ;;  %v13396_v30 = vpop.permute.xlu1 %5691 }
 0x444   : > { %6179 = vrot.lane.b32.xlu0 %v8211_v4, %s9156_s10  ;;  %v6532_v11 = vsel %vm3075_vm2, %v6475_v32, %v6154_v44  ;;  %v8158_v44 = vcombine.low %v13327_v63, %v5315_v13  ;;  %v6287_v4 = vsel %vm3020_vm1, %v6227_v0, %v5858_v5 }
 0x445   : > { %5711 = vrot.lane.b32.xlu1 %v13268_v51, %s9158_s22  ;;  %6890 = vmatprep.mubr.bf16.mxu1 %v6532_v11  ;;  %v14341_v11 = vld [vmem:[#allocation7_spill] sm:$0xff] }
 0x446   : > { %6891 = vmatmul.mubr.bf16.gmra.mrb[84].mxu1 %v6340_v18  ;;  %v6042_v49 = vpop.permute.xlu0 %6041  ;;  %v14342_v18 = vcombine.low %v14340_v16, %v14341_v11 }
 0x447   : > { %v5934_v42 = vpop.permute.xlu1 %5933  ;;  %v6416_v54 = vsel %vm2938_vm15, %v14337_v8, %v6042_v49 }
 0x448   : > { %6067 = vrot.lane.b32.xlu0 %v8206_v23, %s9158_s22  ;;  %v6343_v43 = vsel %vm3075_vm2, %v6285_v2, %v5934_v42  ;;  %v6483_v23 = vsel %vm3020_vm1, %v6425_v25, %v14343_v34  ;;  %v14344_v42 = vld [vmem:[#allocation63_spill] sm:$0xff] }
 0x449   : > { %5879 = vrot.lane.b32.xlu1 %v13409_v7, %s9157_s16 }
 0x44a   : > { %v6156_v51 = vpop.permute.xlu0 %6155 }
 0x44b   : > { %v5936_v37 = vpop.permute.xlu1 %5935 }
 0x44c   : > { %6124 = vrot.lane.b32.xlu0 %v9030_v3, %s9157_s16  ;;  %v6346_v21 = vsel %vm3075_vm2, %v6287_v4, %v5936_v37  ;;  %v6230_v3 = vsel %vm2938_vm15, %v14344_v42, %v13396_v30  ;;  %v14348_v30 = vld [vmem:[#allocation53_spill] sm:$0xff] }
 0x44d   : > { %5957 = vrot.lane.b32.xlu1 %v8157_v17, %s9156_s10  ;;  %v14346_v17 = vld [vmem:[#allocation34_spill] sm:$0xff]  ;;  %v14359_v42 = vld [vmem:[#allocation61_spill] sm:$0xff] }
 0x44e   : > { %v6044_v40 = vpop.permute.xlu0 %6043 }
 0x44f   : > { %v5694_v60 = vpop.permute.xlu1 %5693  ;;  %v6419_v39 = vsel %vm2938_vm15, %v14338_v61, %v6044_v40 }
 0x450   : > { %6181 = vrot.lane.b32.xlu0 %v9033_v52, %s9156_s10 }
 0x451   : > { %5713 = vrot.lane.b32.xlu1 %v13310_v35, %s9158_s22  ;;  %s9161_s22 = smov [#allocation4]  }
 0x452   : > { %v6158_v27 = vpop.permute.xlu0 %6157  ;;  %s9079_s23 = sshll.u32 %s9161_s22, 4  ;;  %s9080_s23 = int_to_ptr.vmem [resolvable:$false] %s9079_s23 }
 0x453   : > { %v5860_v20 = vpop.permute.xlu1 %5859  ;;  %s9081_s30 = scalar_lea.vmem %s9080_s23, 4096  ;;  %p9082_p1 = scmp.lt.s32.totalorder %s13894_s17, %s9080_s23 }
 0x454   : > { %v6289_v37 = vsel %vm3020_vm1, %v6230_v3, %v5860_v20 }
 0x455   : > { %5881 = vrot.lane.b32.xlu1 %v13422_v19, %s9157_s16 }
 0x456   : > { %v6099_v10 = vpop.permute.xlu0 %6098 }
 0x457   : > { %v6477_v35 = vsel %vm3020_vm1, %v6416_v54, %v6099_v10  ;;  %v5696_v9 = vpop.permute.xlu1 %5695  ;;  %v14347_v54 = vld [vmem:[#allocation57_spill] sm:$0xff] }
 0x458   : > { %v6535_v50 = vsel %vm3075_vm2, %v6477_v35, %v6156_v51  ;;  %v14345_v51 = vld [vmem:[#allocation42_spill] sm:$0xff]  ;;  %v6544_v10 = vsel %vm3075_vm2, %v6483_v23, %v14347_v54  ;;  %v14349_v35 = vld [vmem:[#allocation13_spill] sm:$0xff]  ;;  %v6236_v11 = vsel %vm2938_vm15, %v13062_v58, %v5696_v9 }
 0x459   : > { %5959 = vrot.lane.b32.xlu1 %v8158_v44, %s9156_s10  ;;  %6898 = vmatprep.mubr.bf16.mxu1 %v6535_v50  ;;  %v14350_v44 = vld [vmem:[#allocation17_spill] sm:$0xff]  ;;  %s9075_s10 = scalar_lea.vmem %s13894_s17, 2048 }
 0x45a   : > { %6899 = vmatmul.mubr.bf16.gmra.mrb[88].mxu1 %v6343_v43  ;;  %v6166_v31 = vpop.permute.xlu0 %6165  ;;  %v14351_v2 = vcombine.low %v14349_v35, %v14350_v44  ;;  %v14352_v43 = vld [vmem:[#allocation58_spill] sm:$0xff]  ;;  %v14364_v35 = vld [vmem:[#allocation21_spill] sm:$0xff]  ;;  %p9076_p12 = scmp.ne.s32.totalorder %s13894_s17, %s9075_s10  ;;  %p9083_p2 = scmp.lt.s32.totalorder %s9081_s30, %s9075_s10 }
 0x45b   : > { %v13440_v28 = vpop.permute.xlu1 %5943  ;;  %v14365_v44 = vld [vmem:[#allocation25_spill] sm:$0xff] }
 0x45c   : > { %v6428_v20 = vsel %vm2938_vm15, %v14351_v2, %v14348_v30  ;;  %v14366_v2 = vcombine.low %v14364_v35, %v14365_v44  ;;  %p9077_p13 = pnand %p9076_p12, %p9243_p4  ;;  %p9084_p3 = por %p9083_p2, %p9082_p1 }
 0x45d   : > { %v6485_v61 = vsel %vm3020_vm1, %v6428_v20, %v14352_v43 }
 0x45e   : > { %v6101_v63 = vpop.permute.xlu0 %6100  ;;  %p9078_p0 = pneg %p9077_p13 }
 0x45f   : > { %v6479_v13 = vsel %vm3020_vm1, %v6419_v39, %v6101_v63  ;;  %v5862_v38 = vpop.permute.xlu1 %5861  ;;  %v14353_v39 = vld [vmem:[#allocation65_spill] sm:$0xff] }
 0x460   : > { %v6538_v26 = vsel %vm3075_vm2, %v6479_v13, %v6158_v27  ;;  %v6233_v63 = vsel %vm2938_vm15, %v14353_v39, %v5694_v60  ;;  %p9085_p5 = pnand %p9084_p3, %p9078_p0 }
 0x461   : > { %6905 = vmatprep.mubr.bf16.mxu1 %v6538_v26  ;;  %v6291_v0 = vsel %vm3020_vm1, %v6233_v63, %v5862_v38  ;;  %v14356_v38 = vld [vmem:[#allocation20_spill] sm:$0xff] }
 0x462   : > { %6906 = vmatmul.mubr.bf16.gmra.mrb[92].mxu1 %v6346_v21  ;;  %v6054_v22 = vpop.permute.xlu0 %6053  ;;  %v14354_v21 = vld [vmem:[#allocation46_spill] sm:$0xff] }
 0x463   : > { %v5700_v36 = vpop.permute.xlu1 %5699  ;;  %v6547_v1 = vsel %vm3075_vm2, %v6485_v61, %v14354_v21  ;;  %v6434_v20 = vsel %vm2938_vm15, %v14366_v2, %v6054_v22  ;;  %v14369_v22 = vld [vmem:[#allocation23_spill] sm:$0xff] }
 0x466   : > { %v6046_v32 = vpop.permute.xlu0 %6045 }
 0x467   : > { %v6422_v5 = vsel %vm2938_vm15, %v14342_v18, %v6046_v32  ;;  %v5938_v49 = vpop.permute.xlu1 %5937  ;;  %v14355_v18 = vld [vmem:[#allocation60_spill] sm:$0xff] }
 0x468   : > { %v6481_v12 = vsel %vm3020_vm1, %v6422_v5, %v14345_v51  ;;  %v6349_v27 = vsel %vm3075_vm2, %v6289_v37, %v5938_v49  ;;  %v14357_v5 = vld [vmem:[#allocation18_spill] sm:$0xff]  ;;  %v14360_v51 = vld [vmem:[#allocation8_spill] sm:$0xff] }
 0x469   : > { %v6541_v52 = vsel %vm3075_vm2, %v6481_v12, %v14346_v17  ;;  %v14358_v49 = vcombine.low %v14356_v38, %v14357_v5 }
 0x46a   : > { %6912 = vmatprep.mubr.bf16.mxu1 %v6541_v52  ;;  %v6111_v40 = vpop.permute.xlu0 %6110  ;;  %v14361_v52 = vld [vmem:[#allocation52_spill] sm:$0xff] }
 0x46b   : > { %v5940_v8 = vpop.permute.xlu1 %5939  ;;  %6913 = vmatmul.mubr.bf16.gmra.mrb[96].mxu1 %v6349_v27  ;;  %v6431_v34 = vsel %vm2938_vm15, %v14358_v49, %v14355_v18  ;;  %v14362_v27 = vld [vmem:[#allocation55_spill] sm:$0xff]  ;;  %v6489_v43 = vsel %vm3020_vm1, %v6434_v20, %v6111_v40 }
 0x46c   : > { %6920 = vmatprep.mubr.bf16.mxu1 %v6544_v10  ;;  %v6352_v4 = vsel %vm3075_vm2, %v6291_v0, %v5940_v8  ;;  %v6487_v3 = vsel %vm3020_vm1, %v6431_v34, %v14359_v42  ;;  %v6239_v8 = vsel %vm2938_vm15, %v14362_v27, %v14361_v52  ;;  %v14363_v10 = vld [vmem:[#allocation10_spill] sm:$0xff] }
 0x46d   : > { %v6550_v17 = vsel %vm3075_vm2, %v6487_v3, %v6166_v31  ;;  %v6295_v30 = vsel %vm3020_vm1, %v6239_v8, %v14363_v10  ;;  %v14372_v3 = vld [vmem:[#allocation31_spill] sm:$0xff]  ;;  %v14376_v10 = vld [vmem:[#allocation32_spill] sm:$0xff] }
 0x46e   : > { %v6168_v45 = vpop.permute.xlu0 %6167  ;;  %v6358_v31 = vsel %vm3075_vm2, %v6295_v30, %v13440_v28  ;;  %v14377_v30 = vld [vmem:[#allocation35_spill] sm:$0xff] }
 0x46f   : > { %v5868_v50 = vpop.permute.xlu1 %5867  ;;  %v6553_v39 = vsel %vm3075_vm2, %v6489_v43, %v6168_v45  ;;  %v14378_v35 = vcombine.low %v14376_v10, %v14377_v30 }
 0x472   : > { %v6056_v13 = vpop.permute.xlu0 %6055 }
 0x473   : > { %v5946_v26 = vpop.permute.xlu1 %5945  ;;  %6921 = vmatmul.mubr.bf16.gmra.mrb[100].mxu1 %v6352_v4  ;;  %v14367_v4 = vld [vmem:[#allocation22_spill] sm:$0xff] }
 0x474   : > { %6927 = vmatprep.mubr.bf16.mxu1 %v6547_v1  ;;  %v6242_v21 = vsel %vm2938_vm15, %v14367_v4, %v5700_v36  ;;  %v14371_v36 = vld [vmem:[#allocation24_spill] sm:$0xff]  ;;  %v14380_v4 = vld [vmem:[#allocation33_spill] sm:$0xff] }
 0x476   : > { %v6113_v29 = vpop.permute.xlu0 %6112 }
 0x477   : > { %v5702_v32 = vpop.permute.xlu1 %5701 }
 0x47a   : > { %v6170_v59 = vpop.permute.xlu0 %6169 }
 0x47b   : > { %v5870_v25 = vpop.permute.xlu1 %5869 }
 0x47e   : > { %v6058_v16 = vpop.permute.xlu0 %6057 }
 0x47f   : > { %v5864_v60 = vpop.permute.xlu1 %5863 }
 0x480   : > { %v6293_v23 = vsel %vm3020_vm1, %v6236_v11, %v5864_v60  ;;  %v6297_v11 = vsel %vm3020_vm1, %v6242_v21, %v5868_v50  ;;  %v14368_v60 = vld [vmem:[#allocation26_spill] sm:$0xff] }
 0x481   : > { %v6355_v12 = vsel %vm3075_vm2, %v6293_v23, %v14360_v51  ;;  %v14370_v18 = vcombine.low %v14368_v60, %v14369_v22  ;;  %v6361_v38 = vsel %vm3075_vm2, %v6297_v11, %v5946_v26  ;;  %v6245_v23 = vsel %vm2938_vm15, %v14371_v36, %v5702_v32  ;;  %v14373_v51 = vld [vmem:[#allocation30_spill] sm:$0xff]  ;;  %v14375_v32 = vld [vmem:[#allocation28_spill] sm:$0xff] }
 0x482   : > { %6928 = vmatmul.mubr.bf16.gmra.mrb[104].mxu1 %v6355_v12  ;;  %v6115_v37 = vpop.permute.xlu0 %6114  ;;  %v6299_v42 = vsel %vm3020_vm1, %v6245_v23, %v5870_v25 }
 0x483   : > { %v5948_v58 = vpop.permute.xlu1 %5947  ;;  %6934 = vmatprep.mubr.bf16.mxu1 %v6550_v17  ;;  %v6437_v40 = vsel %vm2938_vm15, %v14370_v18, %v6056_v13  ;;  %v14374_v13 = vcombine.low %v14372_v3, %v14373_v51 }
 0x484   : > { %v6491_v28 = vsel %vm3020_vm1, %v6437_v40, %v6113_v29  ;;  %v6364_v12 = vsel %vm3075_vm2, %v6299_v42, %v5948_v58 }
 0x485   : > { %v6556_v5 = vsel %vm3075_vm2, %v6491_v28, %v6170_v59  ;;  %v6440_v29 = vsel %vm2938_vm15, %v14374_v13, %v6058_v16 }
 0x486   : > { %v6172_v9 = vpop.permute.xlu0 %6171  ;;  %v6493_v26 = vsel %vm3020_vm1, %v6440_v29, %v6115_v37 }
 0x487   : > { %v5704_v54 = vpop.permute.xlu1 %5703  ;;  %v6559_v17 = vsel %vm3075_vm2, %v6493_v26, %v6172_v9 }
 0x488   : > { %v6248_v8 = vsel %vm2938_vm15, %v14375_v32, %v5704_v54 }
 0x48a   : > { %6935 = vmatmul.mubr.bf16.gmra.mrb[108].mxu1 %v6358_v31  ;;  %v6060_v61 = vpop.permute.xlu0 %6059 }
 0x48b   : > { %v5872_v63 = vpop.permute.xlu1 %5871  ;;  %6942 = vmatprep.mubr.bf16.mxu1 %v6553_v39  ;;  %v6443_v16 = vsel %vm2938_vm15, %v14378_v35, %v6060_v61  ;;  %v14379_v39 = vld [vmem:[#allocation38_spill] sm:$0xff] }
 0x48c   : > { %v6301_v37 = vsel %vm3020_vm1, %v6248_v8, %v5872_v63  ;;  %v14381_v61 = vcombine.low %v14379_v39, %v14380_v4 }
 0x48e   : > { %v6117_v0 = vpop.permute.xlu0 %6116 }
 0x48f   : > { %v5950_v1 = vpop.permute.xlu1 %5949  ;;  %v6495_v58 = vsel %vm3020_vm1, %v6443_v16, %v6117_v0 }
 0x490   : > { %v6367_v44 = vsel %vm3075_vm2, %v6301_v37, %v5950_v1  ;;  %v8182_v37 = vcombine.low %v13348_v14, %v13383_v33 }
 0x492   : > { %6943 = vmatmul.mubr.bf16.gmra.mrb[112].mxu1 %v6361_v38  ;;  %v6174_v45 = vpop.permute.xlu0 %6173 }
 0x493   : > { %v5706_v49 = vpop.permute.xlu1 %5705  ;;  %6949 = vmatprep.mubr.bf16.mxu1 %v6556_v5  ;;  %v6562_v2 = vsel %vm3075_vm2, %v6495_v58, %v6174_v45  ;;  %v14382_v5 = vld [vmem:[#allocation36_spill] sm:$0xff] }
 0x494   : > { %v6251_v54 = vsel %vm2938_vm15, %v13118_v46, %v5706_v49  ;;  %v14383_v49 = vld [vmem:[#allocation37_spill] sm:$0xff] }
 0x496   : > { %v6062_v34 = vpop.permute.xlu0 %6061 }
 0x497   : > { %v5874_v50 = vpop.permute.xlu1 %5873  ;;  %v6446_v63 = vsel %vm2938_vm15, %v14381_v61, %v6062_v34  ;;  %v14384_v34 = vcombine.low %v14382_v5, %v14383_v49  ;;  %v14389_v49 = vld [vmem:[#allocation14_spill] sm:$0xff] }
 0x498   : > { %v6303_v0 = vsel %vm3020_vm1, %v6251_v54, %v5874_v50 }
 0x49a   : > { %6950 = vmatmul.mubr.bf16.gmra.mrb[116].mxu1 %v6364_v12  ;;  %v6119_v59 = vpop.permute.xlu0 %6118 }
 0x49b   : > { %v5952_v52 = vpop.permute.xlu1 %5951  ;;  %6956 = vmatprep.mubr.bf16.mxu1 %v6559_v17  ;;  %v6497_v21 = vsel %vm3020_vm1, %v6446_v63, %v6119_v59  ;;  %v14385_v59 = vld [vmem:[#allocation40_spill] sm:$0xff]  ;;  %v14386_v17 = vld [vmem:[#allocation41_spill] sm:$0xff] }
 0x49c   : > { %v6370_v1 = vsel %vm3075_vm2, %v6303_v0, %v5952_v52  ;;  %v14387_v52 = vcombine.low %v14385_v59, %v14386_v17 }
 0x49e   : > { %v6176_v27 = vpop.permute.xlu0 %6175 }
 0x49f   : > { %v5708_v25 = vpop.permute.xlu1 %5707  ;;  %v6565_v60 = vsel %vm3075_vm2, %v6497_v21, %v6176_v27 }
 0x4a0   : > { %v6254_v28 = vsel %vm2938_vm15, %v13162_v62, %v5708_v25 }
 0x4a2   : > { %6957 = vmatmul.mubr.bf16.gmra.mrb[120].mxu1 %v6367_v44  ;;  %v6064_v9 = vpop.permute.xlu0 %6063 }
 0x4a3   : > { %v5876_v20 = vpop.permute.xlu1 %5875  ;;  %6964 = vmatprep.mubr.bf16.mxu1 %v6562_v2  ;;  %v6449_v36 = vsel %vm2938_vm15, %v14384_v34, %v6064_v9  ;;  %v14391_v34 = vld [vmem:[#allocation29_spill] sm:$0xff] }
 0x4a4   : > { %v6305_v23 = vsel %vm3020_vm1, %v6254_v28, %v5876_v20 }
 0x4a6   : > { %v6121_v43 = vpop.permute.xlu0 %6120 }
 0x4a7   : > { %v5954_v31 = vpop.permute.xlu1 %5953  ;;  %v6499_v42 = vsel %vm3020_vm1, %v6449_v36, %v6121_v43  ;;  %v14392_v36 = vld [vmem:[#allocation45_spill] sm:$0xff] }
 0x4a8   : > { %v6373_v3 = vsel %vm3075_vm2, %v6305_v23, %v5954_v31 }
 0x4aa   : > { %6965 = vmatmul.mubr.bf16.gmra.mrb[124].mxu1 %v6370_v1  ;;  %v6178_v11 = vpop.permute.xlu0 %6177 }
 0x4ab   : > { %v5710_v22 = vpop.permute.xlu1 %5709  ;;  %6971 = vmatprep.mubr.bf16.mxu1 %v6565_v60  ;;  %v6568_v13 = vsel %vm3075_vm2, %v6499_v42, %v6178_v11 }
 0x4ac   : > { %v6257_v26 = vsel %vm2938_vm15, %v13203_v56, %v5710_v22 }
 0x4ad   : > { %v13552_v18 = vpop.f32.mrb[48].mxu1 }
 0x4ae   : > { %v6828_v46 = vpop.f32.mrb[49].mxu1  ;;  %v6066_v40 = vpop.permute.xlu0 %6065 }
 0x4af   : > { %v5878_v38 = vpop.permute.xlu1 %5877  ;;  %v13556_v45 = vpop.f32.mrb[50].mxu1  ;;  %v6452_v27 = vsel %vm2938_vm15, %v14387_v52, %v6066_v40  ;;  %v14388_v46 = vld [vmem:[#allocation11_spill] sm:$0xff] }
 0x4b0   : > { %v6831_v50 = vpop.f32.mrb[51].mxu1  ;;  %v6307_v32 = vsel %vm3020_vm1, %v6257_v26, %v5878_v38 }
 0x4b1   : > { %v14393_v50 = vld [vmem:[#allocation56_spill] sm:$0xff] }
 0x4b2   : > { %6972 = vmatmul.mubr.bf16.gmra.mrb[128].mxu1 %v6373_v3  ;;  %v6123_v51 = vpop.permute.xlu0 %6122  ;;  %v14394_v3 = vld [vmem:[#allocation12_spill] sm:$0xff] }
 0x4b3   : > { %v5956_v62 = vpop.permute.xlu1 %5955  ;;  %6978 = vmatprep.mubr.bf16.mxu1 %v6568_v13  ;;  %v6501_v8 = vsel %vm3020_vm1, %v6452_v27, %v6123_v51  ;;  %v14397_v27 = vld [vmem:[#allocation64_spill] sm:$0xff] }
 0x4b4   : > { %v6376_v25 = vsel %vm3075_vm2, %v6307_v32, %v5956_v62 }
 0x4b6   : > { %v6180_v29 = vpop.permute.xlu0 %6179 }
 0x4b7   : > { %v5712_v12 = vpop.permute.xlu1 %5711  ;;  %v6571_v30 = vsel %vm3075_vm2, %v6501_v8, %v6180_v29  ;;  %v14395_v29 = vld [vmem:[#allocation59_spill] sm:$0xff] }
 0x4b8   : > { %v6260_v56 = vsel %vm2938_vm15, %v13255_v48, %v5712_v12  ;;  %v14396_v12 = vld [vmem:[#allocation62_spill] sm:$0xff] }
 0x4ba   : > { %6979 = vmatmul.mubr.bf16.gmra.mrb[132].mxu1 %v6376_v25  ;;  %v6068_v10 = vpop.permute.xlu0 %6067 }
 0x4bb   : > { %v5880_v35 = vpop.permute.xlu1 %5879  ;;  %6986 = vmatprep.mubr.bf16.mxu1 %v6571_v30  ;;  %v6455_v2 = vsel %vm2938_vm15, %v8182_v37, %v6068_v10  ;;  %v14398_v10 = vld [vmem:[#allocation51_spill] sm:$0xff] }
 0x4bc   : > { %v6309_v58 = vsel %vm3020_vm1, %v6260_v56, %v5880_v35 }
 0x4be   : > { %v6125_v16 = vpop.permute.xlu0 %6124 }
 0x4bf   : > { %v5958_v44 = vpop.permute.xlu1 %5957  ;;  %v6503_v43 = vsel %vm3020_vm1, %v6455_v2, %v6125_v16  ;;  %v14399_v16 = vld [vmem:[#allocation54_spill] sm:$0xff] }
 0x4c0   : > { %v6379_v9 = vsel %vm3075_vm2, %v6309_v58, %v5958_v44 }
 0x4c1   : > { %v6834_v20 = vpop.f32.mrb[52].mxu1 }
 0x4c2   : > { %v6835_v54 = vpop.f32.mrb[53].mxu1  ;;  %6987 = vmatmul.mubr.bf16.gmra.mrb[136].mxu1 %v6379_v9  ;;  %v6182_v31 = vpop.permute.xlu0 %6181  ;;  %v5424_v20 = vld [vmem:[#allocation3 + $0x27c] sm:$0xf] }
 0x4c3   : > { %v5714_v39 = vpop.permute.xlu1 %5713  ;;  %v13584_v4 = vpop.f32.mrb[54].mxu1  ;;  %v6574_v48 = vsel %vm3075_vm2, %v6503_v43, %v6182_v31  ;;  %v8214_v43 = vcombine.low %v13398_v47, %v5424_v20  ;;  %v14401_v54 = vld [vmem:[#allocation44_spill] sm:$0xff] }
 0x4c4   : > { %v6838_v61 = vpop.f32.mrb[55].mxu1  ;;  %6993 = vmatprep.mubr.bf16.mxu1 %v6574_v48  ;;  %v6263_v63 = vsel %vm2938_vm15, %v13303_v57, %v5714_v39  ;;  %v14390_v57 = vld [vmem:[#allocation47_spill] sm:$0xff]  ;;  %v14402_v31 = vld [vmem:[#allocation48_spill] sm:$0xff] }
 0x4c5   : > { %v14403_v39 = vcombine.low %v14401_v54, %v14402_v31 }
 0x4c7   : > { %v5882_v14 = vpop.permute.xlu1 %5881 }
 0x4c8   : > { %v6311_v21 = vsel %vm3020_vm1, %v6263_v63, %v5882_v14 }
 0x4c9   : > { %v13587_v33 = vpop.f32.mrb[56].mxu1 }
 0x4ca   : > { %v6843_v0 = vpop.f32.mrb[57].mxu1 }
 0x4cb   : > { %v5960_v1 = vpop.permute.xlu1 %5959  ;;  %v6844_v11 = vpop.f32.mrb[58].mxu1 }
 0x4cc   : > { %v6845_v60 = vpop.f32.mrb[59].mxu1  ;;  %v6382_v22 = vsel %vm3075_vm2, %v6311_v21, %v5960_v1 }
 0x4cd   : > { %6994 = vmatmul.mubr.bf16.gmra.mrb[140].mxu1 %v6382_v22 }
 0x4ce   : > { %8617 = vmatprep.mubr.msk.bf16.mxu1 %vm2938_vm15, %v14388_v46 }
 0x4d1   : > { %v13595_v40 = vpop.f32.mrb[60].mxu1 }
 0x4d2   : > { %v6850_v28 = vpop.f32.mrb[61].mxu1 }
 0x4d3   : > { %v13597_v38 = vpop.f32.mrb[62].mxu1 }
 0x4d4   : > { %v6853_v5 = vpop.f32.mrb[63].mxu1 }
 0x4d5   : > { %8618 = vmatmul.mubr.msk.bf16.vlgmr.msra.gmra.mrb[144].mxu1 %vm2938_vm15, %v14389_v49 }
 0x4d6   : > { %8621 = vmatprep.mubr.msk.bf16.mxu1 %vm2938_vm15, %v14390_v57 }
 0x4dd   : > { %8622 = vmatmul.mubr.msk.bf16.gmra.mrb[148].mxu1 %vm2938_vm15, %v14391_v34 }
 0x4de   : > { %8625 = vmatprep.mubr.msk.bf16.mxu1 %vm2938_vm15, %v14392_v36 }
 0x4e5   : > { %v6856_v23 = vpop.f32.mrb[64].mxu1  ;;  %8626 = vmatmul.mubr.msk.bf16.gmra.mrb[152].mxu1 %vm2938_vm15, %v14393_v50 }
 0x4e6   : > { %v6857_v42 = vpop.f32.mrb[65].mxu1  ;;  %8629 = vmatprep.mubr.msk.bf16.mxu1 %vm2938_vm15, %v14394_v3 }
 0x4e7   : > { %v13611_v51 = vpop.f32.mrb[66].mxu1 }
 0x4e8   : > { %v6860_v13 = vpop.f32.mrb[67].mxu1 }
 0x4ed   : > { %v13613_v62 = vpop.f32.mrb[68].mxu1  ;;  %8630 = vmatmul.mubr.msk.bf16.gmra.mrb[156].mxu1 %vm2938_vm15, %v14395_v29 }
 0x4ee   : > { %v6865_v26 = vpop.f32.mrb[69].mxu1  ;;  %8633 = vmatprep.mubr.msk.bf16.mxu1 %vm2938_vm15, %v14396_v12 }
 0x4ef   : > { %v6866_v59 = vpop.f32.mrb[70].mxu1 }
 0x4f0   : > { %v6867_v17 = vpop.f32.mrb[71].mxu1 }
 0x4f5   : > { %v13619_v52 = vpop.f32.mrb[72].mxu1  ;;  %8634 = vmatmul.mubr.msk.bf16.gmra.mrb[160].mxu1 %vm2938_vm15, %v14397_v27 }
 0x4f6   : > { %v6872_v32 = vpop.f32.mrb[73].mxu1  ;;  %8637 = vmatprep.mubr.msk.bf16.mxu1 %vm2938_vm15, %v13069_v53 }
 0x4f7   : > { %v13625_v8 = vpop.f32.mrb[74].mxu1 }
 0x4f8   : > { %v6875_v25 = vpop.f32.mrb[75].mxu1 }
 0x4fd   : > { %8638 = vmatmul.mubr.msk.bf16.gmra.mrb[164].mxu1 %vm2938_vm15, %v13188_v41 }
 0x4fe   : > { %8641 = vmatprep.mubr.msk.bf16.mxu1 %vm2938_vm15, %v14398_v10 }
 0x505   : > { %8642 = vmatmul.mubr.msk.bf16.gmra.mrb[168].mxu1 %vm2938_vm15, %v12116_v15  ;;  %v14400_v15 = vld [vmem:[#allocation50_spill] sm:$0xff] }
 0x506   : > { %8645 = vmatprep.mubr.msk.bf16.mxu1 %vm2938_vm15, %v13173_v55 }
 0x509   : > { %v6878_v30 = vpop.f32.mrb[76].mxu1 }
 0x50a   : > { %v6879_v35 = vpop.f32.mrb[77].mxu1 }
 0x50b   : > { %v13635_v56 = vpop.f32.mrb[78].mxu1 }
 0x50c   : > { %v6882_v53 = vpop.f32.mrb[79].mxu1 }
 0x50d   : > { %8646 = vmatmul.mubr.msk.bf16.gmra.mrb[172].mxu1 %vm2938_vm15, %v13241_v24 }
 0x50e   : > { %8649 = vmatprep.mubr.msk.bf16.mxu1 %vm2938_vm15, %v14399_v16 }
 0x511   : > { %v13641_v41 = vpop.f32.mrb[80].mxu1 }
 0x512   : > { %v6887_v37 = vpop.f32.mrb[81].mxu1 }
 0x513   : > { %v6888_v58 = vpop.f32.mrb[82].mxu1 }
 0x514   : > { %v6889_v44 = vpop.f32.mrb[83].mxu1 }
 0x515   : > { %8650 = vmatmul.mubr.msk.bf16.gmra.mrb[176].mxu1 %vm2938_vm15, %v14400_v15 }
 0x516   : > { %8653 = vmatprep.mubr.msk.bf16.mxu1 %vm2938_vm15, %v13373_v6  ;;  %v9047_v6 = vld [vmem:[#allocation3 + $0x280] sm:$0xff]  }
 0x519   : > { %v13647_v55 = vpop.f32.mrb[84].mxu1 }
 0x51a   : > { %v6894_v9 = vpop.f32.mrb[85].mxu1 }
 0x51b   : > { %v13649_v2 = vpop.f32.mrb[86].mxu1 }
 0x51c   : > { %v6897_v24 = vpop.f32.mrb[87].mxu1 }
 0x51d   : > { %8654 = vmatmul.mubr.msk.bf16.gmra.mrb[180].mxu1 %vm2938_vm15, %v13409_v7 }
 0x51e   : > { %8657 = vmatprep.mubr.msk.bf16.mxu1 %vm2938_vm15, %v13422_v19 }
 0x525   : > { %8658 = vmatmul.mubr.msk.bf16.gmra.mrb[184].mxu1 %vm2938_vm15, %v14403_v39 }
 0x526   : > { %8661 = vmatprep.mubr.msk.bf16.mxu1 %vm2938_vm15, %v8214_v43 }
 0x52d   : > { %v6900_v48 = vpop.f32.mrb[88].mxu1  ;;  %8662 = vmatmul.mubr.msk.bf16.gmra.mrb[188].mxu1 %vm2938_vm15, %v9047_v6 }
 0x52e   : > { %v6901_v61 = vpop.f32.mrb[89].mxu1 }
 0x52f   : > { %v13662_v14 = vpop.f32.mrb[90].mxu1 }
 0x530   : > { %v6904_v7 = vpop.f32.mrb[91].mxu1 }
 0x535   : > { %v13664_v63 = vpop.f32.mrb[92].mxu1 }
 0x536   : > { %v6909_v19 = vpop.f32.mrb[93].mxu1 }
 0x537   : > { %v6910_v0 = vpop.f32.mrb[94].mxu1 }
 0x538   : > { %v6911_v47 = vpop.f32.mrb[95].mxu1 }
 0x53e   : > { %v13666_v21 = vpop.f32.mrb[96].mxu1 }
 0x53f   : > { %v6916_v1 = vpop.f32.mrb[97].mxu1 }
 0x540   : > { %v13668_v11 = vpop.f32.mrb[98].mxu1 }
 0x541   : > { %v6919_v60 = vpop.f32.mrb[99].mxu1 }
 0x546   : > { %v6922_v22 = vpop.f32.mrb[100].mxu1 }
 0x547   : > { %v6923_v46 = vpop.f32.mrb[101].mxu1  ;;  %v13701_v22 = vld [vmem:[%s13953_s5] ss:$0 sm:$0xff] }
 0x548   : > { %v13670_v28 = vpop.f32.mrb[102].mxu1  ;;  %v8368_v46 = vld [vmem:[%s9599_s19] sm:$0xff]  }
 0x549   : > { %v6926_v5 = vpop.f32.mrb[103].mxu1 }
 0x555   : > { %v13672_v49 = vpop.f32.mrb[104].mxu1 }
 0x556   : > { %v6931_v57 = vpop.f32.mrb[105].mxu1 }
 0x557   : > { %v6932_v34 = vpop.f32.mrb[106].mxu1 }
 0x558   : > { %v6933_v36 = vpop.f32.mrb[107].mxu1  ;;  %v8431_v34 = vld [vmem:[%s9599_s19 + $0x8] sm:$0xff]  }
 0x559   : > { %v13709_v36 = vld [vmem:[%s13954_s6] ss:$0 sm:$0xff] }
 0x55d   : > { %v13674_v23 = vpop.f32.mrb[108].mxu1 }
 0x55e   : > { %v6938_v50 = vpop.f32.mrb[109].mxu1 }
 0x55f   : > { %v13676_v42 = vpop.f32.mrb[110].mxu1 }
 0x560   : > { %v6941_v3 = vpop.f32.mrb[111].mxu1 }
 0x565   : > { %v6944_v13 = vpop.f32.mrb[112].mxu1 }
 0x566   : > { %v6945_v29 = vpop.f32.mrb[113].mxu1 }
 0x567   : > { %v13678_v26 = vpop.f32.mrb[114].mxu1  ;;  %v8369_v29 = vunpack.c.l.bf16 %v8368_v46 }
 0x568   : > { %v6948_v12 = vpop.f32.mrb[115].mxu1 }
 0x56d   : > { %v13680_v59 = vpop.f32.mrb[116].mxu1 }
 0x56e   : > { %v6953_v17 = vpop.f32.mrb[117].mxu1 }
 0x56f   : > { %v6954_v27 = vpop.f32.mrb[118].mxu1  ;;  %v8373_v17 = vunpack.c.l.bf16 %v8431_v34 }
 0x570   : > { %v6955_v32 = vpop.f32.mrb[119].mxu1 }
 0x575   : > { %v13682_v25 = vpop.f32.mrb[120].mxu1 }
 0x576   : > { %v6960_v10 = vpop.f32.mrb[121].mxu1 }
 0x577   : > { %v13684_v30 = vpop.f32.mrb[122].mxu1  ;;  %v8370_v10 = vunpack.c.h.bf16 %v8368_v46 }
 0x578   : > { %v6963_v35 = vpop.f32.mrb[123].mxu1 }
 0x57d   : > { %v6966_v53 = vpop.f32.mrb[124].mxu1 }
 0x57e   : > { %v6967_v16 = vpop.f32.mrb[125].mxu1 }
 0x57f   : > { %v13686_v37 = vpop.f32.mrb[126].mxu1 }
 0x580   : > { %v6970_v58 = vpop.f32.mrb[127].mxu1 }
 0x581   : > { %v8432_v58 = vld [vmem:[%s9599_s19 + $0x10] sm:$0xff]  }
 0x585   : > { %v13688_v44 = vpop.f32.mrb[128].mxu1 }
 0x586   : > { %v6975_v15 = vpop.f32.mrb[129].mxu1 }
 0x587   : > { %v6976_v9 = vpop.f32.mrb[130].mxu1 }
 0x588   : > { %v6977_v24 = vpop.f32.mrb[131].mxu1 }
 0x58d   : > { %v13690_v20 = vpop.f32.mrb[132].mxu1 }
 0x58e   : > { %v6982_v43 = vpop.f32.mrb[133].mxu1 }
 0x58f   : > { %v13692_v54 = vpop.f32.mrb[134].mxu1 }
 0x590   : > { %v6985_v31 = vpop.f32.mrb[135].mxu1 }
 0x595   : > { %v6988_v39 = vpop.f32.mrb[136].mxu1 }
 0x596   : > { %v6989_v6 = vpop.f32.mrb[137].mxu1 }
 0x597   : > { %v13694_v48 = vpop.f32.mrb[138].mxu1 }
 0x598   : > { %v6992_v61 = vpop.f32.mrb[139].mxu1 }
 0x5a0   : > { %v13696_v7 = vpop.f32.mrb[140].mxu1 }
 0x5a1   : > { %v6997_v19 = vpop.f32.mrb[141].mxu1 }
 0x5a2   : > { %v6998_v0 = vpop.f32.mrb[142].mxu1  ;;  %v8377_v19 = vunpack.c.l.bf16 %v8432_v58 }
 0x5a3   : > { %v6999_v47 = vpop.f32.mrb[143].mxu1 }
 0x5a8   : > { %v8619_v1 = vpop.f32.mrb[144].mxu1 }
 0x5a9   : > { %v7035_v60 = vpop.f32.mrb[145].mxu1 }
 0x5aa   : > { %v7036_v5 = vadd.f32 %v7035_v60, %v13552_v18  ;;  %v8620_v57 = vpop.f32.mrb[146].mxu1 }
 0x5ab   : > { %v7046_v50 = vadd.f32 %v8620_v57, %v13584_v4  ;;  %v7038_v3 = vpop.f32.mrb[147].mxu1 }
 0x5ac   : > { %v7217_v13 = vmul.f32 %v13701_v22, %v7036_v5  ;;  %v7039_v12 = vadd.f32 %v7038_v3, %v13556_v45  ;;  %v8374_v5 = vunpack.c.h.bf16 %v8431_v34 }
 0x5ad   : > { %v7219_v18 = vmul.f32 %v13701_v22, %v7046_v50 }
 0x5ae   : > { %v7256_v27 = vadd.f32 %v13709_v36, %v7217_v13  ;;  %v7218_v32 = vmul.f32 %v13701_v22, %v7039_v12 }
 0x5af   : > { %v7258_v35 = vadd.f32 %v13709_v36, %v7219_v18  ;;  %v8433_v18 = vld [vmem:[%s9599_s19 + $0x18] sm:$0xff]  }
 0x5b0   : > { %v7355_v4 = vadd.f32 %v8369_v29, %v7256_v27  ;;  %v7257_v53 = vadd.f32 %v13709_v36, %v7218_v32  ;;  %v8623_v16 = vpop.f32.mrb[148].mxu1 }
 0x5b1   : > { %v7357_v15 = vadd.f32 %v8373_v17, %v7258_v35  ;;  %v7058_v45 = vadd.f32 %v8623_v16, %v13595_v40  ;;  %v7050_v9 = vpop.f32.mrb[149].mxu1 }
 0x5b2   : > { %v7387_v24 = vmax.f32 %v7355_v4, 0.0  ;;  %v7356_v43 = vadd.f32 %v8370_v10, %v7257_v53  ;;  %v7051_v31 = vadd.f32 %v7050_v9, %v13587_v33  ;;  %v8624_v39 = vpop.f32.mrb[150].mxu1  ;;  %v8378_v33 = vunpack.c.h.bf16 %v8432_v58 }
 0x5b3   : > { %v7389_v6 = vmax.f32 %v7357_v15, 0.0  ;;  %v7221_v61 = vmul.f32 %v13701_v22, %v7058_v45  ;;  %v7061_v0 = vadd.f32 %v8624_v39, %v13597_v38  ;;  %v7053_v47 = vpop.f32.mrb[151].mxu1  ;;  %v8382_v15 = vunpack.c.h.bf16 %v8433_v18 }
 0x5b4   : > { %v8334_v1 = vpack.c.bf16 %v7387_v24, %v7387_v24  ;;  %v7388_v60 = vmax.f32 %v7356_v43, 0.0  ;;  %v7220_v46 = vmul.f32 %v13701_v22, %v7051_v31  ;;  %v8381_v39 = vunpack.c.l.bf16 %v8433_v18  ;;  %v8434_v47 = vld [vmem:[%s9599_s19 + $0x20] sm:$0xff]  }
 0x5b5   : > { %v8336_v40 = vpack.c.bf16 %v7389_v6, %v7389_v6  ;;  %v7260_v57 = vadd.f32 %v13709_v36, %v7221_v61  ;;  %v7222_v50 = vmul.f32 %v13701_v22, %v7061_v0 }
 0x5b6   : > { %7547 = vst.msk [vmem:[%s13730_s15] sm:$0xf] %vm330_vm0, %v8334_v1  ;;  %v8335_v38 = vpack.c.bf16 %v7388_v60, %v7388_v60  ;;  %v7259_v3 = vadd.f32 %v13709_v36, %v7220_v46 }
 0x5b7   : > { %7549 = vst.msk [vmem:[%s13730_s15 + $0x8] sm:$0xf] %vm330_vm0, %v8336_v40  ;;  %v7359_v13 = vadd.f32 %v8377_v19, %v7260_v57  ;;  %v7261_v34 = vadd.f32 %v13709_v36, %v7222_v50 }
 0x5b8   : > { %7548 = vst.msk [vmem:[%s13730_s15 + $0x4] sm:$0xf] %vm330_vm0, %v8335_v38  ;;  %v7358_v29 = vadd.f32 %v8374_v5, %v7259_v3  ;;  %v8627_v12 = vpop.f32.mrb[152].mxu1  ;;  %v8435_v5 = vld [vmem:[%s9599_s19 + $0x28] sm:$0xff]   ;;  %v8385_v3 = vunpack.c.l.bf16 %v8434_v47 }
 0x5b9   : > { %v7391_v17 = vmax.f32 %v7359_v13, 0.0  ;;  %v7360_v27 = vadd.f32 %v8378_v33, %v7261_v34  ;;  %v7073_v32 = vadd.f32 %v8627_v12, %v13613_v62  ;;  %v7065_v10 = vpop.f32.mrb[153].mxu1 }
 0x5ba   : > { %v7390_v35 = vmax.f32 %v7358_v29, 0.0  ;;  %v8628_v4 = vpop.f32.mrb[154].mxu1  ;;  %v8389_v29 = vunpack.c.l.bf16 %v8435_v5 }
 0x5bb   : > { %v8338_v53 = vpack.c.bf16 %v7391_v17, %v7391_v17  ;;  %v7392_v16 = vmax.f32 %v7360_v27, 0.0  ;;  %v7224_v58 = vmul.f32 %v13701_v22, %v7073_v32  ;;  %v7067_v45 = vpop.f32.mrb[155].mxu1  ;;  %v8386_v17 = vunpack.c.h.bf16 %v8434_v47 }
 0x5bc   : > { %v8337_v9 = vpack.c.bf16 %v7390_v35, %v7390_v35  ;;  %v7068_v24 = vadd.f32 %v7067_v45, %v13611_v51 }
 0x5bd   : > { %7551 = vst.msk [vmem:[%s13730_s15 + $0x10] sm:$0xf] %vm330_vm0, %v8338_v53  ;;  %v8339_v43 = vpack.c.bf16 %v7392_v16, %v7392_v16  ;;  %v7263_v62 = vadd.f32 %v13709_v36, %v7224_v58 }
 0x5be   : > { %7550 = vst.msk [vmem:[%s13730_s15 + $0xc] sm:$0xf] %vm330_vm0, %v8337_v9  ;;  %v7223_v31 = vmul.f32 %v13701_v22, %v7068_v24 }
 0x5bf   : > { %7552 = vst.msk [vmem:[%s13730_s15 + $0x14] sm:$0xf] %vm330_vm0, %v8339_v43  ;;  %v7362_v6 = vadd.f32 %v8382_v15, %v7263_v62 }
 0x5c0   : > { %v7262_v61 = vadd.f32 %v13709_v36, %v7223_v31  ;;  %v8631_v19 = vpop.f32.mrb[156].mxu1 }
 0x5c1   : > { %v7394_v0 = vmax.f32 %v7362_v6, 0.0  ;;  %v7079_v51 = vpop.f32.mrb[157].mxu1 }
 0x5c2   : > { %v7361_v1 = vadd.f32 %v8381_v39, %v7262_v61  ;;  %v7080_v60 = vadd.f32 %v7079_v51, %v13619_v52  ;;  %v8632_v46 = vpop.f32.mrb[158].mxu1  ;;  %v8390_v61 = vunpack.c.h.bf16 %v8435_v5 }
 0x5c3   : > { %v8341_v40 = vpack.c.bf16 %v7394_v0, %v7394_v0  ;;  %v7090_v57 = vadd.f32 %v8632_v46, %v13635_v56  ;;  %v7082_v50 = vpop.f32.mrb[159].mxu1 }
 0x5c4   : > { %v7393_v33 = vmax.f32 %v7361_v1, 0.0  ;;  %v7225_v38 = vmul.f32 %v13701_v22, %v7080_v60  ;;  %v7083_v13 = vadd.f32 %v7082_v50, %v13625_v8  ;;  %v8436_v8 = vld [vmem:[%s9599_s19 + $0x30] sm:$0xff]  }
 0x5c5   : > { %7554 = vst.msk [vmem:[%s13730_s15 + $0x1c] sm:$0xf] %vm330_vm0, %v8341_v40  ;;  %v7227_v34 = vmul.f32 %v13701_v22, %v7090_v57  ;;  %v8393_v43 = vunpack.c.l.bf16 %v8436_v8  ;;  %v8394_v51 = vunpack.c.h.bf16 %v8436_v8  ;;  %v8437_v40 = vld [vmem:[%s9599_s19 + $0x38] sm:$0xff]  }
 0x5c6   : > { %v8340_v52 = vpack.c.bf16 %v7393_v33, %v7393_v33  ;;  %v7264_v12 = vadd.f32 %v13709_v36, %v7225_v38  ;;  %v7226_v18 = vmul.f32 %v13701_v22, %v7083_v13 }
 0x5c7   : > { %v7266_v56 = vadd.f32 %v13709_v36, %v7227_v34 }
 0x5c8   : > { %7553 = vst.msk [vmem:[%s13730_s15 + $0x18] sm:$0xf] %vm330_vm0, %v8340_v52  ;;  %v7363_v27 = vadd.f32 %v8385_v3, %v7264_v12  ;;  %v7265_v32 = vadd.f32 %v13709_v36, %v7226_v18  ;;  %v8635_v10 = vpop.f32.mrb[160].mxu1  ;;  %v8398_v12 = vunpack.c.h.bf16 %v8437_v40 }
 0x5c9   : > { %v7365_v35 = vadd.f32 %v8389_v29, %v7266_v56  ;;  %v7102_v4 = vadd.f32 %v8635_v10, %v13647_v55  ;;  %v7094_v53 = vpop.f32.mrb[161].mxu1  ;;  %v8397_v10 = vunpack.c.l.bf16 %v8437_v40 }
 0x5ca   : > { %v7395_v16 = vmax.f32 %v7363_v27, 0.0  ;;  %v7364_v58 = vadd.f32 %v8386_v17, %v7265_v32  ;;  %v7095_v15 = vadd.f32 %v7094_v53, %v13641_v41  ;;  %v8636_v45 = vpop.f32.mrb[162].mxu1 }
 0x5cb   : > { %v7397_v9 = vmax.f32 %v7365_v35, 0.0  ;;  %v7229_v24 = vmul.f32 %v13701_v22, %v7102_v4  ;;  %v7105_v62 = vadd.f32 %v8636_v45, %v13649_v2  ;;  %v7097_v31 = vpop.f32.mrb[163].mxu1 }
 0x5cc   : > { %v8342_v39 = vpack.c.bf16 %v7395_v16, %v7395_v16  ;;  %v7396_v6 = vmax.f32 %v7364_v58, 0.0  ;;  %v7228_v55 = vmul.f32 %v13701_v22, %v7095_v15  ;;  %v8438_v16 = vld [vmem:[%s9599_s19 + $0x40] sm:$0xff]  }
 0x5cd   : > { %v8344_v19 = vpack.c.bf16 %v7397_v9, %v7397_v9  ;;  %v7268_v0 = vadd.f32 %v13709_v36, %v7229_v24  ;;  %v7230_v41 = vmul.f32 %v13701_v22, %v7105_v62  ;;  %v8439_v9 = vld [vmem:[%s9599_s19 + $0x48] sm:$0xff]  }
 0x5ce   : > { %7555 = vst.msk [vmem:[%s13730_s15 + $0x20] sm:$0xf] %vm330_vm0, %v8342_v39  ;;  %v8343_v47 = vpack.c.bf16 %v7396_v6, %v7396_v6  ;;  %v7267_v1 = vadd.f32 %v13709_v36, %v7228_v55  ;;  %v8401_v6 = vunpack.c.l.bf16 %v8438_v16 }
 0x5cf   : > { %7557 = vst.msk [vmem:[%s13730_s15 + $0x28] sm:$0xf] %vm330_vm0, %v8344_v19  ;;  %v7367_v2 = vadd.f32 %v8393_v43, %v7268_v0  ;;  %v7269_v60 = vadd.f32 %v13709_v36, %v7230_v41  ;;  %v8405_v19 = vunpack.c.l.bf16 %v8439_v9 }
 0x5d0   : > { %7556 = vst.msk [vmem:[%s13730_s15 + $0x24] sm:$0xf] %vm330_vm0, %v8343_v47  ;;  %v7366_v46 = vadd.f32 %v8390_v61, %v7267_v1  ;;  %v8639_v5 = vpop.f32.mrb[164].mxu1 }
 0x5d1   : > { %v7399_v57 = vmax.f32 %v7367_v2, 0.0  ;;  %v7368_v50 = vadd.f32 %v8394_v51, %v7269_v60  ;;  %v7117_v33 = vadd.f32 %v8639_v5, %v13664_v63  ;;  %v7109_v38 = vpop.f32.mrb[165].mxu1  ;;  %v8402_v51 = vunpack.c.h.bf16 %v8438_v16 }
 0x5d2   : > { %v7398_v3 = vmax.f32 %v7366_v46, 0.0  ;;  %v8640_v13 = vpop.f32.mrb[166].mxu1 }
 0x5d3   : > { %v8346_v34 = vpack.c.bf16 %v7399_v57, %v7399_v57  ;;  %v7400_v29 = vmax.f32 %v7368_v50, 0.0  ;;  %v7232_v52 = vmul.f32 %v13701_v22, %v7117_v33  ;;  %v7111_v18 = vpop.f32.mrb[167].mxu1 }
 0x5d4   : > { %v8345_v17 = vpack.c.bf16 %v7398_v3, %v7398_v3  ;;  %v7112_v56 = vadd.f32 %v7111_v18, %v13662_v14  ;;  %v8406_v18 = vunpack.c.h.bf16 %v8439_v9 }
 0x5d5   : > { %7559 = vst.msk [vmem:[%s13730_s15 + $0x30] sm:$0xf] %vm330_vm0, %v8346_v34  ;;  %v8347_v27 = vpack.c.bf16 %v7400_v29, %v7400_v29  ;;  %v7271_v63 = vadd.f32 %v13709_v36, %v7232_v52 }
 0x5d6   : > { %7558 = vst.msk [vmem:[%s13730_s15 + $0x2c] sm:$0xf] %vm330_vm0, %v8345_v17  ;;  %v7231_v32 = vmul.f32 %v13701_v22, %v7112_v56 }
 0x5d7   : > { %7560 = vst.msk [vmem:[%s13730_s15 + $0x34] sm:$0xf] %vm330_vm0, %v8347_v27  ;;  %v7370_v8 = vadd.f32 %v8398_v12, %v7271_v63 }
 0x5d8   : > { %v7270_v35 = vadd.f32 %v13709_v36, %v7231_v32  ;;  %v8643_v4 = vpop.f32.mrb[168].mxu1 }
 0x5d9   : > { %v7402_v53 = vmax.f32 %v7370_v8, 0.0  ;;  %v7123_v14 = vpop.f32.mrb[169].mxu1  ;;  %v8441_v4 = vld [vmem:[%s9599_s19 + $0x58] sm:$0xff]  }
 0x5da   : > { %v7369_v58 = vadd.f32 %v8397_v10, %v7270_v35  ;;  %v7124_v15 = vadd.f32 %v7123_v14, %v13666_v21  ;;  %v8644_v45 = vpop.f32.mrb[170].mxu1 }
 0x5db   : > { %v8349_v24 = vpack.c.bf16 %v7402_v53, %v7402_v53  ;;  %v7134_v43 = vadd.f32 %v8644_v45, %v13670_v28  ;;  %v7126_v62 = vpop.f32.mrb[171].mxu1 }
 0x5dc   : > { %v7401_v31 = vmax.f32 %v7369_v58, 0.0  ;;  %v7233_v39 = vmul.f32 %v13701_v22, %v7124_v15  ;;  %v7127_v55 = vadd.f32 %v7126_v62, %v13668_v11  ;;  %v8440_v11 = vld [vmem:[%s9599_s19 + $0x50] sm:$0xff]   ;;  %v8414_v62 = vunpack.c.h.bf16 %v8441_v4 }
 0x5dd   : > { %7562 = vst.msk [vmem:[%s13730_s15 + $0x3c] sm:$0xf] %vm330_vm0, %v8349_v24  ;;  %v7235_v61 = vmul.f32 %v13701_v22, %v7134_v43  ;;  %v8409_v13 = vunpack.c.l.bf16 %v8440_v11  ;;  %v8410_v27 = vunpack.c.h.bf16 %v8440_v11  ;;  %v8443_v11 = vld [vmem:[%s9599_s19 + $0x68] sm:$0xff]  }
 0x5de   : > { %v8348_v21 = vpack.c.bf16 %v7401_v31, %v7401_v31  ;;  %v7272_v0 = vadd.f32 %v13709_v36, %v7233_v39  ;;  %v7234_v41 = vmul.f32 %v13701_v22, %v7127_v55 }
 0x5df   : > { %v7274_v28 = vadd.f32 %v13709_v36, %v7235_v61 }
 0x5e0   : > { %7561 = vst.msk [vmem:[%s13730_s15 + $0x38] sm:$0xf] %vm330_vm0, %v8348_v21  ;;  %v7371_v47 = vadd.f32 %v8401_v6, %v7272_v0  ;;  %v7273_v1 = vadd.f32 %v13709_v36, %v7234_v41  ;;  %v8647_v2 = vpop.f32.mrb[172].mxu1 }
 0x5e1   : > { %v7373_v60 = vadd.f32 %v8405_v19, %v7274_v28  ;;  %v7146_v46 = vadd.f32 %v8647_v2, %v13674_v23  ;;  %v7138_v5 = vpop.f32.mrb[173].mxu1  ;;  %v8413_v19 = vunpack.c.l.bf16 %v8441_v4  ;;  %v8442_v28 = vld [vmem:[%s9599_s19 + $0x60] sm:$0xff]  }
 0x5e2   : > { %v7403_v40 = vmax.f32 %v7371_v47, 0.0  ;;  %v7372_v57 = vadd.f32 %v8402_v51, %v7273_v1  ;;  %v7139_v50 = vadd.f32 %v7138_v5, %v13672_v49  ;;  %v8648_v33 = vpop.f32.mrb[174].mxu1 }
 0x5e3   : > { %v7405_v38 = vmax.f32 %v7373_v60, 0.0  ;;  %v7237_v3 = vmul.f32 %v13701_v22, %v7146_v46  ;;  %v7149_v34 = vadd.f32 %v8648_v33, %v13676_v42  ;;  %v7141_v29 = vpop.f32.mrb[175].mxu1 }
 0x5e4   : > { %v8350_v52 = vpack.c.bf16 %v7403_v40, %v7403_v40  ;;  %v7404_v12 = vmax.f32 %v7372_v57, 0.0  ;;  %v7236_v23 = vmul.f32 %v13701_v22, %v7139_v50  ;;  %v8417_v50 = vunpack.c.l.bf16 %v8442_v28 }
 0x5e5   : > { %v8352_v17 = vpack.c.bf16 %v7405_v38, %v7405_v38  ;;  %v7276_v56 = vadd.f32 %v13709_v36, %v7237_v3  ;;  %v7238_v49 = vmul.f32 %v13701_v22, %v7149_v34  ;;  %v8421_v3 = vunpack.c.l.bf16 %v8443_v11 }
 0x5e6   : > { %7563 = vst.msk [vmem:[%s13730_s15 + $0x40] sm:$0xf] %vm330_vm0, %v8350_v52  ;;  %v8351_v63 = vpack.c.bf16 %v7404_v12, %v7404_v12  ;;  %v7275_v32 = vadd.f32 %v13709_v36, %v7236_v23  ;;  %v8418_v29 = vunpack.c.h.bf16 %v8442_v28 }
 0x5e7   : > { %7565 = vst.msk [vmem:[%s13730_s15 + $0x48] sm:$0xf] %vm330_vm0, %v8352_v17  ;;  %v7375_v42 = vadd.f32 %v8409_v13, %v7276_v56  ;;  %v7277_v10 = vadd.f32 %v13709_v36, %v7238_v49 }
 0x5e8   : > { %7564 = vst.msk [vmem:[%s13730_s15 + $0x44] sm:$0xf] %vm330_vm0, %v8351_v63  ;;  %v7374_v8 = vadd.f32 %v8406_v18, %v7275_v32  ;;  %v8651_v35 = vpop.f32.mrb[176].mxu1 }
 0x5e9   : > { %v7407_v53 = vmax.f32 %v7375_v42, 0.0  ;;  %v7376_v14 = vadd.f32 %v8410_v27, %v7277_v10  ;;  %v7161_v16 = vadd.f32 %v8651_v35, %v13680_v59  ;;  %v7153_v58 = vpop.f32.mrb[177].mxu1 }
 0x5ea   : > { %v7406_v15 = vmax.f32 %v7374_v8, 0.0  ;;  %v8652_v45 = vpop.f32.mrb[178].mxu1 }
 0x5eb   : > { %v8354_v9 = vpack.c.bf16 %v7407_v53, %v7407_v53  ;;  %v7408_v24 = vmax.f32 %v7376_v14, 0.0  ;;  %v7240_v43 = vmul.f32 %v13701_v22, %v7161_v16  ;;  %v7155_v31 = vpop.f32.mrb[179].mxu1  ;;  %v8422_v16 = vunpack.c.h.bf16 %v8443_v11 }
 0x5ec   : > { %v8353_v39 = vpack.c.bf16 %v7406_v15, %v7406_v15  ;;  %v7156_v6 = vadd.f32 %v7155_v31, %v13678_v26 }
 0x5ed   : > { %7567 = vst.msk [vmem:[%s13730_s15 + $0x50] sm:$0xf] %vm330_vm0, %v8354_v9  ;;  %v8355_v55 = vpack.c.bf16 %v7408_v24, %v7408_v24  ;;  %v7279_v59 = vadd.f32 %v13709_v36, %v7240_v43 }
 0x5ee   : > { %7566 = vst.msk [vmem:[%s13730_s15 + $0x4c] sm:$0xf] %vm330_vm0, %v8353_v39  ;;  %v7239_v61 = vmul.f32 %v13701_v22, %v7156_v6  ;;  %v8445_v39 = vld [vmem:[%s9599_s19 + $0x78] sm:$0xff]  }
 0x5ef   : > { %7568 = vst.msk [vmem:[%s13730_s15 + $0x54] sm:$0xf] %vm330_vm0, %v8355_v55  ;;  %v7378_v21 = vadd.f32 %v8414_v62, %v7279_v59 }
 0x5f0   : > { %v7278_v0 = vadd.f32 %v13709_v36, %v7239_v61  ;;  %v8655_v41 = vpop.f32.mrb[180].mxu1 }
 0x5f1   : > { %v7410_v51 = vmax.f32 %v7378_v21, 0.0  ;;  %v7167_v26 = vpop.f32.mrb[181].mxu1 }
 0x5f2   : > { %v7377_v47 = vadd.f32 %v8413_v19, %v7278_v0  ;;  %v7168_v1 = vadd.f32 %v7167_v26, %v13682_v25  ;;  %v8656_v2 = vpop.f32.mrb[182].mxu1  ;;  %v8430_v26 = vunpack.c.h.bf16 %v8445_v39 }
 0x5f3   : > { %v8357_v60 = vpack.c.bf16 %v7410_v51, %v7410_v51  ;;  %v7178_v46 = vadd.f32 %v8656_v2, %v13686_v37  ;;  %v7170_v5 = vpop.f32.mrb[183].mxu1 }
 0x5f4   : > { %v7409_v40 = vmax.f32 %v7377_v47, 0.0  ;;  %v7241_v57 = vmul.f32 %v13701_v22, %v7168_v1  ;;  %v7171_v33 = vadd.f32 %v7170_v5, %v13684_v30  ;;  %v8444_v30 = vld [vmem:[%s9599_s19 + $0x70] sm:$0xff]   ;;  %s8366_s19 = sshll.u32 %s9145_s27, 11  ;;  %s13900_s27 = scalar_lea.sflag [#allocation5], %s283_s8 }
 0x5f5   : > { %7570 = vst.msk [vmem:[%s13730_s15 + $0x5c] sm:$0xf] %vm330_vm0, %v8357_v60  ;;  %v7243_v38 = vmul.f32 %v13701_v22, %v7178_v46  ;;  %v8425_v8 = vunpack.c.l.bf16 %v8444_v30  ;;  %v8426_v45 = vunpack.c.h.bf16 %v8444_v30  ;;  %v8429_v60 = vunpack.c.l.bf16 %v8445_v39  ;;  %s13892_s21 = scalar_lea.hbm %s13955_s7, %s8366_s19 }
 0x5f6   : > { %v8356_v25 = vpack.c.bf16 %v7409_v40, %v7409_v40  ;;  %v7280_v13 = vadd.f32 %v13709_v36, %v7241_v57  ;;  %v7242_v34 = vmul.f32 %v13701_v22, %v7171_v33 }
 0x5f7   : > { %v7282_v37 = vadd.f32 %v13709_v36, %v7243_v38 }
 0x5f8   : > { %7569 = vst.msk [vmem:[%s13730_s15 + $0x58] sm:$0xf] %vm330_vm0, %v8356_v25  ;;  %v7379_v52 = vadd.f32 %v8417_v50, %v7280_v13  ;;  %v7281_v12 = vadd.f32 %v13709_v36, %v7242_v34  ;;  %v8659_v23 = vpop.f32.mrb[184].mxu1 }
 0x5f9   : > { %v7381_v18 = vadd.f32 %v8421_v3, %v7282_v37  ;;  %v7190_v17 = vadd.f32 %v8659_v23, %v13690_v20  ;;  %v7182_v56 = vpop.f32.mrb[185].mxu1 }
 0x5fa   : > { %v7411_v49 = vmax.f32 %v7379_v52, 0.0  ;;  %v7380_v27 = vadd.f32 %v8418_v29, %v7281_v12  ;;  %v7183_v63 = vadd.f32 %v7182_v56, %v13688_v44  ;;  %v8660_v32 = vpop.f32.mrb[186].mxu1 }
 0x5fb   : > { %v7413_v42 = vmax.f32 %v7381_v18, 0.0  ;;  %v7245_v10 = vmul.f32 %v13701_v22, %v7190_v17  ;;  %v7193_v35 = vadd.f32 %v8660_v32, %v13692_v54  ;;  %v7185_v4 = vpop.f32.mrb[187].mxu1 }
 0x5fc   : > { %v8358_v53 = vpack.c.bf16 %v7411_v49, %v7411_v49  ;;  %v7412_v14 = vmax.f32 %v7380_v27, 0.0  ;;  %v7244_v20 = vmul.f32 %v13701_v22, %v7183_v63 }
 0x5fd   : > { %v8360_v58 = vpack.c.bf16 %v7413_v42, %v7413_v42  ;;  %v7284_v15 = vadd.f32 %v13709_v36, %v7245_v10  ;;  %v7246_v44 = vmul.f32 %v13701_v22, %v7193_v35 }
 0x5fe   : > { %7571 = vst.msk [vmem:[%s13730_s15 + $0x60] sm:$0xf] %vm330_vm0, %v8358_v53  ;;  %v8359_v9 = vpack.c.bf16 %v7412_v14, %v7412_v14  ;;  %v7283_v24 = vadd.f32 %v13709_v36, %v7244_v20 }
 0x5ff   : > { %7573 = vst.msk [vmem:[%s13730_s15 + $0x68] sm:$0xf] %vm330_vm0, %v8360_v58  ;;  %v7383_v54 = vadd.f32 %v8425_v8, %v7284_v15  ;;  %v7285_v43 = vadd.f32 %v13709_v36, %v7246_v44 }
 0x600   : > { %7572 = vst.msk [vmem:[%s13730_s15 + $0x64] sm:$0xf] %vm330_vm0, %v8359_v9  ;;  %v7382_v62 = vadd.f32 %v8422_v16, %v7283_v24  ;;  %v8663_v31 = vpop.f32.mrb[188].mxu1 }
 0x601   : > { %v7415_v6 = vmax.f32 %v7383_v54, 0.0  ;;  %v7384_v55 = vadd.f32 %v8426_v45, %v7285_v43  ;;  %v7205_v59 = vadd.f32 %v8663_v31, %v13696_v7  ;;  %v7197_v61 = vpop.f32.mrb[189].mxu1 }
 0x602   : > { %v7414_v19 = vmax.f32 %v7382_v62, 0.0  ;;  %v8664_v21 = vpop.f32.mrb[190].mxu1 }
 0x603   : > { %v8362_v0 = vpack.c.bf16 %v7415_v6, %v7415_v6  ;;  %v7416_v41 = vmax.f32 %v7384_v55, 0.0  ;;  %v7248_v51 = vmul.f32 %v13701_v22, %v7205_v59  ;;  %v7199_v28 = vpop.f32.mrb[191].mxu1 }
 0x604   : > { %v8361_v47 = vpack.c.bf16 %v7414_v19, %v7414_v19  ;;  %v7200_v1 = vadd.f32 %v7199_v28, %v13694_v48 }
 0x605   : > { %7575 = vst.msk [vmem:[%s13730_s15 + $0x70] sm:$0xf] %vm330_vm0, %v8362_v0  ;;  %v8363_v2 = vpack.c.bf16 %v7416_v41, %v7416_v41  ;;  %v7287_v7 = vadd.f32 %v13709_v36, %v7248_v51 }
 0x606   : > { %7574 = vst.msk [vmem:[%s13730_s15 + $0x6c] sm:$0xf] %vm330_vm0, %v8361_v47  ;;  %v7247_v11 = vmul.f32 %v13701_v22, %v7200_v1 }
 0x607   : > { %7576 = vst.msk [vmem:[%s13730_s15 + $0x74] sm:$0xf] %vm330_vm0, %v8363_v2  ;;  %v7386_v46 = vadd.f32 %v8430_v26, %v7287_v7 }
 0x608   : > { %v7286_v5 = vadd.f32 %v13709_v36, %v7247_v11 }
 0x609   : > { %v7418_v48 = vmax.f32 %v7386_v46, 0.0 }
 0x60a   : > { %v7385_v40 = vadd.f32 %v8429_v60, %v7286_v5 }
 0x60b   : > { %v8365_v57 = vpack.c.bf16 %v7418_v48, %v7418_v48 }
 0x60c   : > { %v7417_v50 = vmax.f32 %v7385_v40, 0.0 }
 0x60d   : > { %7578 = vst.msk [vmem:[%s13730_s15 + $0x7c] sm:$0xf] %vm330_vm0, %v8365_v57 }
 0x60e   : > { %v8364_v22 = vpack.c.bf16 %v7417_v50, %v7417_v50 }
 0x610   : > { %7577 = vst.msk [vmem:[%s13730_s15 + $0x78] sm:$0xf] %vm330_vm0, %v8364_v22 }
 0x611   : > { %9088 = shalt.err (!%p9085_p5)
}
 0x612   : > { %s9089_s8 = scalar_lea.hbm %s13892_s21, 2048  ;;  %s9093_s19 = scalar_lea.hbm %s13955_s7, 4096 }
 0x613   : > { %p9090_p6 = scmp.ne.s32.totalorder %s13892_s21, %s9089_s8  ;;  %p9094_p10 = scmp.lt.u32.totalorder %s13892_s21, %s13955_s7 }
 0x614   : > { %p9095_p11 = scmp.lt.u32.totalorder %s9093_s19, %s9089_s8  ;;  %p9097_p13 = scmp.lt.u32.totalorder %s9089_s8, %s13892_s21 }
 0x615   : > { %p9091_p7 = pnand %p9090_p6, %p9243_p4 }
 0x616   : > { %p9096_p12 = por %p9095_p11, %p9094_p10 }
 0x617   : > { %p9092_p9 = pneg %p9091_p7 }
 0x618   : > { %p9098_p0 = por %p9097_p13, %p9096_p12 }
 0x61a   : > { %p9099_p1 = pnand %p9098_p0, %p9092_p9 }
 0x61c   : > { %9102 = shalt.err (!%p9099_p1)
}
 0x61d   : > { %s9162_s10 = smov 4  }
 0x61e   : > { %8745 = dma.vmem_to_hbm [thread:$0]  (%p9243_p4), %s13894_s17, 2048, %s13892_s21, %s13900_s27, %s9157_s16, %s9157_s16, %s9162_s10  }
 0x61f PF: > { %p8751_p2 = scmp.ge.s32.totalorder %s9153_s29, 2  ;;  %s7611_s22 = sand.u32 1, %s9133_s24  }
 0x620   : > { %s7612_s23 = scalar_lea.sflag [#allocation5], %s7611_s22 }
 0x621   : > { %p8748_p3 = pnand %p8751_p2, %p9250_p8 }
 0x623   : > { %9128 = dma.done.wait (!%p8748_p3), %s7612_s23, 2048  }
 0x624   : > { %9130 = vsyncadd (!%p8748_p3), %s7612_s23, 4294965248  ;;  %s20_s29 = sadd.s32 1, %s9153_s29   ;;  %s14404_s24 = smov %s9137_s25 }
 0x625   : > { %p17_p5 = scmp.ge.s32.totalorder %s20_s29, 4   ;;  %s14405_s25 = smov %s9141_s26 }
 0x626   : > { %s14406_s26 = smov %s9256_s14  ;;  %s14407_s27 = smov %s9149_s28 }
 0x627   : > { %s14408_s28 = smov %s14410_s9  ;;  %19 = sbr.rel (!%p17_p5) target bundleno = 4 (0x4), region = 110 }
 0x62e   :  { %7617 = vsyncpa [#allocation5], 1 }
 0x62f   :  { %7619 = vsyncpa [#allocation5 + $0x1], 1 }

</bundles_post_ra>
